<compile_context>
chip_gen: v7x
topology: tpu7x:2x2x1
jax: 0.10.0
libtpu: 0.0.40
codegen_flags: <defaults>
</compile_context>

<pallas_src>
import functools

import jax
import jax.numpy as jnp
from jax.experimental import pallas as pl
from jax.experimental.pallas import tpu as pltpu

NUM_CLASSES = 400   # slow_r50 Kinetics-400 head
NC_PAD = 512        # logits padded to a lane-dense multiple of 128
C_STEM = 64         # stem / block output channels (logical)
C_MID = 16          # bottleneck mid channels (logical)
CP = 128            # padded channel width (lane-dense storage)


# -----------------------------------------------------------------------------
# Kernel A: stem conv (matmul) + shift + ReLU, with fused 1x1 conv epilogue.
# -----------------------------------------------------------------------------
def _stem_y1_kernel(x_ref, ws_ref, ss_ref, w1_ref, s1_ref, feat_ref, y1_ref):
    # feat = relu(x @ w_stem + shift_stem); y1 = relu(feat @ w1 + shift1)
    feat = jnp.dot(x_ref[...], ws_ref[...], preferred_element_type=jnp.float32)
    feat = jnp.maximum(feat + ss_ref[...], 0.0)                 # f32 epilogue
    feat_bf = feat.astype(jnp.bfloat16)                         # single cast, reused
    feat_ref[...] = feat_bf
    y1 = jnp.dot(feat_bf, w1_ref[...], preferred_element_type=jnp.float32)
    y1_ref[...] = jnp.maximum(y1 + s1_ref[...], 0.0).astype(y1_ref.dtype)


def stem_y1(patches, w_stem, s_stem, w1, s1, *, tm):
    """patches:(V,M,K) bf16 -> (feat, y1), each (V,M,CP) bf16."""
    V, M, K = patches.shape
    return pl.pallas_call(
        _stem_y1_kernel,
        out_shape=(jax.ShapeDtypeStruct((V, M, CP), jnp.bfloat16),
                   jax.ShapeDtypeStruct((V, M, CP), jnp.bfloat16)),
        grid_spec=pltpu.PrefetchScalarGridSpec(
            num_scalar_prefetch=0,
            grid=(V, M // tm),
            in_specs=[
                pl.BlockSpec((None, tm, K), lambda v, i: (v, i, 0)),
                pl.BlockSpec((None, K, CP), lambda v, i: (v, 0, 0)),
                pl.BlockSpec((None, 1, CP), lambda v, i: (v, 0, 0)),
                pl.BlockSpec((None, CP, CP), lambda v, i: (v, 0, 0)),
                pl.BlockSpec((None, 1, CP), lambda v, i: (v, 0, 0)),
            ],
            out_specs=[
                pl.BlockSpec((None, tm, CP), lambda v, i: (v, i, 0)),
                pl.BlockSpec((None, tm, CP), lambda v, i: (v, i, 0)),
            ],
        ),
        compiler_params=pltpu.CompilerParams(
            dimension_semantics=("parallel", "parallel")),
    )(patches, w_stem, s_stem, w1, s1)


# -----------------------------------------------------------------------------
# Kernel B: 3x3 conv + 1x1 conv + residual add+ReLU + global-avg-pool + head.
# -----------------------------------------------------------------------------
def _res_pool_head_kernel(p2_ref, feat_ref, w2_ref, s2_ref, w3_ref, s3_ref,
                          wh_ref, bh_ref, o_ref, acc_ref, *, inv_s, nb):
    b = pl.program_id(1)
    j = pl.program_id(2)

    @pl.when(j == 0)
    def _():
        acc_ref[...] = jnp.zeros_like(acc_ref)

    # 3x3 conv (im2col matmul) + folded-BN shift + ReLU
    y2 = jnp.dot(p2_ref[...], w2_ref[...], preferred_element_type=jnp.float32)
    y2 = jnp.maximum(y2 + s2_ref[...], 0.0)
    # 1x1 conv + shift, then residual add + ReLU (fused, f32 epilogue)
    y3 = jnp.dot(y2.astype(jnp.bfloat16), w3_ref[...],
                 preferred_element_type=jnp.float32) + s3_ref[...]
    res = jnp.maximum(y3 + feat_ref[...].astype(jnp.float32), 0.0)   # (tm, CP)
    # global-average-pool partial sum for this row chunk (XLU sublane reduce)
    acc_ref[...] += jnp.sum(res, axis=0, keepdims=True)              # (1, CP)

    @pl.when(j == pl.num_programs(2) - 1)
    def _():
        pooled = acc_ref[...] * inv_s                                # (1, CP)
        logits = jnp.dot(pooled.astype(jnp.bfloat16), wh_ref[...],
                         preferred_element_type=jnp.float32) + bh_ref[...]
        # Write row `b` of the resident (nb, NC_PAD) output block with a
        # full-block lane-dense select (avoids dynamic sublane stores).
        row_ids = jax.lax.broadcasted_iota(jnp.int32, (nb, NC_PAD), 0)
        o_ref[...] = jnp.where(row_ids == b,
                               jnp.broadcast_to(logits, (nb, NC_PAD)),
                               o_ref[...])


def res_pool_head(p2, feat, w2, s2, w3, s3, wh, bh, *, nviews, tm):
    """p2:(V*B,S,K2), feat:(V*B,S,CP) bf16; weights stacked per view -> (V,B,NC_PAD) f32."""
    VB, S, K2 = p2.shape
    B = VB // nviews
    kernel = functools.partial(_res_pool_head_kernel, inv_s=1.0 / S, nb=B)
    return pl.pallas_call(
        kernel,
        out_shape=jax.ShapeDtypeStruct((nviews, B, NC_PAD), jnp.float32),
        grid_spec=pltpu.PrefetchScalarGridSpec(
            num_scalar_prefetch=0,
            grid=(nviews, B, S // tm),
            in_specs=[
                pl.BlockSpec((None, tm, K2), lambda v, b, j: (v * B + b, j, 0)),
                pl.BlockSpec((None, tm, CP), lambda v, b, j: (v * B + b, j, 0)),
                pl.BlockSpec((None, K2, CP), lambda v, b, j: (v, 0, 0)),
                pl.BlockSpec((None, 1, CP), lambda v, b, j: (v, 0, 0)),
                pl.BlockSpec((None, CP, CP), lambda v, b, j: (v, 0, 0)),
                pl.BlockSpec((None, 1, CP), lambda v, b, j: (v, 0, 0)),
                pl.BlockSpec((None, CP, NC_PAD), lambda v, b, j: (v, 0, 0)),
                pl.BlockSpec((None, 1, NC_PAD), lambda v, b, j: (v, 0, 0)),
            ],
            out_specs=pl.BlockSpec((None, B, NC_PAD), lambda v, b, j: (v, 0, 0)),
            scratch_shapes=[pltpu.VMEM((1, CP), jnp.float32)],
        ),
        # Tiles are a few MiB double-buffered, far under default scoped VMEM on
        # v5e/v6e/v7x; no explicit vmem_limit_bytes needed at these shapes.
        compiler_params=pltpu.CompilerParams(
            dimension_semantics=("parallel", "arbitrary", "arbitrary")),
    )(p2, feat, w2, s2, w3, s3, wh, bh)


# -----------------------------------------------------------------------------
# Plain-JAX glue: im2col patch extraction (static slices only, bf16).
# -----------------------------------------------------------------------------
def im2col_2d(x, k, stride, pad):
    """x: (N, H, W, C) -> patches (N, Ho, Wo, k*k*C) for a kxk conv."""
    n, h, w, c = x.shape
    xp = jnp.pad(x, ((0, 0), (pad, pad), (pad, pad), (0, 0)))
    ho = (h + 2 * pad - k) // stride + 1
    wo = (w + 2 * pad - k) // stride + 1
    cols = []
    for dh in range(k):
        for dw in range(k):
            cols.append(xp[:, dh:dh + stride * (ho - 1) + 1:stride,
                           dw:dw + stride * (wo - 1) + 1:stride, :])
    return jnp.concatenate(cols, axis=-1), ho, wo


def _pick_tm(m, cap=1024):
    # Biggest tile that fits: per-step pipeline overhead (~0.35 us) dominates at
    # these shapes, and 1024-row tiles stay well within scoped VMEM.
    for t in (1024, 512, 256, 128, 64, 32, 16, 8):
        if t <= cap and m % t == 0:
            return t
    # TODO(synk): ragged row counts would need padded M + masked pooling.
    raise ValueError(f"row count {m} must be a multiple of 8")


# -----------------------------------------------------------------------------
# Synthetic slow_r50-style backbone parameters (deterministic init).
# -----------------------------------------------------------------------------
def init_backbone_raw(key):
    ks = jax.random.split(key, 14)
    nrm = lambda k, shape, s=0.05: s * jax.random.normal(k, shape, jnp.float32)
    bn_scale = lambda k, c: 1.0 + 0.01 * jax.random.normal(k, (c,), jnp.float32)
    bn_shift = lambda k, c: 0.01 * jax.random.normal(k, (c,), jnp.float32)
    return {
        # stem: Conv3d(3->64, kernel (1,7,7), stride (1,2,2), pad (0,3,3)) + BN + ReLU
        "w_stem": nrm(ks[0], (7 * 7 * 3, C_STEM)),
        "scale_stem": bn_scale(ks[1], C_STEM), "shift_stem": bn_shift(ks[2], C_STEM),
        # bottleneck block: 1x1x1 -> 1x3x3 -> 1x1x1 (+ identity), BN folded
        "w1": nrm(ks[3], (C_STEM, C_MID)),
        "scale1": bn_scale(ks[4], C_MID), "shift1": bn_shift(ks[5], C_MID),
        "w2": nrm(ks[6], (3 * 3 * C_MID, C_MID)),
        "scale2": bn_scale(ks[7], C_MID), "shift2": bn_shift(ks[8], C_MID),
        "w3": nrm(ks[9], (C_MID, C_STEM)),
        "scale3": bn_scale(ks[10], C_STEM), "shift3": bn_shift(ks[11], C_STEM),
        # head: global avg pool + Linear(64, 400)
        "w_head": nrm(ks[12], (C_STEM, NUM_CLASSES)),
        "b_head": nrm(ks[13], (NUM_CLASSES,), 0.01),
    }


def _fold_pad(w, scale, shift, k_pad, n_pad):
    """Fold eval-mode BN scale into weight columns; zero-pad to lane-dense shapes."""
    wf = w * scale[None, :]
    wf = jnp.pad(wf, ((0, k_pad - w.shape[0]), (0, n_pad - w.shape[1])))
    sh = jnp.pad(shift, (0, n_pad - shift.shape[0])).reshape(1, n_pad)
    return wf.astype(jnp.bfloat16), sh.astype(jnp.float32)


def prepare_view_params(raw):
    w_stem, s_stem = _fold_pad(raw["w_stem"], raw["scale_stem"], raw["shift_stem"], 7 * 7 * 3, CP)
    w1, s1 = _fold_pad(raw["w1"], raw["scale1"], raw["shift1"], CP, CP)
    w2, s2 = _fold_pad(raw["w2"], raw["scale2"], raw["shift2"], 3 * 3 * C_MID, CP)
    w3, s3 = _fold_pad(raw["w3"], raw["scale3"], raw["shift3"], CP, CP)
    wh = jnp.pad(raw["w_head"],
                 ((0, CP - C_STEM), (0, NC_PAD - NUM_CLASSES))).astype(jnp.bfloat16)
    bh = jnp.pad(raw["b_head"], (0, NC_PAD - NUM_CLASSES)).reshape(1, NC_PAD).astype(jnp.float32)
    return dict(w_stem=w_stem, s_stem=s_stem, w1=w1, s1=s1, w2=w2, s2=s2,
                w3=w3, s3=s3, wh=wh, bh=bh)


def stack_view_params(views):
    return jax.tree_util.tree_map(lambda *xs: jnp.stack(xs, axis=0), *views)


# -----------------------------------------------------------------------------
# Multi-view forward: all 4 backbones through the same two pallas_calls.
# -----------------------------------------------------------------------------
def multiview_forward(params, x):
    """x: (4, B, 3, T, H, W) float -> logits (4, B, NUM_CLASSES) f32."""
    V, B, C, T, H, W = x.shape
    xv = jnp.transpose(x, (0, 1, 3, 4, 5, 2)).astype(jnp.bfloat16)  # (V,B,T,H,W,3)

    # ---- stem 7x7 stride-2 conv (temporal size 1 -> per-frame 2D conv).
    # TODO(synk): at real slow_r50 resolution the 49x im2col expansion should
    # move in-kernel (tap-reduction grid axis / manual DMA); negligible here.
    x2d = xv.reshape(V * B * T, H, W, C)
    patches, ho, wo = im2col_2d(x2d, k=7, stride=2, pad=3)
    Mv = B * T * ho * wo
    patches = patches.reshape(V, Mv, 7 * 7 * C)

    feat, y1 = stem_y1(patches, params["w_stem"], params["s_stem"],
                       params["w1"], params["s1"], tm=_pick_tm(Mv))

    # ---- 3x3 conv patches on the C_MID live channels of y1 (padding lanes are 0).
    # TODO(synk): the [:C_MID] slice + 9-way concat is narrow-lane XLA glue; an
    # in-kernel halo/roll formulation would avoid it but is overkill here.
    y1_sp = y1[..., :C_MID].reshape(V * B * T, ho, wo, C_MID)
    p2, _, _ = im2col_2d(y1_sp, k=3, stride=1, pad=1)
    S = T * ho * wo
    p2 = p2.reshape(V * B, S, 3 * 3 * C_MID)
    featb = feat.reshape(V * B, S, CP)

    logits = res_pool_head(p2, featb, params["w2"], params["s2"],
                           params["w3"], params["s3"],
                           params["wh"], params["bh"],
                           nviews=V, tm=_pick_tm(S))
    return logits[..., :NUM_CLASSES]


# -----------------------------------------------------------------------------
# BYOLMultiView
# -----------------------------------------------------------------------------
class BYOLMultiViewPallas:
    def __init__(self, input_dims=2048, output_dims=256, seed=0):
        del input_dims, output_dims  # only used by self.loss, unused in forward()
        ks = jax.random.split(jax.random.PRNGKey(seed), 4)
        # TODO(synk): multi1/2/3 are pretrained slow_r50 checkpoints in PyTorch;
        # no checkpoint load here -> deterministic per-branch random init.
        views = [prepare_view_params(init_backbone_raw(k)) for k in ks]
        self.params = stack_view_params(views)
        self._fwd = jax.jit(multiview_forward)

    def forward(self, s, m1, m2, m3):
        x = jnp.stack([s, m1, m2, m3], axis=0)        # (4, B, 3, T, H, W)
        logits = self._fwd(self.params, x)            # (4, B, 400)
        return tuple(logits[i] for i in range(4))


if __name__ == "__main__":
    # Small shapes consistent with slow_r50 video input (B, 3, T, H, W).
    B, T, H, W = 2, 4, 32, 32
    keys = jax.random.split(jax.random.PRNGKey(0), 4)
    s = jax.random.normal(keys[0], (B, 3, T, H, W), jnp.float32)
    m1 = jax.random.normal(keys[1], (B, 3, T, H, W), jnp.float32)
    m2 = jax.random.normal(keys[2], (B, 3, T, H, W), jnp.float32)
    m3 = jax.random.normal(keys[3], (B, 3, T, H, W), jnp.float32)

    model = BYOLMultiViewPallas(input_dims=2048, output_dims=256, seed=0)
    outs = model.forward(s, m1, m2, m3)
    outs = jax.block_until_ready(outs)

    assert len(outs) == 4
    for o in outs:
        assert o.shape == (B, NUM_CLASSES), o.shape
        assert o.dtype == jnp.float32
        assert bool(jnp.all(jnp.isfinite(o)))
    print("KERNEL_OK")
</pallas_src>

<mosaic_0001>
module attributes {stable_mosaic.version = 11 : i64} {
  func.func @_stem_y1_kernel(%arg0: i32, %arg1: i32, %arg2: memref<1x1024x147xbf16, #tpu.memory_space<vmem>>, %arg3: memref<1x147x128xbf16, #tpu.memory_space<vmem>>, %arg4: memref<1x1x128xf32, #tpu.memory_space<vmem>>, %arg5: memref<1x128x128xbf16, #tpu.memory_space<vmem>>, %arg6: memref<1x1x128xf32, #tpu.memory_space<vmem>>, %arg7: memref<1x1024x128xbf16, #tpu.memory_space<vmem>>, %arg8: memref<1x1024x128xbf16, #tpu.memory_space<vmem>>) attributes {dimension_semantics = [#tpu.dimension_semantics<parallel>, #tpu.dimension_semantics<parallel>], iteration_bounds = array<i64: 4, 2>, scalar_prefetch = 0 : i64, scratch_operands = 0 : i64, tpu.core_type = #tpu.core_type<tc>, window_params = [{transform_indices = @transform_0, window_bounds = array<i64: 1, 1024, 147>}, {transform_indices = @transform_1, window_bounds = array<i64: 1, 147, 128>}, {transform_indices = @transform_2, window_bounds = array<i64: 1, 1, 128>}, {transform_indices = @transform_3, window_bounds = array<i64: 1, 128, 128>}, {transform_indices = @transform_4, window_bounds = array<i64: 1, 1, 128>}, {transform_indices = @transform_5, window_bounds = array<i64: 1, 1024, 128>}, {transform_indices = @transform_6, window_bounds = array<i64: 1, 1024, 128>}]} {
    %c0 = arith.constant 0 : index
    %c0_0 = arith.constant 0 : index
    %c0_1 = arith.constant 0 : index
    %0 = vector.load %arg2[%c0, %c0_0, %c0_1] : memref<1x1024x147xbf16, #tpu.memory_space<vmem>>, vector<1x1024x147xbf16>
    %1 = vector.shape_cast %0 : vector<1x1024x147xbf16> to vector<1024x147xbf16>
    %c0_2 = arith.constant 0 : index
    %c0_3 = arith.constant 0 : index
    %c0_4 = arith.constant 0 : index
    %2 = vector.load %arg3[%c0_2, %c0_3, %c0_4] : memref<1x147x128xbf16, #tpu.memory_space<vmem>>, vector<1x147x128xbf16>
    %3 = vector.shape_cast %2 : vector<1x147x128xbf16> to vector<147x128xbf16>
    %cst = arith.constant dense<0.000000e+00> : vector<1024x128xf32>
    %4 = tpu.matmul %1, %3, %cst {dimension_numbers = #tpu.dot_dimension_numbers<[1], [0], [0], [1], [0, 0, 1, 1], [], []>} : vector<1024x147xbf16>, vector<147x128xbf16>, vector<1024x128xf32> -> vector<1024x128xf32>
    %c0_5 = arith.constant 0 : index
    %c0_6 = arith.constant 0 : index
    %c0_7 = arith.constant 0 : index
    %5 = vector.load %arg4[%c0_5, %c0_6, %c0_7] : memref<1x1x128xf32, #tpu.memory_space<vmem>>, vector<1x1x128xf32>
    %6 = vector.shape_cast %5 : vector<1x1x128xf32> to vector<1x128xf32>
    %7 = vector.broadcast %6 : vector<1x128xf32> to vector<1024x128xf32>
    %8 = arith.addf %4, %7 : vector<1024x128xf32>
    %cst_8 = arith.constant 0.000000e+00 : f32
    %9 = vector.broadcast %cst_8 : f32 to vector<1024x128xf32>
    %10 = arith.maximumf %8, %9 : vector<1024x128xf32>
    %11 = arith.truncf %10 : vector<1024x128xf32> to vector<1024x128xbf16>
    %c0_9 = arith.constant 0 : index
    %c0_10 = arith.constant 0 : index
    %c0_11 = arith.constant 0 : index
    %12 = vector.load %arg7[%c0_9, %c0_10, %c0_11] : memref<1x1024x128xbf16, #tpu.memory_space<vmem>>, vector<1x1024x128xbf16>
    %13 = vector.shape_cast %12 : vector<1x1024x128xbf16> to vector<1024x128xbf16>
    %14 = vector.shape_cast %11 : vector<1024x128xbf16> to vector<1x1024x128xbf16>
    tpu.vector_store %arg7[%c0_9, %c0_10, %c0_11], %14 {strides = array<i32>} : memref<1x1024x128xbf16, #tpu.memory_space<vmem>>, vector<1x1024x128xbf16>,
    %c0_12 = arith.constant 0 : index
    %c0_13 = arith.constant 0 : index
    %c0_14 = arith.constant 0 : index
    %15 = vector.load %arg5[%c0_12, %c0_13, %c0_14] : memref<1x128x128xbf16, #tpu.memory_space<vmem>>, vector<1x128x128xbf16>
    %16 = vector.shape_cast %15 : vector<1x128x128xbf16> to vector<128x128xbf16>
    %cst_15 = arith.constant dense<0.000000e+00> : vector<1024x128xf32>
    %17 = tpu.matmul %11, %16, %cst_15 {dimension_numbers = #tpu.dot_dimension_numbers<[1], [0], [0], [1], [0, 0, 1, 1], [], []>} : vector<1024x128xbf16>, vector<128x128xbf16>, vector<1024x128xf32> -> vector<1024x128xf32>
    %c0_16 = arith.constant 0 : index
    %c0_17 = arith.constant 0 : index
    %c0_18 = arith.constant 0 : index
    %18 = vector.load %arg6[%c0_16, %c0_17, %c0_18] : memref<1x1x128xf32, #tpu.memory_space<vmem>>, vector<1x1x128xf32>
    %19 = vector.shape_cast %18 : vector<1x1x128xf32> to vector<1x128xf32>
    %20 = vector.broadcast %19 : vector<1x128xf32> to vector<1024x128xf32>
    %21 = arith.addf %17, %20 : vector<1024x128xf32>
    %cst_19 = arith.constant 0.000000e+00 : f32
    %22 = vector.broadcast %cst_19 : f32 to vector<1024x128xf32>
    %23 = arith.maximumf %21, %22 : vector<1024x128xf32>
    %24 = arith.truncf %23 : vector<1024x128xf32> to vector<1024x128xbf16>
    %c0_20 = arith.constant 0 : index
    %c0_21 = arith.constant 0 : index
    %c0_22 = arith.constant 0 : index
    %25 = vector.load %arg8[%c0_20, %c0_21, %c0_22] : memref<1x1024x128xbf16, #tpu.memory_space<vmem>>, vector<1x1024x128xbf16>
    %26 = vector.shape_cast %25 : vector<1x1024x128xbf16> to vector<1024x128xbf16>
    %27 = vector.shape_cast %24 : vector<1024x128xbf16> to vector<1x1024x128xbf16>
    tpu.vector_store %arg8[%c0_20, %c0_21, %c0_22], %27 {strides = array<i32>} : memref<1x1024x128xbf16, #tpu.memory_space<vmem>>, vector<1x1024x128xbf16>,
    return
  }
  func.func @transform_0(%arg0: i32, %arg1: i32) -> (i32, i32, i32) {
    %c0_i32 = arith.constant 0 : i32
    %c0_i32_0 = arith.constant 0 : i32
    return %arg0, %arg1, %c0_i32 : i32, i32, i32
  }
  func.func @transform_1(%arg0: i32, %arg1: i32) -> (i32, i32, i32) {
    %c0_i32 = arith.constant 0 : i32
    %c0_i32_0 = arith.constant 0 : i32
    %c0_i32_1 = arith.constant 0 : i32
    return %arg0, %c0_i32, %c0_i32_0 : i32, i32, i32
  }
  func.func @transform_2(%arg0: i32, %arg1: i32) -> (i32, i32, i32) {
    %c0_i32 = arith.constant 0 : i32
    %c0_i32_0 = arith.constant 0 : i32
    %c0_i32_1 = arith.constant 0 : i32
    return %arg0, %c0_i32, %c0_i32_0 : i32, i32, i32
  }
  func.func @transform_3(%arg0: i32, %arg1: i32) -> (i32, i32, i32) {
    %c0_i32 = arith.constant 0 : i32
    %c0_i32_0 = arith.constant 0 : i32
    %c0_i32_1 = arith.constant 0 : i32
    return %arg0, %c0_i32, %c0_i32_0 : i32, i32, i32
  }
  func.func @transform_4(%arg0: i32, %arg1: i32) -> (i32, i32, i32) {
    %c0_i32 = arith.constant 0 : i32
    %c0_i32_0 = arith.constant 0 : i32
    %c0_i32_1 = arith.constant 0 : i32
    return %arg0, %c0_i32, %c0_i32_0 : i32, i32, i32
  }
  func.func @transform_5(%arg0: i32, %arg1: i32) -> (i32, i32, i32) {
    %c0_i32 = arith.constant 0 : i32
    %c0_i32_0 = arith.constant 0 : i32
    return %arg0, %arg1, %c0_i32 : i32, i32, i32
  }
  func.func @transform_6(%arg0: i32, %arg1: i32) -> (i32, i32, i32) {
    %c0_i32 = arith.constant 0 : i32
    %c0_i32_0 = arith.constant 0 : i32
    return %arg0, %arg1, %c0_i32 : i32, i32, i32
  }
}

module attributes {stable_mosaic.version = 11 : i64} {
  func.func @_res_pool_head_kernel(%arg0: i32, %arg1: i32, %arg2: i32, %arg3: memref<1x1024x144xbf16, #tpu.memory_space<vmem>>, %arg4: memref<1x1024x128xbf16, #tpu.memory_space<vmem>>, %arg5: memref<1x144x128xbf16, #tpu.memory_space<vmem>>, %arg6: memref<1x1x128xf32, #tpu.memory_space<vmem>>, %arg7: memref<1x128x128xbf16, #tpu.memory_space<vmem>>, %arg8: memref<1x1x128xf32, #tpu.memory_space<vmem>>, %arg9: memref<1x128x512xbf16, #tpu.memory_space<vmem>>, %arg10: memref<1x1x512xf32, #tpu.memory_space<vmem>>, %arg11: memref<1x2x512xf32, #tpu.memory_space<vmem>>, %arg12: memref<1x128xf32, #tpu.memory_space<vmem>>) attributes {dimension_semantics = [#tpu.dimension_semantics<parallel>, #tpu.dimension_semantics<arbitrary>, #tpu.dimension_semantics<arbitrary>], iteration_bounds = array<i64: 4, 2, 1>, scalar_prefetch = 0 : i64, scratch_operands = 1 : i64, tpu.core_type = #tpu.core_type<tc>, window_params = [{transform_indices = @transform_0, window_bounds = array<i64: 1, 1024, 144>}, {transform_indices = @transform_1, window_bounds = array<i64: 1, 1024, 128>}, {transform_indices = @transform_2, window_bounds = array<i64: 1, 144, 128>}, {transform_indices = @transform_3, window_bounds = array<i64: 1, 1, 128>}, {transform_indices = @transform_4, window_bounds = array<i64: 1, 128, 128>}, {transform_indices = @transform_5, window_bounds = array<i64: 1, 1, 128>}, {transform_indices = @transform_6, window_bounds = array<i64: 1, 128, 512>}, {transform_indices = @transform_7, window_bounds = array<i64: 1, 1, 512>}, {transform_indices = @transform_8, window_bounds = array<i64: 1, 2, 512>}]} {
    %c0_i32 = arith.constant 0 : i32
    %0 = arith.cmpi eq, %arg2, %c0_i32 : i32
    %1 = arith.extui %0 : i1 to i32
    %c0_i32_0 = arith.constant 0 : i32
    %2 = arith.cmpi ne, %1, %c0_i32_0 : i32
    scf.if %2 {
      %cst_28 = arith.constant 0.000000e+00 : f32
      %36 = vector.broadcast %cst_28 : f32 to vector<1x128xf32>
      %c0_29 = arith.constant 0 : index
      %c0_30 = arith.constant 0 : index
      %37 = vector.load %arg12[%c0_29, %c0_30] : memref<1x128xf32, #tpu.memory_space<vmem>>, vector<1x128xf32>
      tpu.vector_store %arg12[%c0_29, %c0_30], %36 {strides = array<i32>} : memref<1x128xf32, #tpu.memory_space<vmem>>, vector<1x128xf32>,
    } else {
    }
    %c0 = arith.constant 0 : index
    %c0_1 = arith.constant 0 : index
    %c0_2 = arith.constant 0 : index
    %3 = vector.load %arg3[%c0, %c0_1, %c0_2] : memref<1x1024x144xbf16, #tpu.memory_space<vmem>>, vector<1x1024x144xbf16>
    %4 = vector.shape_cast %3 : vector<1x1024x144xbf16> to vector<1024x144xbf16>
    %c0_3 = arith.constant 0 : index
    %c0_4 = arith.constant 0 : index
    %c0_5 = arith.constant 0 : index
    %5 = vector.load %arg5[%c0_3, %c0_4, %c0_5] : memref<1x144x128xbf16, #tpu.memory_space<vmem>>, vector<1x144x128xbf16>
    %6 = vector.shape_cast %5 : vector<1x144x128xbf16> to vector<144x128xbf16>
    %cst = arith.constant dense<0.000000e+00> : vector<1024x128xf32>
    %7 = tpu.matmul %4, %6, %cst {dimension_numbers = #tpu.dot_dimension_numbers<[1], [0], [0], [1], [0, 0, 1, 1], [], []>} : vector<1024x144xbf16>, vector<144x128xbf16>, vector<1024x128xf32> -> vector<1024x128xf32>
    %c0_6 = arith.constant 0 : index
    %c0_7 = arith.constant 0 : index
    %c0_8 = arith.constant 0 : index
    %8 = vector.load %arg6[%c0_6, %c0_7, %c0_8] : memref<1x1x128xf32, #tpu.memory_space<vmem>>, vector<1x1x128xf32>
    %9 = vector.shape_cast %8 : vector<1x1x128xf32> to vector<1x128xf32>
    %10 = vector.broadcast %9 : vector<1x128xf32> to vector<1024x128xf32>
    %11 = arith.addf %7, %10 : vector<1024x128xf32>
    %cst_9 = arith.constant 0.000000e+00 : f32
    %12 = vector.broadcast %cst_9 : f32 to vector<1024x128xf32>
    %13 = arith.maximumf %11, %12 : vector<1024x128xf32>
    %14 = arith.truncf %13 : vector<1024x128xf32> to vector<1024x128xbf16>
    %c0_10 = arith.constant 0 : index
    %c0_11 = arith.constant 0 : index
    %c0_12 = arith.constant 0 : index
    %15 = vector.load %arg7[%c0_10, %c0_11, %c0_12] : memref<1x128x128xbf16, #tpu.memory_space<vmem>>, vector<1x128x128xbf16>
    %16 = vector.shape_cast %15 : vector<1x128x128xbf16> to vector<128x128xbf16>
    %cst_13 = arith.constant dense<0.000000e+00> : vector<1024x128xf32>
    %17 = tpu.matmul %14, %16, %cst_13 {dimension_numbers = #tpu.dot_dimension_numbers<[1], [0], [0], [1], [0, 0, 1, 1], [], []>} : vector<1024x128xbf16>, vector<128x128xbf16>, vector<1024x128xf32> -> vector<1024x128xf32>
    %c0_14 = arith.constant 0 : index
    %c0_15 = arith.constant 0 : index
    %c0_16 = arith.constant 0 : index
    %18 = vector.load %arg8[%c0_14, %c0_15, %c0_16] : memref<1x1x128xf32, #tpu.memory_space<vmem>>, vector<1x1x128xf32>
    %19 = vector.shape_cast %18 : vector<1x1x128xf32> to vector<1x128xf32>
    %20 = vector.broadcast %19 : vector<1x128xf32> to vector<1024x128xf32>
    %21 = arith.addf %17, %20 : vector<1024x128xf32>
    %c0_17 = arith.constant 0 : index
    %c0_18 = arith.constant 0 : index
    %c0_19 = arith.constant 0 : index
    %22 = vector.load %arg4[%c0_17, %c0_18, %c0_19] : memref<1x1024x128xbf16, #tpu.memory_space<vmem>>, vector<1x1024x128xbf16>
    %23 = vector.shape_cast %22 : vector<1x1024x128xbf16> to vector<1024x128xbf16>
    %24 = arith.extf %23 : vector<1024x128xbf16> to vector<1024x128xf32>
    %25 = arith.addf %21, %24 : vector<1024x128xf32>
    %cst_20 = arith.constant 0.000000e+00 : f32
    %26 = vector.broadcast %cst_20 : f32 to vector<1024x128xf32>
    %27 = arith.maximumf %25, %26 : vector<1024x128xf32>
    %c0_21 = arith.constant 0 : index
    %c0_22 = arith.constant 0 : index
    %28 = vector.load %arg12[%c0_21, %c0_22] : memref<1x128xf32, #tpu.memory_space<vmem>>, vector<1x128xf32>
    %cst_23 = arith.constant dense<0.000000e+00> : vector<128xf32>
    %29 = vector.multi_reduction <add>, %27, %cst_23 [0] : vector<1024x128xf32> to vector<128xf32>
    %30 = vector.shape_cast %29 : vector<128xf32> to vector<1x128xf32>
    %31 = arith.addf %28, %30 : vector<1x128xf32>
    %c0_24 = arith.constant 0 : index
    %c0_25 = arith.constant 0 : index
    %32 = vector.load %arg12[%c0_24, %c0_25] : memref<1x128xf32, #tpu.memory_space<vmem>>, vector<1x128xf32>
    tpu.vector_store %arg12[%c0_24, %c0_25], %31 {strides = array<i32>} : memref<1x128xf32, #tpu.memory_space<vmem>>, vector<1x128xf32>,
    %c0_i32_26 = arith.constant 0 : i32
    %33 = arith.cmpi eq, %arg2, %c0_i32_26 : i32
    %34 = arith.extui %33 : i1 to i32
    %c0_i32_27 = arith.constant 0 : i32
    %35 = arith.cmpi ne, %34, %c0_i32_27 : i32
    scf.if %35 {
      %c0_28 = arith.constant 0 : index
      %c0_29 = arith.constant 0 : index
      %36 = vector.load %arg12[%c0_28, %c0_29] : memref<1x128xf32, #tpu.memory_space<vmem>>, vector<1x128xf32>
      %cst_30 = arith.constant 9.765625E-4 : f32
      %37 = vector.broadcast %cst_30 : f32 to vector<1x128xf32>
      %38 = arith.mulf %36, %37 : vector<1x128xf32>
      %39 = arith.truncf %38 : vector<1x128xf32> to vector<1x128xbf16>
      %c0_31 = arith.constant 0 : index
      %c0_32 = arith.constant 0 : index
      %c0_33 = arith.constant 0 : index
      %40 = vector.load %arg9[%c0_31, %c0_32, %c0_33] : memref<1x128x512xbf16, #tpu.memory_space<vmem>>, vector<1x128x512xbf16>
      %41 = vector.shape_cast %40 : vector<1x128x512xbf16> to vector<128x512xbf16>
      %cst_34 = arith.constant dense<0.000000e+00> : vector<1x512xf32>
      %42 = tpu.matmul %39, %41, %cst_34 {dimension_numbers = #tpu.dot_dimension_numbers<[1], [0], [0], [1], [0, 0, 1, 1], [], []>} : vector<1x128xbf16>, vector<128x512xbf16>, vector<1x512xf32> -> vector<1x512xf32>
      %c0_35 = arith.constant 0 : index
      %c0_36 = arith.constant 0 : index
      %c0_37 = arith.constant 0 : index
      %43 = vector.load %arg10[%c0_35, %c0_36, %c0_37] : memref<1x1x512xf32, #tpu.memory_space<vmem>>, vector<1x1x512xf32>
      %44 = vector.shape_cast %43 : vector<1x1x512xf32> to vector<1x512xf32>
      %45 = arith.addf %42, %44 : vector<1x512xf32>
      %46 = tpu.iota {dimensions = array<i32: 0>} : vector<2x512xi32>
      %47 = vector.broadcast %arg1 : i32 to vector<2x512xi32>
      %48 = arith.cmpi eq, %46, %47 : vector<2x512xi32>
      %49 = vector.shape_cast %45 : vector<1x512xf32> to vector<1x512xf32>
      %50 = vector.broadcast %49 : vector<1x512xf32> to vector<2x512xf32>
      %c0_38 = arith.constant 0 : index
      %c0_39 = arith.constant 0 : index
      %c0_40 = arith.constant 0 : index
      %51 = vector.load %arg11[%c0_38, %c0_39, %c0_40] : memref<1x2x512xf32, #tpu.memory_space<vmem>>, vector<1x2x512xf32>
      %52 = vector.shape_cast %51 : vector<1x2x512xf32> to vector<2x512xf32>
      %53 = arith.select %48, %50, %52 : vector<2x512xi1>, vector<2x512xf32>
      %c0_41 = arith.constant 0 : index
      %c0_42 = arith.constant 0 : index
      %c0_43 = arith.constant 0 : index
      %54 = vector.load %arg11[%c0_41, %c0_42, %c0_43] : memref<1x2x512xf32, #tpu.memory_space<vmem>>, vector<1x2x512xf32>
      %55 = vector.shape_cast %54 : vector<1x2x512xf32> to vector<2x512xf32>
      %56 = vector.shape_cast %53 : vector<2x512xf32> to vector<1x2x512xf32>
      tpu.vector_store %arg11[%c0_41, %c0_42, %c0_43], %56 {strides = array<i32>} : memref<1x2x512xf32, #tpu.memory_space<vmem>>, vector<1x2x512xf32>,
    } else {
    }
    return
  }
  func.func @transform_0(%arg0: i32, %arg1: i32, %arg2: i32) -> (i32, i32, i32) {
    %c2_i32 = arith.constant 2 : i32
    %0 = arith.muli %arg0, %c2_i32 : i32
    %1 = arith.addi %0, %arg1 : i32
    %c0_i32 = arith.constant 0 : i32
    %c0_i32_0 = arith.constant 0 : i32
    return %1, %arg2, %c0_i32 : i32, i32, i32
  }
  func.func @transform_1(%arg0: i32, %arg1: i32, %arg2: i32) -> (i32, i32, i32) {
    %c2_i32 = arith.constant 2 : i32
    %0 = arith.muli %arg0, %c2_i32 : i32
    %1 = arith.addi %0, %arg1 : i32
    %c0_i32 = arith.constant 0 : i32
    %c0_i32_0 = arith.constant 0 : i32
    return %1, %arg2, %c0_i32 : i32, i32, i32
  }
  func.func @transform_2(%arg0: i32, %arg1: i32, %arg2: i32) -> (i32, i32, i32) {
    %c0_i32 = arith.constant 0 : i32
    %c0_i32_0 = arith.constant 0 : i32
    %c0_i32_1 = arith.constant 0 : i32
    return %arg0, %c0_i32, %c0_i32_0 : i32, i32, i32
  }
  func.func @transform_3(%arg0: i32, %arg1: i32, %arg2: i32) -> (i32, i32, i32) {
    %c0_i32 = arith.constant 0 : i32
    %c0_i32_0 = arith.constant 0 : i32
    %c0_i32_1 = arith.constant 0 : i32
    return %arg0, %c0_i32, %c0_i32_0 : i32, i32, i32
  }
  func.func @transform_4(%arg0: i32, %arg1: i32, %arg2: i32) -> (i32, i32, i32) {
    %c0_i32 = arith.constant 0 : i32
    %c0_i32_0 = arith.constant 0 : i32
    %c0_i32_1 = arith.constant 0 : i32
    return %arg0, %c0_i32, %c0_i32_0 : i32, i32, i32
  }
  func.func @transform_5(%arg0: i32, %arg1: i32, %arg2: i32) -> (i32, i32, i32) {
    %c0_i32 = arith.constant 0 : i32
    %c0_i32_0 = arith.constant 0 : i32
    %c0_i32_1 = arith.constant 0 : i32
    return %arg0, %c0_i32, %c0_i32_0 : i32, i32, i32
  }
  func.func @transform_6(%arg0: i32, %arg1: i32, %arg2: i32) -> (i32, i32, i32) {
    %c0_i32 = arith.constant 0 : i32
    %c0_i32_0 = arith.constant 0 : i32
    %c0_i32_1 = arith.constant 0 : i32
    return %arg0, %c0_i32, %c0_i32_0 : i32, i32, i32
  }
  func.func @transform_7(%arg0: i32, %arg1: i32, %arg2: i32) -> (i32, i32, i32) {
    %c0_i32 = arith.constant 0 : i32
    %c0_i32_0 = arith.constant 0 : i32
    %c0_i32_1 = arith.constant 0 : i32
    return %arg0, %c0_i32, %c0_i32_0 : i32, i32, i32
  }
  func.func @transform_8(%arg0: i32, %arg1: i32, %arg2: i32) -> (i32, i32, i32) {
    %c0_i32 = arith.constant 0 : i32
    %c0_i32_0 = arith.constant 0 : i32
    %c0_i32_1 = arith.constant 0 : i32
    return %arg0, %c0_i32, %c0_i32_0 : i32, i32, i32
  }
}

</mosaic_0001>

<bundles_post_ra>
// kernel: multiview_forward.2
= control target key start
LH: loop header
LB: loop body
LE: loop exit
PB: predicated region body
PF: predicated region fallthrough
CT: control target
= control target key end

     0   :  { %s7513_s0 = inlined_call_operand.vmem [shape: bf16[4,2048,147], index: 0, kind: input, shape index: {}]   ;;  %s7514_s1 = inlined_call_operand.vmem [shape: bf16[4,147,128], index: 1, kind: input, shape index: {}]   ;;  %s7515_s2 = inlined_call_operand.hbm [shape: f32[4,1,128], index: 2, kind: input, shape index: {}]   ;;  %s7516_s3 = inlined_call_operand.hbm [shape: bf16[4,128,128], index: 3, kind: input, shape index: {}]   ;;  %s7517_s4 = inlined_call_operand.hbm [shape: f32[4,1,128], index: 4, kind: input, shape index: {}]   ;;  %s7518_s5 = inlined_call_operand.vmem [shape: bf16[4,2048,128], index: 5, kind: output, shape index: {0}]   ;;  %s7519_s6 = inlined_call_operand.vmem [shape: bf16[4,2048,128], index: 6, kind: output, shape index: {1}]  }
   0x1   :  { %7527 = sst [smem:[#allocation12_spill]] %s7516_s3 }
   0x2   :  { %12 = vsyncpa [#allocation3], 0 }
   0x3   :  { %14 = vsyncpa [#allocation3 + $0x1], 0 }
   0x4   :  { %15 = vsyncpa [#allocation5], 0 }
   0x5   :  { %17 = vsyncpa [#allocation5 + $0x1], 0  ;;  %s6612_s21 = smov 0   ;;  %s6614_s22 = smov 0  }
   0x6   :  { %s6616_s23 = smov 0   ;;  %s6618_s24 = smov 0  }
   0x7   :  { %s6620_s25 = smov 0   ;;  %s6622_s26 = smov 0  }
   0x8   :  { %s6624_s27 = smov 0   ;;  %s6626_s28 = smov 0  }
   0x9 LB: > { %7528 = sst [smem:[#allocation9_spill]] %s6560_s26  ;;  %s7520_s29 = sadd.s32 4294967295, %s6568_s28   ;;  %s6568_s28 = sphi %s6626_s28, %s23_s28   ;;  %s6564_s27 = sphi %s6624_s27, %s7550_s27   ;;  %s6560_s26 = sphi %s6622_s26, %s7544_s26   ;;  %s6556_s25 = sphi %s6620_s25, %s7549_s25   ;;  %s6552_s24 = sphi %s6618_s24, %s7543_s24   ;;  %s6548_s23 = sphi %s6616_s23, %s7548_s23   ;;  %s6544_s22 = sphi %s6614_s22, %s7547_s22   ;;  %s6540_s21 = sphi %s6612_s21, %s7546_s21  }
   0xa   : > { %s32_s30 = sadd.s32 1, %s6560_s26  ;;  %s35_s7 = sadd.s32 1, %s6564_s27 }
   0xb   : > { %p33_p0 = scmp.ge.s32.totalorder %s32_s30, 2  ;;  %s96_s8 = sadd.s32 1, %s6548_s23 }
   0xc   : > { %p103_p1 = scmp.ne.s32.totalorder %s6548_s23, %s6544_s22  ;;  %p104_p2 = scmp.eq.s32.totalorder %s6568_s28, 0 }
   0xd   : > { %s7552_s30 = smov (%p33_p0, %s32_s30), 0  ;;  %s7554_s7 = smov (!%p33_p0, %s35_s7), %s6564_s27 }
   0xe   : > { %7529 = sst [smem:[#allocation10_spill]] %s7552_s30  ;;  %p109_p3 = scmp.ne.s32.totalorder %s6544_s22, %s6540_s21 }
   0xf   : > { %p37_p4 = scmp.ge.s32.totalorder %s7554_s7, 4  ;;  %p110_p5 = scmp.eq.s32.totalorder %s7520_s29, 0 }
  0x10   : > { %p105_p6 = por %p104_p2, %p103_p1  ;;  %p6111_p8 = scmp.lt.s32.totalorder %s6568_s28, 8 }
  0x11   : > { %s7556_s7 = smov (%p37_p4, %s7554_s7), 0  ;;  %p6665_p7 = por %p110_p5, %p109_p3 }
  0x12   : > { %7530 = sst [smem:[#allocation11_spill]] %s7556_s7  ;;  %s93_s10 = ssub.s32 %s6564_s27, %s7556_s7 }
  0x13   : > { %s7531_s9 = scalar_select %p6665_p7, 1, 0 }
  0x14   : > { %s6673_s11 = sand.u32 1, %s6548_s23   ;;  %p94_p9 = scmp.eq.s32.totalorder %s93_s10, 0 }
  0x15   : > { %p6675_p10 = pnand %p6111_p8, %p105_p6  ;;  %s280_s13 = sand.u32 1, %s6568_s28  }
  0x16   : > { %s4348_s14 = sshll.u32 %s6673_s11, 6  ;;  %s4835_s16 = sshll.u32 %s6564_s27, 10 }
  0x17   : > { %s7532_s12 = scalar_select %p6675_p10, 1, 0 }
  0x18   : > { %s6682_s15 = scalar_select %p94_p9, %s6548_s23, %s96_s8  }
  0x19   : > { %s7533_s3 = sld [smem:[#allocation12_spill]]  ;;  %s284_s20 = scalar_lea.vmem [#allocation4], %s4348_s14 }
  0x1a   : > { %s291_s21 = sshll.u32 %s284_s20, 4  ;;  %s6693_s10 = scalar_lea.sflag [#allocation5], %s280_s13  ;;  %s6690_s21 = int_to_ptr.vmem [resolvable:$true] %s291_s21 }
  0x1b   : > { %p6699_p13 = pneg %p6675_p10 }
  0x1f   : > { %s6688_s19 = scalar_lea.hbm %s7533_s3, %s4835_s16  ;;  %s6413_s14 = scalar_lea.hbm %s7533_s3, 4096 }
  0x20   : > { %s6408_s29 = scalar_lea.hbm %s6688_s19, 1024  ;;  %p6414_p2 = scmp.lt.u32.totalorder %s6688_s19, %s7533_s3 }
  0x21   : > { %p6409_p12 = scmp.ne.s32.totalorder %s6688_s19, %s6408_s29  ;;  %p6415_p3 = scmp.lt.u32.totalorder %s6413_s14, %s6408_s29 }
  0x22   : > { %p6417_p5 = scmp.lt.u32.totalorder %s6408_s29, %s6688_s19 }
  0x23   : > { %p6411_p0 = pnand %p6699_p13, %p6409_p12  ;;  %p6416_p4 = por %p6415_p3, %p6414_p2 }
  0x25   : > { %p6412_p1 = pneg %p6411_p0  ;;  %p6418_p6 = por %p6417_p5, %p6416_p4 }
  0x27   : > { %p6419_p8 = pnand %p6418_p6, %p6412_p1 }
  0x29   : > { %6422 = shalt.err (!%p6419_p8)
}
  0x2a   : > { %s6423_s13 = scalar_lea.vmem %s6690_s21, 1024  ;;  %s6570_s16 = smov [#allocation4]  }
  0x2b   : > { %p6424_p9 = scmp.ne.s32.totalorder %s6690_s21, %s6423_s13  ;;  %s6428_s17 = sshll.u32 %s6570_s16, 4  ;;  %s6429_s17 = int_to_ptr.vmem [resolvable:$false] %s6428_s17 }
  0x2c   : > { %s6430_s18 = scalar_lea.vmem %s6429_s17, 2048  ;;  %p6431_p11 = scmp.lt.s32.totalorder %s6690_s21, %s6429_s17 }
  0x2d   : > { %p6426_p12 = pnand %p6424_p9, %p6699_p13  ;;  %p6432_p7 = scmp.lt.s32.totalorder %s6430_s18, %s6423_s13 }
  0x2f   : > { %p6427_p0 = pneg %p6426_p12  ;;  %p6433_p2 = por %p6432_p7, %p6431_p11 }
  0x31   : > { %p6434_p3 = pnand %p6433_p2, %p6427_p0 }
  0x33   : > { %6437 = shalt.err (!%p6434_p3)
}
  0x34   : > { %s6571_s29 = smov 64   ;;  %s6572_s14 = smov 4  }
  0x35   : > { %6107 = dma.hbm_to_vmem [thread:$0]  (!%p6675_p10), %s6688_s19, 1024, %s6690_s21, %s6693_s10, %s6571_s29, %s6571_s29, %s6572_s14  }
  0x36   : > { %p316_p1 = scmp.lt.s32.totalorder %s6568_s28, 9  ;;  %p7535_p4 = scmp.ge.s32.totalorder %s6568_s28, 1 }
  0x37   : > { %s7524_s13 = sshll.u32 %s6564_s27, 4  ;;  %s266_s16 = scalar_lea.vmem [#allocation2], %s6673_s11 }
  0x38   : > { %p6726_p7 = pnand %p7535_p4, %p316_p1  ;;  %s273_s17 = sshll.u32 %s266_s16, 4  ;;  %s274_s17 = int_to_ptr.vmem [resolvable:$true] %s273_s17 }
  0x39   : > { %s6737_s7 = scalar_lea.hbm %s7515_s2, %s7524_s13  ;;  %s264_s19 = scalar_lea.sflag [#allocation3], %s6673_s11 }
  0x3a   : > { %s7536_s20 = scalar_select %p6726_p7, 1, 0 }
  0x3b   : > { %s6438_s21 = scalar_lea.hbm %s6737_s7, 16  ;;  %s6443_s16 = scalar_lea.hbm %s7515_s2, 64 }
  0x3c   : > { %p6439_p11 = scmp.ne.s32.totalorder %s6737_s7, %s6438_s21  ;;  %p6444_p8 = scmp.lt.u32.totalorder %s6737_s7, %s7515_s2 }
  0x3d   : > { %p6445_p9 = scmp.lt.u32.totalorder %s6443_s16, %s6438_s21  ;;  %p6447_p0 = scmp.lt.u32.totalorder %s6438_s21, %s6737_s7 }
  0x3e   : > { %p6441_p5 = pnand %p6439_p11, %p6699_p13 }
  0x3f   : > { %p6446_p12 = por %p6445_p9, %p6444_p8 }
  0x40   : > { %p6442_p6 = pneg %p6441_p5 }
  0x41   : > { %p6448_p2 = por %p6447_p0, %p6446_p12 }
  0x43   : > { %p6449_p3 = pnand %p6448_p2, %p6442_p6 }
  0x45   : > { %6452 = shalt.err (!%p6449_p3)
}
  0x46   : > { %s6453_s3 = scalar_lea.vmem %s274_s17, 16  ;;  %s6573_s18 = smov [#allocation2]  }
  0x47   : > { %p6454_p1 = scmp.ne.s32.totalorder %s274_s17, %s6453_s3  ;;  %s6458_s13 = sshll.u32 %s6573_s18, 4  ;;  %s6459_s13 = int_to_ptr.vmem [resolvable:$false] %s6458_s13 }
  0x48   : > { %s6460_s29 = scalar_lea.vmem %s6459_s13, 32  ;;  %p6461_p5 = scmp.lt.s32.totalorder %s274_s17, %s6459_s13 }
  0x49   : > { %p6456_p4 = pnand %p6454_p1, %p6699_p13  ;;  %p6462_p7 = scmp.lt.s32.totalorder %s6460_s29, %s6453_s3 }
  0x4b   : > { %p6457_p11 = pneg %p6456_p4  ;;  %p6463_p10 = por %p6462_p7, %p6461_p5 }
  0x4d   : > { %p6464_p8 = pnand %p6463_p10, %p6457_p11 }
  0x4f   : > { %6467 = shalt.err (!%p6464_p8)
}
  0x50   : > { %p7537_p9 = scmp.ne.s32.totalorder %s7532_s12, 0  ;;  %s7538_s26 = sshll.u32 %s6564_s27, 4 }
  0x51   : > { %s6762_s14 = scalar_lea.hbm %s7517_s4, %s7538_s26  ;;  %s304_s13 = scalar_lea.vmem [#allocation6], %s6673_s11 }
  0x52   : > { %6104 = dma.hbm_to_vmem [thread:$0]  (!%p7537_p9), %s6737_s7, 16, %s274_s17, %s264_s19  }
  0x53   : > { %s311_s16 = sshll.u32 %s304_s13, 4  ;;  %s6468_s3 = scalar_lea.hbm %s6762_s14, 16  ;;  %s312_s16 = int_to_ptr.vmem [resolvable:$true] %s311_s16 }
  0x54   : > { %p6469_p10 = scmp.ne.s32.totalorder %s6762_s14, %s6468_s3  ;;  %s6473_s17 = scalar_lea.hbm %s7517_s4, 64 }
  0x55   : > { %p6474_p12 = scmp.lt.u32.totalorder %s6762_s14, %s7517_s4  ;;  %p6475_p0 = scmp.lt.u32.totalorder %s6473_s17, %s6468_s3 }
  0x56   : > { %p6471_p7 = pnand %p6469_p10, %p6699_p13  ;;  %p6477_p3 = scmp.lt.u32.totalorder %s6468_s3, %s6762_s14 }
  0x57   : > { %p6476_p2 = por %p6475_p0, %p6474_p12 }
  0x58   : > { %p6472_p6 = pneg %p6471_p7 }
  0x59   : > { %p6478_p1 = por %p6477_p3, %p6476_p2 }
  0x5b   : > { %p6479_p4 = pnand %p6478_p1, %p6472_p6 }
  0x5d   : > { %6482 = shalt.err (!%p6479_p4)
}
  0x5e   : > { %s6483_s11 = scalar_lea.vmem %s312_s16, 16  ;;  %s6574_s26 = smov [#allocation6]  }
  0x5f   : > { %p6484_p11 = scmp.ne.s32.totalorder %s312_s16, %s6483_s11  ;;  %s6488_s30 = sshll.u32 %s6574_s26, 4  ;;  %s6489_s30 = int_to_ptr.vmem [resolvable:$false] %s6488_s30 }
  0x60   : > { %s6490_s21 = scalar_lea.vmem %s6489_s30, 32  ;;  %p6491_p10 = scmp.lt.s32.totalorder %s312_s16, %s6489_s30 }
  0x61   : > { %p6486_p5 = pnand %p6484_p11, %p6699_p13  ;;  %p6492_p7 = scmp.lt.s32.totalorder %s6490_s21, %s6483_s11 }
  0x63   : > { %p6487_p8 = pneg %p6486_p5  ;;  %p6493_p9 = por %p6492_p7, %p6491_p10 }
  0x65   : > { %p6494_p0 = pnand %p6493_p9, %p6487_p8 }
  0x67   : > { %6497 = shalt.err (!%p6494_p0)
}
  0x68   : > { %p7539_p12 = scmp.ne.s32.totalorder %s7532_s12, 0  ;;  %p7540_p6 = scmp.ne.s32.totalorder %s7536_s20, 0 }
  0x69   : > { %s6786_s8 = sand.u32 (!%p7540_p6), 1, %s6544_s22   ;;  %p7541_p13 = scmp.ne.s32.totalorder (!%p7540_p6), %s7531_s9, 0 }
  0x6a   : > { %6110 = dma.hbm_to_vmem [thread:$0]  (!%p7539_p12), %s6762_s14, 16, %s312_s16, %s6693_s10  }
  0x6b   : > { %320 = sbr.rel (%p7540_p6) target bundleno = 1047 (0x417), region = 40  ;;  %s323_s13 = scalar_lea.sflag (!%p7540_p6), [#allocation3], %s6786_s8 }
  0x6c   : > { %s325_s3 = scalar_lea.vmem (!%p7540_p6), [#allocation2], %s6786_s8 }
  0x72   : > { %6531 = dma.done.wait (%p7541_p13), %s323_s13, 16  }
  0x73   : > { %6533 = vsyncadd (%p7541_p13), %s323_s13, 4294967280  ;;  %s7542_s12 = sadd.s32 4294967295, %s6568_s28   ;;  %s4353_s20 = sshll.u32 %s6786_s8, 6 }
  0x74   : > { %s330_s10 = sand.u32 1, %s7542_s12   ;;  %s6797_s16 = scalar_lea.vmem [#allocation4], %s4353_s20 }
  0x75   : > { %s331_s14 = scalar_lea.sflag [#allocation5], %s330_s10 }
  0x76   : > { %6535 = dma.done.wait (%p7541_p13), %s331_s14, 1040  }
  0x77   : > { %6537 = vsyncadd (%p7541_p13), %s331_s14, 4294966256  ;;  %p408_p9 = scmp.lt.s32.totalorder %s6556_s25, 3  ;;  %v6575_v0 = vmov 0   ;;  %s4354_s18 = sshll.u32 %s6552_s24, 7  ;;  %vm1231_vm0 = vcmask 154624   ;;  %vm1424_vm1 = vcmask 1040384  }
  0x78   : > { %1431 = vmatprep.subr.bf16.mxu0 %v6575_v0  ;;  %6074 = vmatprep.subr.bf16.mxu1 %v6575_v0  ;;  %p410_p2 = scmp.lt.s32.totalorder %s4354_s18, 255  ;;  %vm1425_vm2 = vcmask 1041408   ;;  %v6576_v10 = vmov 65535   ;;  %v6304_v53 = vld [vmem:[%s6797_s16] sm:$0xff]   ;;  %v6308_v58 = vld [vmem:[%s6797_s16 + $0x8] sm:$0xff]   ;;  %v6312_v59 = vld [vmem:[%s6797_s16 + $0x10] sm:$0xff]  }
  0x79   : > { %s7558_s25 = smov (!%p408_p9, %s6556_s25), 3  ;;  %v1426_v11 = vsel %vm1424_vm1, 4294967295, %v6576_v10 }
  0x7a   : > { %s6094_s7 = smul.u32 76, %s7558_s25  ;;  %s4356_s17 = sshll.u32 %s7558_s25, 9  ;;  %v1427_v15 = vsel %vm1425_vm2, %v1426_v11, 0 }
  0x7b   : > { %s7560_s18 = smov (!%p410_p2, %s4354_s18), 255  ;;  %s4360_s12 = sshll.u32 %s7558_s25, 8 }
  0x7c   : > { %s6817_s29 = scalar_lea.vmem %s7514_s1, %s6094_s7  ;;  %s4355_s24 = sshll.u32 %s7560_s18, 1 }
  0x7d   : > { %v6180_v1 = vld [vmem:[%s6817_s29] sm:$0xff]   ;;  %s414_s11 = sadd.s32 %s4356_s17, %s4355_s24  ;;  %v6181_v2 = vld [vmem:[%s6817_s29 + $0x8] sm:$0xff]   ;;  %v6182_v3 = vld [vmem:[%s6817_s29 + $0x10] sm:$0xff]   ;;  %s6998_s10 = sadd.s32 %s4360_s12, %s7560_s18 }
  0x7e   : > { %1432 = vmatpush1.bf16.msra.mxu0 %v6180_v1  ;;  %6084 = vmatpush1.bf16.msra.mxu1 %v6180_v1  ;;  %s4357_s26 = sshll.u32 %s414_s11, 2  ;;  %v6183_v4 = vld [vmem:[%s6817_s29 + $0x18] sm:$0xff]   ;;  %v6184_v6 = vld [vmem:[%s6817_s29 + $0x20] sm:$0xff]   ;;  %v6185_v7 = vld [vmem:[%s6817_s29 + $0x28] sm:$0xff]   ;;  %s4361_s20 = sshll.u32 %s6998_s10, 2 }
  0x7f   : > { %1433 = vmatprep.subr.bf16.mxu0 %v6575_v0  ;;  %6075 = vmatprep.subr.bf16.mxu1 %v6575_v0  ;;  %s6829_s13 = scalar_lea.vmem %s7513_s0, %s4357_s26  ;;  %v6186_v8 = vld [vmem:[%s6817_s29 + $0x30] sm:$0xff]   ;;  %v6187_v9 = vld [vmem:[%s6817_s29 + $0x38] sm:$0xff]   ;;  %v6188_v13 = vld [vmem:[%s6817_s29 + $0x40] sm:$0xff]   ;;  %s7223_s17 = scalar_lea.vmem %s7519_s6, %s4361_s20 }
  0x80   : > { %v6192_v5 = vld [vmem:[%s6829_s13 + $0x4] ss:$8 sps:$4 sm:$0xff]   ;;  %v6189_v14 = vld [vmem:[%s6817_s29 + $0x48] ss:$0 sps:$4 sm:$0x33]  }
  0x81   : > { %4504 = vmatprep.mubr.msk.bf16.mxu0 %vm1231_vm0, %v6192_v5  ;;  %v6231_v12 = vld [vmem:[%s6829_s13 + $0x304] ss:$8 sps:$4 sm:$0xff]   ;;  %v1429_v16 = vand.u32 %v6189_v14, %v1427_v15  ;;  %v6190_v17 = vld [vmem:[%s6829_s13] ss:$8 sps:$4 sm:$0xff]   ;;  %v6193_v18 = vld [vmem:[%s6829_s13 + $0x14] ss:$8 sps:$4 sm:$0xff]  }
  0x82   : > { %1434 = vmatpush1.bf16.msra.mxu0 %v6181_v2  ;;  %6085 = vmatpush1.bf16.msra.mxu1 %v6181_v2  ;;  %v6229_v19 = vld [vmem:[%s6829_s13 + $0x300] ss:$8 sps:$4 sm:$0xff]   ;;  %v6235_v20 = vld [vmem:[%s6829_s13 + $0x314] ss:$8 sps:$4 sm:$0xff]   ;;  %v6195_v21 = vld [vmem:[%s6829_s13 + $0x10] ss:$8 sps:$4 sm:$0xff]  }
  0x83   : > { %1435 = vmatprep.subr.bf16.mxu0 %v6575_v0  ;;  %6076 = vmatprep.subr.bf16.mxu1 %v6575_v0  ;;  %v6237_v22 = vld [vmem:[%s6829_s13 + $0x310] ss:$8 sps:$4 sm:$0xff]   ;;  %v6196_v23 = vld [vmem:[%s6829_s13 + $0x24] ss:$8 sps:$4 sm:$0xff]   ;;  %v6198_v25 = vld [vmem:[%s6829_s13 + $0x20] ss:$8 sps:$4 sm:$0xff]  }
  0x84   : > { %4552 = vmatprep.mubr.msk.bf16.mxu1 %vm1231_vm0, %v6231_v12  ;;  %v6241_v24 = vld [vmem:[%s6829_s13 + $0x324] ss:$8 sps:$4 sm:$0xff]   ;;  %v6243_v26 = vld [vmem:[%s6829_s13 + $0x320] ss:$8 sps:$4 sm:$0xff]   ;;  %v6199_v27 = vld [vmem:[%s6829_s13 + $0x34] ss:$8 sps:$4 sm:$0xff]  }
  0x85   : > { %v6247_v28 = vld [vmem:[%s6829_s13 + $0x334] ss:$8 sps:$4 sm:$0xff]   ;;  %v6201_v29 = vld [vmem:[%s6829_s13 + $0x30] ss:$8 sps:$4 sm:$0xff]   ;;  %v6202_v31 = vld [vmem:[%s6829_s13 + $0x44] ss:$8 sps:$4 sm:$0xff]  }
  0x86   : > { %1436 = vmatpush1.bf16.msra.mxu0 %v6182_v3  ;;  %6086 = vmatpush1.bf16.msra.mxu1 %v6182_v3  ;;  %v6249_v30 = vld [vmem:[%s6829_s13 + $0x330] ss:$8 sps:$4 sm:$0xff]   ;;  %v6253_v32 = vld [vmem:[%s6829_s13 + $0x344] ss:$8 sps:$4 sm:$0xff]   ;;  %v6204_v33 = vld [vmem:[%s6829_s13 + $0x40] ss:$8 sps:$4 sm:$0xff]  }
  0x87   : > { %1437 = vmatprep.subr.bf16.mxu0 %v6575_v0  ;;  %6077 = vmatprep.subr.bf16.mxu1 %v6575_v0  ;;  %v6255_v34 = vld [vmem:[%s6829_s13 + $0x340] ss:$8 sps:$4 sm:$0xff]   ;;  %v6205_v35 = vld [vmem:[%s6829_s13 + $0x54] ss:$8 sps:$4 sm:$0xff]   ;;  %v6207_v37 = vld [vmem:[%s6829_s13 + $0x50] ss:$8 sps:$4 sm:$0xff]  }
  0x88   : > { %v6259_v36 = vld [vmem:[%s6829_s13 + $0x354] ss:$8 sps:$4 sm:$0xff]   ;;  %v6261_v38 = vld [vmem:[%s6829_s13 + $0x350] ss:$8 sps:$4 sm:$0xff]   ;;  %v6208_v39 = vld [vmem:[%s6829_s13 + $0x64] ss:$8 sps:$4 sm:$0xff]  }
  0x89   : > { %v6265_v40 = vld [vmem:[%s6829_s13 + $0x364] ss:$8 sps:$4 sm:$0xff]   ;;  %v6210_v41 = vld [vmem:[%s6829_s13 + $0x60] ss:$8 sps:$4 sm:$0xff]   ;;  %v6211_v43 = vld [vmem:[%s6829_s13 + $0x74] ss:$8 sps:$4 sm:$0xff]  }
  0x8a   : > { %1438 = vmatpush1.bf16.msra.mxu0 %v6183_v4  ;;  %6087 = vmatpush1.bf16.msra.mxu1 %v6183_v4  ;;  %v6267_v42 = vld [vmem:[%s6829_s13 + $0x360] ss:$8 sps:$4 sm:$0xff]   ;;  %v6271_v44 = vld [vmem:[%s6829_s13 + $0x374] ss:$8 sps:$4 sm:$0xff]   ;;  %v6213_v45 = vld [vmem:[%s6829_s13 + $0x70] ss:$8 sps:$4 sm:$0xff]  }
  0x8b   : > { %1439 = vmatprep.subr.bf16.mxu0 %v6575_v0  ;;  %6078 = vmatprep.subr.bf16.mxu1 %v6575_v0  ;;  %v6273_v46 = vld [vmem:[%s6829_s13 + $0x370] ss:$8 sps:$4 sm:$0xff]   ;;  %v6214_v47 = vld [vmem:[%s6829_s13 + $0x84] ss:$8 sps:$4 sm:$0xff]   ;;  %v6216_v49 = vld [vmem:[%s6829_s13 + $0x80] ss:$8 sps:$4 sm:$0xff]  }
  0x8c   : > { %v6277_v48 = vld [vmem:[%s6829_s13 + $0x384] ss:$8 sps:$4 sm:$0xff]   ;;  %v6279_v50 = vld [vmem:[%s6829_s13 + $0x380] ss:$8 sps:$4 sm:$0xff]   ;;  %v6217_v51 = vld [vmem:[%s6829_s13 + $0x94] ss:$8 sps:$4 sm:$0xff]  }
  0x8d   : > { %v6283_v52 = vld [vmem:[%s6829_s13 + $0x394] ss:$8 sps:$4 sm:$0xff]   ;;  %v6219_v54 = vld [vmem:[%s6829_s13 + $0x90] ss:$8 sps:$4 sm:$0xff]   ;;  %v6220_v56 = vld [vmem:[%s6829_s13 + $0xa4] ss:$8 sps:$4 sm:$0xff]  }
  0x8e   : > { %1440 = vmatpush1.bf16.msra.mxu0 %v6184_v6  ;;  %6088 = vmatpush1.bf16.msra.mxu1 %v6184_v6  ;;  %v6285_v55 = vld [vmem:[%s6829_s13 + $0x390] ss:$8 sps:$4 sm:$0xff]   ;;  %v6289_v57 = vld [vmem:[%s6829_s13 + $0x3a4] ss:$8 sps:$4 sm:$0xff]   ;;  %v6222_v60 = vld [vmem:[%s6829_s13 + $0xa0] ss:$8 sps:$4 sm:$0xff]  }
  0x8f   : > { %1441 = vmatprep.subr.bf16.mxu0 %v6575_v0  ;;  %6079 = vmatprep.subr.bf16.mxu1 %v6575_v0  ;;  %v6291_v61 = vld [vmem:[%s6829_s13 + $0x3a0] ss:$8 sps:$4 sm:$0xff]   ;;  %v6223_v62 = vld [vmem:[%s6829_s13 + $0xb4] ss:$8 sps:$4 sm:$0xff]   ;;  %v6225_v2 = vld [vmem:[%s6829_s13 + $0xb0] ss:$8 sps:$4 sm:$0xff]  }
  0x90   : > { %v6295_v63 = vld [vmem:[%s6829_s13 + $0x3b4] ss:$8 sps:$4 sm:$0xff]   ;;  %v6320_v1 = vld [vmem:[%s6797_s16 + $0x20] sm:$0xff]   ;;  %v6297_v3 = vld [vmem:[%s6829_s13 + $0x3b0] ss:$8 sps:$4 sm:$0xff]  }
  0x91   : > { %v6226_v4 = vld [vmem:[%s6829_s13 + $0xc4] ss:$8 sps:$4 sm:$0xff]   ;;  %v6232_v10 = vld [vmem:[%s6829_s13 + $0xd4] ss:$8 sps:$4 sm:$0xff]   ;;  %v6311_v14 = vld [vmem:[%s6829_s13 + $0x3d0] ss:$8 sps:$4 sm:$0xff]  }
  0x92   : > { %1442 = vmatpush1.bf16.msra.mxu0 %v6185_v7  ;;  %6089 = vmatpush1.bf16.msra.mxu1 %v6185_v7  ;;  %v6301_v5 = vld [vmem:[%s6829_s13 + $0x3c4] ss:$8 sps:$4 sm:$0xff]   ;;  %v6328_v7 = vld [vmem:[%s6797_s16 + $0x30] sm:$0xff]   ;;  %v6332_v12 = vld [vmem:[%s6797_s16 + $0x38] sm:$0xff]  }
  0x93   : > { %1443 = vmatprep.subr.bf16.mxu0 %v6575_v0  ;;  %6080 = vmatprep.subr.bf16.mxu1 %v6575_v0  ;;  %v6324_v6 = vld [vmem:[%s6797_s16 + $0x28] sm:$0xff]   ;;  %v6309_v11 = vld [vmem:[%s6829_s13 + $0x3d4] ss:$8 sps:$4 sm:$0xff]  }
  0x94   : > { %v6238_v15 = vld [vmem:[%s6829_s13 + $0xe4] ss:$8 sps:$4 sm:$0xff]  }
  0x96   : > { %1444 = vmatpush1.bf16.msra.mxu0 %v6186_v8  ;;  %6090 = vmatpush1.bf16.msra.mxu1 %v6186_v8  ;;  %v6228_v8 = vld [vmem:[%s6829_s13 + $0xc0] ss:$8 sps:$4 sm:$0xff]  }
  0x97   : > { %1445 = vmatprep.subr.bf16.mxu0 %v6575_v0  ;;  %6081 = vmatprep.subr.bf16.mxu1 %v6575_v0 }
  0x9a   : > { %1446 = vmatpush1.bf16.msra.mxu0 %v6187_v9  ;;  %6091 = vmatpush1.bf16.msra.mxu1 %v6187_v9  ;;  %v6303_v9 = vld [vmem:[%s6829_s13 + $0x3c0] ss:$8 sps:$4 sm:$0xff]  }
  0x9b   : > { %1447 = vmatprep.subr.bf16.mxu0 %v6575_v0  ;;  %6082 = vmatprep.subr.bf16.mxu1 %v6575_v0 }
  0x9e   : > { %1448 = vmatpush1.bf16.msra.mxu0 %v6188_v13  ;;  %6092 = vmatpush1.bf16.msra.mxu1 %v6188_v13  ;;  %v6234_v13 = vld [vmem:[%s6829_s13 + $0xd0] ss:$8 sps:$4 sm:$0xff]  }
  0x9f   : > { %1449 = vmatprep.subr.bf16.mxu0 %v6575_v0  ;;  %6083 = vmatprep.subr.bf16.mxu1 %v6575_v0  ;;  %v6316_v0 = vld [vmem:[%s6797_s16 + $0x18] sm:$0xff]   ;;  %s7010_s16 = scalar_lea.vmem %s7518_s5, %s4361_s20 }
  0xa2   : > { %1450 = vmatpush1.bf16.msra.mxu0 %v1429_v16  ;;  %6093 = vmatpush1.bf16.msra.mxu1 %v1429_v16  ;;  %v6317_v16 = vld [vmem:[%s6829_s13 + $0x3e4] ss:$8 sps:$4 sm:$0xff]  }
  0xa3   : > { %5930 = vmatprep.subr.bf16.mxu1 %v6304_v53 }
  0xa5   : > { %1464 = vmatmul.mubr.bf16.vlgmr.msra.gmra.mrb[0].mxu0 %v6190_v17  ;;  %1848 = vmatmul.mubr.bf16.vlgmr.msra.gmra.mrb[0].mxu1 %v6229_v19  ;;  %v6240_v17 = vld [vmem:[%s6829_s13 + $0xe0] ss:$8 sps:$4 sm:$0xff]   ;;  %v6244_v19 = vld [vmem:[%s6829_s13 + $0xf4] ss:$8 sps:$4 sm:$0xff]  }
  0xa6   : > { %4505 = vmatprep.mubr.msk.bf16.mxu0 %vm1231_vm0, %v6193_v18  ;;  %4553 = vmatprep.mubr.msk.bf16.mxu1 %vm1231_vm0, %v6235_v20  ;;  %v6319_v18 = vld [vmem:[%s6829_s13 + $0x3e0] ss:$8 sps:$4 sm:$0xff]   ;;  %v6325_v20 = vld [vmem:[%s6829_s13 + $0x3f4] ss:$8 sps:$4 sm:$0xff]  }
  0xa7   : > { %5931 = vmatpush3.bf16.msra.mxu1 %v6304_v53 }
  0xa8   : > { %5932 = vmatprep.subr.bf16.mxu1 %v6308_v58 }
  0xab   : > { %5933 = vmatpush3.bf16.msra.mxu1 %v6308_v58 }
  0xac   : > { %5934 = vmatprep.subr.bf16.mxu1 %v6312_v59 }
  0xad   : > { %1472 = vmatmul.mubr.bf16.gmra.mrb[4].mxu0 %v6195_v21  ;;  %1856 = vmatmul.mubr.bf16.gmra.mrb[4].mxu1 %v6237_v22  ;;  %v6246_v21 = vld [vmem:[%s6829_s13 + $0xf0] ss:$8 sps:$4 sm:$0xff]  }
  0xae   : > { %4506 = vmatprep.mubr.msk.bf16.mxu0 %vm1231_vm0, %v6196_v23  ;;  %4554 = vmatprep.mubr.msk.bf16.mxu1 %vm1231_vm0, %v6241_v24  ;;  %v6327_v22 = vld [vmem:[%s6829_s13 + $0x3f0] ss:$8 sps:$4 sm:$0xff]   ;;  %v6250_v23 = vld [vmem:[%s6829_s13 + $0x104] ss:$8 sps:$4 sm:$0xff]   ;;  %v6252_v24 = vld [vmem:[%s6829_s13 + $0x100] ss:$8 sps:$4 sm:$0xff]  }
  0xaf   : > { %5935 = vmatpush3.bf16.msra.mxu1 %v6312_v59 }
  0xb0   : > { %5936 = vmatprep.subr.bf16.mxu1 %v6316_v0 }
  0xb3   : > { %5937 = vmatpush3.bf16.msra.mxu1 %v6316_v0 }
  0xb4   : > { %5938 = vmatprep.subr.bf16.mxu1 %v6320_v1 }
  0xb5   : > { %1480 = vmatmul.mubr.bf16.gmra.mrb[8].mxu0 %v6198_v25  ;;  %1864 = vmatmul.mubr.bf16.gmra.mrb[8].mxu1 %v6243_v26  ;;  %v6256_v25 = vld [vmem:[%s6829_s13 + $0x114] ss:$8 sps:$4 sm:$0xff]   ;;  %v6258_v26 = vld [vmem:[%s6829_s13 + $0x110] ss:$8 sps:$4 sm:$0xff]  }
  0xb6   : > { %4507 = vmatprep.mubr.msk.bf16.mxu0 %vm1231_vm0, %v6199_v27  ;;  %4555 = vmatprep.mubr.msk.bf16.mxu1 %vm1231_vm0, %v6247_v28  ;;  %v6262_v27 = vld [vmem:[%s6829_s13 + $0x124] ss:$8 sps:$4 sm:$0xff]   ;;  %v6264_v28 = vld [vmem:[%s6829_s13 + $0x120] ss:$8 sps:$4 sm:$0xff]  }
  0xb7   : > { %5939 = vmatpush3.bf16.msra.mxu1 %v6320_v1 }
  0xb8   : > { %5940 = vmatprep.subr.bf16.mxu1 %v6324_v6 }
  0xbb   : > { %5941 = vmatpush3.bf16.msra.mxu1 %v6324_v6 }
  0xbc   : > { %5942 = vmatprep.subr.bf16.mxu1 %v6328_v7 }
  0xbd   : > { %1488 = vmatmul.mubr.bf16.gmra.mrb[12].mxu0 %v6201_v29  ;;  %1872 = vmatmul.mubr.bf16.gmra.mrb[12].mxu1 %v6249_v30  ;;  %v6268_v29 = vld [vmem:[%s6829_s13 + $0x134] ss:$8 sps:$4 sm:$0xff]   ;;  %v6270_v30 = vld [vmem:[%s6829_s13 + $0x130] ss:$8 sps:$4 sm:$0xff]  }
  0xbe   : > { %4508 = vmatprep.mubr.msk.bf16.mxu0 %vm1231_vm0, %v6202_v31  ;;  %4556 = vmatprep.mubr.msk.bf16.mxu1 %vm1231_vm0, %v6253_v32  ;;  %v6274_v31 = vld [vmem:[%s6829_s13 + $0x144] ss:$8 sps:$4 sm:$0xff]   ;;  %v6276_v32 = vld [vmem:[%s6829_s13 + $0x140] ss:$8 sps:$4 sm:$0xff]  }
  0xbf   : > { %5943 = vmatpush3.bf16.msra.mxu1 %v6328_v7 }
  0xc0   : > { %5944 = vmatprep.subr.bf16.mxu1 %v6332_v12 }
  0xc3   : > { %5945 = vmatpush3.bf16.msra.mxu1 %v6332_v12 }
  0xc5   : > { %1496 = vmatmul.mubr.bf16.gmra.mrb[16].mxu0 %v6204_v33  ;;  %1880 = vmatmul.mubr.bf16.gmra.mrb[16].mxu1 %v6255_v34  ;;  %v6280_v33 = vld [vmem:[%s6829_s13 + $0x154] ss:$8 sps:$4 sm:$0xff]   ;;  %v6282_v34 = vld [vmem:[%s6829_s13 + $0x150] ss:$8 sps:$4 sm:$0xff]  }
  0xc6   : > { %4509 = vmatprep.mubr.msk.bf16.mxu0 %vm1231_vm0, %v6205_v35  ;;  %4557 = vmatprep.mubr.msk.bf16.mxu1 %vm1231_vm0, %v6259_v36  ;;  %v6286_v35 = vld [vmem:[%s6829_s13 + $0x164] ss:$8 sps:$4 sm:$0xff]   ;;  %v6288_v36 = vld [vmem:[%s6829_s13 + $0x160] ss:$8 sps:$4 sm:$0xff]  }
  0xcd   : > { %1504 = vmatmul.mubr.bf16.gmra.mrb[20].mxu0 %v6207_v37  ;;  %1888 = vmatmul.mubr.bf16.gmra.mrb[20].mxu1 %v6261_v38  ;;  %v6292_v37 = vld [vmem:[%s6829_s13 + $0x174] ss:$8 sps:$4 sm:$0xff]   ;;  %v6294_v38 = vld [vmem:[%s6829_s13 + $0x170] ss:$8 sps:$4 sm:$0xff]  }
  0xce   : > { %4510 = vmatprep.mubr.msk.bf16.mxu0 %vm1231_vm0, %v6208_v39  ;;  %4558 = vmatprep.mubr.msk.bf16.mxu1 %vm1231_vm0, %v6265_v40  ;;  %v6298_v39 = vld [vmem:[%s6829_s13 + $0x184] ss:$8 sps:$4 sm:$0xff]   ;;  %v6300_v40 = vld [vmem:[%s6829_s13 + $0x180] ss:$8 sps:$4 sm:$0xff]  }
  0xd5   : > { %1512 = vmatmul.mubr.bf16.gmra.mrb[24].mxu0 %v6210_v41  ;;  %1896 = vmatmul.mubr.bf16.gmra.mrb[24].mxu1 %v6267_v42  ;;  %v6305_v41 = vld [vmem:[%s6829_s13 + $0x194] ss:$8 sps:$4 sm:$0xff]   ;;  %v6307_v42 = vld [vmem:[%s6829_s13 + $0x190] ss:$8 sps:$4 sm:$0xff]  }
  0xd6   : > { %4511 = vmatprep.mubr.msk.bf16.mxu0 %vm1231_vm0, %v6211_v43  ;;  %4559 = vmatprep.mubr.msk.bf16.mxu1 %vm1231_vm0, %v6271_v44  ;;  %v6313_v43 = vld [vmem:[%s6829_s13 + $0x1a4] ss:$8 sps:$4 sm:$0xff]   ;;  %v6315_v44 = vld [vmem:[%s6829_s13 + $0x1a0] ss:$8 sps:$4 sm:$0xff]  }
  0xdd   : > { %1520 = vmatmul.mubr.bf16.gmra.mrb[28].mxu0 %v6213_v45  ;;  %1904 = vmatmul.mubr.bf16.gmra.mrb[28].mxu1 %v6273_v46  ;;  %v6321_v45 = vld [vmem:[%s6829_s13 + $0x1b4] ss:$8 sps:$4 sm:$0xff]   ;;  %v6994_v46 = vld [vmem:[%s325_s3] ss:$0 sm:$0xff] }
  0xde   : > { %4512 = vmatprep.mubr.msk.bf16.mxu0 %vm1231_vm0, %v6214_v47  ;;  %4560 = vmatprep.mubr.msk.bf16.mxu1 %vm1231_vm0, %v6277_v48 }
  0xe5   : > { %1528 = vmatmul.mubr.bf16.gmra.mrb[32].mxu0 %v6216_v49  ;;  %1912 = vmatmul.mubr.bf16.gmra.mrb[32].mxu1 %v6279_v50  ;;  %v6323_v50 = vld [vmem:[%s6829_s13 + $0x1b0] ss:$8 sps:$4 sm:$0xff]  }
  0xe6   : > { %4513 = vmatprep.mubr.msk.bf16.mxu0 %vm1231_vm0, %v6217_v51  ;;  %4561 = vmatprep.mubr.msk.bf16.mxu1 %vm1231_vm0, %v6283_v52  ;;  %v6329_v52 = vld [vmem:[%s6829_s13 + $0x1c4] ss:$8 sps:$4 sm:$0xff]  }
  0xed   : > { %1536 = vmatmul.mubr.bf16.gmra.mrb[36].mxu0 %v6219_v54  ;;  %1920 = vmatmul.mubr.bf16.gmra.mrb[36].mxu1 %v6285_v55 }
  0xee   : > { %4514 = vmatprep.mubr.msk.bf16.mxu0 %vm1231_vm0, %v6220_v56  ;;  %4562 = vmatprep.mubr.msk.bf16.mxu1 %vm1231_vm0, %v6289_v57 }
  0xf5   : > { %1544 = vmatmul.mubr.bf16.gmra.mrb[40].mxu0 %v6222_v60  ;;  %1928 = vmatmul.mubr.bf16.gmra.mrb[40].mxu1 %v6291_v61  ;;  %v6331_v61 = vld [vmem:[%s6829_s13 + $0x1c0] ss:$8 sps:$4 sm:$0xff]  }
  0xf6   : > { %4515 = vmatprep.mubr.msk.bf16.mxu0 %vm1231_vm0, %v6223_v62  ;;  %4563 = vmatprep.mubr.msk.bf16.mxu1 %vm1231_vm0, %v6295_v63  ;;  %v6333_v63 = vld [vmem:[%s6829_s13 + $0x1d4] ss:$8 sps:$4 sm:$0xff]  }
  0xfd   : > { %1552 = vmatmul.mubr.bf16.gmra.mrb[44].mxu0 %v6225_v2  ;;  %1936 = vmatmul.mubr.bf16.gmra.mrb[44].mxu1 %v6297_v3 }
  0xfe   : > { %4516 = vmatprep.mubr.msk.bf16.mxu0 %vm1231_vm0, %v6226_v4  ;;  %4564 = vmatprep.mubr.msk.bf16.mxu1 %vm1231_vm0, %v6301_v5 }
 0x105   : > { %1560 = vmatmul.mubr.bf16.gmra.mrb[48].mxu0 %v6228_v8  ;;  %1944 = vmatmul.mubr.bf16.gmra.mrb[48].mxu1 %v6303_v9  ;;  %v6335_v8 = vld [vmem:[%s6829_s13 + $0x1d0] ss:$8 sps:$4 sm:$0xff]  }
 0x106   : > { %4517 = vmatprep.mubr.msk.bf16.mxu0 %vm1231_vm0, %v6232_v10  ;;  %4565 = vmatprep.mubr.msk.bf16.mxu1 %vm1231_vm0, %v6309_v11  ;;  %v6336_v10 = vld [vmem:[%s6829_s13 + $0x1e4] ss:$8 sps:$4 sm:$0xff]  }
 0x10d   : > { %1568 = vmatmul.mubr.bf16.gmra.mrb[52].mxu0 %v6234_v13  ;;  %1952 = vmatmul.mubr.bf16.gmra.mrb[52].mxu1 %v6311_v14 }
 0x10e   : > { %4518 = vmatprep.mubr.msk.bf16.mxu0 %vm1231_vm0, %v6238_v15  ;;  %4566 = vmatprep.mubr.msk.bf16.mxu1 %vm1231_vm0, %v6317_v16 }
 0x115   : > { %1576 = vmatmul.mubr.bf16.gmra.mrb[56].mxu0 %v6240_v17  ;;  %1960 = vmatmul.mubr.bf16.gmra.mrb[56].mxu1 %v6319_v18 }
 0x116   : > { %4519 = vmatprep.mubr.msk.bf16.mxu0 %vm1231_vm0, %v6244_v19  ;;  %4567 = vmatprep.mubr.msk.bf16.mxu1 %vm1231_vm0, %v6325_v20  ;;  %v6338_v19 = vld [vmem:[%s6829_s13 + $0x1e0] ss:$8 sps:$4 sm:$0xff]  }
 0x11d   : > { %1584 = vmatmul.mubr.bf16.gmra.mrb[60].mxu0 %v6246_v21  ;;  %1968 = vmatmul.mubr.bf16.gmra.mrb[60].mxu1 %v6327_v22  ;;  %v6339_v21 = vld [vmem:[%s6829_s13 + $0x1f4] ss:$8 sps:$4 sm:$0xff]  }
 0x11e   : > { %4520 = vmatprep.mubr.msk.bf16.mxu0 %vm1231_vm0, %v6250_v23 }
 0x125   : > { %1592 = vmatmul.mubr.bf16.gmra.mrb[64].mxu0 %v6252_v24 }
 0x126   : > { %4521 = vmatprep.mubr.msk.bf16.mxu0 %vm1231_vm0, %v6256_v25 }
 0x12d   : > { %1600 = vmatmul.mubr.bf16.gmra.mrb[68].mxu0 %v6258_v26 }
 0x12e   : > { %4522 = vmatprep.mubr.msk.bf16.mxu0 %vm1231_vm0, %v6262_v27 }
 0x135   : > { %1608 = vmatmul.mubr.bf16.gmra.mrb[72].mxu0 %v6264_v28 }
 0x136   : > { %4523 = vmatprep.mubr.msk.bf16.mxu0 %vm1231_vm0, %v6268_v29 }
 0x13d   : > { %1616 = vmatmul.mubr.bf16.gmra.mrb[76].mxu0 %v6270_v30  ;;  %v6341_v30 = vld [vmem:[%s6829_s13 + $0x1f0] ss:$8 sps:$4 sm:$0xff]  }
 0x13e   : > { %4524 = vmatprep.mubr.msk.bf16.mxu0 %vm1231_vm0, %v6274_v31 }
 0x145   : > { %1624 = vmatmul.mubr.bf16.gmra.mrb[80].mxu0 %v6276_v32  ;;  %v6342_v32 = vld [vmem:[%s6829_s13 + $0x204] ss:$8 sps:$4 sm:$0xff]  }
 0x146   : > { %4525 = vmatprep.mubr.msk.bf16.mxu0 %vm1231_vm0, %v6280_v33 }
 0x14d   : > { %1632 = vmatmul.mubr.bf16.gmra.mrb[84].mxu0 %v6282_v34 }
 0x14e   : > { %4526 = vmatprep.mubr.msk.bf16.mxu0 %vm1231_vm0, %v6286_v35 }
 0x155   : > { %1640 = vmatmul.mubr.bf16.gmra.mrb[88].mxu0 %v6288_v36 }
 0x156   : > { %4527 = vmatprep.mubr.msk.bf16.mxu0 %vm1231_vm0, %v6292_v37 }
 0x15d   : > { %1648 = vmatmul.mubr.bf16.gmra.mrb[92].mxu0 %v6294_v38 }
 0x15e   : > { %4528 = vmatprep.mubr.msk.bf16.mxu0 %vm1231_vm0, %v6298_v39 }
 0x165   : > { %1656 = vmatmul.mubr.bf16.gmra.mrb[96].mxu0 %v6300_v40 }
 0x166   : > { %4529 = vmatprep.mubr.msk.bf16.mxu0 %vm1231_vm0, %v6305_v41 }
 0x16d   : > { %1664 = vmatmul.mubr.bf16.gmra.mrb[100].mxu0 %v6307_v42 }
 0x16e   : > { %4530 = vmatprep.mubr.msk.bf16.mxu0 %vm1231_vm0, %v6313_v43 }
 0x175   : > { %1672 = vmatmul.mubr.bf16.gmra.mrb[104].mxu0 %v6315_v44 }
 0x176   : > { %4531 = vmatprep.mubr.msk.bf16.mxu0 %vm1231_vm0, %v6321_v45 }
 0x178   : > { %v1465_v47 = vpop.f32.mrb[0].mxu0  ;;  %v1849_v35 = vpop.f32.mrb[0].mxu1 }
 0x179   : > { %v1466_v48 = vadd.f32 %v6994_v46, %v1465_v47  ;;  %v1467_v49 = vpop.f32.mrb[1].mxu0  ;;  %v1851_v38 = vpop.f32.mrb[1].mxu1  ;;  %v6344_v47 = vld [vmem:[%s6829_s13 + $0x200] ss:$8 sps:$4 sm:$0xff]  }
 0x17a   : > { %v1468_v51 = vpop.f32.mrb[2].mxu0  ;;  %v1852_v39 = vpop.f32.mrb[2].mxu1  ;;  %v6350_v38 = vld [vmem:[%s6829_s13 + $0x220] ss:$8 sps:$4 sm:$0xff]  }
 0x17b   : > { %v1469_v53 = vadd.f32 %v6994_v46, %v1468_v51  ;;  %v1470_v54 = vpop.f32.mrb[3].mxu0  ;;  %v1976_v55 = vmax.f32 %v1466_v48, 0.0  ;;  %v1854_v41 = vpop.f32.mrb[3].mxu1  ;;  %v1850_v48 = vadd.f32 %v6994_v46, %v1849_v35  ;;  %v1853_v49 = vadd.f32 %v6994_v46, %v1852_v39 }
 0x17d   : > { %v1977_v56 = vmax.f32 %v1469_v53, 0.0  ;;  %1680 = vmatmul.mubr.bf16.gmra.mrb[108].mxu0 %v6323_v50 }
 0x17e   : > { %4532 = vmatprep.mubr.msk.bf16.mxu0 %vm1231_vm0, %v6329_v52  ;;  %v6345_v52 = vld [vmem:[%s6829_s13 + $0x214] ss:$8 sps:$4 sm:$0xff]  }
 0x17f   : > { %v2104_v57 = vpack.c.bf16 %v1977_v56, %v1976_v55  ;;  %v2072_v56 = vmax.f32 %v1850_v48, 0.0 }
 0x180   : > { %v1473_v58 = vpop.f32.mrb[4].mxu0  ;;  %v1857_v43 = vpop.f32.mrb[4].mxu1 }
 0x181   : > { %5096 = vst [vmem:[%s7010_s16] sm:$0xff] %v2104_v57   ;;  %v1474_v59 = vadd.f32 %v6994_v46, %v1473_v58  ;;  %v1475_v60 = vpop.f32.mrb[5].mxu0  ;;  %5946 = vmatprep.mubr.bf16.mxu1 %v2104_v57  ;;  %v1859_v50 = vpop.f32.mrb[5].mxu1  ;;  %v2073_v57 = vmax.f32 %v1853_v49, 0.0 }
 0x182   : > { %v1476_v62 = vpop.f32.mrb[6].mxu0  ;;  %v1860_v53 = vpop.f32.mrb[6].mxu1 }
 0x183   : > { %v1477_v0 = vadd.f32 %v6994_v46, %v1476_v62  ;;  %v1478_v1 = vpop.f32.mrb[7].mxu0  ;;  %v1978_v2 = vmax.f32 %v1474_v59, 0.0  ;;  %v1862_v58 = vpop.f32.mrb[7].mxu1  ;;  %v1858_v59 = vadd.f32 %v6994_v46, %v1857_v43 }
 0x185   : > { %v1979_v3 = vmax.f32 %v1477_v0, 0.0  ;;  %1688 = vmatmul.mubr.bf16.gmra.mrb[112].mxu0 %v6331_v61 }
 0x186   : > { %4533 = vmatprep.mubr.msk.bf16.mxu0 %vm1231_vm0, %v6333_v63  ;;  %v2152_v63 = vpack.c.bf16 %v2073_v57, %v2072_v56 }
 0x187   : > { %v2105_v4 = vpack.c.bf16 %v1979_v3, %v1978_v2 }
 0x188   : > { %v1481_v5 = vpop.f32.mrb[8].mxu0  ;;  %v1865_v60 = vpop.f32.mrb[8].mxu1  ;;  %5779 = vst [vmem:[%s7010_s16 + $0x180] sm:$0xff] %v2152_v63  }
 0x189   : > { %5732 = vst [vmem:[%s7010_s16 + $0x8] sm:$0xff] %v2105_v4   ;;  %v1482_v6 = vadd.f32 %v6994_v46, %v1481_v5  ;;  %v1483_v7 = vpop.f32.mrb[9].mxu0  ;;  %5947 = vmatmul.mubr.bf16.vlgmr.msra.gmra.mrb[64].mxu1 %v2105_v4  ;;  %v1867_v0 = vpop.f32.mrb[9].mxu1  ;;  %v2074_v5 = vmax.f32 %v1858_v59, 0.0 }
 0x18a   : > { %v1484_v9 = vpop.f32.mrb[10].mxu0  ;;  %v1868_v1 = vpop.f32.mrb[10].mxu1 }
 0x18b   : > { %v1485_v11 = vadd.f32 %v6994_v46, %v1484_v9  ;;  %v1486_v12 = vpop.f32.mrb[11].mxu0  ;;  %v1980_v13 = vmax.f32 %v1482_v6, 0.0  ;;  %v1870_v3 = vpop.f32.mrb[11].mxu1  ;;  %v6347_v9 = vld [vmem:[%s6829_s13 + $0x210] ss:$8 sps:$4 sm:$0xff]  }
 0x18c   : > { %v1869_v12 = vadd.f32 %v6994_v46, %v1868_v1 }
 0x18d   : > { %v1981_v14 = vmax.f32 %v1485_v11, 0.0  ;;  %1696 = vmatmul.mubr.bf16.gmra.mrb[116].mxu0 %v6335_v8  ;;  %v1866_v11 = vadd.f32 %v6994_v46, %v1865_v60 }
 0x18e   : > { %4534 = vmatprep.mubr.msk.bf16.mxu0 %vm1231_vm0, %v6336_v10  ;;  %v1861_v10 = vadd.f32 %v6994_v46, %v1860_v53 }
 0x18f   : > { %v2106_v15 = vpack.c.bf16 %v1981_v14, %v1980_v13 }
 0x190   : > { %v1489_v16 = vpop.f32.mrb[12].mxu0  ;;  %v1873_v6 = vpop.f32.mrb[12].mxu1 }
 0x191   : > { %5733 = vst [vmem:[%s7010_s16 + $0x10] sm:$0xff] %v2106_v15   ;;  %v1490_v17 = vadd.f32 %v6994_v46, %v1489_v16  ;;  %v1491_v18 = vpop.f32.mrb[13].mxu0  ;;  %5950 = vmatprep.mubr.bf16.mxu1 %v2106_v15  ;;  %v1875_v13 = vpop.f32.mrb[13].mxu1  ;;  %v6348_v15 = vld [vmem:[%s6829_s13 + $0x224] ss:$8 sps:$4 sm:$0xff]  }
 0x192   : > { %v1492_v20 = vpop.f32.mrb[14].mxu0  ;;  %v1876_v16 = vpop.f32.mrb[14].mxu1 }
 0x193   : > { %v1493_v22 = vadd.f32 %v6994_v46, %v1492_v20  ;;  %v1494_v23 = vpop.f32.mrb[15].mxu0  ;;  %v1982_v24 = vmax.f32 %v1490_v17, 0.0  ;;  %v2076_v20 = vmax.f32 %v1866_v11, 0.0  ;;  %v1877_v39 = vadd.f32 %v6994_v46, %v1876_v16 }
 0x194   : > { %v1874_v23 = vadd.f32 %v6994_v46, %v1873_v6 }
 0x195   : > { %v1983_v25 = vmax.f32 %v1493_v22, 0.0  ;;  %1704 = vmatmul.mubr.bf16.gmra.mrb[120].mxu0 %v6338_v19  ;;  %v2075_v19 = vmax.f32 %v1861_v10, 0.0  ;;  %v2077_v22 = vmax.f32 %v1869_v12, 0.0  ;;  %v2079_v49 = vmax.f32 %v1877_v39, 0.0  ;;  %v6354_v10 = vld [vmem:[%s6829_s13 + $0x244] ss:$8 sps:$4 sm:$0xff]  }
 0x196   : > { %4535 = vmatprep.mubr.msk.bf16.mxu0 %vm1231_vm0, %v6339_v21  ;;  %v1878_v21 = vpop.f32.mrb[15].mxu1  ;;  %v6357_v39 = vld [vmem:[%s6829_s13 + $0x254] ss:$8 sps:$4 sm:$0xff]  }
 0x197   : > { %v2107_v26 = vpack.c.bf16 %v1983_v25, %v1982_v24 }
 0x198   : > { %v1497_v27 = vpop.f32.mrb[16].mxu0  ;;  %v1881_v24 = vpop.f32.mrb[16].mxu1 }
 0x199   : > { %5734 = vst [vmem:[%s7010_s16 + $0x18] sm:$0xff] %v2107_v26   ;;  %v1498_v28 = vadd.f32 %v6994_v46, %v1497_v27  ;;  %v1499_v29 = vpop.f32.mrb[17].mxu0  ;;  %5951 = vmatmul.mubr.bf16.gmra.mrb[68].mxu1 %v2107_v26  ;;  %v2153_v27 = vpack.c.bf16 %v2075_v19, %v2074_v5 }
 0x19a   : > { %v1500_v31 = vpop.f32.mrb[18].mxu0  ;;  %v2154_v29 = vpack.c.bf16 %v2077_v22, %v2076_v20 }
 0x19b   : > { %v1501_v33 = vadd.f32 %v6994_v46, %v1500_v31  ;;  %v1502_v34 = vpop.f32.mrb[19].mxu0  ;;  %v1984_v36 = vmax.f32 %v1498_v28, 0.0  ;;  %v1883_v28 = vpop.f32.mrb[17].mxu1  ;;  %5780 = vst [vmem:[%s7010_s16 + $0x188] sm:$0xff] %v2153_v27  }
 0x19c   : > { %5781 = vst [vmem:[%s7010_s16 + $0x190] sm:$0xff] %v2154_v29   ;;  %v2078_v34 = vmax.f32 %v1874_v23, 0.0 }
 0x19d   : > { %v1985_v37 = vmax.f32 %v1501_v33, 0.0  ;;  %1712 = vmatmul.mubr.bf16.gmra.mrb[124].mxu0 %v6341_v30  ;;  %v1884_v30 = vpop.f32.mrb[18].mxu1 }
 0x19e   : > { %4536 = vmatprep.mubr.msk.bf16.mxu0 %vm1231_vm0, %v6342_v32  ;;  %v1886_v32 = vpop.f32.mrb[19].mxu1  ;;  %v1885_v41 = vadd.f32 %v6994_v46, %v1884_v30  ;;  %v2155_v57 = vpack.c.bf16 %v2079_v49, %v2078_v34 }
 0x19f   : > { %v2108_v40 = vpack.c.bf16 %v1985_v37, %v1984_v36 }
 0x1a0   : > { %v1505_v42 = vpop.f32.mrb[20].mxu0  ;;  %v1889_v35 = vpop.f32.mrb[20].mxu1  ;;  %5782 = vst [vmem:[%s7010_s16 + $0x198] sm:$0xff] %v2155_v57  }
 0x1a1   : > { %5735 = vst [vmem:[%s7010_s16 + $0x20] sm:$0xff] %v2108_v40   ;;  %v1506_v44 = vadd.f32 %v6994_v46, %v1505_v42  ;;  %v1507_v45 = vpop.f32.mrb[21].mxu0  ;;  %5954 = vmatprep.mubr.bf16.mxu1 %v2108_v40  ;;  %v1882_v40 = vadd.f32 %v6994_v46, %v1881_v24  ;;  %v1891_v42 = vpop.f32.mrb[21].mxu1  ;;  %v1890_v53 = vadd.f32 %v6994_v46, %v1889_v35 }
 0x1a2   : > { %v1508_v51 = vpop.f32.mrb[22].mxu0  ;;  %v1892_v45 = vpop.f32.mrb[22].mxu1 }
 0x1a3   : > { %v1509_v54 = vadd.f32 %v6994_v46, %v1508_v51  ;;  %v1510_v55 = vpop.f32.mrb[23].mxu0  ;;  %v1986_v61 = vmax.f32 %v1506_v44, 0.0  ;;  %v6351_v44 = vld [vmem:[%s6829_s13 + $0x234] ss:$8 sps:$4 sm:$0xff]   ;;  %v2080_v50 = vmax.f32 %v1882_v40, 0.0  ;;  %v1894_v51 = vpop.f32.mrb[23].mxu1  ;;  %v1893_v5 = vadd.f32 %v6994_v46, %v1892_v45 }
 0x1a4   : > { %v2082_v0 = vmax.f32 %v1890_v53, 0.0 }
 0x1a5   : > { %v1987_v62 = vmax.f32 %v1509_v54, 0.0  ;;  %1720 = vmatmul.mubr.bf16.gmra.mrb[128].mxu0 %v6344_v47 }
 0x1a6   : > { %4537 = vmatprep.mubr.msk.bf16.mxu0 %vm1231_vm0, %v6345_v52  ;;  %v2081_v52 = vmax.f32 %v1885_v41, 0.0 }
 0x1a7   : > { %v2109_v2 = vpack.c.bf16 %v1987_v62, %v1986_v61 }
 0x1a8   : > { %v1513_v4 = vpop.f32.mrb[24].mxu0  ;;  %v1897_v54 = vpop.f32.mrb[24].mxu1  ;;  %v2156_v59 = vpack.c.bf16 %v2081_v52, %v2080_v50 }
 0x1a9   : > { %5736 = vst [vmem:[%s7010_s16 + $0x28] sm:$0xff] %v2109_v2   ;;  %v1514_v7 = vadd.f32 %v6994_v46, %v1513_v4  ;;  %v1515_v8 = vpop.f32.mrb[25].mxu0  ;;  %5955 = vmatmul.mubr.bf16.gmra.mrb[72].mxu1 %v2109_v2  ;;  %v1899_v58 = vpop.f32.mrb[25].mxu1  ;;  %v6353_v4 = vld [vmem:[%s6829_s13 + $0x230] ss:$8 sps:$4 sm:$0xff]   ;;  %v1898_v6 = vadd.f32 %v6994_v46, %v1897_v54 }
 0x1aa   : > { %v1516_v14 = vpop.f32.mrb[26].mxu0  ;;  %v1900_v60 = vpop.f32.mrb[26].mxu1  ;;  %5783 = vst [vmem:[%s7010_s16 + $0x1a0] sm:$0xff] %v2156_v59   ;;  %v6359_v58 = vld [vmem:[%s6829_s13 + $0x250] ss:$8 sps:$4 sm:$0xff]  }
 0x1ab   : > { %v1517_v17 = vadd.f32 %v6994_v46, %v1516_v14  ;;  %v1518_v18 = vpop.f32.mrb[27].mxu0  ;;  %v1988_v25 = vmax.f32 %v1514_v7, 0.0  ;;  %v1902_v62 = vpop.f32.mrb[27].mxu1  ;;  %v1901_v7 = vadd.f32 %v6994_v46, %v1900_v60  ;;  %v2083_v14 = vmax.f32 %v1893_v5, 0.0 }
 0x1ad   : > { %v1989_v26 = vmax.f32 %v1517_v17, 0.0  ;;  %1728 = vmatmul.mubr.bf16.gmra.mrb[132].mxu0 %v6347_v9  ;;  %v2085_v17 = vmax.f32 %v1901_v7, 0.0  ;;  %v2157_v22 = vpack.c.bf16 %v2083_v14, %v2082_v0  ;;  %v6360_v0 = vld [vmem:[%s6829_s13 + $0x264] ss:$8 sps:$4 sm:$0xff]  }
 0x1ae   : > { %4538 = vmatprep.mubr.msk.bf16.mxu0 %vm1231_vm0, %v6348_v15  ;;  %v2084_v15 = vmax.f32 %v1898_v6, 0.0 }
 0x1af   : > { %v2110_v31 = vpack.c.bf16 %v1989_v26, %v1988_v25  ;;  %5784 = vst [vmem:[%s7010_s16 + $0x1a8] sm:$0xff] %v2157_v22   ;;  %v6363_v22 = vld [vmem:[%s6829_s13 + $0x274] ss:$8 sps:$4 sm:$0xff]  }
 0x1b0   : > { %v1521_v33 = vpop.f32.mrb[28].mxu0  ;;  %v1905_v1 = vpop.f32.mrb[28].mxu1  ;;  %v2158_v24 = vpack.c.bf16 %v2085_v17, %v2084_v15 }
 0x1b1   : > { %5737 = vst [vmem:[%s7010_s16 + $0x30] sm:$0xff] %v2110_v31   ;;  %v1522_v36 = vadd.f32 %v6994_v46, %v1521_v33  ;;  %v1523_v37 = vpop.f32.mrb[29].mxu0  ;;  %5958 = vmatprep.mubr.bf16.mxu1 %v2110_v31  ;;  %v1907_v8 = vpop.f32.mrb[29].mxu1  ;;  %v1906_v18 = vadd.f32 %v6994_v46, %v1905_v1  ;;  %v6356_v33 = vld [vmem:[%s6829_s13 + $0x240] ss:$8 sps:$4 sm:$0xff]  }
 0x1b2   : > { %v1524_v43 = vpop.f32.mrb[30].mxu0  ;;  %v1908_v11 = vpop.f32.mrb[30].mxu1  ;;  %5785 = vst [vmem:[%s7010_s16 + $0x1b0] sm:$0xff] %v2158_v24  }
 0x1b3   : > { %v1525_v47 = vadd.f32 %v6994_v46, %v1524_v43  ;;  %v1526_v48 = vpop.f32.mrb[31].mxu0  ;;  %v1990_v55 = vmax.f32 %v1522_v36, 0.0  ;;  %v1910_v16 = vpop.f32.mrb[31].mxu1  ;;  %v2086_v29 = vmax.f32 %v1906_v18, 0.0  ;;  %v1909_v34 = vadd.f32 %v6994_v46, %v1908_v11  ;;  %v6362_v18 = vld [vmem:[%s6829_s13 + $0x260] ss:$8 sps:$4 sm:$0xff]  }
 0x1b5   : > { %v1991_v56 = vmax.f32 %v1525_v47, 0.0  ;;  %1736 = vmatmul.mubr.bf16.gmra.mrb[136].mxu0 %v6350_v38  ;;  %v2087_v43 = vmax.f32 %v1909_v34, 0.0 }
 0x1b6   : > { %4539 = vmatprep.mubr.msk.bf16.mxu0 %vm1231_vm0, %v6351_v44 }
 0x1b7   : > { %v2111_v61 = vpack.c.bf16 %v1991_v56, %v1990_v55  ;;  %v2159_v50 = vpack.c.bf16 %v2087_v43, %v2086_v29 }
 0x1b8   : > { %v1529_v63 = vpop.f32.mrb[32].mxu0  ;;  %v1913_v19 = vpop.f32.mrb[32].mxu1 }
 0x1b9   : > { %5738 = vst [vmem:[%s7010_s16 + $0x38] sm:$0xff] %v2111_v61   ;;  %v1530_v2 = vadd.f32 %v6994_v46, %v1529_v63  ;;  %v1531_v3 = vpop.f32.mrb[33].mxu0  ;;  %5959 = vmatmul.mubr.bf16.gmra.mrb[76].mxu1 %v2111_v61  ;;  %v1915_v23 = vpop.f32.mrb[33].mxu1  ;;  %v1914_v35 = vadd.f32 %v6994_v46, %v1913_v19  ;;  %5786 = vst [vmem:[%s7010_s16 + $0x1b8] sm:$0xff] %v2159_v50  }
 0x1ba   : > { %v1532_v9 = vpop.f32.mrb[34].mxu0  ;;  %v1916_v25 = vpop.f32.mrb[34].mxu1 }
 0x1bb   : > { %v1533_v12 = vadd.f32 %v6994_v46, %v1532_v9  ;;  %v1534_v13 = vpop.f32.mrb[35].mxu0  ;;  %v1992_v20 = vmax.f32 %v1530_v2, 0.0  ;;  %v1918_v27 = vpop.f32.mrb[35].mxu1  ;;  %v1917_v36 = vadd.f32 %v6994_v46, %v1916_v25  ;;  %v2088_v44 = vmax.f32 %v1914_v35, 0.0 }
 0x1bd   : > { %v1993_v21 = vmax.f32 %v1533_v12, 0.0  ;;  %1744 = vmatmul.mubr.bf16.gmra.mrb[140].mxu0 %v6353_v4  ;;  %v2089_v47 = vmax.f32 %v1917_v36, 0.0 }
 0x1be   : > { %4540 = vmatprep.mubr.msk.bf16.mxu0 %vm1231_vm0, %v6354_v10 }
 0x1bf   : > { %v2112_v26 = vpack.c.bf16 %v1993_v21, %v1992_v20  ;;  %v2160_v52 = vpack.c.bf16 %v2089_v47, %v2088_v44 }
 0x1c0   : > { %v1537_v28 = vpop.f32.mrb[36].mxu0  ;;  %v1921_v30 = vpop.f32.mrb[36].mxu1 }
 0x1c1   : > { %5739 = vst [vmem:[%s7010_s16 + $0x40] sm:$0xff] %v2112_v26   ;;  %v1538_v31 = vadd.f32 %v6994_v46, %v1537_v28  ;;  %v1539_v32 = vpop.f32.mrb[37].mxu0  ;;  %5962 = vmatprep.mubr.bf16.mxu1 %v2112_v26  ;;  %v1923_v37 = vpop.f32.mrb[37].mxu1  ;;  %v1922_v51 = vadd.f32 %v6994_v46, %v1921_v30  ;;  %5787 = vst [vmem:[%s7010_s16 + $0x1c0] sm:$0xff] %v2160_v52  }
 0x1c2   : > { %v1540_v38 = vpop.f32.mrb[38].mxu0  ;;  %v1924_v40 = vpop.f32.mrb[38].mxu1 }
 0x1c3   : > { %v1541_v41 = vadd.f32 %v6994_v46, %v1540_v38  ;;  %v1542_v42 = vpop.f32.mrb[39].mxu0  ;;  %v1926_v45 = vpop.f32.mrb[39].mxu1  ;;  %v1994_v48 = vmax.f32 %v1538_v31, 0.0  ;;  %v2090_v59 = vmax.f32 %v1922_v51, 0.0  ;;  %v1925_v60 = vadd.f32 %v6994_v46, %v1924_v40  ;;  %v6365_v38 = vld [vmem:[%s6829_s13 + $0x270] ss:$8 sps:$4 sm:$0xff]  }
 0x1c4   : > { %v6366_v42 = vld [vmem:[%s6829_s13 + $0x284] ss:$8 sps:$4 sm:$0xff]  }
 0x1c5   : > { %v1995_v49 = vmax.f32 %v1541_v41, 0.0  ;;  %1752 = vmatmul.mubr.bf16.gmra.mrb[144].mxu0 %v6356_v33  ;;  %v2091_v4 = vmax.f32 %v1925_v60, 0.0 }
 0x1c6   : > { %4541 = vmatprep.mubr.msk.bf16.mxu0 %vm1231_vm0, %v6357_v39 }
 0x1c7   : > { %v2113_v53 = vpack.c.bf16 %v1995_v49, %v1994_v48  ;;  %v2161_v10 = vpack.c.bf16 %v2091_v4, %v2090_v59  ;;  %v6368_v59 = vld [vmem:[%s6829_s13 + $0x280] ss:$8 sps:$4 sm:$0xff]  }
 0x1c8   : > { %v1545_v54 = vpop.f32.mrb[40].mxu0  ;;  %v1929_v55 = vpop.f32.mrb[40].mxu1 }
 0x1c9   : > { %5740 = vst [vmem:[%s7010_s16 + $0x48] sm:$0xff] %v2113_v53   ;;  %v1546_v56 = vadd.f32 %v6994_v46, %v1545_v54  ;;  %v1547_v57 = vpop.f32.mrb[41].mxu0  ;;  %5963 = vmatmul.mubr.bf16.gmra.mrb[80].mxu1 %v2113_v53  ;;  %v1930_v61 = vadd.f32 %v6994_v46, %v1929_v55  ;;  %v1931_v62 = vpop.f32.mrb[41].mxu1  ;;  %5788 = vst [vmem:[%s7010_s16 + $0x1c8] sm:$0xff] %v2161_v10  }
 0x1ca   : > { %v1548_v63 = vpop.f32.mrb[42].mxu0  ;;  %v1932_v1 = vpop.f32.mrb[42].mxu1 }
 0x1cb   : > { %v1549_v2 = vadd.f32 %v6994_v46, %v1548_v63  ;;  %v1550_v3 = vpop.f32.mrb[43].mxu0  ;;  %v1934_v5 = vpop.f32.mrb[43].mxu1  ;;  %v2092_v6 = vmax.f32 %v1930_v61, 0.0  ;;  %v1933_v7 = vadd.f32 %v6994_v46, %v1932_v1  ;;  %v1996_v8 = vmax.f32 %v1546_v56, 0.0  ;;  %v6369_v63 = vld [vmem:[%s6829_s13 + $0x294] ss:$8 sps:$4 sm:$0xff]  }
 0x1cd   : > { %v1997_v9 = vmax.f32 %v1549_v2, 0.0  ;;  %1760 = vmatmul.mubr.bf16.gmra.mrb[148].mxu0 %v6359_v58  ;;  %v2093_v11 = vmax.f32 %v1933_v7, 0.0 }
 0x1ce   : > { %4542 = vmatprep.mubr.msk.bf16.mxu0 %vm1231_vm0, %v6360_v0 }
 0x1cf   : > { %v2114_v12 = vpack.c.bf16 %v1997_v9, %v1996_v8  ;;  %v2162_v14 = vpack.c.bf16 %v2093_v11, %v2092_v6 }
 0x1d0   : > { %v1553_v13 = vpop.f32.mrb[44].mxu0  ;;  %v1937_v15 = vpop.f32.mrb[44].mxu1 }
 0x1d1   : > { %5741 = vst [vmem:[%s7010_s16 + $0x50] sm:$0xff] %v2114_v12   ;;  %v1554_v16 = vadd.f32 %v6994_v46, %v1553_v13  ;;  %v1555_v17 = vpop.f32.mrb[45].mxu0  ;;  %5966 = vmatprep.mubr.bf16.mxu1 %v2114_v12  ;;  %v1938_v19 = vadd.f32 %v6994_v46, %v1937_v15  ;;  %v1939_v20 = vpop.f32.mrb[45].mxu1  ;;  %5789 = vst [vmem:[%s7010_s16 + $0x1d0] sm:$0xff] %v2162_v14   ;;  %v6371_v15 = vld [vmem:[%s6829_s13 + $0x290] ss:$8 sps:$4 sm:$0xff]  }
 0x1d2   : > { %v1556_v21 = vpop.f32.mrb[46].mxu0  ;;  %v1940_v23 = vpop.f32.mrb[46].mxu1 }
 0x1d3   : > { %v1557_v24 = vadd.f32 %v6994_v46, %v1556_v21  ;;  %v1558_v25 = vpop.f32.mrb[47].mxu0  ;;  %v2094_v26 = vmax.f32 %v1938_v19, 0.0  ;;  %v1941_v27 = vadd.f32 %v6994_v46, %v1940_v23  ;;  %v1942_v28 = vpop.f32.mrb[47].mxu1  ;;  %v1998_v29 = vmax.f32 %v1554_v16, 0.0  ;;  %v6372_v19 = vld [vmem:[%s6829_s13 + $0x2a4] ss:$8 sps:$4 sm:$0xff]  }
 0x1d5   : > { %v1999_v30 = vmax.f32 %v1557_v24, 0.0  ;;  %1768 = vmatmul.mubr.bf16.gmra.mrb[152].mxu0 %v6362_v18  ;;  %v2095_v31 = vmax.f32 %v1941_v27, 0.0 }
 0x1d6   : > { %4543 = vmatprep.mubr.msk.bf16.mxu0 %vm1231_vm0, %v6363_v22 }
 0x1d7   : > { %v2115_v32 = vpack.c.bf16 %v1999_v30, %v1998_v29  ;;  %v2163_v33 = vpack.c.bf16 %v2095_v31, %v2094_v26 }
 0x1d8   : > { %v1561_v34 = vpop.f32.mrb[48].mxu0  ;;  %v1945_v35 = vpop.f32.mrb[48].mxu1 }
 0x1d9   : > { %5742 = vst [vmem:[%s7010_s16 + $0x58] sm:$0xff] %v2115_v32   ;;  %v1562_v36 = vadd.f32 %v6994_v46, %v1561_v34  ;;  %v1563_v37 = vpop.f32.mrb[49].mxu0  ;;  %5967 = vmatmul.mubr.bf16.gmra.mrb[84].mxu1 %v2115_v32  ;;  %5790 = vst [vmem:[%s7010_s16 + $0x1d8] sm:$0xff] %v2163_v33   ;;  %v1946_v39 = vadd.f32 %v6994_v46, %v1945_v35  ;;  %v1947_v40 = vpop.f32.mrb[49].mxu1  ;;  %v6374_v35 = vld [vmem:[%s6829_s13 + $0x2a0] ss:$8 sps:$4 sm:$0xff]  }
 0x1da   : > { %v1564_v41 = vpop.f32.mrb[50].mxu0  ;;  %v1948_v43 = vpop.f32.mrb[50].mxu1 }
 0x1db   : > { %v1565_v44 = vadd.f32 %v6994_v46, %v1564_v41  ;;  %v1566_v45 = vpop.f32.mrb[51].mxu0  ;;  %v2096_v47 = vmax.f32 %v1946_v39, 0.0  ;;  %v1949_v48 = vadd.f32 %v6994_v46, %v1948_v43  ;;  %v1950_v49 = vpop.f32.mrb[51].mxu1  ;;  %v2000_v50 = vmax.f32 %v1562_v36, 0.0  ;;  %v6375_v39 = vld [vmem:[%s6829_s13 + $0x2b4] ss:$8 sps:$4 sm:$0xff]  }
 0x1dd   : > { %v2001_v51 = vmax.f32 %v1565_v44, 0.0  ;;  %1776 = vmatmul.mubr.bf16.gmra.mrb[156].mxu0 %v6365_v38  ;;  %v2097_v52 = vmax.f32 %v1949_v48, 0.0 }
 0x1de   : > { %4544 = vmatprep.mubr.msk.bf16.mxu0 %vm1231_vm0, %v6366_v42 }
 0x1df   : > { %v2116_v53 = vpack.c.bf16 %v2001_v51, %v2000_v50  ;;  %v2164_v54 = vpack.c.bf16 %v2097_v52, %v2096_v47 }
 0x1e0   : > { %v1569_v55 = vpop.f32.mrb[52].mxu0  ;;  %v1953_v56 = vpop.f32.mrb[52].mxu1 }
 0x1e1   : > { %5743 = vst [vmem:[%s7010_s16 + $0x60] sm:$0xff] %v2116_v53   ;;  %v1570_v57 = vadd.f32 %v6994_v46, %v1569_v55  ;;  %v1571_v58 = vpop.f32.mrb[53].mxu0  ;;  %5970 = vmatprep.mubr.bf16.mxu1 %v2116_v53  ;;  %5791 = vst [vmem:[%s7010_s16 + $0x1e0] sm:$0xff] %v2164_v54   ;;  %v1954_v60 = vadd.f32 %v6994_v46, %v1953_v56  ;;  %v1955_v61 = vpop.f32.mrb[53].mxu1  ;;  %v6377_v55 = vld [vmem:[%s6829_s13 + $0x2b0] ss:$8 sps:$4 sm:$0xff]  }
 0x1e2   : > { %v1572_v62 = vpop.f32.mrb[54].mxu0  ;;  %v1956_v0 = vpop.f32.mrb[54].mxu1 }
 0x1e3   : > { %v1573_v1 = vadd.f32 %v6994_v46, %v1572_v62  ;;  %v1574_v2 = vpop.f32.mrb[55].mxu0  ;;  %v2098_v3 = vmax.f32 %v1954_v60, 0.0  ;;  %v1957_v4 = vadd.f32 %v6994_v46, %v1956_v0  ;;  %v1958_v5 = vpop.f32.mrb[55].mxu1  ;;  %v2002_v6 = vmax.f32 %v1570_v57, 0.0  ;;  %v6378_v57 = vld [vmem:[%s6829_s13 + $0x2c4] ss:$8 sps:$4 sm:$0xff]  }
 0x1e4   : > { %v6380_v2 = vld [vmem:[%s6829_s13 + $0x2c0] ss:$8 sps:$4 sm:$0xff]  }
 0x1e5   : > { %v2003_v7 = vmax.f32 %v1573_v1, 0.0  ;;  %1784 = vmatmul.mubr.bf16.gmra.mrb[160].mxu0 %v6368_v59  ;;  %v2099_v8 = vmax.f32 %v1957_v4, 0.0  ;;  %v6381_v4 = vld [vmem:[%s6829_s13 + $0x2d4] ss:$8 sps:$4 sm:$0xff]  }
 0x1e6   : > { %4545 = vmatprep.mubr.msk.bf16.mxu0 %vm1231_vm0, %v6369_v63 }
 0x1e7   : > { %v2117_v9 = vpack.c.bf16 %v2003_v7, %v2002_v6  ;;  %v2165_v10 = vpack.c.bf16 %v2099_v8, %v2098_v3 }
 0x1e8   : > { %v1577_v11 = vpop.f32.mrb[56].mxu0  ;;  %v1961_v12 = vpop.f32.mrb[56].mxu1 }
 0x1e9   : > { %5744 = vst [vmem:[%s7010_s16 + $0x68] sm:$0xff] %v2117_v9   ;;  %v1578_v13 = vadd.f32 %v6994_v46, %v1577_v11  ;;  %v1579_v14 = vpop.f32.mrb[57].mxu0  ;;  %5971 = vmatmul.mubr.bf16.gmra.mrb[88].mxu1 %v2117_v9  ;;  %5792 = vst [vmem:[%s7010_s16 + $0x1e8] sm:$0xff] %v2165_v10   ;;  %v1962_v16 = vadd.f32 %v6994_v46, %v1961_v12  ;;  %v1963_v17 = vpop.f32.mrb[57].mxu1 }
 0x1ea   : > { %v1580_v18 = vpop.f32.mrb[58].mxu0  ;;  %v1964_v20 = vpop.f32.mrb[58].mxu1 }
 0x1eb   : > { %v1581_v21 = vadd.f32 %v6994_v46, %v1580_v18  ;;  %v1582_v22 = vpop.f32.mrb[59].mxu0  ;;  %v2100_v23 = vmax.f32 %v1962_v16, 0.0  ;;  %v1965_v24 = vadd.f32 %v6994_v46, %v1964_v20  ;;  %v1966_v25 = vpop.f32.mrb[59].mxu1  ;;  %v2004_v26 = vmax.f32 %v1578_v13, 0.0  ;;  %v6383_v13 = vld [vmem:[%s6829_s13 + $0x2d0] ss:$8 sps:$4 sm:$0xff]  }
 0x1ed   : > { %v2005_v27 = vmax.f32 %v1581_v21, 0.0  ;;  %1792 = vmatmul.mubr.bf16.gmra.mrb[164].mxu0 %v6371_v15  ;;  %v2101_v28 = vmax.f32 %v1965_v24, 0.0  ;;  %v6384_v15 = vld [vmem:[%s6829_s13 + $0x2e4] ss:$8 sps:$4 sm:$0xff]   ;;  %v6386_v24 = vld [vmem:[%s6829_s13 + $0x2e0] ss:$8 sps:$4 sm:$0xff]  }
 0x1ee   : > { %4546 = vmatprep.mubr.msk.bf16.mxu0 %vm1231_vm0, %v6372_v19 }
 0x1ef   : > { %v2118_v29 = vpack.c.bf16 %v2005_v27, %v2004_v26  ;;  %v2166_v30 = vpack.c.bf16 %v2101_v28, %v2100_v23  ;;  %v6387_v26 = vld [vmem:[%s6829_s13 + $0x2f4] ss:$8 sps:$4 sm:$0xff]  }
 0x1f0   : > { %v1585_v31 = vpop.f32.mrb[60].mxu0  ;;  %v1969_v32 = vpop.f32.mrb[60].mxu1 }
 0x1f1   : > { %5745 = vst [vmem:[%s7010_s16 + $0x70] sm:$0xff] %v2118_v29   ;;  %v1586_v33 = vadd.f32 %v6994_v46, %v1585_v31  ;;  %v1587_v34 = vpop.f32.mrb[61].mxu0  ;;  %5974 = vmatprep.mubr.bf16.mxu1 %v2118_v29  ;;  %5793 = vst [vmem:[%s7010_s16 + $0x1f0] sm:$0xff] %v2166_v30   ;;  %v1970_v36 = vadd.f32 %v6994_v46, %v1969_v32  ;;  %v1971_v37 = vpop.f32.mrb[61].mxu1 }
 0x1f2   : > { %v1588_v38 = vpop.f32.mrb[62].mxu0  ;;  %v1972_v40 = vpop.f32.mrb[62].mxu1 }
 0x1f3   : > { %v1589_v41 = vadd.f32 %v6994_v46, %v1588_v38  ;;  %v1590_v42 = vpop.f32.mrb[63].mxu0  ;;  %v2102_v43 = vmax.f32 %v1970_v36, 0.0  ;;  %v1973_v44 = vadd.f32 %v6994_v46, %v1972_v40  ;;  %v1974_v45 = vpop.f32.mrb[63].mxu1  ;;  %v2006_v47 = vmax.f32 %v1586_v33, 0.0 }
 0x1f5   : > { %v2007_v48 = vmax.f32 %v1589_v41, 0.0  ;;  %1800 = vmatmul.mubr.bf16.gmra.mrb[168].mxu0 %v6374_v35  ;;  %v2103_v49 = vmax.f32 %v1973_v44, 0.0  ;;  %v6389_v35 = vld [vmem:[%s6829_s13 + $0x2f0] ss:$8 sps:$4 sm:$0xff]  }
 0x1f6   : > { %4547 = vmatprep.mubr.msk.bf16.mxu0 %vm1231_vm0, %v6375_v39 }
 0x1f7   : > { %v2119_v50 = vpack.c.bf16 %v2007_v48, %v2006_v47  ;;  %v2167_v51 = vpack.c.bf16 %v2103_v49, %v2102_v43 }
 0x1f8   : > { %v1593_v52 = vpop.f32.mrb[64].mxu0 }
 0x1f9   : > { %5746 = vst [vmem:[%s7010_s16 + $0x78] sm:$0xff] %v2119_v50   ;;  %v1594_v53 = vadd.f32 %v6994_v46, %v1593_v52  ;;  %v1595_v54 = vpop.f32.mrb[65].mxu0  ;;  %5975 = vmatmul.mubr.bf16.gmra.mrb[92].mxu1 %v2119_v50  ;;  %5794 = vst [vmem:[%s7010_s16 + $0x1f8] sm:$0xff] %v2167_v51  }
 0x1fa   : > { %v1596_v56 = vpop.f32.mrb[66].mxu0 }
 0x1fb   : > { %v1597_v58 = vadd.f32 %v6994_v46, %v1596_v56  ;;  %v1598_v59 = vpop.f32.mrb[67].mxu0  ;;  %v2008_v60 = vmax.f32 %v1594_v53, 0.0 }
 0x1fd   : > { %v2009_v61 = vmax.f32 %v1597_v58, 0.0  ;;  %1808 = vmatmul.mubr.bf16.gmra.mrb[172].mxu0 %v6377_v55 }
 0x1fe   : > { %4548 = vmatprep.mubr.msk.bf16.mxu0 %vm1231_vm0, %v6378_v57 }
 0x1ff   : > { %v2120_v62 = vpack.c.bf16 %v2009_v61, %v2008_v60 }
 0x200   : > { %v1601_v63 = vpop.f32.mrb[68].mxu0 }
 0x201   : > { %5747 = vst [vmem:[%s7010_s16 + $0x80] sm:$0xff] %v2120_v62   ;;  %v1602_v0 = vadd.f32 %v6994_v46, %v1601_v63  ;;  %v1603_v1 = vpop.f32.mrb[69].mxu0  ;;  %5978 = vmatprep.mubr.bf16.mxu1 %v2120_v62 }
 0x202   : > { %v1604_v3 = vpop.f32.mrb[70].mxu0 }
 0x203   : > { %v1605_v5 = vadd.f32 %v6994_v46, %v1604_v3  ;;  %v1606_v6 = vpop.f32.mrb[71].mxu0  ;;  %v2010_v7 = vmax.f32 %v1602_v0, 0.0 }
 0x205   : > { %v2011_v8 = vmax.f32 %v1605_v5, 0.0  ;;  %1816 = vmatmul.mubr.bf16.gmra.mrb[176].mxu0 %v6380_v2 }
 0x206   : > { %4549 = vmatprep.mubr.msk.bf16.mxu0 %vm1231_vm0, %v6381_v4 }
 0x207   : > { %v2121_v9 = vpack.c.bf16 %v2011_v8, %v2010_v7 }
 0x208   : > { %v1609_v10 = vpop.f32.mrb[72].mxu0 }
 0x209   : > { %5748 = vst [vmem:[%s7010_s16 + $0x88] sm:$0xff] %v2121_v9   ;;  %v1610_v11 = vadd.f32 %v6994_v46, %v1609_v10  ;;  %v1611_v12 = vpop.f32.mrb[73].mxu0  ;;  %5979 = vmatmul.mubr.bf16.gmra.mrb[96].mxu1 %v2121_v9  ;;  %v7192_v10 = vld [vmem:[%s325_s3] ss:$0 sm:$0xff]  ;;  %s342_s3 = scalar_lea.vmem [#allocation6], %s6786_s8 }
 0x20a   : > { %v1612_v14 = vpop.f32.mrb[74].mxu0 }
 0x20b   : > { %v1613_v16 = vadd.f32 %v6994_v46, %v1612_v14  ;;  %v1614_v17 = vpop.f32.mrb[75].mxu0  ;;  %v2012_v18 = vmax.f32 %v1610_v11, 0.0 }
 0x20d   : > { %v2013_v19 = vmax.f32 %v1613_v16, 0.0  ;;  %1824 = vmatmul.mubr.bf16.gmra.mrb[180].mxu0 %v6383_v13 }
 0x20e   : > { %4550 = vmatprep.mubr.msk.bf16.mxu0 %vm1231_vm0, %v6384_v15 }
 0x20f   : > { %v2122_v20 = vpack.c.bf16 %v2013_v19, %v2012_v18 }
 0x210   : > { %v1617_v21 = vpop.f32.mrb[76].mxu0 }
 0x211   : > { %5749 = vst [vmem:[%s7010_s16 + $0x90] sm:$0xff] %v2122_v20   ;;  %v1618_v22 = vadd.f32 %v6994_v46, %v1617_v21  ;;  %v1619_v23 = vpop.f32.mrb[77].mxu0  ;;  %5982 = vmatprep.mubr.bf16.mxu1 %v2122_v20 }
 0x212   : > { %v1620_v25 = vpop.f32.mrb[78].mxu0 }
 0x213   : > { %v1621_v27 = vadd.f32 %v6994_v46, %v1620_v25  ;;  %v1622_v28 = vpop.f32.mrb[79].mxu0  ;;  %v2014_v29 = vmax.f32 %v1618_v22, 0.0 }
 0x215   : > { %v2015_v30 = vmax.f32 %v1621_v27, 0.0  ;;  %1832 = vmatmul.mubr.bf16.gmra.mrb[184].mxu0 %v6386_v24 }
 0x216   : > { %4551 = vmatprep.mubr.msk.bf16.mxu0 %vm1231_vm0, %v6387_v26 }
 0x217   : > { %v2123_v31 = vpack.c.bf16 %v2015_v30, %v2014_v29 }
 0x218   : > { %v1625_v32 = vpop.f32.mrb[80].mxu0 }
 0x219   : > { %5750 = vst [vmem:[%s7010_s16 + $0x98] sm:$0xff] %v2123_v31   ;;  %v1626_v33 = vadd.f32 %v6994_v46, %v1625_v32  ;;  %v1627_v34 = vpop.f32.mrb[81].mxu0  ;;  %5983 = vmatmul.mubr.bf16.gmra.mrb[100].mxu1 %v2123_v31 }
 0x21a   : > { %v1628_v36 = vpop.f32.mrb[82].mxu0 }
 0x21b   : > { %v1629_v37 = vadd.f32 %v6994_v46, %v1628_v36  ;;  %v1630_v38 = vpop.f32.mrb[83].mxu0  ;;  %v2016_v39 = vmax.f32 %v1626_v33, 0.0 }
 0x21d   : > { %v2017_v40 = vmax.f32 %v1629_v37, 0.0  ;;  %1840 = vmatmul.mubr.bf16.gmra.mrb[188].mxu0 %v6389_v35 }
 0x21f   : > { %v2124_v41 = vpack.c.bf16 %v2017_v40, %v2016_v39 }
 0x220   : > { %v1633_v42 = vpop.f32.mrb[84].mxu0 }
 0x221   : > { %5751 = vst [vmem:[%s7010_s16 + $0xa0] sm:$0xff] %v2124_v41   ;;  %v1634_v43 = vadd.f32 %v6994_v46, %v1633_v42  ;;  %v1635_v44 = vpop.f32.mrb[85].mxu0  ;;  %5986 = vmatprep.mubr.bf16.mxu1 %v2124_v41 }
 0x222   : > { %v1636_v45 = vpop.f32.mrb[86].mxu0 }
 0x223   : > { %v1637_v47 = vadd.f32 %v6994_v46, %v1636_v45  ;;  %v1638_v48 = vpop.f32.mrb[87].mxu0  ;;  %v2018_v49 = vmax.f32 %v1634_v43, 0.0 }
 0x225   : > { %v2019_v50 = vmax.f32 %v1637_v47, 0.0  ;;  %v7209_v47 = vld [vmem:[%s342_s3] ss:$0 sm:$0xff] }
 0x227   : > { %v2125_v51 = vpack.c.bf16 %v2019_v50, %v2018_v49 }
 0x228   : > { %v1641_v52 = vpop.f32.mrb[88].mxu0 }
 0x229   : > { %5752 = vst [vmem:[%s7010_s16 + $0xa8] sm:$0xff] %v2125_v51   ;;  %v1642_v53 = vadd.f32 %v6994_v46, %v1641_v52  ;;  %v1643_v54 = vpop.f32.mrb[89].mxu0  ;;  %5987 = vmatmul.mubr.bf16.gmra.mrb[104].mxu1 %v2125_v51 }
 0x22a   : > { %v1644_v55 = vpop.f32.mrb[90].mxu0 }
 0x22b   : > { %v1645_v56 = vadd.f32 %v6994_v46, %v1644_v55  ;;  %v1646_v57 = vpop.f32.mrb[91].mxu0  ;;  %v2020_v58 = vmax.f32 %v1642_v53, 0.0 }
 0x22d   : > { %v2021_v59 = vmax.f32 %v1645_v56, 0.0 }
 0x22f   : > { %v2126_v60 = vpack.c.bf16 %v2021_v59, %v2020_v58 }
 0x230   : > { %v1649_v61 = vpop.f32.mrb[92].mxu0 }
 0x231   : > { %5753 = vst [vmem:[%s7010_s16 + $0xb0] sm:$0xff] %v2126_v60   ;;  %v1650_v62 = vadd.f32 %v6994_v46, %v1649_v61  ;;  %v1651_v63 = vpop.f32.mrb[93].mxu0  ;;  %5990 = vmatprep.mubr.bf16.mxu1 %v2126_v60 }
 0x232   : > { %v1652_v0 = vpop.f32.mrb[94].mxu0 }
 0x233   : > { %v1653_v1 = vadd.f32 %v6994_v46, %v1652_v0  ;;  %v1654_v2 = vpop.f32.mrb[95].mxu0  ;;  %v2022_v3 = vmax.f32 %v1650_v62, 0.0 }
 0x235   : > { %v2023_v4 = vmax.f32 %v1653_v1, 0.0 }
 0x237   : > { %v2127_v5 = vpack.c.bf16 %v2023_v4, %v2022_v3 }
 0x238   : > { %v1657_v6 = vpop.f32.mrb[96].mxu0 }
 0x239   : > { %5754 = vst [vmem:[%s7010_s16 + $0xb8] sm:$0xff] %v2127_v5   ;;  %v1658_v7 = vadd.f32 %v6994_v46, %v1657_v6  ;;  %v1659_v8 = vpop.f32.mrb[97].mxu0  ;;  %5991 = vmatmul.mubr.bf16.gmra.mrb[108].mxu1 %v2127_v5 }
 0x23a   : > { %v1660_v9 = vpop.f32.mrb[98].mxu0 }
 0x23b   : > { %v1661_v11 = vadd.f32 %v7192_v10, %v1660_v9  ;;  %v1662_v12 = vpop.f32.mrb[99].mxu0  ;;  %v2024_v13 = vmax.f32 %v1658_v7, 0.0 }
 0x23d   : > { %v2025_v14 = vmax.f32 %v1661_v11, 0.0 }
 0x23f   : > { %v2128_v15 = vpack.c.bf16 %v2025_v14, %v2024_v13 }
 0x240   : > { %v1665_v16 = vpop.f32.mrb[100].mxu0 }
 0x241   : > { %5755 = vst [vmem:[%s7010_s16 + $0xc0] sm:$0xff] %v2128_v15   ;;  %v1666_v17 = vadd.f32 %v7192_v10, %v1665_v16  ;;  %v1667_v18 = vpop.f32.mrb[101].mxu0  ;;  %5994 = vmatprep.mubr.bf16.mxu1 %v2128_v15 }
 0x242   : > { %v1668_v46 = vpop.f32.mrb[102].mxu0 }
 0x243   : > { %v1669_v19 = vadd.f32 %v7192_v10, %v1668_v46  ;;  %v1670_v20 = vpop.f32.mrb[103].mxu0  ;;  %v2026_v21 = vmax.f32 %v1666_v17, 0.0 }
 0x245   : > { %v2027_v22 = vmax.f32 %v1669_v19, 0.0 }
 0x247   : > { %v2129_v23 = vpack.c.bf16 %v2027_v22, %v2026_v21 }
 0x248   : > { %v1673_v24 = vpop.f32.mrb[104].mxu0 }
 0x249   : > { %5756 = vst [vmem:[%s7010_s16 + $0xc8] sm:$0xff] %v2129_v23   ;;  %v1674_v25 = vadd.f32 %v7192_v10, %v1673_v24  ;;  %v1675_v26 = vpop.f32.mrb[105].mxu0  ;;  %5995 = vmatmul.mubr.bf16.gmra.mrb[112].mxu1 %v2129_v23 }
 0x24a   : > { %v1676_v27 = vpop.f32.mrb[106].mxu0 }
 0x24b   : > { %v1677_v28 = vadd.f32 %v7192_v10, %v1676_v27  ;;  %v1678_v29 = vpop.f32.mrb[107].mxu0  ;;  %v2028_v30 = vmax.f32 %v1674_v25, 0.0 }
 0x24d   : > { %v2029_v31 = vmax.f32 %v1677_v28, 0.0 }
 0x24f   : > { %v2130_v32 = vpack.c.bf16 %v2029_v31, %v2028_v30 }
 0x250   : > { %v1681_v33 = vpop.f32.mrb[108].mxu0 }
 0x251   : > { %5757 = vst [vmem:[%s7010_s16 + $0xd0] sm:$0xff] %v2130_v32   ;;  %v1682_v34 = vadd.f32 %v7192_v10, %v1681_v33  ;;  %v1683_v35 = vpop.f32.mrb[109].mxu0  ;;  %5998 = vmatprep.mubr.bf16.mxu1 %v2130_v32 }
 0x252   : > { %v1684_v36 = vpop.f32.mrb[110].mxu0 }
 0x253   : > { %v1685_v37 = vadd.f32 %v7192_v10, %v1684_v36  ;;  %v1686_v38 = vpop.f32.mrb[111].mxu0  ;;  %v2030_v39 = vmax.f32 %v1682_v34, 0.0 }
 0x255   : > { %v2031_v40 = vmax.f32 %v1685_v37, 0.0 }
 0x257   : > { %v2131_v41 = vpack.c.bf16 %v2031_v40, %v2030_v39 }
 0x258   : > { %v1689_v42 = vpop.f32.mrb[112].mxu0 }
 0x259   : > { %5758 = vst [vmem:[%s7010_s16 + $0xd8] sm:$0xff] %v2131_v41   ;;  %v1690_v43 = vadd.f32 %v7192_v10, %v1689_v42  ;;  %v1691_v44 = vpop.f32.mrb[113].mxu0  ;;  %5999 = vmatmul.mubr.bf16.gmra.mrb[116].mxu1 %v2131_v41 }
 0x25a   : > { %v1692_v45 = vpop.f32.mrb[114].mxu0 }
 0x25b   : > { %v1693_v48 = vadd.f32 %v7192_v10, %v1692_v45  ;;  %v1694_v49 = vpop.f32.mrb[115].mxu0  ;;  %v2032_v51 = vmax.f32 %v1690_v43, 0.0 }
 0x25c   : > { %v5948_v50 = vpop.f32.mrb[64].mxu1 }
 0x25d   : > { %v2033_v52 = vmax.f32 %v1693_v48, 0.0  ;;  %v2858_v53 = vadd.f32 %v5948_v50, %v7209_v47  ;;  %v2849_v54 = vpop.f32.mrb[65].mxu1 }
 0x25e   : > { %v2850_v55 = vadd.f32 %v7209_v47, %v2849_v54  ;;  %v5949_v56 = vpop.f32.mrb[66].mxu1 }
 0x25f   : > { %v2132_v57 = vpack.c.bf16 %v2033_v52, %v2032_v51  ;;  %v2861_v58 = vadd.f32 %v5949_v56, %v7209_v47  ;;  %v2852_v59 = vpop.f32.mrb[67].mxu1  ;;  %v3362_v62 = vmax.f32 %v2858_v53, 0.0 }
 0x260   : > { %v2853_v60 = vadd.f32 %v7209_v47, %v2852_v59  ;;  %v1697_v61 = vpop.f32.mrb[116].mxu0  ;;  %v3360_v2 = vmax.f32 %v2850_v55, 0.0 }
 0x261   : > { %5759 = vst [vmem:[%s7010_s16 + $0xe0] sm:$0xff] %v2132_v57   ;;  %v3363_v63 = vmax.f32 %v2861_v58, 0.0  ;;  %v1698_v0 = vadd.f32 %v7192_v10, %v1697_v61  ;;  %v1699_v1 = vpop.f32.mrb[117].mxu0  ;;  %6002 = vmatprep.mubr.bf16.mxu1 %v2132_v57 }
 0x262   : > { %v3361_v3 = vmax.f32 %v2853_v60, 0.0  ;;  %v1700_v4 = vpop.f32.mrb[118].mxu0 }
 0x263   : > { %v5420_v5 = vpack.c.bf16 %v3363_v63, %v3362_v62  ;;  %v1701_v6 = vadd.f32 %v7192_v10, %v1700_v4  ;;  %v1702_v7 = vpop.f32.mrb[119].mxu0  ;;  %v2034_v9 = vmax.f32 %v1698_v0, 0.0 }
 0x264   : > { %v5415_v8 = vpack.c.bf16 %v3361_v3, %v3360_v2 }
 0x265   : > { %5795 = vst [vmem:[%s7223_s17 + $0x8] sm:$0xff] %v5420_v5   ;;  %v2035_v11 = vmax.f32 %v1701_v6, 0.0 }
 0x266   : > { %5416 = vst [vmem:[%s7223_s17] sm:$0xff] %v5415_v8  }
 0x267   : > { %v2133_v12 = vpack.c.bf16 %v2035_v11, %v2034_v9 }
 0x268   : > { %v1705_v13 = vpop.f32.mrb[120].mxu0 }
 0x269   : > { %5760 = vst [vmem:[%s7010_s16 + $0xe8] sm:$0xff] %v2133_v12   ;;  %v1706_v14 = vadd.f32 %v7192_v10, %v1705_v13  ;;  %v1707_v15 = vpop.f32.mrb[121].mxu0  ;;  %6003 = vmatmul.mubr.bf16.gmra.mrb[120].mxu1 %v2133_v12 }
 0x26a   : > { %v1708_v16 = vpop.f32.mrb[122].mxu0 }
 0x26b   : > { %v1709_v17 = vadd.f32 %v7192_v10, %v1708_v16  ;;  %v1710_v18 = vpop.f32.mrb[123].mxu0  ;;  %v2036_v19 = vmax.f32 %v1706_v14, 0.0 }
 0x26c   : > { %v5952_v46 = vpop.f32.mrb[68].mxu1 }
 0x26d   : > { %v2037_v20 = vmax.f32 %v1709_v17, 0.0  ;;  %v2874_v21 = vadd.f32 %v5952_v46, %v7209_v47  ;;  %v2865_v22 = vpop.f32.mrb[69].mxu1 }
 0x26e   : > { %v2866_v23 = vadd.f32 %v7209_v47, %v2865_v22  ;;  %v5953_v24 = vpop.f32.mrb[70].mxu1 }
 0x26f   : > { %v2134_v25 = vpack.c.bf16 %v2037_v20, %v2036_v19  ;;  %v2877_v26 = vadd.f32 %v5953_v24, %v7209_v47  ;;  %v2868_v27 = vpop.f32.mrb[71].mxu1  ;;  %v3366_v30 = vmax.f32 %v2874_v21, 0.0 }
 0x270   : > { %v2869_v28 = vadd.f32 %v7209_v47, %v2868_v27  ;;  %v1713_v29 = vpop.f32.mrb[124].mxu0  ;;  %v3364_v34 = vmax.f32 %v2866_v23, 0.0 }
 0x271   : > { %5761 = vst [vmem:[%s7010_s16 + $0xf0] sm:$0xff] %v2134_v25   ;;  %v3367_v31 = vmax.f32 %v2877_v26, 0.0  ;;  %v1714_v32 = vadd.f32 %v7192_v10, %v1713_v29  ;;  %v1715_v33 = vpop.f32.mrb[125].mxu0  ;;  %6006 = vmatprep.mubr.bf16.mxu1 %v2134_v25 }
 0x272   : > { %v3365_v35 = vmax.f32 %v2869_v28, 0.0  ;;  %v1716_v36 = vpop.f32.mrb[126].mxu0 }
 0x273   : > { %v5430_v37 = vpack.c.bf16 %v3367_v31, %v3366_v30  ;;  %v1717_v38 = vadd.f32 %v7192_v10, %v1716_v36  ;;  %v1718_v39 = vpop.f32.mrb[127].mxu0  ;;  %v2038_v41 = vmax.f32 %v1714_v32, 0.0 }
 0x274   : > { %v5425_v40 = vpack.c.bf16 %v3365_v35, %v3364_v34 }
 0x275   : > { %5797 = vst [vmem:[%s7223_s17 + $0x18] sm:$0xff] %v5430_v37   ;;  %v2039_v42 = vmax.f32 %v1717_v38, 0.0 }
 0x276   : > { %5796 = vst [vmem:[%s7223_s17 + $0x10] sm:$0xff] %v5425_v40  }
 0x277   : > { %v2135_v43 = vpack.c.bf16 %v2039_v42, %v2038_v41 }
 0x278   : > { %v1721_v44 = vpop.f32.mrb[128].mxu0 }
 0x279   : > { %5762 = vst [vmem:[%s7010_s16 + $0xf8] sm:$0xff] %v2135_v43   ;;  %v1722_v45 = vadd.f32 %v7192_v10, %v1721_v44  ;;  %v1723_v48 = vpop.f32.mrb[129].mxu0  ;;  %6007 = vmatmul.mubr.bf16.gmra.mrb[124].mxu1 %v2135_v43 }
 0x27a   : > { %v1724_v49 = vpop.f32.mrb[130].mxu0 }
 0x27b   : > { %v1725_v50 = vadd.f32 %v7192_v10, %v1724_v49  ;;  %v1726_v51 = vpop.f32.mrb[131].mxu0  ;;  %v2040_v53 = vmax.f32 %v1722_v45, 0.0 }
 0x27c   : > { %v5956_v52 = vpop.f32.mrb[72].mxu1 }
 0x27d   : > { %v2041_v54 = vmax.f32 %v1725_v50, 0.0  ;;  %v2890_v55 = vadd.f32 %v5956_v52, %v7209_v47  ;;  %v2881_v56 = vpop.f32.mrb[73].mxu1 }
 0x27e   : > { %v2882_v57 = vadd.f32 %v7209_v47, %v2881_v56  ;;  %v5957_v58 = vpop.f32.mrb[74].mxu1 }
 0x27f   : > { %v2136_v59 = vpack.c.bf16 %v2041_v54, %v2040_v53  ;;  %v2893_v60 = vadd.f32 %v5957_v58, %v7209_v47  ;;  %v2884_v61 = vpop.f32.mrb[75].mxu1  ;;  %v3370_v0 = vmax.f32 %v2890_v55, 0.0 }
 0x280   : > { %v2885_v62 = vadd.f32 %v7209_v47, %v2884_v61  ;;  %v1729_v63 = vpop.f32.mrb[132].mxu0  ;;  %v3368_v4 = vmax.f32 %v2882_v57, 0.0 }
 0x281   : > { %5763 = vst [vmem:[%s7010_s16 + $0x100] sm:$0xff] %v2136_v59   ;;  %v3371_v1 = vmax.f32 %v2893_v60, 0.0  ;;  %v1730_v2 = vadd.f32 %v7192_v10, %v1729_v63  ;;  %v1731_v3 = vpop.f32.mrb[133].mxu0  ;;  %6010 = vmatprep.mubr.bf16.mxu1 %v2136_v59 }
 0x282   : > { %v3369_v5 = vmax.f32 %v2885_v62, 0.0  ;;  %v1732_v6 = vpop.f32.mrb[134].mxu0 }
 0x283   : > { %v5440_v7 = vpack.c.bf16 %v3371_v1, %v3370_v0  ;;  %v1733_v8 = vadd.f32 %v7192_v10, %v1732_v6  ;;  %v1734_v9 = vpop.f32.mrb[135].mxu0  ;;  %v2042_v12 = vmax.f32 %v1730_v2, 0.0 }
 0x284   : > { %v5435_v11 = vpack.c.bf16 %v3369_v5, %v3368_v4 }
 0x285   : > { %5799 = vst [vmem:[%s7223_s17 + $0x28] sm:$0xff] %v5440_v7   ;;  %v2043_v13 = vmax.f32 %v1733_v8, 0.0 }
 0x286   : > { %5798 = vst [vmem:[%s7223_s17 + $0x20] sm:$0xff] %v5435_v11  }
 0x287   : > { %v2137_v14 = vpack.c.bf16 %v2043_v13, %v2042_v12 }
 0x288   : > { %v1737_v15 = vpop.f32.mrb[136].mxu0 }
 0x289   : > { %5764 = vst [vmem:[%s7010_s16 + $0x108] sm:$0xff] %v2137_v14   ;;  %v1738_v16 = vadd.f32 %v7192_v10, %v1737_v15  ;;  %v1739_v17 = vpop.f32.mrb[137].mxu0  ;;  %6011 = vmatmul.mubr.bf16.gmra.mrb[128].mxu1 %v2137_v14 }
 0x28a   : > { %v1740_v18 = vpop.f32.mrb[138].mxu0 }
 0x28b   : > { %v1741_v46 = vadd.f32 %v7192_v10, %v1740_v18  ;;  %v1742_v19 = vpop.f32.mrb[139].mxu0  ;;  %v2044_v21 = vmax.f32 %v1738_v16, 0.0 }
 0x28c   : > { %v5960_v20 = vpop.f32.mrb[76].mxu1 }
 0x28d   : > { %v2045_v22 = vmax.f32 %v1741_v46, 0.0  ;;  %v2906_v23 = vadd.f32 %v5960_v20, %v7209_v47  ;;  %v2897_v24 = vpop.f32.mrb[77].mxu1 }
 0x28e   : > { %v2898_v25 = vadd.f32 %v7209_v47, %v2897_v24  ;;  %v5961_v26 = vpop.f32.mrb[78].mxu1 }
 0x28f   : > { %v2138_v27 = vpack.c.bf16 %v2045_v22, %v2044_v21  ;;  %v2909_v28 = vadd.f32 %v5961_v26, %v7209_v47  ;;  %v2900_v29 = vpop.f32.mrb[79].mxu1  ;;  %v3374_v32 = vmax.f32 %v2906_v23, 0.0 }
 0x290   : > { %v2901_v30 = vadd.f32 %v7209_v47, %v2900_v29  ;;  %v1745_v31 = vpop.f32.mrb[140].mxu0  ;;  %v3372_v36 = vmax.f32 %v2898_v25, 0.0 }
 0x291   : > { %5765 = vst [vmem:[%s7010_s16 + $0x110] sm:$0xff] %v2138_v27   ;;  %v3375_v33 = vmax.f32 %v2909_v28, 0.0  ;;  %v1746_v34 = vadd.f32 %v7192_v10, %v1745_v31  ;;  %v1747_v35 = vpop.f32.mrb[141].mxu0  ;;  %6014 = vmatprep.mubr.bf16.mxu1 %v2138_v27 }
 0x292   : > { %v3373_v37 = vmax.f32 %v2901_v30, 0.0  ;;  %v1748_v38 = vpop.f32.mrb[142].mxu0 }
 0x293   : > { %v5450_v39 = vpack.c.bf16 %v3375_v33, %v3374_v32  ;;  %v1749_v40 = vadd.f32 %v7192_v10, %v1748_v38  ;;  %v1750_v41 = vpop.f32.mrb[143].mxu0  ;;  %v2046_v43 = vmax.f32 %v1746_v34, 0.0 }
 0x294   : > { %v5445_v42 = vpack.c.bf16 %v3373_v37, %v3372_v36 }
 0x295   : > { %5801 = vst [vmem:[%s7223_s17 + $0x38] sm:$0xff] %v5450_v39   ;;  %v2047_v44 = vmax.f32 %v1749_v40, 0.0 }
 0x296   : > { %5800 = vst [vmem:[%s7223_s17 + $0x30] sm:$0xff] %v5445_v42  }
 0x297   : > { %v2139_v45 = vpack.c.bf16 %v2047_v44, %v2046_v43 }
 0x298   : > { %v1753_v48 = vpop.f32.mrb[144].mxu0 }
 0x299   : > { %5766 = vst [vmem:[%s7010_s16 + $0x118] sm:$0xff] %v2139_v45   ;;  %v1754_v49 = vadd.f32 %v7192_v10, %v1753_v48  ;;  %v1755_v50 = vpop.f32.mrb[145].mxu0  ;;  %6015 = vmatmul.mubr.bf16.gmra.mrb[132].mxu1 %v2139_v45 }
 0x29a   : > { %v1756_v51 = vpop.f32.mrb[146].mxu0 }
 0x29b   : > { %v1757_v52 = vadd.f32 %v7192_v10, %v1756_v51  ;;  %v1758_v53 = vpop.f32.mrb[147].mxu0  ;;  %v2048_v55 = vmax.f32 %v1754_v49, 0.0 }
 0x29c   : > { %v5964_v54 = vpop.f32.mrb[80].mxu1 }
 0x29d   : > { %v2049_v56 = vmax.f32 %v1757_v52, 0.0  ;;  %v2922_v57 = vadd.f32 %v5964_v54, %v7209_v47  ;;  %v2913_v58 = vpop.f32.mrb[81].mxu1 }
 0x29e   : > { %v2914_v59 = vadd.f32 %v7209_v47, %v2913_v58  ;;  %v5965_v60 = vpop.f32.mrb[82].mxu1 }
 0x29f   : > { %v2140_v61 = vpack.c.bf16 %v2049_v56, %v2048_v55  ;;  %v2925_v62 = vadd.f32 %v5965_v60, %v7209_v47  ;;  %v2916_v63 = vpop.f32.mrb[83].mxu1  ;;  %v3378_v2 = vmax.f32 %v2922_v57, 0.0 }
 0x2a0   : > { %v2917_v0 = vadd.f32 %v7209_v47, %v2916_v63  ;;  %v1761_v1 = vpop.f32.mrb[148].mxu0  ;;  %v3376_v6 = vmax.f32 %v2914_v59, 0.0 }
 0x2a1   : > { %5767 = vst [vmem:[%s7010_s16 + $0x120] sm:$0xff] %v2140_v61   ;;  %v3379_v3 = vmax.f32 %v2925_v62, 0.0  ;;  %v1762_v4 = vadd.f32 %v7192_v10, %v1761_v1  ;;  %v1763_v5 = vpop.f32.mrb[149].mxu0  ;;  %6018 = vmatprep.mubr.bf16.mxu1 %v2140_v61 }
 0x2a2   : > { %v3377_v7 = vmax.f32 %v2917_v0, 0.0  ;;  %v1764_v8 = vpop.f32.mrb[150].mxu0 }
 0x2a3   : > { %v5460_v9 = vpack.c.bf16 %v3379_v3, %v3378_v2  ;;  %v1765_v11 = vadd.f32 %v7192_v10, %v1764_v8  ;;  %v1766_v12 = vpop.f32.mrb[151].mxu0  ;;  %v2050_v14 = vmax.f32 %v1762_v4, 0.0 }
 0x2a4   : > { %v5455_v13 = vpack.c.bf16 %v3377_v7, %v3376_v6 }
 0x2a5   : > { %5803 = vst [vmem:[%s7223_s17 + $0x48] sm:$0xff] %v5460_v9   ;;  %v2051_v15 = vmax.f32 %v1765_v11, 0.0 }
 0x2a6   : > { %5802 = vst [vmem:[%s7223_s17 + $0x40] sm:$0xff] %v5455_v13  }
 0x2a7   : > { %v2141_v16 = vpack.c.bf16 %v2051_v15, %v2050_v14 }
 0x2a8   : > { %v1769_v17 = vpop.f32.mrb[152].mxu0 }
 0x2a9   : > { %5768 = vst [vmem:[%s7010_s16 + $0x128] sm:$0xff] %v2141_v16   ;;  %v1770_v18 = vadd.f32 %v7192_v10, %v1769_v17  ;;  %v1771_v46 = vpop.f32.mrb[153].mxu0  ;;  %6019 = vmatmul.mubr.bf16.gmra.mrb[136].mxu1 %v2141_v16 }
 0x2aa   : > { %v1772_v19 = vpop.f32.mrb[154].mxu0 }
 0x2ab   : > { %v1773_v20 = vadd.f32 %v7192_v10, %v1772_v19  ;;  %v1774_v21 = vpop.f32.mrb[155].mxu0  ;;  %v2052_v23 = vmax.f32 %v1770_v18, 0.0 }
 0x2ac   : > { %v5968_v22 = vpop.f32.mrb[84].mxu1 }
 0x2ad   : > { %v2053_v24 = vmax.f32 %v1773_v20, 0.0  ;;  %v2938_v25 = vadd.f32 %v5968_v22, %v7209_v47  ;;  %v2929_v26 = vpop.f32.mrb[85].mxu1 }
 0x2ae   : > { %v2930_v27 = vadd.f32 %v7209_v47, %v2929_v26  ;;  %v5969_v28 = vpop.f32.mrb[86].mxu1 }
 0x2af   : > { %v2142_v29 = vpack.c.bf16 %v2053_v24, %v2052_v23  ;;  %v2941_v30 = vadd.f32 %v5969_v28, %v7209_v47  ;;  %v2932_v31 = vpop.f32.mrb[87].mxu1  ;;  %v3382_v34 = vmax.f32 %v2938_v25, 0.0 }
 0x2b0   : > { %v2933_v32 = vadd.f32 %v7209_v47, %v2932_v31  ;;  %v1777_v33 = vpop.f32.mrb[156].mxu0  ;;  %v3380_v38 = vmax.f32 %v2930_v27, 0.0 }
 0x2b1   : > { %5769 = vst [vmem:[%s7010_s16 + $0x130] sm:$0xff] %v2142_v29   ;;  %v3383_v35 = vmax.f32 %v2941_v30, 0.0  ;;  %v1778_v36 = vadd.f32 %v7192_v10, %v1777_v33  ;;  %v1779_v37 = vpop.f32.mrb[157].mxu0  ;;  %6022 = vmatprep.mubr.bf16.mxu1 %v2142_v29 }
 0x2b2   : > { %v3381_v39 = vmax.f32 %v2933_v32, 0.0  ;;  %v1780_v40 = vpop.f32.mrb[158].mxu0 }
 0x2b3   : > { %v5470_v41 = vpack.c.bf16 %v3383_v35, %v3382_v34  ;;  %v1781_v42 = vadd.f32 %v7192_v10, %v1780_v40  ;;  %v1782_v43 = vpop.f32.mrb[159].mxu0  ;;  %v2054_v45 = vmax.f32 %v1778_v36, 0.0 }
 0x2b4   : > { %v5465_v44 = vpack.c.bf16 %v3381_v39, %v3380_v38 }
 0x2b5   : > { %5805 = vst [vmem:[%s7223_s17 + $0x58] sm:$0xff] %v5470_v41   ;;  %v2055_v48 = vmax.f32 %v1781_v42, 0.0 }
 0x2b6   : > { %5804 = vst [vmem:[%s7223_s17 + $0x50] sm:$0xff] %v5465_v44  }
 0x2b7   : > { %v2143_v49 = vpack.c.bf16 %v2055_v48, %v2054_v45 }
 0x2b8   : > { %v1785_v50 = vpop.f32.mrb[160].mxu0 }
 0x2b9   : > { %5770 = vst [vmem:[%s7010_s16 + $0x138] sm:$0xff] %v2143_v49   ;;  %v1786_v51 = vadd.f32 %v7192_v10, %v1785_v50  ;;  %v1787_v52 = vpop.f32.mrb[161].mxu0  ;;  %6023 = vmatmul.mubr.bf16.gmra.mrb[140].mxu1 %v2143_v49 }
 0x2ba   : > { %v1788_v53 = vpop.f32.mrb[162].mxu0 }
 0x2bb   : > { %v1789_v54 = vadd.f32 %v7192_v10, %v1788_v53  ;;  %v1790_v55 = vpop.f32.mrb[163].mxu0  ;;  %v2056_v57 = vmax.f32 %v1786_v51, 0.0 }
 0x2bc   : > { %v5972_v56 = vpop.f32.mrb[88].mxu1 }
 0x2bd   : > { %v2057_v58 = vmax.f32 %v1789_v54, 0.0  ;;  %v2954_v59 = vadd.f32 %v5972_v56, %v7209_v47  ;;  %v2945_v60 = vpop.f32.mrb[89].mxu1 }
 0x2be   : > { %v2946_v61 = vadd.f32 %v7209_v47, %v2945_v60  ;;  %v5973_v62 = vpop.f32.mrb[90].mxu1 }
 0x2bf   : > { %v2144_v63 = vpack.c.bf16 %v2057_v58, %v2056_v57  ;;  %v2957_v0 = vadd.f32 %v5973_v62, %v7209_v47  ;;  %v2948_v1 = vpop.f32.mrb[91].mxu1  ;;  %v3386_v4 = vmax.f32 %v2954_v59, 0.0 }
 0x2c0   : > { %v2949_v2 = vadd.f32 %v7209_v47, %v2948_v1  ;;  %v1793_v3 = vpop.f32.mrb[164].mxu0  ;;  %v3384_v8 = vmax.f32 %v2946_v61, 0.0 }
 0x2c1   : > { %5771 = vst [vmem:[%s7010_s16 + $0x140] sm:$0xff] %v2144_v63   ;;  %v3387_v5 = vmax.f32 %v2957_v0, 0.0  ;;  %v1794_v6 = vadd.f32 %v7192_v10, %v1793_v3  ;;  %v1795_v7 = vpop.f32.mrb[165].mxu0  ;;  %6026 = vmatprep.mubr.bf16.mxu1 %v2144_v63 }
 0x2c2   : > { %v3385_v9 = vmax.f32 %v2949_v2, 0.0  ;;  %v1796_v11 = vpop.f32.mrb[166].mxu0 }
 0x2c3   : > { %v5480_v12 = vpack.c.bf16 %v3387_v5, %v3386_v4  ;;  %v1797_v13 = vadd.f32 %v7192_v10, %v1796_v11  ;;  %v1798_v14 = vpop.f32.mrb[167].mxu0  ;;  %v2058_v16 = vmax.f32 %v1794_v6, 0.0 }
 0x2c4   : > { %v5475_v15 = vpack.c.bf16 %v3385_v9, %v3384_v8 }
 0x2c5   : > { %5807 = vst [vmem:[%s7223_s17 + $0x68] sm:$0xff] %v5480_v12   ;;  %v2059_v17 = vmax.f32 %v1797_v13, 0.0 }
 0x2c6   : > { %5806 = vst [vmem:[%s7223_s17 + $0x60] sm:$0xff] %v5475_v15  }
 0x2c7   : > { %v2145_v18 = vpack.c.bf16 %v2059_v17, %v2058_v16 }
 0x2c8   : > { %v1801_v46 = vpop.f32.mrb[168].mxu0 }
 0x2c9   : > { %5772 = vst [vmem:[%s7010_s16 + $0x148] sm:$0xff] %v2145_v18   ;;  %v1802_v19 = vadd.f32 %v7192_v10, %v1801_v46  ;;  %v1803_v20 = vpop.f32.mrb[169].mxu0  ;;  %6027 = vmatmul.mubr.bf16.gmra.mrb[144].mxu1 %v2145_v18 }
 0x2ca   : > { %v1804_v21 = vpop.f32.mrb[170].mxu0 }
 0x2cb   : > { %v1805_v22 = vadd.f32 %v7192_v10, %v1804_v21  ;;  %v1806_v23 = vpop.f32.mrb[171].mxu0  ;;  %v2060_v25 = vmax.f32 %v1802_v19, 0.0 }
 0x2cc   : > { %v5976_v24 = vpop.f32.mrb[92].mxu1 }
 0x2cd   : > { %v2061_v26 = vmax.f32 %v1805_v22, 0.0  ;;  %v2970_v27 = vadd.f32 %v5976_v24, %v7209_v47  ;;  %v2961_v28 = vpop.f32.mrb[93].mxu1 }
 0x2ce   : > { %v2962_v29 = vadd.f32 %v7209_v47, %v2961_v28  ;;  %v5977_v30 = vpop.f32.mrb[94].mxu1 }
 0x2cf   : > { %v2146_v31 = vpack.c.bf16 %v2061_v26, %v2060_v25  ;;  %v2973_v32 = vadd.f32 %v5977_v30, %v7209_v47  ;;  %v2964_v33 = vpop.f32.mrb[95].mxu1  ;;  %v3390_v36 = vmax.f32 %v2970_v27, 0.0 }
 0x2d0   : > { %v2965_v34 = vadd.f32 %v7209_v47, %v2964_v33  ;;  %v1809_v35 = vpop.f32.mrb[172].mxu0  ;;  %v3388_v40 = vmax.f32 %v2962_v29, 0.0 }
 0x2d1   : > { %5773 = vst [vmem:[%s7010_s16 + $0x150] sm:$0xff] %v2146_v31   ;;  %v3391_v37 = vmax.f32 %v2973_v32, 0.0  ;;  %v1810_v38 = vadd.f32 %v7192_v10, %v1809_v35  ;;  %v1811_v39 = vpop.f32.mrb[173].mxu0  ;;  %6030 = vmatprep.mubr.bf16.mxu1 %v2146_v31 }
 0x2d2   : > { %v3389_v41 = vmax.f32 %v2965_v34, 0.0  ;;  %v1812_v42 = vpop.f32.mrb[174].mxu0 }
 0x2d3   : > { %v5490_v43 = vpack.c.bf16 %v3391_v37, %v3390_v36  ;;  %v1813_v44 = vadd.f32 %v7192_v10, %v1812_v42  ;;  %v1814_v45 = vpop.f32.mrb[175].mxu0  ;;  %v2062_v49 = vmax.f32 %v1810_v38, 0.0 }
 0x2d4   : > { %v5485_v48 = vpack.c.bf16 %v3389_v41, %v3388_v40 }
 0x2d5   : > { %5809 = vst [vmem:[%s7223_s17 + $0x78] sm:$0xff] %v5490_v43   ;;  %v2063_v50 = vmax.f32 %v1813_v44, 0.0 }
 0x2d6   : > { %5808 = vst [vmem:[%s7223_s17 + $0x70] sm:$0xff] %v5485_v48  }
 0x2d7   : > { %v2147_v51 = vpack.c.bf16 %v2063_v50, %v2062_v49 }
 0x2d8   : > { %v1817_v52 = vpop.f32.mrb[176].mxu0 }
 0x2d9   : > { %5774 = vst [vmem:[%s7010_s16 + $0x158] sm:$0xff] %v2147_v51   ;;  %v1818_v53 = vadd.f32 %v7192_v10, %v1817_v52  ;;  %v1819_v54 = vpop.f32.mrb[177].mxu0  ;;  %6031 = vmatmul.mubr.bf16.gmra.mrb[148].mxu1 %v2147_v51 }
 0x2da   : > { %v1820_v55 = vpop.f32.mrb[178].mxu0  ;;  %v6391_v54 = vld [vmem:[%s7010_s16 + $0x180] sm:$0xff] }
 0x2db   : > { %v1821_v56 = vadd.f32 %v7192_v10, %v1820_v55  ;;  %v1822_v57 = vpop.f32.mrb[179].mxu0  ;;  %v2064_v59 = vmax.f32 %v1818_v53, 0.0 }
 0x2dc   : > { %v5980_v58 = vpop.f32.mrb[96].mxu1 }
 0x2dd   : > { %v2065_v60 = vmax.f32 %v1821_v56, 0.0  ;;  %v2986_v61 = vadd.f32 %v5980_v58, %v7209_v47  ;;  %v2977_v62 = vpop.f32.mrb[97].mxu1 }
 0x2de   : > { %v2978_v63 = vadd.f32 %v7209_v47, %v2977_v62  ;;  %v5981_v0 = vpop.f32.mrb[98].mxu1 }
 0x2df   : > { %v2148_v1 = vpack.c.bf16 %v2065_v60, %v2064_v59  ;;  %v2989_v2 = vadd.f32 %v5981_v0, %v7209_v47  ;;  %v2980_v3 = vpop.f32.mrb[99].mxu1  ;;  %v3394_v6 = vmax.f32 %v2986_v61, 0.0  ;;  %v6392_v0 = vld [vmem:[%s7010_s16 + $0x188] sm:$0xff] }
 0x2e0   : > { %v2981_v4 = vadd.f32 %v7209_v47, %v2980_v3  ;;  %v1825_v5 = vpop.f32.mrb[180].mxu0  ;;  %v3392_v11 = vmax.f32 %v2978_v63, 0.0  ;;  %v6393_v3 = vld [vmem:[%s7010_s16 + $0x190] sm:$0xff] }
 0x2e1   : > { %5775 = vst [vmem:[%s7010_s16 + $0x160] sm:$0xff] %v2148_v1   ;;  %v3395_v7 = vmax.f32 %v2989_v2, 0.0  ;;  %v1826_v8 = vadd.f32 %v7192_v10, %v1825_v5  ;;  %v1827_v9 = vpop.f32.mrb[181].mxu0  ;;  %6034 = vmatprep.mubr.bf16.mxu1 %v2148_v1 }
 0x2e2   : > { %v3393_v12 = vmax.f32 %v2981_v4, 0.0  ;;  %v1828_v13 = vpop.f32.mrb[182].mxu0 }
 0x2e3   : > { %v5500_v14 = vpack.c.bf16 %v3395_v7, %v3394_v6  ;;  %v1829_v15 = vadd.f32 %v7192_v10, %v1828_v13  ;;  %v1830_v16 = vpop.f32.mrb[183].mxu0  ;;  %v2066_v18 = vmax.f32 %v1826_v8, 0.0  ;;  %v6394_v6 = vld [vmem:[%s7010_s16 + $0x198] sm:$0xff]  ;;  %v6395_v7 = vld [vmem:[%s7010_s16 + $0x1a0] sm:$0xff] }
 0x2e4   : > { %v5495_v17 = vpack.c.bf16 %v3393_v12, %v3392_v11 }
 0x2e5   : > { %5811 = vst [vmem:[%s7223_s17 + $0x88] sm:$0xff] %v5500_v14   ;;  %v2067_v46 = vmax.f32 %v1829_v15, 0.0 }
 0x2e6   : > { %5810 = vst [vmem:[%s7223_s17 + $0x80] sm:$0xff] %v5495_v17  }
 0x2e7   : > { %v2149_v19 = vpack.c.bf16 %v2067_v46, %v2066_v18  ;;  %v6396_v46 = vld [vmem:[%s7010_s16 + $0x1a8] sm:$0xff] }
 0x2e8   : > { %v1833_v20 = vpop.f32.mrb[184].mxu0 }
 0x2e9   : > { %5776 = vst [vmem:[%s7010_s16 + $0x168] sm:$0xff] %v2149_v19   ;;  %v1834_v21 = vadd.f32 %v7192_v10, %v1833_v20  ;;  %v1835_v22 = vpop.f32.mrb[185].mxu0  ;;  %6035 = vmatmul.mubr.bf16.gmra.mrb[152].mxu1 %v2149_v19 }
 0x2ea   : > { %v1836_v23 = vpop.f32.mrb[186].mxu0 }
 0x2eb   : > { %v1837_v24 = vadd.f32 %v7192_v10, %v1836_v23  ;;  %v1838_v25 = vpop.f32.mrb[187].mxu0  ;;  %v2068_v27 = vmax.f32 %v1834_v21, 0.0  ;;  %v6397_v21 = vld [vmem:[%s7010_s16 + $0x1b0] sm:$0xff] }
 0x2ec   : > { %v5984_v26 = vpop.f32.mrb[100].mxu1  ;;  %v6399_v25 = vld [vmem:[%s7010_s16 + $0x1c0] sm:$0xff] }
 0x2ed   : > { %v2069_v28 = vmax.f32 %v1837_v24, 0.0  ;;  %v3002_v29 = vadd.f32 %v5984_v26, %v7209_v47  ;;  %v2993_v30 = vpop.f32.mrb[101].mxu1  ;;  %v6398_v24 = vld [vmem:[%s7010_s16 + $0x1b8] sm:$0xff] }
 0x2ee   : > { %v2994_v31 = vadd.f32 %v7209_v47, %v2993_v30  ;;  %v5985_v32 = vpop.f32.mrb[102].mxu1 }
 0x2ef   : > { %v2150_v33 = vpack.c.bf16 %v2069_v28, %v2068_v27  ;;  %v3005_v34 = vadd.f32 %v5985_v32, %v7209_v47  ;;  %v2996_v35 = vpop.f32.mrb[103].mxu1  ;;  %v3398_v38 = vmax.f32 %v3002_v29, 0.0 }
 0x2f0   : > { %v2997_v36 = vadd.f32 %v7209_v47, %v2996_v35  ;;  %v1841_v37 = vpop.f32.mrb[188].mxu0  ;;  %v3396_v42 = vmax.f32 %v2994_v31, 0.0 }
 0x2f1   : > { %5777 = vst [vmem:[%s7010_s16 + $0x170] sm:$0xff] %v2150_v33   ;;  %v3399_v39 = vmax.f32 %v3005_v34, 0.0  ;;  %v1842_v40 = vadd.f32 %v7192_v10, %v1841_v37  ;;  %v1843_v41 = vpop.f32.mrb[189].mxu0  ;;  %6038 = vmatprep.mubr.bf16.mxu1 %v2150_v33 }
 0x2f2   : > { %v3397_v43 = vmax.f32 %v2997_v36, 0.0  ;;  %v1844_v44 = vpop.f32.mrb[190].mxu0  ;;  %v6400_v36 = vld [vmem:[%s7010_s16 + $0x1c8] sm:$0xff] }
 0x2f3   : > { %v5510_v45 = vpack.c.bf16 %v3399_v39, %v3398_v38  ;;  %v1845_v48 = vadd.f32 %v7192_v10, %v1844_v44  ;;  %v1846_v49 = vpop.f32.mrb[191].mxu0  ;;  %v2070_v51 = vmax.f32 %v1842_v40, 0.0  ;;  %v6401_v39 = vld [vmem:[%s7010_s16 + $0x1d0] sm:$0xff] }
 0x2f4   : > { %v5505_v50 = vpack.c.bf16 %v3397_v43, %v3396_v42  ;;  %v6402_v42 = vld [vmem:[%s7010_s16 + $0x1d8] sm:$0xff]  ;;  %v6403_v43 = vld [vmem:[%s7010_s16 + $0x1e0] sm:$0xff] }
 0x2f5   : > { %5813 = vst [vmem:[%s7223_s17 + $0x98] sm:$0xff] %v5510_v45   ;;  %v2071_v52 = vmax.f32 %v1845_v48, 0.0 }
 0x2f6   : > { %5812 = vst [vmem:[%s7223_s17 + $0x90] sm:$0xff] %v5505_v50  }
 0x2f7   : > { %v2151_v53 = vpack.c.bf16 %v2071_v52, %v2070_v51 }
 0x2f9   : > { %5778 = vst [vmem:[%s7010_s16 + $0x178] sm:$0xff] %v2151_v53   ;;  %6039 = vmatmul.mubr.bf16.gmra.mrb[156].mxu1 %v2151_v53 }
 0x2fa   : > { %6042 = vmatprep.mubr.bf16.mxu1 %v6391_v54 }
 0x2fc   : > { %v5988_v55 = vpop.f32.mrb[104].mxu1 }
 0x2fd   : > { %v3018_v56 = vadd.f32 %v5988_v55, %v7209_v47  ;;  %v3009_v57 = vpop.f32.mrb[105].mxu1 }
 0x2fe   : > { %v3010_v10 = vadd.f32 %v7209_v47, %v3009_v57  ;;  %v5989_v58 = vpop.f32.mrb[106].mxu1 }
 0x2ff   : > { %v3021_v59 = vadd.f32 %v5989_v58, %v7209_v47  ;;  %v3012_v60 = vpop.f32.mrb[107].mxu1  ;;  %v3402_v62 = vmax.f32 %v3018_v56, 0.0  ;;  %v6404_v56 = vld [vmem:[%s7010_s16 + $0x1e8] sm:$0xff]  ;;  %v6405_v58 = vld [vmem:[%s7010_s16 + $0x1f0] sm:$0xff] }
 0x300   : > { %v3013_v61 = vadd.f32 %v7209_v47, %v3012_v60  ;;  %v3400_v1 = vmax.f32 %v3010_v10, 0.0 }
 0x301   : > { %v3403_v63 = vmax.f32 %v3021_v59, 0.0  ;;  %6043 = vmatmul.mubr.bf16.gmra.mrb[160].mxu1 %v6392_v0 }
 0x302   : > { %v3401_v2 = vmax.f32 %v3013_v61, 0.0  ;;  %6046 = vmatprep.mubr.bf16.mxu1 %v6393_v3  ;;  %v6406_v61 = vld [vmem:[%s7010_s16 + $0x1f8] sm:$0xff] }
 0x303   : > { %v5520_v4 = vpack.c.bf16 %v3403_v63, %v3402_v62 }
 0x304   : > { %v5515_v5 = vpack.c.bf16 %v3401_v2, %v3400_v1 }
 0x305   : > { %5815 = vst [vmem:[%s7223_s17 + $0xa8] sm:$0xff] %v5520_v4  }
 0x306   : > { %5814 = vst [vmem:[%s7223_s17 + $0xa0] sm:$0xff] %v5515_v5  }
 0x309   : > { %6047 = vmatmul.mubr.bf16.gmra.mrb[164].mxu1 %v6394_v6 }
 0x30a   : > { %6050 = vmatprep.mubr.bf16.mxu1 %v6395_v7 }
 0x30c   : > { %v5992_v8 = vpop.f32.mrb[108].mxu1 }
 0x30d   : > { %v3034_v9 = vadd.f32 %v5992_v8, %v7209_v47  ;;  %v3025_v11 = vpop.f32.mrb[109].mxu1 }
 0x30e   : > { %v3026_v12 = vadd.f32 %v7209_v47, %v3025_v11  ;;  %v5993_v13 = vpop.f32.mrb[110].mxu1 }
 0x30f   : > { %v3037_v14 = vadd.f32 %v5993_v13, %v7209_v47  ;;  %v3028_v15 = vpop.f32.mrb[111].mxu1  ;;  %v3406_v17 = vmax.f32 %v3034_v9, 0.0 }
 0x310   : > { %v3029_v16 = vadd.f32 %v7209_v47, %v3028_v15  ;;  %v3404_v19 = vmax.f32 %v3026_v12, 0.0 }
 0x311   : > { %v3407_v18 = vmax.f32 %v3037_v14, 0.0  ;;  %6051 = vmatmul.mubr.bf16.gmra.mrb[168].mxu1 %v6396_v46 }
 0x312   : > { %v3405_v20 = vmax.f32 %v3029_v16, 0.0  ;;  %6054 = vmatprep.mubr.bf16.mxu1 %v6397_v21 }
 0x313   : > { %v5530_v22 = vpack.c.bf16 %v3407_v18, %v3406_v17 }
 0x314   : > { %v5525_v23 = vpack.c.bf16 %v3405_v20, %v3404_v19 }
 0x315   : > { %5817 = vst [vmem:[%s7223_s17 + $0xb8] sm:$0xff] %v5530_v22  }
 0x316   : > { %5816 = vst [vmem:[%s7223_s17 + $0xb0] sm:$0xff] %v5525_v23  }
 0x319   : > { %6055 = vmatmul.mubr.bf16.gmra.mrb[172].mxu1 %v6398_v24 }
 0x31a   : > { %6058 = vmatprep.mubr.bf16.mxu1 %v6399_v25 }
 0x31c   : > { %v5996_v26 = vpop.f32.mrb[112].mxu1 }
 0x31d   : > { %v3050_v27 = vadd.f32 %v5996_v26, %v7209_v47  ;;  %v3041_v28 = vpop.f32.mrb[113].mxu1 }
 0x31e   : > { %v3042_v29 = vadd.f32 %v7209_v47, %v3041_v28  ;;  %v5997_v30 = vpop.f32.mrb[114].mxu1 }
 0x31f   : > { %v3053_v31 = vadd.f32 %v5997_v30, %v7209_v47  ;;  %v3044_v32 = vpop.f32.mrb[115].mxu1  ;;  %v3410_v34 = vmax.f32 %v3050_v27, 0.0 }
 0x320   : > { %v3045_v33 = vadd.f32 %v7209_v47, %v3044_v32  ;;  %v3408_v37 = vmax.f32 %v3042_v29, 0.0 }
 0x321   : > { %v3411_v35 = vmax.f32 %v3053_v31, 0.0  ;;  %6059 = vmatmul.mubr.bf16.gmra.mrb[176].mxu1 %v6400_v36 }
 0x322   : > { %v3409_v38 = vmax.f32 %v3045_v33, 0.0  ;;  %6062 = vmatprep.mubr.bf16.mxu1 %v6401_v39 }
 0x323   : > { %v5540_v40 = vpack.c.bf16 %v3411_v35, %v3410_v34 }
 0x324   : > { %v5535_v41 = vpack.c.bf16 %v3409_v38, %v3408_v37 }
 0x325   : > { %5819 = vst [vmem:[%s7223_s17 + $0xc8] sm:$0xff] %v5540_v40  }
 0x326   : > { %5818 = vst [vmem:[%s7223_s17 + $0xc0] sm:$0xff] %v5535_v41  }
 0x329   : > { %6063 = vmatmul.mubr.bf16.gmra.mrb[180].mxu1 %v6402_v42 }
 0x32a   : > { %6066 = vmatprep.mubr.bf16.mxu1 %v6403_v43 }
 0x32c   : > { %v6000_v44 = vpop.f32.mrb[116].mxu1 }
 0x32d   : > { %v3066_v45 = vadd.f32 %v6000_v44, %v7209_v47  ;;  %v3057_v48 = vpop.f32.mrb[117].mxu1 }
 0x32e   : > { %v3058_v49 = vadd.f32 %v7209_v47, %v3057_v48  ;;  %v6001_v50 = vpop.f32.mrb[118].mxu1 }
 0x32f   : > { %v3069_v51 = vadd.f32 %v6001_v50, %v7209_v47  ;;  %v3060_v52 = vpop.f32.mrb[119].mxu1  ;;  %v3414_v54 = vmax.f32 %v3066_v45, 0.0 }
 0x330   : > { %v3061_v53 = vadd.f32 %v7209_v47, %v3060_v52  ;;  %v3412_v57 = vmax.f32 %v3058_v49, 0.0  ;;  %v7400_v49 = vld [vmem:[%s342_s3] ss:$0 sm:$0xff] }
 0x331   : > { %v3415_v55 = vmax.f32 %v3069_v51, 0.0  ;;  %6067 = vmatmul.mubr.bf16.gmra.mrb[184].mxu1 %v6404_v56 }
 0x332   : > { %v3413_v10 = vmax.f32 %v3061_v53, 0.0  ;;  %6070 = vmatprep.mubr.bf16.mxu1 %v6405_v58 }
 0x333   : > { %v5550_v59 = vpack.c.bf16 %v3415_v55, %v3414_v54 }
 0x334   : > { %v5545_v60 = vpack.c.bf16 %v3413_v10, %v3412_v57 }
 0x335   : > { %5821 = vst [vmem:[%s7223_s17 + $0xd8] sm:$0xff] %v5550_v59  }
 0x336   : > { %5820 = vst [vmem:[%s7223_s17 + $0xd0] sm:$0xff] %v5545_v60  }
 0x339   : > { %6071 = vmatmul.mubr.bf16.gmra.mrb[188].mxu1 %v6406_v61 }
 0x33c   : > { %v6004_v62 = vpop.f32.mrb[120].mxu1 }
 0x33d   : > { %v3082_v63 = vadd.f32 %v6004_v62, %v7209_v47  ;;  %v3073_v0 = vpop.f32.mrb[121].mxu1 }
 0x33e   : > { %v3074_v1 = vadd.f32 %v7209_v47, %v3073_v0  ;;  %v6005_v2 = vpop.f32.mrb[122].mxu1 }
 0x33f   : > { %v3085_v3 = vadd.f32 %v6005_v2, %v7209_v47  ;;  %v3076_v4 = vpop.f32.mrb[123].mxu1  ;;  %v3418_v6 = vmax.f32 %v3082_v63, 0.0 }
 0x340   : > { %v3077_v5 = vadd.f32 %v7209_v47, %v3076_v4  ;;  %v3416_v8 = vmax.f32 %v3074_v1, 0.0 }
 0x341   : > { %v3419_v7 = vmax.f32 %v3085_v3, 0.0 }
 0x342   : > { %v3417_v9 = vmax.f32 %v3077_v5, 0.0 }
 0x343   : > { %v5560_v11 = vpack.c.bf16 %v3419_v7, %v3418_v6 }
 0x344   : > { %v5555_v12 = vpack.c.bf16 %v3417_v9, %v3416_v8 }
 0x345   : > { %5823 = vst [vmem:[%s7223_s17 + $0xe8] sm:$0xff] %v5560_v11  }
 0x346   : > { %5822 = vst [vmem:[%s7223_s17 + $0xe0] sm:$0xff] %v5555_v12  }
 0x34c   : > { %v6008_v13 = vpop.f32.mrb[124].mxu1 }
 0x34d   : > { %v3098_v14 = vadd.f32 %v6008_v13, %v7209_v47  ;;  %v3089_v15 = vpop.f32.mrb[125].mxu1 }
 0x34e   : > { %v3090_v16 = vadd.f32 %v7209_v47, %v3089_v15  ;;  %v6009_v17 = vpop.f32.mrb[126].mxu1 }
 0x34f   : > { %v3101_v18 = vadd.f32 %v6009_v17, %v7209_v47  ;;  %v3092_v46 = vpop.f32.mrb[127].mxu1  ;;  %v3422_v20 = vmax.f32 %v3098_v14, 0.0 }
 0x350   : > { %v3093_v19 = vadd.f32 %v7209_v47, %v3092_v46  ;;  %v3420_v22 = vmax.f32 %v3090_v16, 0.0 }
 0x351   : > { %v3423_v21 = vmax.f32 %v3101_v18, 0.0 }
 0x352   : > { %v3421_v23 = vmax.f32 %v3093_v19, 0.0 }
 0x353   : > { %v5570_v24 = vpack.c.bf16 %v3423_v21, %v3422_v20 }
 0x354   : > { %v5565_v25 = vpack.c.bf16 %v3421_v23, %v3420_v22 }
 0x355   : > { %5825 = vst [vmem:[%s7223_s17 + $0xf8] sm:$0xff] %v5570_v24  }
 0x356   : > { %5824 = vst [vmem:[%s7223_s17 + $0xf0] sm:$0xff] %v5565_v25  }
 0x35c   : > { %v6012_v26 = vpop.f32.mrb[128].mxu1 }
 0x35d   : > { %v3114_v27 = vadd.f32 %v6012_v26, %v7209_v47  ;;  %v3105_v28 = vpop.f32.mrb[129].mxu1 }
 0x35e   : > { %v3106_v29 = vadd.f32 %v7209_v47, %v3105_v28  ;;  %v6013_v30 = vpop.f32.mrb[130].mxu1 }
 0x35f   : > { %v3117_v31 = vadd.f32 %v6013_v30, %v7209_v47  ;;  %v3108_v32 = vpop.f32.mrb[131].mxu1  ;;  %v3426_v34 = vmax.f32 %v3114_v27, 0.0 }
 0x360   : > { %v3109_v33 = vadd.f32 %v7209_v47, %v3108_v32  ;;  %v3424_v36 = vmax.f32 %v3106_v29, 0.0 }
 0x361   : > { %v3427_v35 = vmax.f32 %v3117_v31, 0.0 }
 0x362   : > { %v3425_v37 = vmax.f32 %v3109_v33, 0.0 }
 0x363   : > { %v5580_v38 = vpack.c.bf16 %v3427_v35, %v3426_v34 }
 0x364   : > { %v5575_v39 = vpack.c.bf16 %v3425_v37, %v3424_v36 }
 0x365   : > { %5827 = vst [vmem:[%s7223_s17 + $0x108] sm:$0xff] %v5580_v38  }
 0x366   : > { %5826 = vst [vmem:[%s7223_s17 + $0x100] sm:$0xff] %v5575_v39  }
 0x36c   : > { %v6016_v40 = vpop.f32.mrb[132].mxu1 }
 0x36d   : > { %v3130_v41 = vadd.f32 %v6016_v40, %v7209_v47  ;;  %v3121_v42 = vpop.f32.mrb[133].mxu1 }
 0x36e   : > { %v3122_v43 = vadd.f32 %v7209_v47, %v3121_v42  ;;  %v6017_v44 = vpop.f32.mrb[134].mxu1 }
 0x36f   : > { %v3133_v45 = vadd.f32 %v6017_v44, %v7209_v47  ;;  %v3124_v48 = vpop.f32.mrb[135].mxu1  ;;  %v3430_v51 = vmax.f32 %v3130_v41, 0.0 }
 0x370   : > { %v3125_v50 = vadd.f32 %v7400_v49, %v3124_v48  ;;  %v3428_v53 = vmax.f32 %v3122_v43, 0.0 }
 0x371   : > { %v3431_v52 = vmax.f32 %v3133_v45, 0.0 }
 0x372   : > { %v3429_v54 = vmax.f32 %v3125_v50, 0.0 }
 0x373   : > { %v5590_v55 = vpack.c.bf16 %v3431_v52, %v3430_v51 }
 0x374   : > { %v5585_v56 = vpack.c.bf16 %v3429_v54, %v3428_v53 }
 0x375   : > { %5829 = vst [vmem:[%s7223_s17 + $0x118] sm:$0xff] %v5590_v55  }
 0x376   : > { %5828 = vst [vmem:[%s7223_s17 + $0x110] sm:$0xff] %v5585_v56  }
 0x37c   : > { %v6020_v57 = vpop.f32.mrb[136].mxu1 }
 0x37d   : > { %v3146_v10 = vadd.f32 %v7400_v49, %v6020_v57  ;;  %v3137_v47 = vpop.f32.mrb[137].mxu1 }
 0x37e   : > { %v3138_v58 = vadd.f32 %v7400_v49, %v3137_v47  ;;  %v6021_v59 = vpop.f32.mrb[138].mxu1 }
 0x37f   : > { %v3149_v60 = vadd.f32 %v7400_v49, %v6021_v59  ;;  %v3140_v61 = vpop.f32.mrb[139].mxu1  ;;  %v3434_v63 = vmax.f32 %v3146_v10, 0.0 }
 0x380   : > { %v3141_v62 = vadd.f32 %v7400_v49, %v3140_v61  ;;  %v3432_v1 = vmax.f32 %v3138_v58, 0.0 }
 0x381   : > { %v3435_v0 = vmax.f32 %v3149_v60, 0.0 }
 0x382   : > { %v3433_v2 = vmax.f32 %v3141_v62, 0.0 }
 0x383   : > { %v5600_v3 = vpack.c.bf16 %v3435_v0, %v3434_v63 }
 0x384   : > { %v5595_v4 = vpack.c.bf16 %v3433_v2, %v3432_v1 }
 0x385   : > { %5831 = vst [vmem:[%s7223_s17 + $0x128] sm:$0xff] %v5600_v3  }
 0x386   : > { %5830 = vst [vmem:[%s7223_s17 + $0x120] sm:$0xff] %v5595_v4  }
 0x38c   : > { %v6024_v5 = vpop.f32.mrb[140].mxu1 }
 0x38d   : > { %v3162_v6 = vadd.f32 %v7400_v49, %v6024_v5  ;;  %v3153_v7 = vpop.f32.mrb[141].mxu1 }
 0x38e   : > { %v3154_v8 = vadd.f32 %v7400_v49, %v3153_v7  ;;  %v6025_v9 = vpop.f32.mrb[142].mxu1 }
 0x38f   : > { %v3165_v11 = vadd.f32 %v7400_v49, %v6025_v9  ;;  %v3156_v12 = vpop.f32.mrb[143].mxu1  ;;  %v3438_v14 = vmax.f32 %v3162_v6, 0.0 }
 0x390   : > { %v3157_v13 = vadd.f32 %v7400_v49, %v3156_v12  ;;  %v3436_v16 = vmax.f32 %v3154_v8, 0.0 }
 0x391   : > { %v3439_v15 = vmax.f32 %v3165_v11, 0.0 }
 0x392   : > { %v3437_v17 = vmax.f32 %v3157_v13, 0.0 }
 0x393   : > { %v5610_v18 = vpack.c.bf16 %v3439_v15, %v3438_v14 }
 0x394   : > { %v5605_v46 = vpack.c.bf16 %v3437_v17, %v3436_v16 }
 0x395   : > { %5833 = vst [vmem:[%s7223_s17 + $0x138] sm:$0xff] %v5610_v18  }
 0x396   : > { %5832 = vst [vmem:[%s7223_s17 + $0x130] sm:$0xff] %v5605_v46  }
 0x39c   : > { %v6028_v19 = vpop.f32.mrb[144].mxu1 }
 0x39d   : > { %v3178_v20 = vadd.f32 %v7400_v49, %v6028_v19  ;;  %v3169_v21 = vpop.f32.mrb[145].mxu1 }
 0x39e   : > { %v3170_v22 = vadd.f32 %v7400_v49, %v3169_v21  ;;  %v6029_v23 = vpop.f32.mrb[146].mxu1 }
 0x39f   : > { %v3181_v24 = vadd.f32 %v7400_v49, %v6029_v23  ;;  %v3172_v25 = vpop.f32.mrb[147].mxu1  ;;  %v3442_v27 = vmax.f32 %v3178_v20, 0.0 }
 0x3a0   : > { %v3173_v26 = vadd.f32 %v7400_v49, %v3172_v25  ;;  %v3440_v29 = vmax.f32 %v3170_v22, 0.0 }
 0x3a1   : > { %v3443_v28 = vmax.f32 %v3181_v24, 0.0 }
 0x3a2   : > { %v3441_v30 = vmax.f32 %v3173_v26, 0.0 }
 0x3a3   : > { %v5620_v31 = vpack.c.bf16 %v3443_v28, %v3442_v27 }
 0x3a4   : > { %v5615_v32 = vpack.c.bf16 %v3441_v30, %v3440_v29 }
 0x3a5   : > { %5835 = vst [vmem:[%s7223_s17 + $0x148] sm:$0xff] %v5620_v31  }
 0x3a6   : > { %5834 = vst [vmem:[%s7223_s17 + $0x140] sm:$0xff] %v5615_v32  }
 0x3ac   : > { %v6032_v33 = vpop.f32.mrb[148].mxu1 }
 0x3ad   : > { %v3194_v34 = vadd.f32 %v7400_v49, %v6032_v33  ;;  %v3185_v35 = vpop.f32.mrb[149].mxu1 }
 0x3ae   : > { %v3186_v36 = vadd.f32 %v7400_v49, %v3185_v35  ;;  %v6033_v37 = vpop.f32.mrb[150].mxu1 }
 0x3af   : > { %v3197_v38 = vadd.f32 %v7400_v49, %v6033_v37  ;;  %v3188_v39 = vpop.f32.mrb[151].mxu1  ;;  %v3446_v41 = vmax.f32 %v3194_v34, 0.0 }
 0x3b0   : > { %v3189_v40 = vadd.f32 %v7400_v49, %v3188_v39  ;;  %v3444_v43 = vmax.f32 %v3186_v36, 0.0 }
 0x3b1   : > { %v3447_v42 = vmax.f32 %v3197_v38, 0.0 }
 0x3b2   : > { %v3445_v44 = vmax.f32 %v3189_v40, 0.0 }
 0x3b3   : > { %v5630_v45 = vpack.c.bf16 %v3447_v42, %v3446_v41 }
 0x3b4   : > { %v5625_v48 = vpack.c.bf16 %v3445_v44, %v3444_v43 }
 0x3b5   : > { %5837 = vst [vmem:[%s7223_s17 + $0x158] sm:$0xff] %v5630_v45  }
 0x3b6   : > { %5836 = vst [vmem:[%s7223_s17 + $0x150] sm:$0xff] %v5625_v48  }
 0x3bc   : > { %v6036_v50 = vpop.f32.mrb[152].mxu1 }
 0x3bd   : > { %v3210_v51 = vadd.f32 %v7400_v49, %v6036_v50  ;;  %v3201_v52 = vpop.f32.mrb[153].mxu1 }
 0x3be   : > { %v3202_v53 = vadd.f32 %v7400_v49, %v3201_v52  ;;  %v6037_v54 = vpop.f32.mrb[154].mxu1 }
 0x3bf   : > { %v3213_v55 = vadd.f32 %v7400_v49, %v6037_v54  ;;  %v3204_v56 = vpop.f32.mrb[155].mxu1  ;;  %v3450_v10 = vmax.f32 %v3210_v51, 0.0 }
 0x3c0   : > { %v3205_v57 = vadd.f32 %v7400_v49, %v3204_v56  ;;  %v3448_v58 = vmax.f32 %v3202_v53, 0.0 }
 0x3c1   : > { %v3451_v47 = vmax.f32 %v3213_v55, 0.0 }
 0x3c2   : > { %v3449_v59 = vmax.f32 %v3205_v57, 0.0 }
 0x3c3   : > { %v5640_v60 = vpack.c.bf16 %v3451_v47, %v3450_v10 }
 0x3c4   : > { %v5635_v61 = vpack.c.bf16 %v3449_v59, %v3448_v58 }
 0x3c5   : > { %5839 = vst [vmem:[%s7223_s17 + $0x168] sm:$0xff] %v5640_v60  }
 0x3c6   : > { %5838 = vst [vmem:[%s7223_s17 + $0x160] sm:$0xff] %v5635_v61  }
 0x3cc   : > { %v6040_v62 = vpop.f32.mrb[156].mxu1 }
 0x3cd   : > { %v3226_v63 = vadd.f32 %v7400_v49, %v6040_v62  ;;  %v3217_v0 = vpop.f32.mrb[157].mxu1 }
 0x3ce   : > { %v3218_v1 = vadd.f32 %v7400_v49, %v3217_v0  ;;  %v6041_v2 = vpop.f32.mrb[158].mxu1 }
 0x3cf   : > { %v3229_v3 = vadd.f32 %v7400_v49, %v6041_v2  ;;  %v3220_v4 = vpop.f32.mrb[159].mxu1  ;;  %v3454_v6 = vmax.f32 %v3226_v63, 0.0 }
 0x3d0   : > { %v3221_v5 = vadd.f32 %v7400_v49, %v3220_v4  ;;  %v3452_v8 = vmax.f32 %v3218_v1, 0.0 }
 0x3d1   : > { %v3455_v7 = vmax.f32 %v3229_v3, 0.0 }
 0x3d2   : > { %v3453_v9 = vmax.f32 %v3221_v5, 0.0 }
 0x3d3   : > { %v5650_v11 = vpack.c.bf16 %v3455_v7, %v3454_v6 }
 0x3d4   : > { %v5645_v12 = vpack.c.bf16 %v3453_v9, %v3452_v8  ;;  %v6044_v13 = vpop.f32.mrb[160].mxu1 }
 0x3d5   : > { %5841 = vst [vmem:[%s7223_s17 + $0x178] sm:$0xff] %v5650_v11   ;;  %v3242_v14 = vadd.f32 %v7400_v49, %v6044_v13  ;;  %v3233_v15 = vpop.f32.mrb[161].mxu1 }
 0x3d6   : > { %5840 = vst [vmem:[%s7223_s17 + $0x170] sm:$0xff] %v5645_v12   ;;  %v3234_v16 = vadd.f32 %v7400_v49, %v3233_v15  ;;  %v6045_v17 = vpop.f32.mrb[162].mxu1 }
 0x3d7   : > { %v3245_v18 = vadd.f32 %v7400_v49, %v6045_v17  ;;  %v3236_v46 = vpop.f32.mrb[163].mxu1  ;;  %v3458_v20 = vmax.f32 %v3242_v14, 0.0 }
 0x3d8   : > { %v3237_v19 = vadd.f32 %v7400_v49, %v3236_v46  ;;  %v3456_v22 = vmax.f32 %v3234_v16, 0.0 }
 0x3d9   : > { %v3459_v21 = vmax.f32 %v3245_v18, 0.0 }
 0x3da   : > { %v3457_v23 = vmax.f32 %v3237_v19, 0.0 }
 0x3db   : > { %v5660_v24 = vpack.c.bf16 %v3459_v21, %v3458_v20 }
 0x3dc   : > { %v5655_v25 = vpack.c.bf16 %v3457_v23, %v3456_v22  ;;  %v6048_v26 = vpop.f32.mrb[164].mxu1 }
 0x3dd   : > { %5843 = vst [vmem:[%s7223_s17 + $0x188] sm:$0xff] %v5660_v24   ;;  %v3258_v27 = vadd.f32 %v7400_v49, %v6048_v26  ;;  %v3249_v28 = vpop.f32.mrb[165].mxu1 }
 0x3de   : > { %5842 = vst [vmem:[%s7223_s17 + $0x180] sm:$0xff] %v5655_v25   ;;  %v3250_v29 = vadd.f32 %v7400_v49, %v3249_v28  ;;  %v6049_v30 = vpop.f32.mrb[166].mxu1 }
 0x3df   : > { %v3261_v31 = vadd.f32 %v7400_v49, %v6049_v30  ;;  %v3252_v32 = vpop.f32.mrb[167].mxu1  ;;  %v3462_v34 = vmax.f32 %v3258_v27, 0.0 }
 0x3e0   : > { %v3253_v33 = vadd.f32 %v7400_v49, %v3252_v32  ;;  %v3460_v36 = vmax.f32 %v3250_v29, 0.0 }
 0x3e1   : > { %v3463_v35 = vmax.f32 %v3261_v31, 0.0 }
 0x3e2   : > { %v3461_v37 = vmax.f32 %v3253_v33, 0.0 }
 0x3e3   : > { %v5670_v38 = vpack.c.bf16 %v3463_v35, %v3462_v34 }
 0x3e4   : > { %v5665_v39 = vpack.c.bf16 %v3461_v37, %v3460_v36  ;;  %v6052_v40 = vpop.f32.mrb[168].mxu1 }
 0x3e5   : > { %5845 = vst [vmem:[%s7223_s17 + $0x198] sm:$0xff] %v5670_v38   ;;  %v3274_v41 = vadd.f32 %v7400_v49, %v6052_v40  ;;  %v3265_v42 = vpop.f32.mrb[169].mxu1 }
 0x3e6   : > { %5844 = vst [vmem:[%s7223_s17 + $0x190] sm:$0xff] %v5665_v39   ;;  %v3266_v43 = vadd.f32 %v7400_v49, %v3265_v42  ;;  %v6053_v44 = vpop.f32.mrb[170].mxu1 }
 0x3e7   : > { %v3277_v45 = vadd.f32 %v7400_v49, %v6053_v44  ;;  %v3268_v48 = vpop.f32.mrb[171].mxu1  ;;  %v3466_v51 = vmax.f32 %v3274_v41, 0.0 }
 0x3e8   : > { %v3269_v50 = vadd.f32 %v7400_v49, %v3268_v48  ;;  %v3464_v53 = vmax.f32 %v3266_v43, 0.0 }
 0x3e9   : > { %v3467_v52 = vmax.f32 %v3277_v45, 0.0 }
 0x3ea   : > { %v3465_v54 = vmax.f32 %v3269_v50, 0.0 }
 0x3eb   : > { %v5680_v55 = vpack.c.bf16 %v3467_v52, %v3466_v51 }
 0x3ec   : > { %v5675_v56 = vpack.c.bf16 %v3465_v54, %v3464_v53  ;;  %v6056_v57 = vpop.f32.mrb[172].mxu1 }
 0x3ed   : > { %5847 = vst [vmem:[%s7223_s17 + $0x1a8] sm:$0xff] %v5680_v55   ;;  %v3290_v10 = vadd.f32 %v7400_v49, %v6056_v57  ;;  %v3281_v47 = vpop.f32.mrb[173].mxu1 }
 0x3ee   : > { %5846 = vst [vmem:[%s7223_s17 + $0x1a0] sm:$0xff] %v5675_v56   ;;  %v3282_v58 = vadd.f32 %v7400_v49, %v3281_v47  ;;  %v6057_v59 = vpop.f32.mrb[174].mxu1 }
 0x3ef   : > { %v3293_v60 = vadd.f32 %v7400_v49, %v6057_v59  ;;  %v3284_v61 = vpop.f32.mrb[175].mxu1  ;;  %v3470_v63 = vmax.f32 %v3290_v10, 0.0 }
 0x3f0   : > { %v3285_v62 = vadd.f32 %v7400_v49, %v3284_v61  ;;  %v3468_v1 = vmax.f32 %v3282_v58, 0.0 }
 0x3f1   : > { %v3471_v0 = vmax.f32 %v3293_v60, 0.0 }
 0x3f2   : > { %v3469_v2 = vmax.f32 %v3285_v62, 0.0 }
 0x3f3   : > { %v5690_v3 = vpack.c.bf16 %v3471_v0, %v3470_v63 }
 0x3f4   : > { %v5685_v4 = vpack.c.bf16 %v3469_v2, %v3468_v1  ;;  %v6060_v5 = vpop.f32.mrb[176].mxu1 }
 0x3f5   : > { %5849 = vst [vmem:[%s7223_s17 + $0x1b8] sm:$0xff] %v5690_v3   ;;  %v3306_v6 = vadd.f32 %v7400_v49, %v6060_v5  ;;  %v3297_v7 = vpop.f32.mrb[177].mxu1 }
 0x3f6   : > { %5848 = vst [vmem:[%s7223_s17 + $0x1b0] sm:$0xff] %v5685_v4   ;;  %v3298_v8 = vadd.f32 %v7400_v49, %v3297_v7  ;;  %v6061_v9 = vpop.f32.mrb[178].mxu1 }
 0x3f7   : > { %v3309_v11 = vadd.f32 %v7400_v49, %v6061_v9  ;;  %v3300_v12 = vpop.f32.mrb[179].mxu1  ;;  %v3474_v14 = vmax.f32 %v3306_v6, 0.0 }
 0x3f8   : > { %v3301_v13 = vadd.f32 %v7400_v49, %v3300_v12  ;;  %v3472_v16 = vmax.f32 %v3298_v8, 0.0 }
 0x3f9   : > { %v3475_v15 = vmax.f32 %v3309_v11, 0.0 }
 0x3fa   : > { %v3473_v17 = vmax.f32 %v3301_v13, 0.0 }
 0x3fb   : > { %v5700_v18 = vpack.c.bf16 %v3475_v15, %v3474_v14 }
 0x3fc   : > { %v5695_v46 = vpack.c.bf16 %v3473_v17, %v3472_v16  ;;  %v6064_v19 = vpop.f32.mrb[180].mxu1 }
 0x3fd   : > { %5851 = vst [vmem:[%s7223_s17 + $0x1c8] sm:$0xff] %v5700_v18   ;;  %v3322_v20 = vadd.f32 %v7400_v49, %v6064_v19  ;;  %v3313_v21 = vpop.f32.mrb[181].mxu1 }
 0x3fe   : > { %5850 = vst [vmem:[%s7223_s17 + $0x1c0] sm:$0xff] %v5695_v46   ;;  %v3314_v22 = vadd.f32 %v7400_v49, %v3313_v21  ;;  %v6065_v23 = vpop.f32.mrb[182].mxu1 }
 0x3ff   : > { %v3325_v24 = vadd.f32 %v7400_v49, %v6065_v23  ;;  %v3316_v25 = vpop.f32.mrb[183].mxu1  ;;  %v3478_v27 = vmax.f32 %v3322_v20, 0.0 }
 0x400   : > { %v3317_v26 = vadd.f32 %v7400_v49, %v3316_v25  ;;  %v3476_v29 = vmax.f32 %v3314_v22, 0.0 }
 0x401   : > { %v3479_v28 = vmax.f32 %v3325_v24, 0.0 }
 0x402   : > { %v3477_v30 = vmax.f32 %v3317_v26, 0.0 }
 0x403   : > { %v5710_v31 = vpack.c.bf16 %v3479_v28, %v3478_v27 }
 0x404   : > { %v5705_v32 = vpack.c.bf16 %v3477_v30, %v3476_v29  ;;  %v6068_v33 = vpop.f32.mrb[184].mxu1 }
 0x405   : > { %5853 = vst [vmem:[%s7223_s17 + $0x1d8] sm:$0xff] %v5710_v31   ;;  %v3338_v34 = vadd.f32 %v7400_v49, %v6068_v33  ;;  %v3329_v35 = vpop.f32.mrb[185].mxu1 }
 0x406   : > { %5852 = vst [vmem:[%s7223_s17 + $0x1d0] sm:$0xff] %v5705_v32   ;;  %v3330_v36 = vadd.f32 %v7400_v49, %v3329_v35  ;;  %v6069_v37 = vpop.f32.mrb[186].mxu1 }
 0x407   : > { %v3341_v38 = vadd.f32 %v7400_v49, %v6069_v37  ;;  %v3332_v39 = vpop.f32.mrb[187].mxu1  ;;  %v3482_v41 = vmax.f32 %v3338_v34, 0.0 }
 0x408   : > { %v3333_v40 = vadd.f32 %v7400_v49, %v3332_v39  ;;  %v3480_v43 = vmax.f32 %v3330_v36, 0.0 }
 0x409   : > { %v3483_v42 = vmax.f32 %v3341_v38, 0.0 }
 0x40a   : > { %v3481_v44 = vmax.f32 %v3333_v40, 0.0 }
 0x40b   : > { %v5720_v45 = vpack.c.bf16 %v3483_v42, %v3482_v41 }
 0x40c   : > { %v5715_v48 = vpack.c.bf16 %v3481_v44, %v3480_v43  ;;  %v6072_v50 = vpop.f32.mrb[188].mxu1 }
 0x40d   : > { %5855 = vst [vmem:[%s7223_s17 + $0x1e8] sm:$0xff] %v5720_v45   ;;  %v3354_v51 = vadd.f32 %v7400_v49, %v6072_v50  ;;  %v3345_v52 = vpop.f32.mrb[189].mxu1 }
 0x40e   : > { %5854 = vst [vmem:[%s7223_s17 + $0x1e0] sm:$0xff] %v5715_v48   ;;  %v3346_v53 = vadd.f32 %v7400_v49, %v3345_v52  ;;  %v6073_v54 = vpop.f32.mrb[190].mxu1 }
 0x40f   : > { %v3357_v55 = vadd.f32 %v7400_v49, %v6073_v54  ;;  %v3348_v56 = vpop.f32.mrb[191].mxu1  ;;  %v3486_v10 = vmax.f32 %v3354_v51, 0.0 }
 0x410   : > { %v3349_v57 = vadd.f32 %v7400_v49, %v3348_v56  ;;  %v3484_v58 = vmax.f32 %v3346_v53, 0.0 }
 0x411   : > { %v3487_v47 = vmax.f32 %v3357_v55, 0.0 }
 0x412   : > { %v3485_v59 = vmax.f32 %v3349_v57, 0.0 }
 0x413   : > { %v5730_v60 = vpack.c.bf16 %v3487_v47, %v3486_v10 }
 0x414   : > { %v5725_v61 = vpack.c.bf16 %v3485_v59, %v3484_v58 }
 0x415   : > { %5857 = vst [vmem:[%s7223_s17 + $0x1f8] sm:$0xff] %v5730_v60  }
 0x416   : > { %5856 = vst [vmem:[%s7223_s17 + $0x1f0] sm:$0xff] %v5725_v61  }
 0x417 PF: > { %s23_s28 = sadd.s32 1, %s6568_s28   ;;  %s7543_s24 = sld [smem:[#allocation9_spill]] }
 0x418   : > { %p20_p3 = scmp.ge.s32.totalorder %s23_s28, 10   ;;  %s7544_s26 = sld [smem:[#allocation10_spill]] }
 0x419   : > { %s7545_s8 = sld [smem:[#allocation11_spill]]  ;;  %s7546_s21 = smov %s6544_s22 }
 0x41a   : > { %s7547_s22 = smov %s6548_s23  ;;  %s7548_s23 = smov %s6682_s15 }
 0x41b   : > { %s7549_s25 = smov %s6564_s27  ;;  %22 = sbr.rel (!%p20_p3) target bundleno = 9 (0x9), region = 122 }
 0x41f   : > { %s7550_s27 = smov %s7545_s8 }
 0x422   :  { %4183 = vsyncpa [#allocation3], 1 }
 0x423   :  { %4185 = vsyncpa [#allocation3 + $0x1], 1 }
 0x424   :  { %4186 = vsyncpa [#allocation5], 1 }
 0x425   :  { %4188 = vsyncpa [#allocation5 + $0x1], 1 }

// kernel: multiview_forward.3
= control target key start
LH: loop header
LB: loop body
LE: loop exit
PB: predicated region body
PF: predicated region fallthrough
CT: control target
= control target key end

     0   :  { %s6182_s0 = inlined_call_operand.vmem [shape: bf16[8,1024,144], index: 0, kind: input, shape index: {}]   ;;  %s6183_s1 = inlined_call_operand.vmem [shape: bf16[8,1024,128], index: 1, kind: input, shape index: {}]   ;;  %s6184_s2 = inlined_call_operand.vmem [shape: bf16[4,144,128], index: 2, kind: input, shape index: {}]   ;;  %s6185_s3 = inlined_call_operand.vmem [shape: f32[4,1,128], index: 3, kind: input, shape index: {}]   ;;  %s6186_s4 = inlined_call_operand.vmem [shape: bf16[4,128,128], index: 4, kind: input, shape index: {}]   ;;  %s6187_s5 = inlined_call_operand.vmem [shape: f32[4,1,128], index: 5, kind: input, shape index: {}]   ;;  %s6188_s6 = inlined_call_operand.vmem [shape: bf16[4,128,512], index: 6, kind: input, shape index: {}]   ;;  %s6189_s7 = inlined_call_operand.vmem [shape: f32[4,1,512], index: 7, kind: input, shape index: {}]   ;;  %s6190_s8 = inlined_call_operand.hbm [shape: f32[4,2,512], index: 8, kind: output, shape index: {}]  }
   0x1   :  { %6191 = sst [smem:[#allocation6_spill]] %s6182_s0 }
   0x2   :  { %6192 = sst [smem:[#allocation7_spill]] %s6184_s2 }
   0x3   :  { %13 = vsyncpa [#allocation4], 0 }
   0x4   :  { %15 = vsyncpa [#allocation4 + $0x1], 0  ;;  %s5356_s27 = smov 0   ;;  %s5358_s28 = smov 0  }
   0x5   :  { %s5360_s29 = smov 0   ;;  %s5362_s30 = smov 0  }
   0x6   :  { %s5364_s9 = smov 0   ;;  %s5366_s10 = smov 0  }
   0x7   :  { %s5368_s11 = smov 0   ;;  %s5370_s12 = smov 0  }
   0x8 LB: > { %s4047_s13 = sadd.s32 4294967295, %s5305_s12   ;;  %s4048_s14 = sadd.s32 4294967294, %s5305_s12   ;;  %s5305_s12 = sphi %s5370_s12, %s21_s12   ;;  %s5301_s11 = sphi %s5368_s11, %s6205_s11   ;;  %s5297_s10 = sphi %s5366_s10, %s6204_s10   ;;  %s5293_s9 = sphi %s5364_s9, %s6203_s9   ;;  %s5289_s30 = sphi %s5362_s30, %s6202_s30   ;;  %s5285_s29 = sphi %s5360_s29, %s6201_s29   ;;  %s5281_s28 = sphi %s5358_s28, %s6200_s28   ;;  %s5277_s27 = sphi %s5356_s27, %s6199_s27  }
   0x9   : > { %s36_s15 = sadd.s32 1, %s5297_s10  ;;  %s40_s16 = sadd.s32 1, %s5301_s11 }
   0xa   : > { %p38_p0 = scmp.ge.s32.totalorder %s36_s15, 2  ;;  %p277_p1 = scmp.ne.s32.totalorder %s5285_s29, %s5281_s28 }
   0xb   : > { %p278_p2 = scmp.eq.s32.totalorder %s4047_s13, 7  ;;  %p283_p4 = scmp.ne.s32.totalorder %s5281_s28, %s5277_s27 }
   0xc   : > { %s6207_s15 = smov (%p38_p0, %s36_s15), 0  ;;  %s6209_s16 = smov (!%p38_p0, %s40_s16), %s5301_s11 }
   0xd   : > { %p5405_p3 = por %p278_p2, %p277_p1  ;;  %p42_p5 = scmp.ge.s32.totalorder %s6209_s16, 4 }
   0xe   : > { %p284_p6 = scmp.eq.s32.totalorder %s4048_s14, 7  ;;  %p4055_p7 = scmp.ge.s32.totalorder %s5305_s12, 1 }
   0xf   : > { %p380_p8 = scmp.lt.s32.totalorder %s5305_s12, 9  ;;  %s6211_s16 = smov (%p42_p5, %s6209_s16), 0 }
  0x10   : > { %p5415_p9 = por %p284_p6, %p283_p4  ;;  %s264_s19 = ssub.s32 %s5301_s11, %s6211_s16 }
  0x11   : > { %p381_p10 = pnand %p4055_p7, %p380_p8  ;;  %s267_s20 = sadd.s32 1, %s5285_s29 }
  0x12   : > { %p265_p11 = scmp.eq.s32.totalorder %s264_s19, 0  ;;  %p486_p12 = scmp.lt.s32.totalorder (!%p381_p10), %s5293_s9, 3  ;;  %v5307_v0 = vmov (!%p381_p10), 0   ;;  %vm1300_vm0 = vcmask (!%p381_p10), 130048  }
  0x13   : > { %384 = sbr.rel (%p381_p10) target bundleno = 1259 (0x4eb), region = 52  ;;  %s4057_s22 = sshll.u32 (!%p381_p10), %s5293_s9, 1  ;;  %1493 = vmatprep.subr.bf16.mxu0 (!%p381_p10), %v5307_v0  ;;  %4857 = vmatprep.subr.bf16.mxu1 (!%p381_p10), %v5307_v0 }
  0x14   : > { %s5423_s21 = scalar_select %p265_p11, %s5285_s29, %s267_s20  }
  0x15   : > { %s458_s23 = sadd.s32 (!%p381_p10), %s5289_s30, %s4057_s22  ;;  %s6195_s2 = sld [smem:[#allocation7_spill]] (!%p381_p10) }
  0x16   : > { %p460_p13 = scmp.lt.s32.totalorder (!%p381_p10), %s458_s23, 7  ;;  %s6196_s0 = sld [smem:[#allocation6_spill]] (!%p381_p10) }
  0x1a   : > { %s5431_s24 = scalar_select %p486_p12, %s5293_s9, 3 }
  0x1b   : > { %s6213_s23 = smov (!%p460_p13, %s458_s23), 7 }
  0x1c   : > { %s4875_s25 = smul.u32 72, %s5431_s24  ;;  %s4317_s19 = sshll.u32 %s6213_s23, 10 }
  0x1d   : > { %s4320_s26 = sshll.u32 %s5431_s24, 8  ;;  %s4319_s20 = sshll.u32 %s5431_s24, 6 }
  0x1e   : > { %s5437_s14 = scalar_lea.vmem %s6195_s2, %s4875_s25  ;;  %s5451_s25 = scalar_lea.vmem %s6196_s0, %s4317_s19 }
  0x1f   : > { %v4950_v1 = vld [vmem:[%s5437_s14] sm:$0xff]   ;;  %v4951_v2 = vld [vmem:[%s5437_s14 + $0x8] sm:$0xff]   ;;  %v4952_v3 = vld [vmem:[%s5437_s14 + $0x10] sm:$0xff]   ;;  %s5507_s19 = scalar_lea.vmem %s6188_s6, %s4320_s26  ;;  %s5539_s13 = scalar_lea.vmem %s6186_s4, %s4319_s20 }
  0x20   : > { %1494 = vmatpush1.bf16.msra.mxu0 %v4950_v1  ;;  %4866 = vmatpush1.bf16.msra.mxu1 %v4950_v1  ;;  %v4953_v4 = vld [vmem:[%s5437_s14 + $0x18] sm:$0xff]   ;;  %v4961_v5 = vld [vmem:[%s5451_s25 + $0x4] ss:$8 sps:$4 sm:$0xff]   ;;  %v4956_v8 = vld [vmem:[%s5437_s14 + $0x30] sm:$0xff]   ;;  %s5617_s22 = scalar_lea.vmem %s6185_s3, %s5431_s24  ;;  %s5811_s2 = scalar_lea.vmem %s6187_s5, %s5431_s24 }
  0x21   : > { %1495 = vmatprep.subr.bf16.mxu0 %v5307_v0  ;;  %4858 = vmatprep.subr.bf16.mxu1 %v5307_v0  ;;  %v4954_v6 = vld [vmem:[%s5437_s14 + $0x20] sm:$0xff]   ;;  %v4955_v7 = vld [vmem:[%s5437_s14 + $0x28] sm:$0xff]   ;;  %v4957_v9 = vld [vmem:[%s5437_s14 + $0x38] sm:$0xff]   ;;  %s454_s0 = sand.u32 1, %s5281_s28  }
  0x22   : > { %4207 = vmatprep.mubr.msk.bf16.mxu0 %vm1300_vm0, %v4961_v5  ;;  %v4958_v10 = vld [vmem:[%s5437_s14 + $0x40] sm:$0xff]   ;;  %v5009_v12 = vld [vmem:[%s5451_s25 + $0x334] ss:$8 sps:$4 sm:$0xff]   ;;  %v5007_v14 = vld [vmem:[%s5451_s25 + $0x330] ss:$8 sps:$4 sm:$0xff]  }
  0x23   : > { %v4959_v11 = vld [vmem:[%s5451_s25] ss:$8 sps:$4 sm:$0xff]   ;;  %v4962_v13 = vld [vmem:[%s5451_s25 + $0x14] ss:$8 sps:$4 sm:$0xff]   ;;  %4258 = vmatprep.mubr.msk.bf16.mxu1 %vm1300_vm0, %v5009_v12  ;;  %v5013_v15 = vld [vmem:[%s5451_s25 + $0x344] ss:$8 sps:$4 sm:$0xff]  }
  0x24   : > { %1496 = vmatpush1.bf16.msra.mxu0 %v4951_v2  ;;  %4867 = vmatpush1.bf16.msra.mxu1 %v4951_v2  ;;  %v4964_v16 = vld [vmem:[%s5451_s25 + $0x10] ss:$8 sps:$4 sm:$0xff]   ;;  %v5015_v17 = vld [vmem:[%s5451_s25 + $0x340] ss:$8 sps:$4 sm:$0xff]   ;;  %v4965_v18 = vld [vmem:[%s5451_s25 + $0x24] ss:$8 sps:$4 sm:$0xff]  }
  0x25   : > { %1497 = vmatprep.subr.bf16.mxu0 %v5307_v0  ;;  %4859 = vmatprep.subr.bf16.mxu1 %v5307_v0  ;;  %v5019_v19 = vld [vmem:[%s5451_s25 + $0x354] ss:$8 sps:$4 sm:$0xff]   ;;  %v4967_v20 = vld [vmem:[%s5451_s25 + $0x20] ss:$8 sps:$4 sm:$0xff]   ;;  %v5021_v21 = vld [vmem:[%s5451_s25 + $0x350] ss:$8 sps:$4 sm:$0xff]  }
  0x26   : > { %v4968_v22 = vld [vmem:[%s5451_s25 + $0x34] ss:$8 sps:$4 sm:$0xff]   ;;  %v5025_v23 = vld [vmem:[%s5451_s25 + $0x364] ss:$8 sps:$4 sm:$0xff]   ;;  %v4970_v24 = vld [vmem:[%s5451_s25 + $0x30] ss:$8 sps:$4 sm:$0xff]  }
  0x27   : > { %v5027_v25 = vld [vmem:[%s5451_s25 + $0x360] ss:$8 sps:$4 sm:$0xff]   ;;  %v4971_v26 = vld [vmem:[%s5451_s25 + $0x44] ss:$8 sps:$4 sm:$0xff]   ;;  %v5031_v27 = vld [vmem:[%s5451_s25 + $0x374] ss:$8 sps:$4 sm:$0xff]  }
  0x28   : > { %1498 = vmatpush1.bf16.msra.mxu0 %v4952_v3  ;;  %4868 = vmatpush1.bf16.msra.mxu1 %v4952_v3  ;;  %v4973_v28 = vld [vmem:[%s5451_s25 + $0x40] ss:$8 sps:$4 sm:$0xff]   ;;  %v5033_v29 = vld [vmem:[%s5451_s25 + $0x370] ss:$8 sps:$4 sm:$0xff]   ;;  %v4974_v30 = vld [vmem:[%s5451_s25 + $0x54] ss:$8 sps:$4 sm:$0xff]  }
  0x29   : > { %1499 = vmatprep.subr.bf16.mxu0 %v5307_v0  ;;  %4860 = vmatprep.subr.bf16.mxu1 %v5307_v0  ;;  %v5037_v31 = vld [vmem:[%s5451_s25 + $0x384] ss:$8 sps:$4 sm:$0xff]   ;;  %v4976_v32 = vld [vmem:[%s5451_s25 + $0x50] ss:$8 sps:$4 sm:$0xff]   ;;  %v5039_v33 = vld [vmem:[%s5451_s25 + $0x380] ss:$8 sps:$4 sm:$0xff]  }
  0x2a   : > { %v4977_v34 = vld [vmem:[%s5451_s25 + $0x64] ss:$8 sps:$4 sm:$0xff]   ;;  %v5043_v35 = vld [vmem:[%s5451_s25 + $0x394] ss:$8 sps:$4 sm:$0xff]   ;;  %v4979_v36 = vld [vmem:[%s5451_s25 + $0x60] ss:$8 sps:$4 sm:$0xff]  }
  0x2b   : > { %v5045_v37 = vld [vmem:[%s5451_s25 + $0x390] ss:$8 sps:$4 sm:$0xff]   ;;  %v4980_v38 = vld [vmem:[%s5451_s25 + $0x74] ss:$8 sps:$4 sm:$0xff]   ;;  %v5049_v39 = vld [vmem:[%s5451_s25 + $0x3a4] ss:$8 sps:$4 sm:$0xff]  }
  0x2c   : > { %1500 = vmatpush1.bf16.msra.mxu0 %v4953_v4  ;;  %4869 = vmatpush1.bf16.msra.mxu1 %v4953_v4  ;;  %v4982_v40 = vld [vmem:[%s5451_s25 + $0x70] ss:$8 sps:$4 sm:$0xff]   ;;  %v5051_v41 = vld [vmem:[%s5451_s25 + $0x3a0] ss:$8 sps:$4 sm:$0xff]   ;;  %v4983_v42 = vld [vmem:[%s5451_s25 + $0x84] ss:$8 sps:$4 sm:$0xff]  }
  0x2d   : > { %1501 = vmatprep.subr.bf16.mxu0 %v5307_v0  ;;  %4861 = vmatprep.subr.bf16.mxu1 %v5307_v0  ;;  %v5055_v43 = vld [vmem:[%s5451_s25 + $0x3b4] ss:$8 sps:$4 sm:$0xff]   ;;  %v4985_v44 = vld [vmem:[%s5451_s25 + $0x80] ss:$8 sps:$4 sm:$0xff]   ;;  %v5057_v45 = vld [vmem:[%s5451_s25 + $0x3b0] ss:$8 sps:$4 sm:$0xff]  }
  0x2e   : > { %v4986_v46 = vld [vmem:[%s5451_s25 + $0x94] ss:$8 sps:$4 sm:$0xff]   ;;  %v5061_v47 = vld [vmem:[%s5451_s25 + $0x3c4] ss:$8 sps:$4 sm:$0xff]   ;;  %v4988_v48 = vld [vmem:[%s5451_s25 + $0x90] ss:$8 sps:$4 sm:$0xff]  }
  0x2f   : > { %v5063_v49 = vld [vmem:[%s5451_s25 + $0x3c0] ss:$8 sps:$4 sm:$0xff]   ;;  %v4989_v51 = vld [vmem:[%s5451_s25 + $0xa4] ss:$8 sps:$4 sm:$0xff]   ;;  %v5069_v53 = vld [vmem:[%s5451_s25 + $0x3d4] ss:$8 sps:$4 sm:$0xff]  }
  0x30   : > { %1502 = vmatpush1.bf16.msra.mxu0 %v4954_v6  ;;  %4870 = vmatpush1.bf16.msra.mxu1 %v4954_v6  ;;  %v5064_v50 = vld [vmem:[%s5539_s13] sm:$0xff]   ;;  %v5068_v52 = vld [vmem:[%s5539_s13 + $0x8] sm:$0xff]   ;;  %v5072_v54 = vld [vmem:[%s5539_s13 + $0x10] sm:$0xff]  }
  0x31   : > { %1503 = vmatprep.subr.bf16.mxu0 %v5307_v0  ;;  %4862 = vmatprep.subr.bf16.mxu1 %v5307_v0  ;;  %v4991_v55 = vld [vmem:[%s5451_s25 + $0xa0] ss:$8 sps:$4 sm:$0xff]   ;;  %v5071_v56 = vld [vmem:[%s5451_s25 + $0x3d0] ss:$8 sps:$4 sm:$0xff]   ;;  %v4992_v57 = vld [vmem:[%s5451_s25 + $0xb4] ss:$8 sps:$4 sm:$0xff]  }
  0x32   : > { %v5076_v58 = vld [vmem:[%s5539_s13 + $0x18] sm:$0xff]   ;;  %v5077_v59 = vld [vmem:[%s5451_s25 + $0x3e4] ss:$8 sps:$4 sm:$0xff]   ;;  %v5079_v62 = vld [vmem:[%s5451_s25 + $0x3e0] ss:$8 sps:$4 sm:$0xff]  }
  0x33   : > { %v5080_v60 = vld [vmem:[%s5539_s13 + $0x20] sm:$0xff]   ;;  %v4994_v61 = vld [vmem:[%s5451_s25 + $0xb0] ss:$8 sps:$4 sm:$0xff]   ;;  %v5084_v1 = vld [vmem:[%s5539_s13 + $0x28] sm:$0xff]  }
  0x34   : > { %1504 = vmatpush1.bf16.msra.mxu0 %v4955_v7  ;;  %4871 = vmatpush1.bf16.msra.mxu1 %v4955_v7  ;;  %v4995_v63 = vld [vmem:[%s5451_s25 + $0xc4] ss:$8 sps:$4 sm:$0xff]   ;;  %v5085_v2 = vld [vmem:[%s5451_s25 + $0x3f4] ss:$8 sps:$4 sm:$0xff]   ;;  %v4997_v4 = vld [vmem:[%s5451_s25 + $0xc0] ss:$8 sps:$4 sm:$0xff]  }
  0x35   : > { %1505 = vmatprep.subr.bf16.mxu0 %v5307_v0  ;;  %4863 = vmatprep.subr.bf16.mxu1 %v5307_v0  ;;  %v5088_v3 = vld [vmem:[%s5539_s13 + $0x30] sm:$0xff]   ;;  %v5092_v7 = vld [vmem:[%s5539_s13 + $0x38] sm:$0xff]  }
  0x36   : > { %v5087_v5 = vld [vmem:[%s5451_s25 + $0x3f0] ss:$8 sps:$4 sm:$0xff]   ;;  %v4998_v6 = vld [vmem:[%s5451_s25 + $0xd4] ss:$8 sps:$4 sm:$0xff]  }
  0x37   : > { %v5006_v12 = vld [vmem:[%s5451_s25 + $0xf0] ss:$8 sps:$4 sm:$0xff]  }
  0x38   : > { %1506 = vmatpush1.bf16.msra.mxu0 %v4956_v8  ;;  %4872 = vmatpush1.bf16.msra.mxu1 %v4956_v8  ;;  %v5000_v8 = vld [vmem:[%s5451_s25 + $0xd0] ss:$8 sps:$4 sm:$0xff]  }
  0x39   : > { %1507 = vmatprep.subr.bf16.mxu0 %v5307_v0  ;;  %4864 = vmatprep.subr.bf16.mxu1 %v5307_v0 }
  0x3c   : > { %1508 = vmatpush1.bf16.msra.mxu0 %v4957_v9  ;;  %4873 = vmatpush1.bf16.msra.mxu1 %v4957_v9  ;;  %v5001_v9 = vld [vmem:[%s5451_s25 + $0xe4] ss:$8 sps:$4 sm:$0xff]  }
  0x3d   : > { %1509 = vmatprep.subr.bf16.mxu0 %v5307_v0  ;;  %4865 = vmatprep.subr.bf16.mxu1 %v5307_v0 }
  0x40   : > { %1510 = vmatpush1.bf16.msra.mxu0 %v4958_v10  ;;  %4874 = vmatpush1.bf16.msra.mxu1 %v4958_v10  ;;  %v5003_v10 = vld [vmem:[%s5451_s25 + $0xe0] ss:$8 sps:$4 sm:$0xff]  }
  0x41   : > { %4713 = vmatprep.subr.bf16.mxu1 %v5064_v50 }
  0x43   : > { %1526 = vmatmul.mubr.bf16.vlgmr.msra.gmra.mrb[0].mxu0 %v4959_v11  ;;  %1934 = vmatmul.mubr.bf16.vlgmr.msra.gmra.mrb[0].mxu1 %v5007_v14  ;;  %v5004_v11 = vld [vmem:[%s5451_s25 + $0xf4] ss:$8 sps:$4 sm:$0xff]   ;;  %v5012_v14 = vld [vmem:[%s5451_s25 + $0x100] ss:$8 sps:$4 sm:$0xff]  }
  0x44   : > { %4208 = vmatprep.mubr.msk.bf16.mxu0 %vm1300_vm0, %v4962_v13  ;;  %4259 = vmatprep.mubr.msk.bf16.mxu1 %vm1300_vm0, %v5013_v15  ;;  %v5010_v13 = vld [vmem:[%s5451_s25 + $0x104] ss:$8 sps:$4 sm:$0xff]   ;;  %v5016_v15 = vld [vmem:[%s5451_s25 + $0x114] ss:$8 sps:$4 sm:$0xff]  }
  0x45   : > { %4714 = vmatpush3.bf16.msra.mxu1 %v5064_v50 }
  0x46   : > { %4715 = vmatprep.subr.bf16.mxu1 %v5068_v52 }
  0x49   : > { %4716 = vmatpush3.bf16.msra.mxu1 %v5068_v52 }
  0x4a   : > { %4717 = vmatprep.subr.bf16.mxu1 %v5072_v54 }
  0x4b   : > { %1534 = vmatmul.mubr.bf16.gmra.mrb[4].mxu0 %v4964_v16  ;;  %1942 = vmatmul.mubr.bf16.gmra.mrb[4].mxu1 %v5015_v17  ;;  %v5018_v16 = vld [vmem:[%s5451_s25 + $0x110] ss:$8 sps:$4 sm:$0xff]   ;;  %v5022_v17 = vld [vmem:[%s5451_s25 + $0x124] ss:$8 sps:$4 sm:$0xff]  }
  0x4c   : > { %4209 = vmatprep.mubr.msk.bf16.mxu0 %vm1300_vm0, %v4965_v18  ;;  %4260 = vmatprep.mubr.msk.bf16.mxu1 %vm1300_vm0, %v5019_v19  ;;  %v5024_v18 = vld [vmem:[%s5451_s25 + $0x120] ss:$8 sps:$4 sm:$0xff]   ;;  %v5028_v19 = vld [vmem:[%s5451_s25 + $0x134] ss:$8 sps:$4 sm:$0xff]  }
  0x4d   : > { %4718 = vmatpush3.bf16.msra.mxu1 %v5072_v54 }
  0x4e   : > { %4719 = vmatprep.subr.bf16.mxu1 %v5076_v58 }
  0x51   : > { %4720 = vmatpush3.bf16.msra.mxu1 %v5076_v58 }
  0x52   : > { %4721 = vmatprep.subr.bf16.mxu1 %v5080_v60 }
  0x53   : > { %1542 = vmatmul.mubr.bf16.gmra.mrb[8].mxu0 %v4967_v20  ;;  %1950 = vmatmul.mubr.bf16.gmra.mrb[8].mxu1 %v5021_v21  ;;  %v5030_v20 = vld [vmem:[%s5451_s25 + $0x130] ss:$8 sps:$4 sm:$0xff]   ;;  %v5034_v21 = vld [vmem:[%s5451_s25 + $0x144] ss:$8 sps:$4 sm:$0xff]  }
  0x54   : > { %4210 = vmatprep.mubr.msk.bf16.mxu0 %vm1300_vm0, %v4968_v22  ;;  %4261 = vmatprep.mubr.msk.bf16.mxu1 %vm1300_vm0, %v5025_v23  ;;  %v5036_v22 = vld [vmem:[%s5451_s25 + $0x140] ss:$8 sps:$4 sm:$0xff]   ;;  %v5040_v23 = vld [vmem:[%s5451_s25 + $0x154] ss:$8 sps:$4 sm:$0xff]  }
  0x55   : > { %4722 = vmatpush3.bf16.msra.mxu1 %v5080_v60 }
  0x56   : > { %4723 = vmatprep.subr.bf16.mxu1 %v5084_v1 }
  0x59   : > { %4724 = vmatpush3.bf16.msra.mxu1 %v5084_v1  ;;  %v5096_v1 = vld [vmem:[%s5451_s25 + $0x1e4] ss:$8 sps:$4 sm:$0xff]  }
  0x5a   : > { %4725 = vmatprep.subr.bf16.mxu1 %v5088_v3 }
  0x5b   : > { %1550 = vmatmul.mubr.bf16.gmra.mrb[12].mxu0 %v4970_v24  ;;  %1958 = vmatmul.mubr.bf16.gmra.mrb[12].mxu1 %v5027_v25  ;;  %v5042_v24 = vld [vmem:[%s5451_s25 + $0x150] ss:$8 sps:$4 sm:$0xff]   ;;  %v5046_v25 = vld [vmem:[%s5451_s25 + $0x164] ss:$8 sps:$4 sm:$0xff]  }
  0x5c   : > { %4211 = vmatprep.mubr.msk.bf16.mxu0 %vm1300_vm0, %v4971_v26  ;;  %4262 = vmatprep.mubr.msk.bf16.mxu1 %vm1300_vm0, %v5031_v27  ;;  %v5048_v26 = vld [vmem:[%s5451_s25 + $0x160] ss:$8 sps:$4 sm:$0xff]   ;;  %v5052_v27 = vld [vmem:[%s5451_s25 + $0x174] ss:$8 sps:$4 sm:$0xff]  }
  0x5d   : > { %4726 = vmatpush3.bf16.msra.mxu1 %v5088_v3 }
  0x5e   : > { %4727 = vmatprep.subr.bf16.mxu1 %v5092_v7 }
  0x61   : > { %4728 = vmatpush3.bf16.msra.mxu1 %v5092_v7 }
  0x63   : > { %1558 = vmatmul.mubr.bf16.gmra.mrb[16].mxu0 %v4973_v28  ;;  %1966 = vmatmul.mubr.bf16.gmra.mrb[16].mxu1 %v5033_v29  ;;  %v5054_v28 = vld [vmem:[%s5451_s25 + $0x170] ss:$8 sps:$4 sm:$0xff]   ;;  %v5058_v29 = vld [vmem:[%s5451_s25 + $0x184] ss:$8 sps:$4 sm:$0xff]  }
  0x64   : > { %4212 = vmatprep.mubr.msk.bf16.mxu0 %vm1300_vm0, %v4974_v30  ;;  %4263 = vmatprep.mubr.msk.bf16.mxu1 %vm1300_vm0, %v5037_v31  ;;  %v5060_v30 = vld [vmem:[%s5451_s25 + $0x180] ss:$8 sps:$4 sm:$0xff]   ;;  %v5065_v31 = vld [vmem:[%s5451_s25 + $0x194] ss:$8 sps:$4 sm:$0xff]  }
  0x6b   : > { %1566 = vmatmul.mubr.bf16.gmra.mrb[20].mxu0 %v4976_v32  ;;  %1974 = vmatmul.mubr.bf16.gmra.mrb[20].mxu1 %v5039_v33  ;;  %v5067_v32 = vld [vmem:[%s5451_s25 + $0x190] ss:$8 sps:$4 sm:$0xff]   ;;  %v5073_v33 = vld [vmem:[%s5451_s25 + $0x1a4] ss:$8 sps:$4 sm:$0xff]  }
  0x6c   : > { %4213 = vmatprep.mubr.msk.bf16.mxu0 %vm1300_vm0, %v4977_v34  ;;  %4264 = vmatprep.mubr.msk.bf16.mxu1 %vm1300_vm0, %v5043_v35  ;;  %v5075_v34 = vld [vmem:[%s5451_s25 + $0x1a0] ss:$8 sps:$4 sm:$0xff]   ;;  %v5081_v35 = vld [vmem:[%s5451_s25 + $0x1b4] ss:$8 sps:$4 sm:$0xff]  }
  0x73   : > { %1574 = vmatmul.mubr.bf16.gmra.mrb[24].mxu0 %v4979_v36  ;;  %1982 = vmatmul.mubr.bf16.gmra.mrb[24].mxu1 %v5045_v37  ;;  %v5620_v36 = vld [vmem:[%s5617_s22] ss:$0 sm:$0xff] }
  0x74   : > { %4214 = vmatprep.mubr.msk.bf16.mxu0 %vm1300_vm0, %v4980_v38  ;;  %4265 = vmatprep.mubr.msk.bf16.mxu1 %vm1300_vm0, %v5049_v39 }
  0x7b   : > { %1582 = vmatmul.mubr.bf16.gmra.mrb[28].mxu0 %v4982_v40  ;;  %1990 = vmatmul.mubr.bf16.gmra.mrb[28].mxu1 %v5051_v41  ;;  %v5083_v40 = vld [vmem:[%s5451_s25 + $0x1b0] ss:$8 sps:$4 sm:$0xff]  }
  0x7c   : > { %4215 = vmatprep.mubr.msk.bf16.mxu0 %vm1300_vm0, %v4983_v42  ;;  %4266 = vmatprep.mubr.msk.bf16.mxu1 %vm1300_vm0, %v5055_v43  ;;  %v5089_v42 = vld [vmem:[%s5451_s25 + $0x1c4] ss:$8 sps:$4 sm:$0xff]  }
  0x83   : > { %1590 = vmatmul.mubr.bf16.gmra.mrb[32].mxu0 %v4985_v44  ;;  %1998 = vmatmul.mubr.bf16.gmra.mrb[32].mxu1 %v5057_v45 }
  0x84   : > { %4216 = vmatprep.mubr.msk.bf16.mxu0 %vm1300_vm0, %v4986_v46  ;;  %4267 = vmatprep.mubr.msk.bf16.mxu1 %vm1300_vm0, %v5061_v47 }
  0x8b   : > { %1598 = vmatmul.mubr.bf16.gmra.mrb[36].mxu0 %v4988_v48  ;;  %2006 = vmatmul.mubr.bf16.gmra.mrb[36].mxu1 %v5063_v49 }
  0x8c   : > { %4217 = vmatprep.mubr.msk.bf16.mxu0 %vm1300_vm0, %v4989_v51  ;;  %4268 = vmatprep.mubr.msk.bf16.mxu1 %vm1300_vm0, %v5069_v53  ;;  %v5091_v51 = vld [vmem:[%s5451_s25 + $0x1c0] ss:$8 sps:$4 sm:$0xff]   ;;  %v5093_v53 = vld [vmem:[%s5451_s25 + $0x1d4] ss:$8 sps:$4 sm:$0xff]  }
  0x93   : > { %1606 = vmatmul.mubr.bf16.gmra.mrb[40].mxu0 %v4991_v55  ;;  %2014 = vmatmul.mubr.bf16.gmra.mrb[40].mxu1 %v5071_v56 }
  0x94   : > { %4218 = vmatprep.mubr.msk.bf16.mxu0 %vm1300_vm0, %v4992_v57  ;;  %4269 = vmatprep.mubr.msk.bf16.mxu1 %vm1300_vm0, %v5077_v59 }
  0x9b   : > { %1614 = vmatmul.mubr.bf16.gmra.mrb[44].mxu0 %v4994_v61  ;;  %2022 = vmatmul.mubr.bf16.gmra.mrb[44].mxu1 %v5079_v62  ;;  %v5095_v62 = vld [vmem:[%s5451_s25 + $0x1d0] ss:$8 sps:$4 sm:$0xff]  }
  0x9c   : > { %4219 = vmatprep.mubr.msk.bf16.mxu0 %vm1300_vm0, %v4995_v63  ;;  %4270 = vmatprep.mubr.msk.bf16.mxu1 %vm1300_vm0, %v5085_v2 }
  0xa3   : > { %1622 = vmatmul.mubr.bf16.gmra.mrb[48].mxu0 %v4997_v4  ;;  %2030 = vmatmul.mubr.bf16.gmra.mrb[48].mxu1 %v5087_v5 }
  0xa4   : > { %4220 = vmatprep.mubr.msk.bf16.mxu0 %vm1300_vm0, %v4998_v6 }
  0xab   : > { %1630 = vmatmul.mubr.bf16.gmra.mrb[52].mxu0 %v5000_v8 }
  0xac   : > { %4221 = vmatprep.mubr.msk.bf16.mxu0 %vm1300_vm0, %v5001_v9 }
  0xb3   : > { %1638 = vmatmul.mubr.bf16.gmra.mrb[56].mxu0 %v5003_v10  ;;  %v5098_v10 = vld [vmem:[%s5451_s25 + $0x1e0] ss:$8 sps:$4 sm:$0xff]  }
  0xb4   : > { %4222 = vmatprep.mubr.msk.bf16.mxu0 %vm1300_vm0, %v5004_v11 }
  0xbb   : > { %1646 = vmatmul.mubr.bf16.gmra.mrb[60].mxu0 %v5006_v12  ;;  %v5099_v12 = vld [vmem:[%s5451_s25 + $0x1f4] ss:$8 sps:$4 sm:$0xff]  }
  0xbc   : > { %4223 = vmatprep.mubr.msk.bf16.mxu0 %vm1300_vm0, %v5010_v13 }
  0xc3   : > { %1654 = vmatmul.mubr.bf16.gmra.mrb[64].mxu0 %v5012_v14 }
  0xc4   : > { %4224 = vmatprep.mubr.msk.bf16.mxu0 %vm1300_vm0, %v5016_v15 }
  0xcb   : > { %1662 = vmatmul.mubr.bf16.gmra.mrb[68].mxu0 %v5018_v16 }
  0xcc   : > { %4225 = vmatprep.mubr.msk.bf16.mxu0 %vm1300_vm0, %v5022_v17 }
  0xd3   : > { %1670 = vmatmul.mubr.bf16.gmra.mrb[72].mxu0 %v5024_v18 }
  0xd4   : > { %4226 = vmatprep.mubr.msk.bf16.mxu0 %vm1300_vm0, %v5028_v19 }
  0xdb   : > { %1678 = vmatmul.mubr.bf16.gmra.mrb[76].mxu0 %v5030_v20 }
  0xdc   : > { %4227 = vmatprep.mubr.msk.bf16.mxu0 %vm1300_vm0, %v5034_v21  ;;  %v5101_v21 = vld [vmem:[%s5451_s25 + $0x1f0] ss:$8 sps:$4 sm:$0xff]  }
  0xe3   : > { %1686 = vmatmul.mubr.bf16.gmra.mrb[80].mxu0 %v5036_v22 }
  0xe4   : > { %4228 = vmatprep.mubr.msk.bf16.mxu0 %vm1300_vm0, %v5040_v23  ;;  %v5102_v23 = vld [vmem:[%s5451_s25 + $0x204] ss:$8 sps:$4 sm:$0xff]  }
  0xeb   : > { %1694 = vmatmul.mubr.bf16.gmra.mrb[84].mxu0 %v5042_v24 }
  0xec   : > { %4229 = vmatprep.mubr.msk.bf16.mxu0 %vm1300_vm0, %v5046_v25 }
  0xf3   : > { %1702 = vmatmul.mubr.bf16.gmra.mrb[88].mxu0 %v5048_v26 }
  0xf4   : > { %4230 = vmatprep.mubr.msk.bf16.mxu0 %vm1300_vm0, %v5052_v27 }
  0xfb   : > { %1710 = vmatmul.mubr.bf16.gmra.mrb[92].mxu0 %v5054_v28 }
  0xfc   : > { %4231 = vmatprep.mubr.msk.bf16.mxu0 %vm1300_vm0, %v5058_v29 }
 0x103   : > { %1718 = vmatmul.mubr.bf16.gmra.mrb[96].mxu0 %v5060_v30 }
 0x104   : > { %4232 = vmatprep.mubr.msk.bf16.mxu0 %vm1300_vm0, %v5065_v31 }
 0x10b   : > { %1726 = vmatmul.mubr.bf16.gmra.mrb[100].mxu0 %v5067_v32  ;;  %v5104_v32 = vld [vmem:[%s5451_s25 + $0x200] ss:$8 sps:$4 sm:$0xff]  }
 0x10c   : > { %4233 = vmatprep.mubr.msk.bf16.mxu0 %vm1300_vm0, %v5073_v33 }
 0x113   : > { %1734 = vmatmul.mubr.bf16.gmra.mrb[104].mxu0 %v5075_v34  ;;  %v5105_v34 = vld [vmem:[%s5451_s25 + $0x214] ss:$8 sps:$4 sm:$0xff]  }
 0x114   : > { %4234 = vmatprep.mubr.msk.bf16.mxu0 %vm1300_vm0, %v5081_v35 }
 0x116   : > { %v1527_v37 = vpop.f32.mrb[0].mxu0 }
 0x117   : > { %v1528_v38 = vadd.f32 %v5620_v36, %v1527_v37  ;;  %v1529_v39 = vpop.f32.mrb[1].mxu0 }
 0x118   : > { %v1530_v41 = vpop.f32.mrb[2].mxu0 }
 0x119   : > { %v1531_v43 = vadd.f32 %v5620_v36, %v1530_v41  ;;  %v1532_v44 = vpop.f32.mrb[3].mxu0  ;;  %v2038_v45 = vmax.f32 %v1528_v38, 0.0 }
 0x11b   : > { %v2039_v46 = vmax.f32 %v1531_v43, 0.0  ;;  %1742 = vmatmul.mubr.bf16.gmra.mrb[108].mxu0 %v5083_v40 }
 0x11c   : > { %4235 = vmatprep.mubr.msk.bf16.mxu0 %vm1300_vm0, %v5089_v42  ;;  %v1935_v42 = vpop.f32.mrb[0].mxu1 }
 0x11d   : > { %v2166_v47 = vpack.c.bf16 %v2039_v46, %v2038_v45  ;;  %v5107_v45 = vld [vmem:[%s5451_s25 + $0x210] ss:$8 sps:$4 sm:$0xff]   ;;  %v1937_v46 = vpop.f32.mrb[1].mxu1 }
 0x11e   : > { %v1535_v48 = vpop.f32.mrb[4].mxu0 }
 0x11f   : > { %v1536_v49 = vadd.f32 %v5620_v36, %v1535_v48  ;;  %v1537_v50 = vpop.f32.mrb[5].mxu0  ;;  %4729 = vmatprep.mubr.bf16.mxu1 %v2166_v47  ;;  %v5108_v48 = vld [vmem:[%s5451_s25 + $0x224] ss:$8 sps:$4 sm:$0xff]  }
 0x120   : > { %v1538_v52 = vpop.f32.mrb[6].mxu0 }
 0x121   : > { %v1539_v54 = vadd.f32 %v5620_v36, %v1538_v52  ;;  %v1540_v55 = vpop.f32.mrb[7].mxu0  ;;  %v2040_v56 = vmax.f32 %v1536_v49, 0.0  ;;  %v1938_v49 = vpop.f32.mrb[2].mxu1  ;;  %v1936_v52 = vadd.f32 %v5620_v36, %v1935_v42  ;;  %v5114_v42 = vld [vmem:[%s5451_s25 + $0x244] ss:$8 sps:$4 sm:$0xff]  }
 0x123   : > { %v2041_v57 = vmax.f32 %v1539_v54, 0.0  ;;  %1750 = vmatmul.mubr.bf16.gmra.mrb[112].mxu0 %v5091_v51 }
 0x124   : > { %4236 = vmatprep.mubr.msk.bf16.mxu0 %vm1300_vm0, %v5093_v53  ;;  %v1940_v53 = vpop.f32.mrb[3].mxu1 }
 0x125   : > { %v2167_v58 = vpack.c.bf16 %v2041_v57, %v2040_v56  ;;  %v1943_v54 = vpop.f32.mrb[4].mxu1 }
 0x126   : > { %v1543_v59 = vpop.f32.mrb[8].mxu0  ;;  %v1945_v57 = vpop.f32.mrb[5].mxu1 }
 0x127   : > { %v1544_v60 = vadd.f32 %v5620_v36, %v1543_v59  ;;  %v1545_v61 = vpop.f32.mrb[9].mxu0  ;;  %4730 = vmatmul.mubr.bf16.vlgmr.msra.gmra.mrb[52].mxu1 %v2167_v58  ;;  %v2140_v58 = vmax.f32 %v1936_v52, 0.0  ;;  %v1946_v59 = vpop.f32.mrb[6].mxu1 }
 0x128   : > { %v1546_v63 = vpop.f32.mrb[10].mxu0  ;;  %v1939_v61 = vadd.f32 %v5620_v36, %v1938_v49 }
 0x129   : > { %v1547_v2 = vadd.f32 %v5620_v36, %v1546_v63  ;;  %v1548_v3 = vpop.f32.mrb[11].mxu0  ;;  %v2042_v4 = vmax.f32 %v1544_v60, 0.0  ;;  %v1947_v63 = vadd.f32 %v5620_v36, %v1946_v59 }
 0x12a   : > { %v5110_v3 = vld [vmem:[%s5451_s25 + $0x220] ss:$8 sps:$4 sm:$0xff]  }
 0x12b   : > { %v2043_v5 = vmax.f32 %v1547_v2, 0.0  ;;  %1758 = vmatmul.mubr.bf16.gmra.mrb[116].mxu0 %v5095_v62  ;;  %v1944_v62 = vadd.f32 %v5620_v36, %v1943_v54 }
 0x12c   : > { %4237 = vmatprep.mubr.msk.bf16.mxu0 %vm1300_vm0, %v5096_v1  ;;  %v1948_v1 = vpop.f32.mrb[7].mxu1 }
 0x12d   : > { %v2168_v6 = vpack.c.bf16 %v2043_v5, %v2042_v4  ;;  %v1951_v4 = vpop.f32.mrb[8].mxu1 }
 0x12e   : > { %v1551_v7 = vpop.f32.mrb[12].mxu0 }
 0x12f   : > { %v1552_v8 = vadd.f32 %v5620_v36, %v1551_v7  ;;  %v1553_v9 = vpop.f32.mrb[13].mxu0  ;;  %4733 = vmatprep.mubr.bf16.mxu1 %v2168_v6  ;;  %v2141_v7 = vmax.f32 %v1939_v61, 0.0 }
 0x130   : > { %v1554_v11 = vpop.f32.mrb[14].mxu0  ;;  %v2143_v9 = vmax.f32 %v1947_v63, 0.0 }
 0x131   : > { %v1555_v13 = vadd.f32 %v5620_v36, %v1554_v11  ;;  %v1556_v14 = vpop.f32.mrb[15].mxu0  ;;  %v2044_v15 = vmax.f32 %v1552_v8, 0.0  ;;  %v2142_v8 = vmax.f32 %v1944_v62, 0.0  ;;  %v5116_v62 = vld [vmem:[%s5451_s25 + $0x240] ss:$8 sps:$4 sm:$0xff]  }
 0x133   : > { %v2045_v16 = vmax.f32 %v1555_v13, 0.0  ;;  %1766 = vmatmul.mubr.bf16.gmra.mrb[120].mxu0 %v5098_v10  ;;  %v1953_v10 = vpop.f32.mrb[9].mxu1 }
 0x134   : > { %4238 = vmatprep.mubr.msk.bf16.mxu0 %vm1300_vm0, %v5099_v12  ;;  %v5111_v12 = vld [vmem:[%s5451_s25 + $0x234] ss:$8 sps:$4 sm:$0xff]   ;;  %v1954_v13 = vpop.f32.mrb[10].mxu1 }
 0x135   : > { %v2169_v17 = vpack.c.bf16 %v2045_v16, %v2044_v15  ;;  %v5666_v16 = vpack.c.bf16 %v2141_v7, %v2140_v58 }
 0x136   : > { %v1559_v18 = vpop.f32.mrb[16].mxu0 }
 0x137   : > { %v1560_v19 = vadd.f32 %v5620_v36, %v1559_v18  ;;  %v1561_v20 = vpop.f32.mrb[17].mxu0  ;;  %4734 = vmatmul.mubr.bf16.gmra.mrb[56].mxu1 %v2169_v17  ;;  %v5668_v17 = vpack.c.bf16 %v2143_v9, %v2142_v8  ;;  %v1956_v18 = vpop.f32.mrb[11].mxu1  ;;  %v5117_v8 = vld [vmem:[%s5451_s25 + $0x254] ss:$8 sps:$4 sm:$0xff]  }
 0x138   : > { %v1562_v22 = vpop.f32.mrb[18].mxu0  ;;  %v1959_v20 = vpop.f32.mrb[12].mxu1 }
 0x139   : > { %v1563_v24 = vadd.f32 %v5620_v36, %v1562_v22  ;;  %v1564_v25 = vpop.f32.mrb[19].mxu0  ;;  %v2046_v26 = vmax.f32 %v1560_v19, 0.0  ;;  %v1952_v19 = vadd.f32 %v5620_v36, %v1951_v4 }
 0x13b   : > { %v2047_v27 = vmax.f32 %v1563_v24, 0.0  ;;  %1774 = vmatmul.mubr.bf16.gmra.mrb[124].mxu0 %v5101_v21  ;;  %v2144_v24 = vmax.f32 %v1952_v19, 0.0 }
 0x13c   : > { %4239 = vmatprep.mubr.msk.bf16.mxu0 %vm1300_vm0, %v5102_v23  ;;  %v1961_v23 = vpop.f32.mrb[13].mxu1 }
 0x13d   : > { %v2170_v28 = vpack.c.bf16 %v2047_v27, %v2046_v26  ;;  %v1962_v25 = vpop.f32.mrb[14].mxu1  ;;  %v1955_v27 = vadd.f32 %v5620_v36, %v1954_v13 }
 0x13e   : > { %v1567_v29 = vpop.f32.mrb[20].mxu0 }
 0x13f   : > { %v1568_v30 = vadd.f32 %v5620_v36, %v1567_v29  ;;  %v1569_v31 = vpop.f32.mrb[21].mxu0  ;;  %4737 = vmatprep.mubr.bf16.mxu1 %v2170_v28  ;;  %v1960_v28 = vadd.f32 %v5620_v36, %v1959_v20  ;;  %v1963_v29 = vadd.f32 %v5620_v36, %v1962_v25 }
 0x140   : > { %v1570_v33 = vpop.f32.mrb[22].mxu0 }
 0x141   : > { %v1571_v35 = vadd.f32 %v5620_v36, %v1570_v33  ;;  %v1572_v37 = vpop.f32.mrb[23].mxu0  ;;  %v2048_v38 = vmax.f32 %v1568_v30, 0.0  ;;  %v1964_v30 = vpop.f32.mrb[15].mxu1 }
 0x142   : > { %v1967_v33 = vpop.f32.mrb[16].mxu1  ;;  %v2145_v37 = vmax.f32 %v1955_v27, 0.0  ;;  %v5119_v30 = vld [vmem:[%s5451_s25 + $0x250] ss:$8 sps:$4 sm:$0xff]  }
 0x143   : > { %v2049_v39 = vmax.f32 %v1571_v35, 0.0  ;;  %1782 = vmatmul.mubr.bf16.gmra.mrb[128].mxu0 %v5104_v32  ;;  %v5113_v32 = vld [vmem:[%s5451_s25 + $0x230] ss:$8 sps:$4 sm:$0xff]   ;;  %v1968_v49 = vadd.f32 %v5620_v36, %v1967_v33 }
 0x144   : > { %4240 = vmatprep.mubr.msk.bf16.mxu0 %vm1300_vm0, %v5105_v34  ;;  %v5679_v46 = vpack.c.bf16 %v2145_v37, %v2144_v24 }
 0x145   : > { %v2171_v40 = vpack.c.bf16 %v2049_v39, %v2048_v38  ;;  %v2146_v38 = vmax.f32 %v1960_v28, 0.0  ;;  %v2147_v39 = vmax.f32 %v1963_v29, 0.0  ;;  %v2148_v54 = vmax.f32 %v1968_v49, 0.0 }
 0x146   : > { %v1575_v41 = vpop.f32.mrb[24].mxu0 }
 0x147   : > { %v1576_v43 = vadd.f32 %v5620_v36, %v1575_v41  ;;  %v1577_v44 = vpop.f32.mrb[25].mxu0  ;;  %4738 = vmatmul.mubr.bf16.gmra.mrb[60].mxu1 %v2171_v40  ;;  %v1969_v40 = vpop.f32.mrb[17].mxu1 }
 0x148   : > { %v1578_v47 = vpop.f32.mrb[26].mxu0  ;;  %v5120_v40 = vld [vmem:[%s5451_s25 + $0x264] ss:$8 sps:$4 sm:$0xff]  }
 0x149   : > { %v1579_v50 = vadd.f32 %v5620_v36, %v1578_v47  ;;  %v1580_v51 = vpop.f32.mrb[27].mxu0  ;;  %v2050_v55 = vmax.f32 %v1576_v43, 0.0  ;;  %v1970_v43 = vpop.f32.mrb[18].mxu1  ;;  %v5681_v47 = vpack.c.bf16 %v2147_v39, %v2146_v38 }
 0x14a   : > { %v1971_v57 = vadd.f32 %v5620_v36, %v1970_v43 }
 0x14b   : > { %v2051_v56 = vmax.f32 %v1579_v50, 0.0  ;;  %1790 = vmatmul.mubr.bf16.gmra.mrb[132].mxu0 %v5107_v45 }
 0x14c   : > { %4241 = vmatprep.mubr.msk.bf16.mxu0 %vm1300_vm0, %v5108_v48  ;;  %v1972_v48 = vpop.f32.mrb[19].mxu1 }
 0x14d   : > { %v2172_v60 = vpack.c.bf16 %v2051_v56, %v2050_v55  ;;  %v1975_v50 = vpop.f32.mrb[20].mxu1 }
 0x14e   : > { %v1583_v2 = vpop.f32.mrb[28].mxu0  ;;  %v1977_v53 = vpop.f32.mrb[21].mxu1  ;;  %v1976_v58 = vadd.f32 %v5620_v36, %v1975_v50 }
 0x14f   : > { %v1584_v5 = vadd.f32 %v5620_v36, %v1583_v2  ;;  %v1585_v6 = vpop.f32.mrb[29].mxu0  ;;  %4741 = vmatprep.mubr.bf16.mxu1 %v2172_v60  ;;  %v1978_v55 = vpop.f32.mrb[22].mxu1 }
 0x150   : > { %v1586_v11 = vpop.f32.mrb[30].mxu0  ;;  %v1979_v59 = vadd.f32 %v5620_v36, %v1978_v55  ;;  %v1980_v60 = vpop.f32.mrb[23].mxu1  ;;  %v2150_v4 = vmax.f32 %v1976_v58, 0.0 }
 0x151   : > { %v1587_v14 = vadd.f32 %v5620_v36, %v1586_v11  ;;  %v1588_v15 = vpop.f32.mrb[31].mxu0  ;;  %v2052_v21 = vmax.f32 %v1584_v5, 0.0  ;;  %v1983_v63 = vpop.f32.mrb[24].mxu1 }
 0x152   : > { %v2151_v5 = vmax.f32 %v1979_v59, 0.0  ;;  %v1985_v6 = vpop.f32.mrb[25].mxu1  ;;  %v1984_v15 = vadd.f32 %v5620_v36, %v1983_v63 }
 0x153   : > { %v2053_v22 = vmax.f32 %v1587_v14, 0.0  ;;  %1798 = vmatmul.mubr.bf16.gmra.mrb[136].mxu0 %v5110_v3  ;;  %v2149_v3 = vmax.f32 %v1971_v57, 0.0  ;;  %v1986_v9 = vpop.f32.mrb[26].mxu1 }
 0x154   : > { %4242 = vmatprep.mubr.msk.bf16.mxu0 %vm1300_vm0, %v5111_v12  ;;  %v5694_v13 = vpack.c.bf16 %v2151_v5, %v2150_v4  ;;  %v1988_v14 = vpop.f32.mrb[27].mxu1  ;;  %v1987_v25 = vadd.f32 %v5620_v36, %v1986_v9 }
 0x155   : > { %v2173_v26 = vpack.c.bf16 %v2053_v22, %v2052_v21  ;;  %v5692_v12 = vpack.c.bf16 %v2149_v3, %v2148_v54  ;;  %v1991_v18 = vpop.f32.mrb[28].mxu1  ;;  %v2152_v22 = vmax.f32 %v1984_v15, 0.0 }
 0x156   : > { %v1591_v31 = vpop.f32.mrb[32].mxu0  ;;  %v1993_v21 = vpop.f32.mrb[29].mxu1 }
 0x157   : > { %v1592_v34 = vadd.f32 %v5620_v36, %v1591_v31  ;;  %v1593_v35 = vpop.f32.mrb[33].mxu0  ;;  %4742 = vmatmul.mubr.bf16.gmra.mrb[64].mxu1 %v2173_v26  ;;  %v1994_v23 = vpop.f32.mrb[30].mxu1  ;;  %v1992_v26 = vadd.f32 %v5620_v36, %v1991_v18 }
 0x158   : > { %v1594_v41 = vpop.f32.mrb[34].mxu0  ;;  %v1995_v27 = vadd.f32 %v5620_v36, %v1994_v23  ;;  %v1996_v28 = vpop.f32.mrb[31].mxu1 }
 0x159   : > { %v1595_v44 = vadd.f32 %v5620_v36, %v1594_v41  ;;  %v1596_v45 = vpop.f32.mrb[35].mxu0  ;;  %v2054_v51 = vmax.f32 %v1592_v34, 0.0  ;;  %v1999_v31 = vpop.f32.mrb[32].mxu1  ;;  %v2153_v34 = vmax.f32 %v1987_v25, 0.0  ;;  %v2154_v35 = vmax.f32 %v1992_v26, 0.0 }
 0x15a   : > { %v2155_v37 = vmax.f32 %v1995_v27, 0.0  ;;  %v2001_v38 = vpop.f32.mrb[33].mxu1  ;;  %v2000_v49 = vadd.f32 %v5620_v36, %v1999_v31 }
 0x15b   : > { %v2055_v52 = vmax.f32 %v1595_v44, 0.0  ;;  %1806 = vmatmul.mubr.bf16.gmra.mrb[140].mxu0 %v5113_v32  ;;  %v2002_v41 = vpop.f32.mrb[34].mxu1  ;;  %v5705_v44 = vpack.c.bf16 %v2153_v34, %v2152_v22 }
 0x15c   : > { %4243 = vmatprep.mubr.msk.bf16.mxu0 %vm1300_vm0, %v5114_v42  ;;  %v5707_v45 = vpack.c.bf16 %v2155_v37, %v2154_v35  ;;  %v2004_v48 = vpop.f32.mrb[35].mxu1  ;;  %v2156_v54 = vmax.f32 %v2000_v49, 0.0  ;;  %v2003_v57 = vadd.f32 %v5620_v36, %v2002_v41 }
 0x15d   : > { %v2174_v56 = vpack.c.bf16 %v2055_v52, %v2054_v51 }
 0x15e   : > { %v1599_v61 = vpop.f32.mrb[36].mxu0  ;;  %v2007_v50 = vpop.f32.mrb[36].mxu1  ;;  %v2157_v3 = vmax.f32 %v2003_v57, 0.0 }
 0x15f   : > { %v1600_v1 = vadd.f32 %v5620_v36, %v1599_v61  ;;  %v1601_v2 = vpop.f32.mrb[37].mxu0  ;;  %4745 = vmatprep.mubr.bf16.mxu1 %v2174_v56  ;;  %v2009_v53 = vpop.f32.mrb[37].mxu1  ;;  %v2008_v58 = vadd.f32 %v5620_v36, %v2007_v50 }
 0x160   : > { %v1602_v7 = vpop.f32.mrb[38].mxu0  ;;  %v2010_v55 = vpop.f32.mrb[38].mxu1  ;;  %v5718_v14 = vpack.c.bf16 %v2157_v3, %v2156_v54 }
 0x161   : > { %v1603_v10 = vadd.f32 %v5620_v36, %v1602_v7  ;;  %v1604_v11 = vpop.f32.mrb[39].mxu0  ;;  %v2056_v19 = vmax.f32 %v1600_v1, 0.0  ;;  %v2011_v59 = vadd.f32 %v5620_v36, %v2010_v55  ;;  %v2012_v60 = vpop.f32.mrb[39].mxu1  ;;  %v2158_v4 = vmax.f32 %v2008_v58, 0.0 }
 0x163   : > { %v2057_v20 = vmax.f32 %v1603_v10, 0.0  ;;  %1814 = vmatmul.mubr.bf16.gmra.mrb[144].mxu0 %v5116_v62  ;;  %v5122_v62 = vld [vmem:[%s5451_s25 + $0x260] ss:$8 sps:$4 sm:$0xff]   ;;  %v2159_v5 = vmax.f32 %v2011_v59, 0.0 }
 0x164   : > { %4244 = vmatprep.mubr.msk.bf16.mxu0 %vm1300_vm0, %v5117_v8  ;;  %v5123_v8 = vld [vmem:[%s5451_s25 + $0x274] ss:$8 sps:$4 sm:$0xff]  }
 0x165   : > { %v2175_v24 = vpack.c.bf16 %v2057_v20, %v2056_v19  ;;  %v5720_v15 = vpack.c.bf16 %v2159_v5, %v2158_v4 }
 0x166   : > { %v1607_v29 = vpop.f32.mrb[40].mxu0  ;;  %v2015_v63 = vpop.f32.mrb[40].mxu1 }
 0x167   : > { %v1608_v32 = vadd.f32 %v5620_v36, %v1607_v29  ;;  %v1609_v33 = vpop.f32.mrb[41].mxu0  ;;  %4746 = vmatmul.mubr.bf16.gmra.mrb[68].mxu1 %v2175_v24  ;;  %v2017_v6 = vpop.f32.mrb[41].mxu1  ;;  %v2016_v19 = vadd.f32 %v5620_v36, %v2015_v63 }
 0x168   : > { %v1610_v39 = vpop.f32.mrb[42].mxu0  ;;  %v2018_v9 = vpop.f32.mrb[42].mxu1 }
 0x169   : > { %v1611_v42 = vadd.f32 %v5620_v36, %v1610_v39  ;;  %v1612_v43 = vpop.f32.mrb[43].mxu0  ;;  %v2058_v51 = vmax.f32 %v1608_v32, 0.0  ;;  %v2020_v18 = vpop.f32.mrb[43].mxu1  ;;  %v2160_v24 = vmax.f32 %v2016_v19, 0.0  ;;  %v2019_v27 = vadd.f32 %v5620_v36, %v2018_v9  ;;  %v5125_v32 = vld [vmem:[%s5451_s25 + $0x270] ss:$8 sps:$4 sm:$0xff]  }
 0x16a   : > { %v5131_v18 = vld [vmem:[%s5451_s25 + $0x290] ss:$8 sps:$4 sm:$0xff]  }
 0x16b   : > { %v2059_v52 = vmax.f32 %v1611_v42, 0.0  ;;  %1822 = vmatmul.mubr.bf16.gmra.mrb[148].mxu0 %v5119_v30  ;;  %v2161_v37 = vmax.f32 %v2019_v27, 0.0  ;;  %v5126_v42 = vld [vmem:[%s5451_s25 + $0x284] ss:$8 sps:$4 sm:$0xff]  }
 0x16c   : > { %4245 = vmatprep.mubr.msk.bf16.mxu0 %vm1300_vm0, %v5120_v40 }
 0x16d   : > { %v2176_v56 = vpack.c.bf16 %v2059_v52, %v2058_v51  ;;  %v5731_v50 = vpack.c.bf16 %v2161_v37, %v2160_v24 }
 0x16e   : > { %v1615_v61 = vpop.f32.mrb[44].mxu0  ;;  %v2023_v20 = vpop.f32.mrb[44].mxu1 }
 0x16f   : > { %v1616_v1 = vadd.f32 %v5620_v36, %v1615_v61  ;;  %v1617_v2 = vpop.f32.mrb[45].mxu0  ;;  %4749 = vmatprep.mubr.bf16.mxu1 %v2176_v56  ;;  %v2025_v23 = vpop.f32.mrb[45].mxu1  ;;  %v2024_v28 = vadd.f32 %v5620_v36, %v2023_v20  ;;  %v5132_v20 = vld [vmem:[%s5451_s25 + $0x2a4] ss:$8 sps:$4 sm:$0xff]  }
 0x170   : > { %v1618_v7 = vpop.f32.mrb[46].mxu0  ;;  %v2026_v25 = vpop.f32.mrb[46].mxu1  ;;  %v5129_v2 = vld [vmem:[%s5451_s25 + $0x294] ss:$8 sps:$4 sm:$0xff]  }
 0x171   : > { %v1619_v10 = vadd.f32 %v5620_v36, %v1618_v7  ;;  %v1620_v11 = vpop.f32.mrb[47].mxu0  ;;  %v2060_v21 = vmax.f32 %v1616_v1, 0.0  ;;  %v2027_v29 = vadd.f32 %v5620_v36, %v2026_v25  ;;  %v2028_v30 = vpop.f32.mrb[47].mxu1  ;;  %v2162_v38 = vmax.f32 %v2024_v28, 0.0 }
 0x173   : > { %v2061_v22 = vmax.f32 %v1619_v10, 0.0  ;;  %1830 = vmatmul.mubr.bf16.gmra.mrb[152].mxu0 %v5122_v62  ;;  %v2163_v39 = vmax.f32 %v2027_v29, 0.0  ;;  %v5128_v62 = vld [vmem:[%s5451_s25 + $0x280] ss:$8 sps:$4 sm:$0xff]  }
 0x174   : > { %4246 = vmatprep.mubr.msk.bf16.mxu0 %vm1300_vm0, %v5123_v8  ;;  %v5134_v29 = vld [vmem:[%s5451_s25 + $0x2a0] ss:$8 sps:$4 sm:$0xff]  }
 0x175   : > { %v2177_v26 = vpack.c.bf16 %v2061_v22, %v2060_v21  ;;  %v5733_v51 = vpack.c.bf16 %v2163_v39, %v2162_v38 }
 0x176   : > { %v1623_v31 = vpop.f32.mrb[48].mxu0  ;;  %v2031_v33 = vpop.f32.mrb[48].mxu1 }
 0x177   : > { %v1624_v34 = vadd.f32 %v5620_v36, %v1623_v31  ;;  %v1625_v35 = vpop.f32.mrb[49].mxu0  ;;  %4750 = vmatmul.mubr.bf16.gmra.mrb[72].mxu1 %v2177_v26  ;;  %v2033_v40 = vpop.f32.mrb[49].mxu1  ;;  %v2032_v53 = vadd.f32 %v5620_v36, %v2031_v33  ;;  %v5135_v31 = vld [vmem:[%s5451_s25 + $0x2b4] ss:$8 sps:$4 sm:$0xff]  }
 0x178   : > { %v1626_v41 = vpop.f32.mrb[50].mxu0  ;;  %v2034_v43 = vpop.f32.mrb[50].mxu1 }
 0x179   : > { %v1627_v48 = vadd.f32 %v5620_v36, %v1626_v41  ;;  %v1628_v49 = vpop.f32.mrb[51].mxu0  ;;  %v2036_v52 = vpop.f32.mrb[51].mxu1  ;;  %v2062_v54 = vmax.f32 %v1624_v34, 0.0  ;;  %v2164_v57 = vmax.f32 %v2032_v53, 0.0  ;;  %v2035_v58 = vadd.f32 %v5620_v36, %v2034_v43  ;;  %v5137_v41 = vld [vmem:[%s5451_s25 + $0x2b0] ss:$8 sps:$4 sm:$0xff]  }
 0x17a   : > { %v5138_v43 = vld [vmem:[%s5451_s25 + $0x2c4] ss:$8 sps:$4 sm:$0xff]  }
 0x17b   : > { %v2063_v55 = vmax.f32 %v1627_v48, 0.0  ;;  %1838 = vmatmul.mubr.bf16.gmra.mrb[156].mxu0 %v5125_v32  ;;  %v2165_v63 = vmax.f32 %v2035_v58, 0.0  ;;  %v5140_v58 = vld [vmem:[%s5451_s25 + $0x2c0] ss:$8 sps:$4 sm:$0xff]  }
 0x17c   : > { %4247 = vmatprep.mubr.msk.bf16.mxu0 %vm1300_vm0, %v5126_v42 }
 0x17d   : > { %v2178_v56 = vpack.c.bf16 %v2063_v55, %v2062_v54  ;;  %v5742_v5 = vpack.c.bf16 %v2165_v63, %v2164_v57 }
 0x17e   : > { %v1631_v59 = vpop.f32.mrb[52].mxu0 }
 0x17f   : > { %v1632_v60 = vadd.f32 %v5620_v36, %v1631_v59  ;;  %v1633_v61 = vpop.f32.mrb[53].mxu0  ;;  %4753 = vmatprep.mubr.bf16.mxu1 %v2178_v56 }
 0x180   : > { %v1634_v1 = vpop.f32.mrb[54].mxu0 }
 0x181   : > { %v1635_v3 = vadd.f32 %v5620_v36, %v1634_v1  ;;  %v1636_v4 = vpop.f32.mrb[55].mxu0  ;;  %v2064_v6 = vmax.f32 %v1632_v60, 0.0  ;;  %v5141_v60 = vld [vmem:[%s5451_s25 + $0x2d4] ss:$8 sps:$4 sm:$0xff]  }
 0x183   : > { %v2065_v7 = vmax.f32 %v1635_v3, 0.0  ;;  %1846 = vmatmul.mubr.bf16.gmra.mrb[160].mxu0 %v5128_v62 }
 0x184   : > { %4248 = vmatprep.mubr.msk.bf16.mxu0 %vm1300_vm0, %v5129_v2 }
 0x185   : > { %v2179_v8 = vpack.c.bf16 %v2065_v7, %v2064_v6  ;;  %v5143_v7 = vld [vmem:[%s5451_s25 + $0x2d0] ss:$8 sps:$4 sm:$0xff]  }
 0x186   : > { %v1639_v9 = vpop.f32.mrb[56].mxu0 }
 0x187   : > { %v1640_v10 = vadd.f32 %v5620_v36, %v1639_v9  ;;  %v1641_v11 = vpop.f32.mrb[57].mxu0  ;;  %4754 = vmatmul.mubr.bf16.gmra.mrb[76].mxu1 %v2179_v8  ;;  %v5144_v9 = vld [vmem:[%s5451_s25 + $0x2e4] ss:$8 sps:$4 sm:$0xff]  }
 0x188   : > { %v1642_v19 = vpop.f32.mrb[58].mxu0 }
 0x189   : > { %v1643_v21 = vadd.f32 %v5620_v36, %v1642_v19  ;;  %v1644_v22 = vpop.f32.mrb[59].mxu0  ;;  %v2066_v23 = vmax.f32 %v1640_v10, 0.0 }
 0x18b   : > { %v2067_v24 = vmax.f32 %v1643_v21, 0.0  ;;  %1854 = vmatmul.mubr.bf16.gmra.mrb[164].mxu0 %v5131_v18 }
 0x18c   : > { %4249 = vmatprep.mubr.msk.bf16.mxu0 %vm1300_vm0, %v5132_v20 }
 0x18d   : > { %v2180_v25 = vpack.c.bf16 %v2067_v24, %v2066_v23  ;;  %v5146_v24 = vld [vmem:[%s5451_s25 + $0x2e0] ss:$8 sps:$4 sm:$0xff]  }
 0x18e   : > { %v1647_v26 = vpop.f32.mrb[60].mxu0 }
 0x18f   : > { %v1648_v27 = vadd.f32 %v5620_v36, %v1647_v26  ;;  %v1649_v28 = vpop.f32.mrb[61].mxu0  ;;  %4757 = vmatprep.mubr.bf16.mxu1 %v2180_v25  ;;  %v5147_v26 = vld [vmem:[%s5451_s25 + $0x2f4] ss:$8 sps:$4 sm:$0xff]  }
 0x190   : > { %v1650_v30 = vpop.f32.mrb[62].mxu0 }
 0x191   : > { %v1651_v32 = vadd.f32 %v5620_v36, %v1650_v30  ;;  %v1652_v33 = vpop.f32.mrb[63].mxu0  ;;  %v2068_v34 = vmax.f32 %v1648_v27, 0.0 }
 0x193   : > { %v2069_v35 = vmax.f32 %v1651_v32, 0.0  ;;  %1862 = vmatmul.mubr.bf16.gmra.mrb[168].mxu0 %v5134_v29 }
 0x194   : > { %4250 = vmatprep.mubr.msk.bf16.mxu0 %vm1300_vm0, %v5135_v31 }
 0x195   : > { %v2181_v37 = vpack.c.bf16 %v2069_v35, %v2068_v34  ;;  %v5149_v35 = vld [vmem:[%s5451_s25 + $0x2f0] ss:$8 sps:$4 sm:$0xff]  }
 0x196   : > { %v1655_v38 = vpop.f32.mrb[64].mxu0 }
 0x197   : > { %v1656_v39 = vadd.f32 %v5620_v36, %v1655_v38  ;;  %v1657_v40 = vpop.f32.mrb[65].mxu0  ;;  %4758 = vmatmul.mubr.bf16.gmra.mrb[80].mxu1 %v2181_v37  ;;  %v5150_v38 = vld [vmem:[%s5451_s25 + $0x304] ss:$8 sps:$4 sm:$0xff]  }
 0x198   : > { %v1658_v42 = vpop.f32.mrb[66].mxu0 }
 0x199   : > { %v1659_v48 = vadd.f32 %v5620_v36, %v1658_v42  ;;  %v1660_v49 = vpop.f32.mrb[67].mxu0  ;;  %v2070_v52 = vmax.f32 %v1656_v39, 0.0 }
 0x19b   : > { %v2071_v53 = vmax.f32 %v1659_v48, 0.0  ;;  %1870 = vmatmul.mubr.bf16.gmra.mrb[172].mxu0 %v5137_v41 }
 0x19c   : > { %4251 = vmatprep.mubr.msk.bf16.mxu0 %vm1300_vm0, %v5138_v43 }
 0x19d   : > { %v2182_v54 = vpack.c.bf16 %v2071_v53, %v2070_v52  ;;  %v5152_v53 = vld [vmem:[%s5451_s25 + $0x300] ss:$8 sps:$4 sm:$0xff]  }
 0x19e   : > { %v1663_v55 = vpop.f32.mrb[68].mxu0 }
 0x19f   : > { %v1664_v56 = vadd.f32 %v5620_v36, %v1663_v55  ;;  %v1665_v57 = vpop.f32.mrb[69].mxu0  ;;  %4761 = vmatprep.mubr.bf16.mxu1 %v2182_v54  ;;  %v5153_v55 = vld [vmem:[%s5451_s25 + $0x314] ss:$8 sps:$4 sm:$0xff]  }
 0x1a0   : > { %v1666_v59 = vpop.f32.mrb[70].mxu0 }
 0x1a1   : > { %v1667_v61 = vadd.f32 %v5620_v36, %v1666_v59  ;;  %v1668_v62 = vpop.f32.mrb[71].mxu0  ;;  %v2072_v63 = vmax.f32 %v1664_v56, 0.0 }
 0x1a3   : > { %v2073_v1 = vmax.f32 %v1667_v61, 0.0  ;;  %1878 = vmatmul.mubr.bf16.gmra.mrb[176].mxu0 %v5140_v58 }
 0x1a4   : > { %4252 = vmatprep.mubr.msk.bf16.mxu0 %vm1300_vm0, %v5141_v60 }
 0x1a5   : > { %v2183_v2 = vpack.c.bf16 %v2073_v1, %v2072_v63  ;;  %v5155_v1 = vld [vmem:[%s5451_s25 + $0x310] ss:$8 sps:$4 sm:$0xff]  }
 0x1a6   : > { %v1671_v3 = vpop.f32.mrb[72].mxu0 }
 0x1a7   : > { %v1672_v4 = vadd.f32 %v5620_v36, %v1671_v3  ;;  %v1673_v6 = vpop.f32.mrb[73].mxu0  ;;  %4762 = vmatmul.mubr.bf16.gmra.mrb[84].mxu1 %v2183_v2  ;;  %v5156_v3 = vld [vmem:[%s5451_s25 + $0x324] ss:$8 sps:$4 sm:$0xff]  }
 0x1a8   : > { %v1674_v8 = vpop.f32.mrb[74].mxu0 }
 0x1a9   : > { %v1675_v10 = vadd.f32 %v5620_v36, %v1674_v8  ;;  %v1676_v11 = vpop.f32.mrb[75].mxu0  ;;  %v2074_v18 = vmax.f32 %v1672_v4, 0.0 }
 0x1ab   : > { %v2075_v19 = vmax.f32 %v1675_v10, 0.0  ;;  %1886 = vmatmul.mubr.bf16.gmra.mrb[180].mxu0 %v5143_v7 }
 0x1ac   : > { %4253 = vmatprep.mubr.msk.bf16.mxu0 %vm1300_vm0, %v5144_v9 }
 0x1ad   : > { %v2184_v20 = vpack.c.bf16 %v2075_v19, %v2074_v18  ;;  %v5158_v19 = vld [vmem:[%s5451_s25 + $0x320] ss:$8 sps:$4 sm:$0xff]   ;;  %s4318_s25 = sshll.u32 %s6213_s23, 9  ;;  %s4056_s23 = sshll.u32 %s454_s0, 3 }
 0x1ae   : > { %v1679_v21 = vpop.f32.mrb[76].mxu0  ;;  %s5805_s14 = scalar_lea.vmem %s6183_s1, %s4318_s25 }
 0x1af   : > { %v1680_v22 = vadd.f32 %v5620_v36, %v1679_v21  ;;  %v1681_v23 = vpop.f32.mrb[77].mxu0  ;;  %4765 = vmatprep.mubr.bf16.mxu1 %v2184_v20 }
 0x1b0   : > { %v1682_v25 = vpop.f32.mrb[78].mxu0 }
 0x1b1   : > { %v1683_v27 = vadd.f32 %v5620_v36, %v1682_v25  ;;  %v1684_v28 = vpop.f32.mrb[79].mxu0  ;;  %v2076_v29 = vmax.f32 %v1680_v22, 0.0 }
 0x1b3   : > { %v2077_v30 = vmax.f32 %v1683_v27, 0.0  ;;  %1894 = vmatmul.mubr.bf16.gmra.mrb[184].mxu0 %v5146_v24 }
 0x1b4   : > { %4254 = vmatprep.mubr.msk.bf16.mxu0 %vm1300_vm0, %v5147_v26 }
 0x1b5   : > { %v2185_v31 = vpack.c.bf16 %v2077_v30, %v2076_v29 }
 0x1b6   : > { %v1687_v32 = vpop.f32.mrb[80].mxu0 }
 0x1b7   : > { %v1688_v33 = vadd.f32 %v5620_v36, %v1687_v32  ;;  %v1689_v34 = vpop.f32.mrb[81].mxu0  ;;  %4766 = vmatmul.mubr.bf16.gmra.mrb[88].mxu1 %v2185_v31 }
 0x1b8   : > { %v1690_v37 = vpop.f32.mrb[82].mxu0 }
 0x1b9   : > { %v1691_v39 = vadd.f32 %v5620_v36, %v1690_v37  ;;  %v1692_v40 = vpop.f32.mrb[83].mxu0  ;;  %v2078_v41 = vmax.f32 %v1688_v33, 0.0 }
 0x1bb   : > { %v2079_v42 = vmax.f32 %v1691_v39, 0.0  ;;  %1902 = vmatmul.mubr.bf16.gmra.mrb[188].mxu0 %v5149_v35 }
 0x1bc   : > { %4255 = vmatprep.mubr.msk.bf16.mxu0 %vm1300_vm0, %v5150_v38 }
 0x1bd   : > { %v2186_v43 = vpack.c.bf16 %v2079_v42, %v2078_v41 }
 0x1be   : > { %v1695_v48 = vpop.f32.mrb[84].mxu0 }
 0x1bf   : > { %v1696_v49 = vadd.f32 %v5620_v36, %v1695_v48  ;;  %v1697_v52 = vpop.f32.mrb[85].mxu0  ;;  %4769 = vmatprep.mubr.bf16.mxu1 %v2186_v43 }
 0x1c0   : > { %v1698_v54 = vpop.f32.mrb[86].mxu0 }
 0x1c1   : > { %v1699_v56 = vadd.f32 %v5620_v36, %v1698_v54  ;;  %v1700_v57 = vpop.f32.mrb[87].mxu0  ;;  %v2080_v58 = vmax.f32 %v1696_v49, 0.0 }
 0x1c3   : > { %v2081_v59 = vmax.f32 %v1699_v56, 0.0  ;;  %1910 = vmatmul.mubr.bf16.gmra.mrb[192].mxu0 %v5152_v53 }
 0x1c4   : > { %4256 = vmatprep.mubr.msk.bf16.mxu0 %vm1300_vm0, %v5153_v55 }
 0x1c5   : > { %v2187_v60 = vpack.c.bf16 %v2081_v59, %v2080_v58 }
 0x1c6   : > { %v1703_v61 = vpop.f32.mrb[88].mxu0 }
 0x1c7   : > { %v1704_v62 = vadd.f32 %v5620_v36, %v1703_v61  ;;  %v1705_v63 = vpop.f32.mrb[89].mxu0  ;;  %4770 = vmatmul.mubr.bf16.gmra.mrb[92].mxu1 %v2187_v60 }
 0x1c8   : > { %v1706_v2 = vpop.f32.mrb[90].mxu0 }
 0x1c9   : > { %v1707_v4 = vadd.f32 %v5620_v36, %v1706_v2  ;;  %v1708_v6 = vpop.f32.mrb[91].mxu0  ;;  %v2082_v7 = vmax.f32 %v1704_v62, 0.0 }
 0x1cb   : > { %v2083_v8 = vmax.f32 %v1707_v4, 0.0  ;;  %1918 = vmatmul.mubr.bf16.gmra.mrb[196].mxu0 %v5155_v1 }
 0x1cc   : > { %4257 = vmatprep.mubr.msk.bf16.mxu0 %vm1300_vm0, %v5156_v3 }
 0x1cd   : > { %v2188_v9 = vpack.c.bf16 %v2083_v8, %v2082_v7 }
 0x1ce   : > { %v1711_v10 = vpop.f32.mrb[92].mxu0 }
 0x1cf   : > { %v1712_v11 = vadd.f32 %v5620_v36, %v1711_v10  ;;  %v1713_v18 = vpop.f32.mrb[93].mxu0  ;;  %4773 = vmatprep.mubr.bf16.mxu1 %v2188_v9  ;;  %v4323_v10 = vld [vmem:[%s5805_s14] sm:$0xff]  }
 0x1d0   : > { %v1714_v20 = vpop.f32.mrb[94].mxu0  ;;  %v5816_v18 = vld [vmem:[%s5811_s2] ss:$0 sm:$0xff] }
 0x1d1   : > { %v1715_v21 = vadd.f32 %v5620_v36, %v1714_v20  ;;  %v1716_v22 = vpop.f32.mrb[95].mxu0  ;;  %v2084_v23 = vmax.f32 %v1712_v11, 0.0 }
 0x1d3   : > { %v2085_v24 = vmax.f32 %v1715_v21, 0.0  ;;  %1926 = vmatmul.mubr.bf16.gmra.mrb[200].mxu0 %v5158_v19  ;;  %v4578_v21 = vld [vmem:[%s5805_s14 + $0x8] sm:$0xff]  }
 0x1d5   : > { %v2189_v25 = vpack.c.bf16 %v2085_v24, %v2084_v23  ;;  %v4324_v23 = vunpack.c.l.bf16 %v4323_v10 }
 0x1d6   : > { %v1719_v26 = vpop.f32.mrb[96].mxu0 }
 0x1d7   : > { %v1720_v27 = vadd.f32 %v5620_v36, %v1719_v26  ;;  %v1721_v28 = vpop.f32.mrb[97].mxu0  ;;  %4774 = vmatmul.mubr.bf16.gmra.mrb[96].mxu1 %v2189_v25 }
 0x1d8   : > { %v1722_v29 = vpop.f32.mrb[98].mxu0  ;;  %v4328_v28 = vunpack.c.l.bf16 %v4578_v21 }
 0x1d9   : > { %v1723_v30 = vadd.f32 %v5620_v36, %v1722_v29  ;;  %v1724_v31 = vpop.f32.mrb[99].mxu0  ;;  %v2086_v32 = vmax.f32 %v1720_v27, 0.0 }
 0x1da   : > { %v4325_v31 = vunpack.c.h.bf16 %v4323_v10 }
 0x1db   : > { %v2087_v33 = vmax.f32 %v1723_v30, 0.0 }
 0x1dd   : > { %v2190_v34 = vpack.c.bf16 %v2087_v33, %v2086_v32 }
 0x1de   : > { %v1727_v35 = vpop.f32.mrb[100].mxu0 }
 0x1df   : > { %v1728_v37 = vadd.f32 %v5620_v36, %v1727_v35  ;;  %v1729_v38 = vpop.f32.mrb[101].mxu0  ;;  %4777 = vmatprep.mubr.bf16.mxu1 %v2190_v34  ;;  %v4329_v35 = vunpack.c.h.bf16 %v4578_v21 }
 0x1e0   : > { %v1730_v39 = vpop.f32.mrb[102].mxu0 }
 0x1e1   : > { %v1731_v40 = vadd.f32 %v5620_v36, %v1730_v39  ;;  %v1732_v41 = vpop.f32.mrb[103].mxu0  ;;  %v2088_v42 = vmax.f32 %v1728_v37, 0.0  ;;  %v5825_v39 = vld [vmem:[%s5617_s22] ss:$0 sm:$0xff] }
 0x1e3   : > { %v2089_v43 = vmax.f32 %v1731_v40, 0.0 }
 0x1e5   : > { %v2191_v48 = vpack.c.bf16 %v2089_v43, %v2088_v42 }
 0x1e6   : > { %v1735_v49 = vpop.f32.mrb[104].mxu0 }
 0x1e7   : > { %v1736_v52 = vadd.f32 %v5620_v36, %v1735_v49  ;;  %v1737_v53 = vpop.f32.mrb[105].mxu0  ;;  %4778 = vmatmul.mubr.bf16.gmra.mrb[100].mxu1 %v2191_v48 }
 0x1e8   : > { %v1738_v54 = vpop.f32.mrb[106].mxu0 }
 0x1e9   : > { %v1739_v55 = vadd.f32 %v5620_v36, %v1738_v54  ;;  %v1740_v56 = vpop.f32.mrb[107].mxu0  ;;  %v2090_v57 = vmax.f32 %v1736_v52, 0.0 }
 0x1eb   : > { %v2091_v58 = vmax.f32 %v1739_v55, 0.0 }
 0x1ed   : > { %v2192_v59 = vpack.c.bf16 %v2091_v58, %v2090_v57 }
 0x1ee   : > { %v1743_v60 = vpop.f32.mrb[108].mxu0 }
 0x1ef   : > { %v1744_v61 = vadd.f32 %v5620_v36, %v1743_v60  ;;  %v1745_v62 = vpop.f32.mrb[109].mxu0  ;;  %4781 = vmatprep.mubr.bf16.mxu1 %v2192_v59 }
 0x1f0   : > { %v1746_v63 = vpop.f32.mrb[110].mxu0 }
 0x1f1   : > { %v1747_v1 = vadd.f32 %v5620_v36, %v1746_v63  ;;  %v1748_v2 = vpop.f32.mrb[111].mxu0  ;;  %v2092_v3 = vmax.f32 %v1744_v61, 0.0 }
 0x1f3   : > { %v2093_v4 = vmax.f32 %v1747_v1, 0.0 }
 0x1f5   : > { %v2193_v6 = vpack.c.bf16 %v2093_v4, %v2092_v3  ;;  %v4579_v3 = vld [vmem:[%s5805_s14 + $0x10] sm:$0xff]  }
 0x1f6   : > { %v1751_v7 = vpop.f32.mrb[112].mxu0 }
 0x1f7   : > { %v1752_v8 = vadd.f32 %v5620_v36, %v1751_v7  ;;  %v1753_v9 = vpop.f32.mrb[113].mxu0  ;;  %4782 = vmatmul.mubr.bf16.gmra.mrb[104].mxu1 %v2193_v6 }
 0x1f8   : > { %v1754_v11 = vpop.f32.mrb[114].mxu0  ;;  %v4580_v9 = vld [vmem:[%s5805_s14 + $0x18] sm:$0xff]  }
 0x1f9   : > { %v1755_v19 = vadd.f32 %v5620_v36, %v1754_v11  ;;  %v1756_v20 = vpop.f32.mrb[115].mxu0  ;;  %v2094_v24 = vmax.f32 %v1752_v8, 0.0  ;;  %v4332_v11 = vunpack.c.l.bf16 %v4579_v3 }
 0x1fa   : > { %v4731_v22 = vpop.f32.mrb[52].mxu1 }
 0x1fb   : > { %v2095_v25 = vmax.f32 %v1755_v19, 0.0  ;;  %v2335_v26 = vpop.f32.mrb[53].mxu1  ;;  %v2344_v27 = vadd.f32 %v4731_v22, %v5816_v18 }
 0x1fc   : > { %v2336_v29 = vadd.f32 %v5816_v18, %v2335_v26  ;;  %v4732_v30 = vpop.f32.mrb[54].mxu1  ;;  %v4333_v26 = vunpack.c.h.bf16 %v4579_v3 }
 0x1fd   : > { %v2194_v32 = vpack.c.bf16 %v2095_v25, %v2094_v24  ;;  %v2338_v33 = vpop.f32.mrb[55].mxu1  ;;  %v2347_v36 = vadd.f32 %v4732_v30, %v5816_v18  ;;  %v3104_v42 = vadd.f32 %v4328_v28, %v2344_v27 }
 0x1fe   : > { %v3102_v34 = vadd.f32 %v4324_v23, %v2336_v29  ;;  %v2339_v37 = vadd.f32 %v5816_v18, %v2338_v33  ;;  %v1759_v38 = vpop.f32.mrb[116].mxu0  ;;  %v4336_v23 = vunpack.c.l.bf16 %v4580_v9 }
 0x1ff   : > { %v1760_v40 = vadd.f32 %v5825_v39, %v1759_v38  ;;  %v1761_v41 = vpop.f32.mrb[117].mxu0  ;;  %4785 = vmatprep.mubr.bf16.mxu1 %v2194_v32  ;;  %v3105_v54 = vadd.f32 %v4329_v35, %v2347_v36  ;;  %v3232_v58 = vmax.f32 %v3104_v42, 0.0 }
 0x200   : > { %v3103_v43 = vadd.f32 %v4325_v31, %v2339_v37  ;;  %v1762_v48 = vpop.f32.mrb[118].mxu0  ;;  %v3230_v53 = vmax.f32 %v3102_v34, 0.0  ;;  %v4337_v31 = vunpack.c.h.bf16 %v4580_v9 }
 0x201   : > { %v1763_v49 = vadd.f32 %v5825_v39, %v1762_v48  ;;  %v1764_v52 = vpop.f32.mrb[119].mxu0  ;;  %v2096_v56 = vmax.f32 %v1760_v40, 0.0  ;;  %v3233_v61 = vmax.f32 %v3105_v54, 0.0 }
 0x202   : > { %v3231_v55 = vmax.f32 %v3103_v43, 0.0 }
 0x203   : > { %v2097_v57 = vmax.f32 %v1763_v49, 0.0 }
 0x204   : > { %v3359_v59 = vadd.f32 %v3231_v55, %v3230_v53 }
 0x205   : > { %v2195_v60 = vpack.c.bf16 %v2097_v57, %v2096_v56 }
 0x206   : > { %v3360_v62 = vadd.f32 %v3359_v59, %v3232_v58  ;;  %v1767_v63 = vpop.f32.mrb[120].mxu0 }
 0x207   : > { %v1768_v1 = vadd.f32 %v5825_v39, %v1767_v63  ;;  %v1769_v2 = vpop.f32.mrb[121].mxu0  ;;  %4786 = vmatmul.mubr.bf16.gmra.mrb[108].mxu1 %v2195_v60 }
 0x208   : > { %v3361_v4 = vadd.f32 %v3360_v62, %v3233_v61  ;;  %v1770_v6 = vpop.f32.mrb[122].mxu0  ;;  %v4581_v62 = vld [vmem:[%s5805_s14 + $0x20] sm:$0xff]  }
 0x209   : > { %v1771_v7 = vadd.f32 %v5825_v39, %v1770_v6  ;;  %v1772_v8 = vpop.f32.mrb[123].mxu0  ;;  %v2098_v19 = vmax.f32 %v1768_v1, 0.0 }
 0x20a   : > { %v4735_v10 = vpop.f32.mrb[56].mxu1 }
 0x20b   : > { %v2099_v20 = vmax.f32 %v1771_v7, 0.0  ;;  %v2351_v21 = vpop.f32.mrb[57].mxu1  ;;  %v2360_v22 = vadd.f32 %v4735_v10, %v5816_v18  ;;  %v4340_v7 = vunpack.c.l.bf16 %v4581_v62 }
 0x20c   : > { %v2352_v24 = vadd.f32 %v5816_v18, %v2351_v21  ;;  %v4736_v25 = vpop.f32.mrb[58].mxu1 }
 0x20d   : > { %v2196_v27 = vpack.c.bf16 %v2099_v20, %v2098_v19  ;;  %v2354_v28 = vpop.f32.mrb[59].mxu1  ;;  %v2363_v30 = vadd.f32 %v4736_v25, %v5816_v18  ;;  %v3108_v35 = vadd.f32 %v4336_v23, %v2360_v22  ;;  %v4341_v22 = vunpack.c.h.bf16 %v4581_v62 }
 0x20e   : > { %v3106_v29 = vadd.f32 %v4332_v11, %v2352_v24  ;;  %v2355_v32 = vadd.f32 %v5816_v18, %v2354_v28  ;;  %v1775_v33 = vpop.f32.mrb[124].mxu0 }
 0x20f   : > { %v1776_v34 = vadd.f32 %v5825_v39, %v1775_v33  ;;  %v1777_v36 = vpop.f32.mrb[125].mxu0  ;;  %4789 = vmatprep.mubr.bf16.mxu1 %v2196_v27  ;;  %v3109_v48 = vadd.f32 %v4337_v31, %v2363_v30  ;;  %v3236_v54 = vmax.f32 %v3108_v35, 0.0 }
 0x210   : > { %v3234_v37 = vmax.f32 %v3106_v29, 0.0  ;;  %v3107_v38 = vadd.f32 %v4333_v26, %v2355_v32  ;;  %v1778_v40 = vpop.f32.mrb[126].mxu0 }
 0x211   : > { %v1779_v41 = vadd.f32 %v5825_v39, %v1778_v40  ;;  %v1780_v42 = vpop.f32.mrb[127].mxu0  ;;  %v2100_v52 = vmax.f32 %v1776_v34, 0.0  ;;  %v3237_v57 = vmax.f32 %v3109_v48, 0.0 }
 0x212   : > { %v3362_v43 = vadd.f32 %v3361_v4, %v3234_v37  ;;  %v3235_v49 = vmax.f32 %v3107_v38, 0.0  ;;  %v4582_v4 = vld [vmem:[%s5805_s14 + $0x28] sm:$0xff]  }
 0x213   : > { %v2101_v53 = vmax.f32 %v1779_v41, 0.0  ;;  %v4344_v19 = vunpack.c.l.bf16 %v4582_v4  ;;  %v4345_v27 = vunpack.c.h.bf16 %v4582_v4 }
 0x214   : > { %v3363_v55 = vadd.f32 %v3362_v43, %v3235_v49 }
 0x215   : > { %v2197_v56 = vpack.c.bf16 %v2101_v53, %v2100_v52 }
 0x216   : > { %v3364_v58 = vadd.f32 %v3363_v55, %v3236_v54  ;;  %v1783_v59 = vpop.f32.mrb[128].mxu0 }
 0x217   : > { %v1784_v60 = vadd.f32 %v5825_v39, %v1783_v59  ;;  %v1785_v61 = vpop.f32.mrb[129].mxu0  ;;  %4790 = vmatmul.mubr.bf16.gmra.mrb[112].mxu1 %v2197_v56 }
 0x218   : > { %v3365_v63 = vadd.f32 %v3364_v58, %v3237_v57  ;;  %v1786_v1 = vpop.f32.mrb[130].mxu0  ;;  %v4583_v58 = vld [vmem:[%s5805_s14 + $0x30] sm:$0xff]  }
 0x219   : > { %v1787_v2 = vadd.f32 %v5825_v39, %v1786_v1  ;;  %v1788_v3 = vpop.f32.mrb[131].mxu0  ;;  %v2102_v8 = vmax.f32 %v1784_v60, 0.0 }
 0x21a   : > { %v4739_v6 = vpop.f32.mrb[60].mxu1 }
 0x21b   : > { %v2103_v9 = vmax.f32 %v1787_v2, 0.0  ;;  %v2367_v10 = vpop.f32.mrb[61].mxu1  ;;  %v2376_v11 = vadd.f32 %v4739_v6, %v5816_v18  ;;  %v4348_v2 = vunpack.c.l.bf16 %v4583_v58 }
 0x21c   : > { %v2368_v20 = vadd.f32 %v5816_v18, %v2367_v10  ;;  %v4740_v21 = vpop.f32.mrb[62].mxu1 }
 0x21d   : > { %v2198_v23 = vpack.c.bf16 %v2103_v9, %v2102_v8  ;;  %v2370_v24 = vpop.f32.mrb[63].mxu1  ;;  %v2379_v26 = vadd.f32 %v4740_v21, %v5816_v18  ;;  %v3112_v32 = vadd.f32 %v4344_v19, %v2376_v11  ;;  %v4349_v11 = vunpack.c.h.bf16 %v4583_v58 }
 0x21e   : > { %v3110_v25 = vadd.f32 %v4340_v7, %v2368_v20  ;;  %v2371_v28 = vadd.f32 %v5816_v18, %v2370_v24  ;;  %v1791_v29 = vpop.f32.mrb[132].mxu0 }
 0x21f   : > { %v1792_v30 = vadd.f32 %v5825_v39, %v1791_v29  ;;  %v1793_v31 = vpop.f32.mrb[133].mxu0  ;;  %4793 = vmatprep.mubr.bf16.mxu1 %v2198_v23  ;;  %v3113_v40 = vadd.f32 %v4345_v27, %v2379_v26  ;;  %v3240_v48 = vmax.f32 %v3112_v32, 0.0 }
 0x220   : > { %v3238_v33 = vmax.f32 %v3110_v25, 0.0  ;;  %v3111_v34 = vadd.f32 %v4341_v22, %v2371_v28  ;;  %v1794_v36 = vpop.f32.mrb[134].mxu0 }
 0x221   : > { %v1795_v35 = vadd.f32 %v5825_v39, %v1794_v36  ;;  %v1796_v37 = vpop.f32.mrb[135].mxu0  ;;  %v2104_v42 = vmax.f32 %v1792_v30, 0.0  ;;  %v3241_v53 = vmax.f32 %v3113_v40, 0.0 }
 0x222   : > { %v3366_v38 = vadd.f32 %v3365_v63, %v3238_v33  ;;  %v3239_v41 = vmax.f32 %v3111_v34, 0.0  ;;  %v4584_v63 = vld [vmem:[%s5805_s14 + $0x38] sm:$0xff]  }
 0x223   : > { %v2105_v43 = vmax.f32 %v1795_v35, 0.0  ;;  %v4352_v8 = vunpack.c.l.bf16 %v4584_v63  ;;  %v4353_v23 = vunpack.c.h.bf16 %v4584_v63 }
 0x224   : > { %v3367_v49 = vadd.f32 %v3366_v38, %v3239_v41 }
 0x225   : > { %v2199_v52 = vpack.c.bf16 %v2105_v43, %v2104_v42 }
 0x226   : > { %v3368_v54 = vadd.f32 %v3367_v49, %v3240_v48  ;;  %v1799_v55 = vpop.f32.mrb[136].mxu0 }
 0x227   : > { %v1800_v56 = vadd.f32 %v5825_v39, %v1799_v55  ;;  %v1801_v57 = vpop.f32.mrb[137].mxu0  ;;  %4794 = vmatmul.mubr.bf16.gmra.mrb[116].mxu1 %v2199_v52 }
 0x228   : > { %v3369_v59 = vadd.f32 %v3368_v54, %v3241_v53  ;;  %v1802_v60 = vpop.f32.mrb[138].mxu0  ;;  %v4585_v54 = vld [vmem:[%s5805_s14 + $0x40] sm:$0xff]  }
 0x229   : > { %v1803_v61 = vadd.f32 %v5825_v39, %v1802_v60  ;;  %v1804_v62 = vpop.f32.mrb[139].mxu0  ;;  %v2106_v3 = vmax.f32 %v1800_v56, 0.0 }
 0x22a   : > { %v4743_v1 = vpop.f32.mrb[64].mxu1 }
 0x22b   : > { %v2107_v4 = vmax.f32 %v1803_v61, 0.0  ;;  %v2383_v6 = vpop.f32.mrb[65].mxu1  ;;  %v2392_v7 = vadd.f32 %v4743_v1, %v5816_v18  ;;  %v4356_v61 = vunpack.c.l.bf16 %v4585_v54 }
 0x22c   : > { %v2384_v9 = vadd.f32 %v5816_v18, %v2383_v6  ;;  %v4744_v10 = vpop.f32.mrb[66].mxu1 }
 0x22d   : > { %v2200_v19 = vpack.c.bf16 %v2107_v4, %v2106_v3  ;;  %v2386_v20 = vpop.f32.mrb[67].mxu1  ;;  %v2395_v22 = vadd.f32 %v4744_v10, %v5816_v18  ;;  %v3116_v28 = vadd.f32 %v4352_v8, %v2392_v7  ;;  %v4357_v7 = vunpack.c.h.bf16 %v4585_v54 }
 0x22e   : > { %v3114_v21 = vadd.f32 %v4348_v2, %v2384_v9  ;;  %v2387_v24 = vadd.f32 %v5816_v18, %v2386_v20  ;;  %v1807_v25 = vpop.f32.mrb[140].mxu0 }
 0x22f   : > { %v1808_v26 = vadd.f32 %v5825_v39, %v1807_v25  ;;  %v1809_v27 = vpop.f32.mrb[141].mxu0  ;;  %4797 = vmatprep.mubr.bf16.mxu1 %v2200_v19  ;;  %v3117_v36 = vadd.f32 %v4353_v23, %v2395_v22  ;;  %v3244_v40 = vmax.f32 %v3116_v28, 0.0 }
 0x230   : > { %v3242_v29 = vmax.f32 %v3114_v21, 0.0  ;;  %v3115_v30 = vadd.f32 %v4349_v11, %v2387_v24  ;;  %v1810_v31 = vpop.f32.mrb[142].mxu0 }
 0x231   : > { %v1811_v32 = vadd.f32 %v5825_v39, %v1810_v31  ;;  %v1812_v33 = vpop.f32.mrb[143].mxu0  ;;  %v2108_v37 = vmax.f32 %v1808_v26, 0.0  ;;  %v3245_v43 = vmax.f32 %v3117_v36, 0.0 }
 0x232   : > { %v3370_v34 = vadd.f32 %v3369_v59, %v3242_v29  ;;  %v3243_v35 = vmax.f32 %v3115_v30, 0.0  ;;  %v4586_v59 = vld [vmem:[%s5805_s14 + $0x48] sm:$0xff]  }
 0x233   : > { %v2109_v38 = vmax.f32 %v1811_v32, 0.0  ;;  %v4360_v3 = vunpack.c.l.bf16 %v4586_v59  ;;  %v4361_v19 = vunpack.c.h.bf16 %v4586_v59 }
 0x234   : > { %v3371_v41 = vadd.f32 %v3370_v34, %v3243_v35 }
 0x235   : > { %v2201_v42 = vpack.c.bf16 %v2109_v38, %v2108_v37 }
 0x236   : > { %v3372_v48 = vadd.f32 %v3371_v41, %v3244_v40  ;;  %v1815_v49 = vpop.f32.mrb[144].mxu0 }
 0x237   : > { %v1816_v52 = vadd.f32 %v5825_v39, %v1815_v49  ;;  %v1817_v53 = vpop.f32.mrb[145].mxu0  ;;  %4798 = vmatmul.mubr.bf16.gmra.mrb[120].mxu1 %v2201_v42 }
 0x238   : > { %v3373_v55 = vadd.f32 %v3372_v48, %v3245_v43  ;;  %v1818_v56 = vpop.f32.mrb[146].mxu0  ;;  %v4587_v48 = vld [vmem:[%s5805_s14 + $0x50] sm:$0xff]  }
 0x239   : > { %v1819_v57 = vadd.f32 %v5825_v39, %v1818_v56  ;;  %v1820_v58 = vpop.f32.mrb[147].mxu0  ;;  %v2110_v62 = vmax.f32 %v1816_v52, 0.0 }
 0x23a   : > { %v4747_v60 = vpop.f32.mrb[68].mxu1 }
 0x23b   : > { %v2111_v63 = vmax.f32 %v1819_v57, 0.0  ;;  %v2399_v1 = vpop.f32.mrb[69].mxu1  ;;  %v2408_v2 = vadd.f32 %v4747_v60, %v5816_v18  ;;  %v4364_v57 = vunpack.c.l.bf16 %v4587_v48 }
 0x23c   : > { %v2400_v4 = vadd.f32 %v5816_v18, %v2399_v1  ;;  %v4748_v6 = vpop.f32.mrb[70].mxu1 }
 0x23d   : > { %v2202_v8 = vpack.c.bf16 %v2111_v63, %v2110_v62  ;;  %v2402_v9 = vpop.f32.mrb[71].mxu1  ;;  %v2411_v11 = vadd.f32 %v4748_v6, %v5816_v18  ;;  %v3120_v24 = vadd.f32 %v4360_v3, %v2408_v2  ;;  %v4365_v2 = vunpack.c.h.bf16 %v4587_v48 }
 0x23e   : > { %v3118_v10 = vadd.f32 %v4356_v61, %v2400_v4  ;;  %v2403_v20 = vadd.f32 %v5816_v18, %v2402_v9  ;;  %v1823_v21 = vpop.f32.mrb[148].mxu0 }
 0x23f   : > { %v1824_v22 = vadd.f32 %v5825_v39, %v1823_v21  ;;  %v1825_v23 = vpop.f32.mrb[149].mxu0  ;;  %4801 = vmatprep.mubr.bf16.mxu1 %v2202_v8  ;;  %v3121_v31 = vadd.f32 %v4361_v19, %v2411_v11  ;;  %v3248_v36 = vmax.f32 %v3120_v24, 0.0 }
 0x240   : > { %v3246_v25 = vmax.f32 %v3118_v10, 0.0  ;;  %v3119_v26 = vadd.f32 %v4357_v7, %v2403_v20  ;;  %v1826_v27 = vpop.f32.mrb[150].mxu0 }
 0x241   : > { %v1827_v28 = vadd.f32 %v5825_v39, %v1826_v27  ;;  %v1828_v29 = vpop.f32.mrb[151].mxu0  ;;  %v2112_v33 = vmax.f32 %v1824_v22, 0.0  ;;  %v3249_v38 = vmax.f32 %v3121_v31, 0.0 }
 0x242   : > { %v3374_v30 = vadd.f32 %v3373_v55, %v3246_v25  ;;  %v3247_v32 = vmax.f32 %v3119_v26, 0.0  ;;  %v4588_v55 = vld [vmem:[%s5805_s14 + $0x58] sm:$0xff]  }
 0x243   : > { %v2113_v34 = vmax.f32 %v1827_v28, 0.0  ;;  %v4368_v62 = vunpack.c.l.bf16 %v4588_v55  ;;  %v4369_v8 = vunpack.c.h.bf16 %v4588_v55 }
 0x244   : > { %v3375_v35 = vadd.f32 %v3374_v30, %v3247_v32 }
 0x245   : > { %v2203_v37 = vpack.c.bf16 %v2113_v34, %v2112_v33 }
 0x246   : > { %v3376_v40 = vadd.f32 %v3375_v35, %v3248_v36  ;;  %v1831_v41 = vpop.f32.mrb[152].mxu0 }
 0x247   : > { %v1832_v42 = vadd.f32 %v5825_v39, %v1831_v41  ;;  %v1833_v43 = vpop.f32.mrb[153].mxu0  ;;  %4802 = vmatmul.mubr.bf16.gmra.mrb[124].mxu1 %v2203_v37 }
 0x248   : > { %v3377_v49 = vadd.f32 %v3376_v40, %v3249_v38  ;;  %v1834_v52 = vpop.f32.mrb[154].mxu0  ;;  %v4589_v40 = vld [vmem:[%s5805_s14 + $0x60] sm:$0xff]  }
 0x249   : > { %v1835_v53 = vadd.f32 %v5825_v39, %v1834_v52  ;;  %v1836_v54 = vpop.f32.mrb[155].mxu0  ;;  %v2114_v58 = vmax.f32 %v1832_v42, 0.0 }
 0x24a   : > { %v4751_v56 = vpop.f32.mrb[72].mxu1 }
 0x24b   : > { %v2115_v59 = vmax.f32 %v1835_v53, 0.0  ;;  %v2415_v60 = vpop.f32.mrb[73].mxu1  ;;  %v2424_v61 = vadd.f32 %v4751_v56, %v5816_v18  ;;  %v4372_v53 = vunpack.c.l.bf16 %v4589_v40 }
 0x24c   : > { %v2416_v63 = vadd.f32 %v5816_v18, %v2415_v60  ;;  %v4752_v1 = vpop.f32.mrb[74].mxu1 }
 0x24d   : > { %v2204_v3 = vpack.c.bf16 %v2115_v59, %v2114_v58  ;;  %v2418_v4 = vpop.f32.mrb[75].mxu1  ;;  %v2427_v7 = vadd.f32 %v4752_v1, %v5816_v18  ;;  %v3124_v20 = vadd.f32 %v4368_v62, %v2424_v61  ;;  %v4373_v61 = vunpack.c.h.bf16 %v4589_v40 }
 0x24e   : > { %v3122_v6 = vadd.f32 %v4364_v57, %v2416_v63  ;;  %v2419_v9 = vadd.f32 %v5816_v18, %v2418_v4  ;;  %v1839_v10 = vpop.f32.mrb[156].mxu0 }
 0x24f   : > { %v1840_v11 = vadd.f32 %v5825_v39, %v1839_v10  ;;  %v1841_v19 = vpop.f32.mrb[157].mxu0  ;;  %4805 = vmatprep.mubr.bf16.mxu1 %v2204_v3  ;;  %v3125_v27 = vadd.f32 %v4369_v8, %v2427_v7  ;;  %v3252_v31 = vmax.f32 %v3124_v20, 0.0 }
 0x250   : > { %v3250_v21 = vmax.f32 %v3122_v6, 0.0  ;;  %v3123_v22 = vadd.f32 %v4365_v2, %v2419_v9  ;;  %v1842_v23 = vpop.f32.mrb[158].mxu0 }
 0x251   : > { %v1843_v24 = vadd.f32 %v5825_v39, %v1842_v23  ;;  %v1844_v25 = vpop.f32.mrb[159].mxu0  ;;  %v2116_v29 = vmax.f32 %v1840_v11, 0.0  ;;  %v3253_v34 = vmax.f32 %v3125_v27, 0.0 }
 0x252   : > { %v3378_v26 = vadd.f32 %v3377_v49, %v3250_v21  ;;  %v3251_v28 = vmax.f32 %v3123_v22, 0.0  ;;  %v4590_v49 = vld [vmem:[%s5805_s14 + $0x68] sm:$0xff]   ;;  %v5159_v25 = vld [vmem:[%s5507_s19] ss:$16 sps:$4 sm:$0xff]  }
 0x253   : > { %v2117_v30 = vmax.f32 %v1843_v24, 0.0  ;;  %v4376_v58 = vunpack.c.l.bf16 %v4590_v49  ;;  %v4377_v3 = vunpack.c.h.bf16 %v4590_v49 }
 0x254   : > { %v3379_v32 = vadd.f32 %v3378_v26, %v3251_v28  ;;  %v5161_v26 = vld [vmem:[%s5507_s19 + $0x4] ss:$16 sps:$4 sm:$0xff]  }
 0x255   : > { %v2205_v33 = vpack.c.bf16 %v2117_v30, %v2116_v29  ;;  %3714 = vmatprep.subr.bf16.mxu1 %v5161_v26 }
 0x256   : > { %v3380_v36 = vadd.f32 %v3379_v32, %v3252_v31  ;;  %v1847_v35 = vpop.f32.mrb[160].mxu0  ;;  %3715 = vmatpush1.bf16.msra.mxu1 %v5159_v25 }
 0x257   : > { %v1848_v37 = vadd.f32 %v5825_v39, %v1847_v35  ;;  %v1849_v38 = vpop.f32.mrb[161].mxu0  ;;  %4806 = vmatmul.mubr.bf16.gmra.mrb[128].mxu1 %v2205_v33 }
 0x258   : > { %v3381_v41 = vadd.f32 %v3380_v36, %v3253_v34  ;;  %v1850_v42 = vpop.f32.mrb[162].mxu0 }
 0x259   : > { %v1851_v43 = vadd.f32 %v5825_v39, %v1850_v42  ;;  %v1852_v48 = vpop.f32.mrb[163].mxu0  ;;  %v2118_v54 = vmax.f32 %v1848_v37, 0.0  ;;  %v4591_v37 = vld [vmem:[%s5805_s14 + $0x70] sm:$0xff]  }
 0x25a   : > { %v4755_v52 = vpop.f32.mrb[76].mxu1  ;;  %v4380_v49 = vunpack.c.l.bf16 %v4591_v37 }
 0x25b   : > { %v2119_v55 = vmax.f32 %v1851_v43, 0.0  ;;  %v2431_v56 = vpop.f32.mrb[77].mxu1  ;;  %v2440_v57 = vadd.f32 %v4755_v52, %v5816_v18  ;;  %v4592_v43 = vld [vmem:[%s5805_s14 + $0x78] sm:$0xff]  }
 0x25c   : > { %v2432_v59 = vadd.f32 %v5816_v18, %v2431_v56  ;;  %v4756_v60 = vpop.f32.mrb[78].mxu1  ;;  %v4384_v56 = vunpack.c.l.bf16 %v4592_v43 }
 0x25d   : > { %v2206_v62 = vpack.c.bf16 %v2119_v55, %v2118_v54  ;;  %v2434_v63 = vpop.f32.mrb[79].mxu1  ;;  %v2443_v2 = vadd.f32 %v4756_v60, %v5816_v18  ;;  %v3128_v9 = vadd.f32 %v4376_v58, %v2440_v57 }
 0x25e   : > { %v3126_v1 = vadd.f32 %v4372_v53, %v2432_v59  ;;  %v2435_v4 = vadd.f32 %v5816_v18, %v2434_v63  ;;  %v1855_v6 = vpop.f32.mrb[164].mxu0  ;;  %v4381_v59 = vunpack.c.h.bf16 %v4591_v37 }
 0x25f   : > { %v1856_v7 = vadd.f32 %v5825_v39, %v1855_v6  ;;  %v1857_v8 = vpop.f32.mrb[165].mxu0  ;;  %4809 = vmatprep.mubr.bf16.mxu1 %v2206_v62  ;;  %v3129_v23 = vadd.f32 %v4377_v3, %v2443_v2  ;;  %v3256_v29 = vmax.f32 %v3128_v9, 0.0 }
 0x260   : > { %v3254_v10 = vmax.f32 %v3126_v1, 0.0  ;;  %v3127_v11 = vadd.f32 %v4373_v61, %v2435_v4  ;;  %v1858_v19 = vpop.f32.mrb[166].mxu0  ;;  %v4385_v1 = vunpack.c.h.bf16 %v4592_v43 }
 0x261   : > { %v1859_v20 = vadd.f32 %v5825_v39, %v1858_v19  ;;  %v1860_v21 = vpop.f32.mrb[167].mxu0  ;;  %v2120_v27 = vmax.f32 %v1856_v7, 0.0  ;;  %v3257_v32 = vmax.f32 %v3129_v23, 0.0 }
 0x262   : > { %v3382_v22 = vadd.f32 %v3381_v41, %v3254_v10  ;;  %v3255_v24 = vmax.f32 %v3127_v11, 0.0 }
 0x263   : > { %v2121_v28 = vmax.f32 %v1859_v20, 0.0 }
 0x264   : > { %v3383_v30 = vadd.f32 %v3382_v22, %v3255_v24 }
 0x265   : > { %v2207_v31 = vpack.c.bf16 %v2121_v28, %v2120_v27 }
 0x266   : > { %v3384_v33 = vadd.f32 %v3383_v30, %v3256_v29  ;;  %v1863_v34 = vpop.f32.mrb[168].mxu0 }
 0x267   : > { %v1864_v36 = vadd.f32 %v5825_v39, %v1863_v34  ;;  %v1865_v35 = vpop.f32.mrb[169].mxu0  ;;  %4810 = vmatmul.mubr.bf16.gmra.mrb[132].mxu1 %v2207_v31 }
 0x268   : > { %v3385_v38 = vadd.f32 %v3384_v33, %v3257_v32  ;;  %v1866_v40 = vpop.f32.mrb[170].mxu0  ;;  %v4593_v33 = vld [vmem:[%s5805_s14 + $0x80] sm:$0xff]  }
 0x269   : > { %v1867_v41 = vadd.f32 %v5825_v39, %v1866_v40  ;;  %v1868_v42 = vpop.f32.mrb[171].mxu0  ;;  %v2122_v52 = vmax.f32 %v1864_v36, 0.0 }
 0x26a   : > { %v4759_v48 = vpop.f32.mrb[80].mxu1 }
 0x26b   : > { %v2123_v53 = vmax.f32 %v1867_v41, 0.0  ;;  %v2447_v54 = vpop.f32.mrb[81].mxu1  ;;  %v2456_v55 = vadd.f32 %v4759_v48, %v5816_v18  ;;  %v4388_v41 = vunpack.c.l.bf16 %v4593_v33 }
 0x26c   : > { %v2448_v57 = vadd.f32 %v5816_v18, %v2447_v54  ;;  %v4760_v58 = vpop.f32.mrb[82].mxu1 }
 0x26d   : > { %v2208_v60 = vpack.c.bf16 %v2123_v53, %v2122_v52  ;;  %v2450_v61 = vpop.f32.mrb[83].mxu1  ;;  %v2459_v63 = vadd.f32 %v4760_v58, %v5816_v18  ;;  %v3132_v7 = vadd.f32 %v4384_v56, %v2456_v55  ;;  %v4389_v55 = vunpack.c.h.bf16 %v4593_v33 }
 0x26e   : > { %v3130_v62 = vadd.f32 %v4380_v49, %v2448_v57  ;;  %v2451_v2 = vadd.f32 %v5816_v18, %v2450_v61  ;;  %v1871_v3 = vpop.f32.mrb[172].mxu0 }
 0x26f   : > { %v1872_v4 = vadd.f32 %v5825_v39, %v1871_v3  ;;  %v1873_v6 = vpop.f32.mrb[173].mxu0  ;;  %4813 = vmatprep.mubr.bf16.mxu1 %v2208_v60  ;;  %v3133_v21 = vadd.f32 %v4385_v1, %v2459_v63  ;;  %v3260_v25 = vmax.f32 %v3132_v7, 0.0 }
 0x270   : > { %v3258_v8 = vmax.f32 %v3130_v62, 0.0  ;;  %v3131_v9 = vadd.f32 %v4381_v59, %v2451_v2  ;;  %v1874_v10 = vpop.f32.mrb[174].mxu0 }
 0x271   : > { %v1875_v11 = vadd.f32 %v5825_v39, %v1874_v10  ;;  %v1876_v19 = vpop.f32.mrb[175].mxu0  ;;  %v2124_v23 = vmax.f32 %v1872_v4, 0.0  ;;  %v3261_v28 = vmax.f32 %v3133_v21, 0.0 }
 0x272   : > { %v3386_v20 = vadd.f32 %v3385_v38, %v3258_v8  ;;  %v3259_v22 = vmax.f32 %v3131_v9, 0.0  ;;  %v4594_v38 = vld [vmem:[%s5805_s14 + $0x88] sm:$0xff]   ;;  %v5162_v19 = vld [vmem:[%s5507_s19 + $0x20] ss:$16 sps:$4 sm:$0xff]  }
 0x273   : > { %v2125_v24 = vmax.f32 %v1875_v11, 0.0  ;;  %v4392_v52 = vunpack.c.l.bf16 %v4594_v38  ;;  %v4393_v60 = vunpack.c.h.bf16 %v4594_v38 }
 0x274   : > { %v3387_v26 = vadd.f32 %v3386_v20, %v3259_v22  ;;  %v5164_v20 = vld [vmem:[%s5507_s19 + $0x24] ss:$16 sps:$4 sm:$0xff]  }
 0x275   : > { %v2209_v27 = vpack.c.bf16 %v2125_v24, %v2124_v23  ;;  %3716 = vmatprep.subr.bf16.mxu1 %v5164_v20 }
 0x276   : > { %v3388_v29 = vadd.f32 %v3387_v26, %v3260_v25  ;;  %v1879_v30 = vpop.f32.mrb[176].mxu0  ;;  %3717 = vmatpush1.bf16.msra.mxu1 %v5162_v19 }
 0x277   : > { %v1880_v31 = vadd.f32 %v5825_v39, %v1879_v30  ;;  %v1881_v32 = vpop.f32.mrb[177].mxu0  ;;  %4814 = vmatmul.mubr.bf16.gmra.mrb[136].mxu1 %v2209_v27 }
 0x278   : > { %v3389_v34 = vadd.f32 %v3388_v29, %v3261_v28  ;;  %v1882_v36 = vpop.f32.mrb[178].mxu0 }
 0x279   : > { %v1883_v35 = vadd.f32 %v5825_v39, %v1882_v36  ;;  %v1884_v37 = vpop.f32.mrb[179].mxu0  ;;  %v2126_v42 = vmax.f32 %v1880_v31, 0.0  ;;  %v4595_v31 = vld [vmem:[%s5805_s14 + $0x90] sm:$0xff]  }
 0x27a   : > { %v4763_v40 = vpop.f32.mrb[84].mxu1  ;;  %v4396_v38 = vunpack.c.l.bf16 %v4595_v31 }
 0x27b   : > { %v2127_v43 = vmax.f32 %v1883_v35, 0.0  ;;  %v2463_v48 = vpop.f32.mrb[85].mxu1  ;;  %v2472_v49 = vadd.f32 %v4763_v40, %v5816_v18  ;;  %v4596_v35 = vld [vmem:[%s5805_s14 + $0x98] sm:$0xff]  }
 0x27c   : > { %v2464_v53 = vadd.f32 %v5816_v18, %v2463_v48  ;;  %v4764_v54 = vpop.f32.mrb[86].mxu1  ;;  %v4400_v48 = vunpack.c.l.bf16 %v4596_v35 }
 0x27d   : > { %v2210_v56 = vpack.c.bf16 %v2127_v43, %v2126_v42  ;;  %v2466_v57 = vpop.f32.mrb[87].mxu1  ;;  %v2475_v59 = vadd.f32 %v4764_v54, %v5816_v18  ;;  %v3136_v2 = vadd.f32 %v4392_v52, %v2472_v49 }
 0x27e   : > { %v3134_v58 = vadd.f32 %v4388_v41, %v2464_v53  ;;  %v2467_v61 = vadd.f32 %v5816_v18, %v2466_v57  ;;  %v1887_v62 = vpop.f32.mrb[180].mxu0  ;;  %v4397_v53 = vunpack.c.h.bf16 %v4595_v31 }
 0x27f   : > { %v1888_v63 = vadd.f32 %v5825_v39, %v1887_v62  ;;  %v1889_v1 = vpop.f32.mrb[181].mxu0  ;;  %4817 = vmatprep.mubr.bf16.mxu1 %v2210_v56  ;;  %v3137_v10 = vadd.f32 %v4393_v60, %v2475_v59  ;;  %v3264_v23 = vmax.f32 %v3136_v2, 0.0 }
 0x280   : > { %v3262_v3 = vmax.f32 %v3134_v58, 0.0  ;;  %v3135_v4 = vadd.f32 %v4389_v55, %v2467_v61  ;;  %v1890_v6 = vpop.f32.mrb[182].mxu0  ;;  %v4401_v58 = vunpack.c.h.bf16 %v4596_v35 }
 0x281   : > { %v1891_v7 = vadd.f32 %v5825_v39, %v1890_v6  ;;  %v1892_v8 = vpop.f32.mrb[183].mxu0  ;;  %v2128_v21 = vmax.f32 %v1888_v63, 0.0  ;;  %v3265_v26 = vmax.f32 %v3137_v10, 0.0 }
 0x282   : > { %v3390_v9 = vadd.f32 %v3389_v34, %v3262_v3  ;;  %v3263_v11 = vmax.f32 %v3135_v4, 0.0 }
 0x283   : > { %v2129_v22 = vmax.f32 %v1891_v7, 0.0 }
 0x284   : > { %v3391_v24 = vadd.f32 %v3390_v9, %v3263_v11 }
 0x285   : > { %v2211_v25 = vpack.c.bf16 %v2129_v22, %v2128_v21 }
 0x286   : > { %v3392_v27 = vadd.f32 %v3391_v24, %v3264_v23  ;;  %v1895_v28 = vpop.f32.mrb[184].mxu0 }
 0x287   : > { %v1896_v29 = vadd.f32 %v5825_v39, %v1895_v28  ;;  %v1897_v30 = vpop.f32.mrb[185].mxu0  ;;  %4818 = vmatmul.mubr.bf16.gmra.mrb[140].mxu1 %v2211_v25 }
 0x288   : > { %v3393_v32 = vadd.f32 %v3392_v27, %v3265_v26  ;;  %v1898_v33 = vpop.f32.mrb[186].mxu0  ;;  %v4597_v27 = vld [vmem:[%s5805_s14 + $0xa0] sm:$0xff]  }
 0x289   : > { %v1899_v34 = vadd.f32 %v5825_v39, %v1898_v33  ;;  %v1900_v36 = vpop.f32.mrb[187].mxu0  ;;  %v2130_v40 = vmax.f32 %v1896_v29, 0.0 }
 0x28a   : > { %v4767_v37 = vpop.f32.mrb[88].mxu1 }
 0x28b   : > { %v2131_v41 = vmax.f32 %v1899_v34, 0.0  ;;  %v2479_v42 = vpop.f32.mrb[89].mxu1  ;;  %v2488_v43 = vadd.f32 %v4767_v37, %v5816_v18  ;;  %v4404_v34 = vunpack.c.l.bf16 %v4597_v27 }
 0x28c   : > { %v2480_v49 = vadd.f32 %v5816_v18, %v2479_v42  ;;  %v4768_v52 = vpop.f32.mrb[90].mxu1 }
 0x28d   : > { %v2212_v54 = vpack.c.bf16 %v2131_v41, %v2130_v40  ;;  %v2482_v55 = vpop.f32.mrb[91].mxu1  ;;  %v2491_v57 = vadd.f32 %v4768_v52, %v5816_v18  ;;  %v3140_v63 = vadd.f32 %v4400_v48, %v2488_v43  ;;  %v4405_v43 = vunpack.c.h.bf16 %v4597_v27 }
 0x28e   : > { %v3138_v56 = vadd.f32 %v4396_v38, %v2480_v49  ;;  %v2483_v59 = vadd.f32 %v5816_v18, %v2482_v55  ;;  %v1903_v60 = vpop.f32.mrb[188].mxu0 }
 0x28f   : > { %v1904_v61 = vadd.f32 %v5825_v39, %v1903_v60  ;;  %v1905_v62 = vpop.f32.mrb[189].mxu0  ;;  %4821 = vmatprep.mubr.bf16.mxu1 %v2212_v54  ;;  %v3141_v8 = vadd.f32 %v4401_v58, %v2491_v57  ;;  %v3268_v19 = vmax.f32 %v3140_v63, 0.0 }
 0x290   : > { %v3266_v1 = vmax.f32 %v3138_v56, 0.0  ;;  %v3139_v2 = vadd.f32 %v4397_v53, %v2483_v59  ;;  %v1906_v3 = vpop.f32.mrb[190].mxu0 }
 0x291   : > { %v1907_v4 = vadd.f32 %v5825_v39, %v1906_v3  ;;  %v1908_v6 = vpop.f32.mrb[191].mxu0  ;;  %v2132_v10 = vmax.f32 %v1904_v61, 0.0  ;;  %v3269_v22 = vmax.f32 %v3141_v8, 0.0 }
 0x292   : > { %v3394_v7 = vadd.f32 %v3393_v32, %v3266_v1  ;;  %v3267_v9 = vmax.f32 %v3139_v2, 0.0  ;;  %v4598_v32 = vld [vmem:[%s5805_s14 + $0xa8] sm:$0xff]   ;;  %v5165_v6 = vld [vmem:[%s5507_s19 + $0x40] ss:$16 sps:$4 sm:$0xff]  }
 0x293   : > { %v2133_v11 = vmax.f32 %v1907_v4, 0.0  ;;  %v4408_v40 = vunpack.c.l.bf16 %v4598_v32  ;;  %v4409_v54 = vunpack.c.h.bf16 %v4598_v32 }
 0x294   : > { %v3395_v20 = vadd.f32 %v3394_v7, %v3267_v9  ;;  %v5167_v7 = vld [vmem:[%s5507_s19 + $0x44] ss:$16 sps:$4 sm:$0xff]  }
 0x295   : > { %v2213_v21 = vpack.c.bf16 %v2133_v11, %v2132_v10  ;;  %3718 = vmatprep.subr.bf16.mxu1 %v5167_v7 }
 0x296   : > { %v3396_v23 = vadd.f32 %v3395_v20, %v3268_v19  ;;  %v1911_v24 = vpop.f32.mrb[192].mxu0  ;;  %3719 = vmatpush1.bf16.msra.mxu1 %v5165_v6 }
 0x297   : > { %v1912_v25 = vadd.f32 %v5825_v39, %v1911_v24  ;;  %v1913_v26 = vpop.f32.mrb[193].mxu0  ;;  %4822 = vmatmul.mubr.bf16.gmra.mrb[144].mxu1 %v2213_v21  ;;  %v4599_v24 = vld [vmem:[%s5805_s14 + $0xb0] sm:$0xff]  }
 0x298   : > { %v3397_v28 = vadd.f32 %v3396_v23, %v3269_v22  ;;  %v1914_v29 = vpop.f32.mrb[194].mxu0 }
 0x299   : > { %v1915_v30 = vadd.f32 %v5825_v39, %v1914_v29  ;;  %v1916_v31 = vpop.f32.mrb[195].mxu0  ;;  %v2134_v36 = vmax.f32 %v1912_v25, 0.0  ;;  %v4600_v29 = vld [vmem:[%s5805_s14 + $0xb8] sm:$0xff]  }
 0x29a   : > { %v4771_v33 = vpop.f32.mrb[92].mxu1  ;;  %v4412_v31 = vunpack.c.l.bf16 %v4599_v24 }
 0x29b   : > { %v2135_v35 = vmax.f32 %v1915_v30, 0.0  ;;  %v2495_v37 = vpop.f32.mrb[93].mxu1  ;;  %v2504_v38 = vadd.f32 %v4771_v33, %v5816_v18 }
 0x29c   : > { %v2496_v41 = vadd.f32 %v5816_v18, %v2495_v37  ;;  %v4772_v42 = vpop.f32.mrb[94].mxu1  ;;  %v4416_v37 = vunpack.c.l.bf16 %v4600_v29 }
 0x29d   : > { %v2214_v48 = vpack.c.bf16 %v2135_v35, %v2134_v36  ;;  %v2498_v49 = vpop.f32.mrb[95].mxu1  ;;  %v2507_v53 = vadd.f32 %v4772_v42, %v5816_v18  ;;  %v3144_v59 = vadd.f32 %v4408_v40, %v2504_v38  ;;  %v5940_v36 = vld [vmem:[%s5811_s2] ss:$0 sm:$0xff] }
 0x29e   : > { %v3142_v52 = vadd.f32 %v4404_v34, %v2496_v41  ;;  %v2499_v55 = vadd.f32 %v5816_v18, %v2498_v49  ;;  %v1919_v56 = vpop.f32.mrb[196].mxu0  ;;  %v4413_v41 = vunpack.c.h.bf16 %v4599_v24  ;;  %v4417_v49 = vunpack.c.h.bf16 %v4600_v29 }
 0x29f   : > { %v1920_v57 = vadd.f32 %v5825_v39, %v1919_v56  ;;  %v1921_v58 = vpop.f32.mrb[197].mxu0  ;;  %4825 = vmatprep.mubr.bf16.mxu1 %v2214_v48  ;;  %v3145_v3 = vadd.f32 %v4409_v54, %v2507_v53  ;;  %v3272_v9 = vmax.f32 %v3144_v59, 0.0 }
 0x2a0   : > { %v3270_v60 = vmax.f32 %v3142_v52, 0.0  ;;  %v3143_v61 = vadd.f32 %v4405_v43, %v2499_v55  ;;  %v1922_v62 = vpop.f32.mrb[198].mxu0 }
 0x2a1   : > { %v1923_v63 = vadd.f32 %v5825_v39, %v1922_v62  ;;  %v1924_v1 = vpop.f32.mrb[199].mxu0  ;;  %v2136_v8 = vmax.f32 %v1920_v57, 0.0  ;;  %v3273_v19 = vmax.f32 %v3145_v3, 0.0 }
 0x2a2   : > { %v3398_v2 = vadd.f32 %v3397_v28, %v3270_v60  ;;  %v3271_v4 = vmax.f32 %v3143_v61, 0.0 }
 0x2a3   : > { %v2137_v18 = vmax.f32 %v1923_v63, 0.0  ;;  %v4601_v63 = vld [vmem:[%s5805_s14 + $0xc0] sm:$0xff]  }
 0x2a4   : > { %v3399_v10 = vadd.f32 %v3398_v2, %v3271_v4  ;;  %v4602_v2 = vld [vmem:[%s5805_s14 + $0xc8] sm:$0xff]   ;;  %v4420_v4 = vunpack.c.l.bf16 %v4601_v63 }
 0x2a5   : > { %v2215_v11 = vpack.c.bf16 %v2137_v18, %v2136_v8  ;;  %v4421_v18 = vunpack.c.h.bf16 %v4601_v63 }
 0x2a6   : > { %v3400_v20 = vadd.f32 %v3399_v10, %v3272_v9  ;;  %v1927_v21 = vpop.f32.mrb[200].mxu0 }
 0x2a7   : > { %v1928_v22 = vadd.f32 %v5825_v39, %v1927_v21  ;;  %v1929_v23 = vpop.f32.mrb[201].mxu0  ;;  %4826 = vmatmul.mubr.bf16.gmra.mrb[148].mxu1 %v2215_v11 }
 0x2a8   : > { %v3401_v25 = vadd.f32 %v3400_v20, %v3273_v19  ;;  %v1930_v26 = vpop.f32.mrb[202].mxu0 }
 0x2a9   : > { %v1931_v27 = vadd.f32 %v5825_v39, %v1930_v26  ;;  %v1932_v28 = vpop.f32.mrb[203].mxu0  ;;  %v2138_v32 = vmax.f32 %v1928_v22, 0.0  ;;  %v5170_v26 = vld [vmem:[%s5507_s19 + $0x64] ss:$16 sps:$4 sm:$0xff]  }
 0x2aa   : > { %v4775_v30 = vpop.f32.mrb[96].mxu1  ;;  %3720 = vmatprep.subr.bf16.mxu1 %v5170_v26  ;;  %v4608_v26 = vld [vmem:[%s5805_s14 + $0xf8] sm:$0xff]  }
 0x2ab   : > { %v2139_v33 = vmax.f32 %v1931_v27, 0.0  ;;  %v2511_v34 = vpop.f32.mrb[97].mxu1  ;;  %v2520_v35 = vadd.f32 %v5940_v36, %v4775_v30 }
 0x2ac   : > { %v2512_v38 = vadd.f32 %v5940_v36, %v2511_v34  ;;  %v4776_v40 = vpop.f32.mrb[98].mxu1 }
 0x2ad   : > { %v2216_v42 = vpack.c.bf16 %v2139_v33, %v2138_v32  ;;  %v2514_v43 = vpop.f32.mrb[99].mxu1  ;;  %v2523_v39 = vadd.f32 %v5940_v36, %v4776_v40  ;;  %v3148_v53 = vadd.f32 %v4416_v37, %v2520_v35 }
 0x2ae   : > { %v3146_v48 = vadd.f32 %v4412_v31, %v2512_v38  ;;  %v2515_v52 = vadd.f32 %v5940_v36, %v2514_v43  ;;  %v4603_v31 = vld [vmem:[%s5805_s14 + $0xd0] sm:$0xff]  }
 0x2af   : > { %4829 = vmatprep.mubr.bf16.mxu1 %v2216_v42  ;;  %v3149_v57 = vadd.f32 %v4417_v49, %v2523_v39  ;;  %v3276_v59 = vmax.f32 %v3148_v53, 0.0  ;;  %v4428_v33 = vunpack.c.l.bf16 %v4603_v31 }
 0x2b0   : > { %v3274_v54 = vmax.f32 %v3146_v48, 0.0  ;;  %v3147_v55 = vadd.f32 %v4413_v41, %v2515_v52  ;;  %4830 = vmatmul.mubr.bf16.gmra.mrb[152].mxu1 %v5666_v16  ;;  %v4429_v41 = vunpack.c.h.bf16 %v4603_v31 }
 0x2b1   : > { %4833 = vmatprep.mubr.bf16.mxu1 %v5668_v17  ;;  %v3277_v61 = vmax.f32 %v3149_v57, 0.0  ;;  %v4424_v17 = vunpack.c.l.bf16 %v4602_v2 }
 0x2b2   : > { %v3402_v56 = vadd.f32 %v3401_v25, %v3274_v54  ;;  %v3275_v58 = vmax.f32 %v3147_v55, 0.0  ;;  %v5168_v25 = vld [vmem:[%s5507_s19 + $0x60] ss:$16 sps:$4 sm:$0xff]  }
 0x2b3   : > { %3721 = vmatpush1.bf16.msra.mxu1 %v5168_v25 }
 0x2b4   : > { %v3403_v60 = vadd.f32 %v3402_v56, %v3275_v58 }
 0x2b6   : > { %v3404_v62 = vadd.f32 %v3403_v60, %v3276_v59  ;;  %v4605_v60 = vld [vmem:[%s5805_s14 + $0xe0] sm:$0xff]  }
 0x2b8   : > { %v3405_v1 = vadd.f32 %v3404_v62, %v3277_v61  ;;  %4834 = vmatmul.mubr.bf16.gmra.mrb[156].mxu1 %v5679_v46  ;;  %v4425_v46 = vunpack.c.h.bf16 %v4602_v2  ;;  %v4606_v62 = vld [vmem:[%s5805_s14 + $0xe8] sm:$0xff]  }
 0x2b9   : > { %4837 = vmatprep.mubr.bf16.mxu1 %v5681_v47 }
 0x2ba   : > { %v4779_v3 = vpop.f32.mrb[100].mxu1 }
 0x2bb   : > { %v2527_v6 = vpop.f32.mrb[101].mxu1  ;;  %v2536_v16 = vadd.f32 %v5940_v36, %v4779_v3 }
 0x2bc   : > { %v2528_v7 = vadd.f32 %v5940_v36, %v2527_v6  ;;  %v4780_v8 = vpop.f32.mrb[102].mxu1  ;;  %v4437_v6 = vunpack.c.h.bf16 %v4605_v60 }
 0x2bd   : > { %v2530_v9 = vpop.f32.mrb[103].mxu1  ;;  %v2539_v11 = vadd.f32 %v5940_v36, %v4780_v8  ;;  %v3152_v19 = vadd.f32 %v4424_v17, %v2536_v16 }
 0x2be   : > { %v3150_v10 = vadd.f32 %v4420_v4, %v2528_v7  ;;  %v2531_v47 = vadd.f32 %v5940_v36, %v2530_v9 }
 0x2bf   : > { %v3153_v23 = vadd.f32 %v4425_v46, %v2539_v11  ;;  %v3280_v27 = vmax.f32 %v3152_v19, 0.0  ;;  %v5173_v19 = vld [vmem:[%s5507_s19 + $0x84] ss:$16 sps:$4 sm:$0xff]  }
 0x2c0   : > { %v3278_v20 = vmax.f32 %v3150_v10, 0.0  ;;  %v3151_v21 = vadd.f32 %v4421_v18, %v2531_v47  ;;  %4838 = vmatmul.mubr.bf16.gmra.mrb[160].mxu1 %v5692_v12  ;;  %v4604_v12 = vld [vmem:[%s5805_s14 + $0xd8] sm:$0xff]   ;;  %v5171_v47 = vld [vmem:[%s5507_s19 + $0x80] ss:$16 sps:$4 sm:$0xff]   ;;  %3722 = vmatprep.subr.bf16.mxu1 %v5173_v19 }
 0x2c1   : > { %4841 = vmatprep.mubr.bf16.mxu1 %v5694_v13  ;;  %v3281_v29 = vmax.f32 %v3153_v23, 0.0  ;;  %v4432_v37 = vunpack.c.l.bf16 %v4604_v12  ;;  %v4433_v39 = vunpack.c.h.bf16 %v4604_v12  ;;  %3723 = vmatpush1.bf16.msra.mxu1 %v5171_v47  ;;  %v4612_v47 = vld [vmem:[%s5805_s14 + $0x118] sm:$0xff]  }
 0x2c2   : > { %v3406_v22 = vadd.f32 %v3405_v1, %v3278_v20  ;;  %v3279_v24 = vmax.f32 %v3151_v21, 0.0  ;;  %v4436_v1 = vunpack.c.l.bf16 %v4605_v60 }
 0x2c4   : > { %v3407_v28 = vadd.f32 %v3406_v22, %v3279_v24  ;;  %v4607_v24 = vld [vmem:[%s5805_s14 + $0xf0] sm:$0xff]  }
 0x2c5   : > { %v4445_v12 = vunpack.c.h.bf16 %v4607_v24 }
 0x2c6   : > { %v3408_v30 = vadd.f32 %v3407_v28, %v3280_v27  ;;  %v4444_v28 = vunpack.c.l.bf16 %v4607_v24 }
 0x2c8   : > { %v3409_v32 = vadd.f32 %v3408_v30, %v3281_v29  ;;  %4842 = vmatmul.mubr.bf16.gmra.mrb[164].mxu1 %v5705_v44  ;;  %v4448_v30 = vunpack.c.l.bf16 %v4608_v26 }
 0x2c9   : > { %4845 = vmatprep.mubr.bf16.mxu1 %v5707_v45 }
 0x2ca   : > { %v4783_v13 = vpop.f32.mrb[104].mxu1 }
 0x2cb   : > { %v2543_v34 = vpop.f32.mrb[105].mxu1  ;;  %v2552_v35 = vadd.f32 %v5940_v36, %v4783_v13 }
 0x2cc   : > { %v2544_v38 = vadd.f32 %v5940_v36, %v2543_v34  ;;  %v4784_v40 = vpop.f32.mrb[106].mxu1 }
 0x2cd   : > { %v2546_v42 = vpop.f32.mrb[107].mxu1  ;;  %v2555_v48 = vadd.f32 %v5940_v36, %v4784_v40  ;;  %v3156_v45 = vadd.f32 %v4432_v37, %v2552_v35  ;;  %v4449_v35 = vunpack.c.h.bf16 %v4608_v26 }
 0x2ce   : > { %v3154_v43 = vadd.f32 %v4428_v33, %v2544_v38  ;;  %v2547_v44 = vadd.f32 %v5940_v36, %v2546_v42 }
 0x2cf   : > { %v3157_v54 = vadd.f32 %v4433_v39, %v2555_v48  ;;  %v3284_v56 = vmax.f32 %v3156_v45, 0.0 }
 0x2d0   : > { %v3282_v49 = vmax.f32 %v3154_v43, 0.0  ;;  %v3155_v52 = vadd.f32 %v4429_v41, %v2547_v44  ;;  %4846 = vmatmul.mubr.bf16.gmra.mrb[168].mxu1 %v5718_v14 }
 0x2d1   : > { %4849 = vmatprep.mubr.bf16.mxu1 %v5720_v15  ;;  %v3285_v58 = vmax.f32 %v3157_v54, 0.0  ;;  %v4440_v15 = vunpack.c.l.bf16 %v4606_v62  ;;  %v4610_v54 = vld [vmem:[%s5805_s14 + $0x108] sm:$0xff]  }
 0x2d2   : > { %v3410_v53 = vadd.f32 %v3409_v32, %v3282_v49  ;;  %v3283_v55 = vmax.f32 %v3155_v52, 0.0  ;;  %v4609_v52 = vld [vmem:[%s5805_s14 + $0x100] sm:$0xff]  }
 0x2d4   : > { %v3411_v57 = vadd.f32 %v3410_v53, %v3283_v55 }
 0x2d6   : > { %v3412_v59 = vadd.f32 %v3411_v57, %v3284_v56  ;;  %v4452_v56 = vunpack.c.l.bf16 %v4609_v52 }
 0x2d8   : > { %v3413_v61 = vadd.f32 %v3412_v59, %v3285_v58  ;;  %4850 = vmatmul.mubr.bf16.gmra.mrb[172].mxu1 %v5731_v50  ;;  %v4441_v50 = vunpack.c.h.bf16 %v4606_v62  ;;  %v4456_v59 = vunpack.c.l.bf16 %v4610_v54  ;;  %v4453_v62 = vunpack.c.h.bf16 %v4609_v52 }
 0x2d9   : > { %4853 = vmatprep.mubr.bf16.mxu1 %v5733_v51 }
 0x2da   : > { %v4787_v63 = vpop.f32.mrb[108].mxu1 }
 0x2db   : > { %v2559_v2 = vpop.f32.mrb[109].mxu1  ;;  %v2568_v14 = vadd.f32 %v5940_v36, %v4787_v63 }
 0x2dc   : > { %v2560_v3 = vadd.f32 %v5940_v36, %v2559_v2  ;;  %v4788_v4 = vpop.f32.mrb[110].mxu1 }
 0x2dd   : > { %v2562_v16 = vpop.f32.mrb[111].mxu1  ;;  %v2571_v7 = vadd.f32 %v5940_v36, %v4788_v4  ;;  %v3160_v8 = vadd.f32 %v4440_v15, %v2568_v14  ;;  %v4457_v14 = vunpack.c.h.bf16 %v4610_v54 }
 0x2de   : > { %v3158_v17 = vadd.f32 %v4436_v1, %v2560_v3  ;;  %v2563_v51 = vadd.f32 %v5940_v36, %v2562_v16 }
 0x2df   : > { %v3161_v11 = vadd.f32 %v4441_v50, %v2571_v7  ;;  %v3288_v20 = vmax.f32 %v3160_v8, 0.0  ;;  %v5174_v50 = vld [vmem:[%s5507_s19 + $0xa0] ss:$16 sps:$4 sm:$0xff]  }
 0x2e0   : > { %v3286_v18 = vmax.f32 %v3158_v17, 0.0  ;;  %v3159_v9 = vadd.f32 %v4437_v6, %v2563_v51  ;;  %4854 = vmatmul.mubr.bf16.gmra.mrb[176].mxu1 %v5742_v5  ;;  %v5176_v51 = vld [vmem:[%s5507_s19 + $0xa4] ss:$16 sps:$4 sm:$0xff]  }
 0x2e1   : > { %3746 = vmatprep.mubr.bf16.mxu1 %v5307_v0  ;;  %v3289_v22 = vmax.f32 %v3161_v11, 0.0  ;;  %3724 = vmatprep.subr.bf16.mxu1 %v5176_v51  ;;  %v4611_v11 = vld [vmem:[%s5805_s14 + $0x110] sm:$0xff]  }
 0x2e2   : > { %v3414_v10 = vadd.f32 %v3413_v61, %v3286_v18  ;;  %v3287_v46 = vmax.f32 %v3159_v9, 0.0  ;;  %3725 = vmatpush1.bf16.msra.mxu1 %v5174_v50  ;;  %v4461_v26 = vunpack.c.h.bf16 %v4611_v11  ;;  %v4616_v50 = vld [vmem:[%s5805_s14 + $0x138] sm:$0xff]  }
 0x2e4   : > { %v3415_v21 = vadd.f32 %v3414_v10, %v3287_v46 }
 0x2e6   : > { %v3416_v23 = vadd.f32 %v3415_v21, %v3288_v20  ;;  %v4460_v20 = vunpack.c.l.bf16 %v4611_v11 }
 0x2e8   : > { %v3417_v25 = vadd.f32 %v3416_v23, %v3289_v22  ;;  %v4464_v23 = vunpack.c.l.bf16 %v4612_v47 }
 0x2ea   : > { %v4791_v27 = vpop.f32.mrb[112].mxu1 }
 0x2eb   : > { %v2575_v29 = vpop.f32.mrb[113].mxu1  ;;  %v2584_v5 = vadd.f32 %v5940_v36, %v4791_v27 }
 0x2ec   : > { %v2576_v31 = vadd.f32 %v5940_v36, %v2575_v29  ;;  %v4792_v32 = vpop.f32.mrb[114].mxu1 }
 0x2ed   : > { %v2578_v13 = vpop.f32.mrb[115].mxu1  ;;  %v2587_v34 = vadd.f32 %v5940_v36, %v4792_v32  ;;  %v3164_v38 = vadd.f32 %v4448_v30, %v2584_v5  ;;  %v4465_v5 = vunpack.c.h.bf16 %v4612_v47 }
 0x2ee   : > { %v3162_v33 = vadd.f32 %v4444_v28, %v2576_v31  ;;  %v2579_v37 = vadd.f32 %v5940_v36, %v2578_v13 }
 0x2ef   : > { %v3165_v43 = vadd.f32 %v4449_v35, %v2587_v34  ;;  %v3292_v39 = vmax.f32 %v3164_v38, 0.0 }
 0x2f0   : > { %v3290_v40 = vmax.f32 %v3162_v33, 0.0  ;;  %v3163_v41 = vadd.f32 %v4445_v12, %v2579_v37 }
 0x2f1   : > { %v3293_v45 = vmax.f32 %v3165_v43, 0.0  ;;  %v4614_v43 = vld [vmem:[%s5805_s14 + $0x128] sm:$0xff]  }
 0x2f2   : > { %v3418_v42 = vadd.f32 %v3417_v25, %v3290_v40  ;;  %v3291_v48 = vmax.f32 %v3163_v41, 0.0  ;;  %v4613_v41 = vld [vmem:[%s5805_s14 + $0x120] sm:$0xff]  }
 0x2f3   : > { %v4469_v54 = vunpack.c.h.bf16 %v4613_v41 }
 0x2f4   : > { %v3419_v44 = vadd.f32 %v3418_v42, %v3291_v48 }
 0x2f6   : > { %v3420_v49 = vadd.f32 %v3419_v44, %v3292_v39  ;;  %v4468_v39 = vunpack.c.l.bf16 %v4613_v41 }
 0x2f8   : > { %v3421_v53 = vadd.f32 %v3420_v49, %v3293_v45  ;;  %v4472_v49 = vunpack.c.l.bf16 %v4614_v43 }
 0x2fa   : > { %v4795_v55 = vpop.f32.mrb[116].mxu1 }
 0x2fb   : > { %v2591_v57 = vpop.f32.mrb[117].mxu1  ;;  %v2600_v58 = vadd.f32 %v5940_v36, %v4795_v55 }
 0x2fc   : > { %v2592_v60 = vadd.f32 %v5940_v36, %v2591_v57  ;;  %v4796_v61 = vpop.f32.mrb[118].mxu1 }
 0x2fd   : > { %v2594_v63 = vpop.f32.mrb[119].mxu1  ;;  %v2603_v2 = vadd.f32 %v5940_v36, %v4796_v61  ;;  %v3168_v3 = vadd.f32 %v4456_v59, %v2600_v58  ;;  %v4473_v58 = vunpack.c.h.bf16 %v4614_v43 }
 0x2fe   : > { %v3166_v1 = vadd.f32 %v4452_v56, %v2592_v60  ;;  %v2595_v15 = vadd.f32 %v5940_v36, %v2594_v63 }
 0x2ff   : > { %v3169_v17 = vadd.f32 %v4457_v14, %v2603_v2  ;;  %v3296_v8 = vmax.f32 %v3168_v3, 0.0  ;;  %v5177_v14 = vld [vmem:[%s5507_s19 + $0xc0] ss:$16 sps:$4 sm:$0xff]  }
 0x300   : > { %v3294_v4 = vmax.f32 %v3166_v1, 0.0  ;;  %v3167_v6 = vadd.f32 %v4453_v62, %v2595_v15  ;;  %v5179_v15 = vld [vmem:[%s5507_s19 + $0xc4] ss:$16 sps:$4 sm:$0xff]  }
 0x301   : > { %v3297_v9 = vmax.f32 %v3169_v17, 0.0  ;;  %3726 = vmatprep.subr.bf16.mxu1 %v5179_v15  ;;  %v4615_v17 = vld [vmem:[%s5805_s14 + $0x130] sm:$0xff]  }
 0x302   : > { %v3422_v16 = vadd.f32 %v3421_v53, %v3294_v4  ;;  %v3295_v7 = vmax.f32 %v3167_v6, 0.0  ;;  %3727 = vmatpush1.bf16.msra.mxu1 %v5177_v14  ;;  %v4477_v47 = vunpack.c.h.bf16 %v4615_v17 }
 0x304   : > { %v3423_v18 = vadd.f32 %v3422_v16, %v3295_v7 }
 0x306   : > { %v3424_v10 = vadd.f32 %v3423_v18, %v3296_v8  ;;  %v4476_v8 = vunpack.c.l.bf16 %v4615_v17 }
 0x308   : > { %v3425_v46 = vadd.f32 %v3424_v10, %v3297_v9  ;;  %v4480_v10 = vunpack.c.l.bf16 %v4616_v50 }
 0x30a   : > { %v4799_v19 = vpop.f32.mrb[120].mxu1 }
 0x30b   : > { %v2607_v21 = vpop.f32.mrb[121].mxu1  ;;  %v2616_v22 = vadd.f32 %v5940_v36, %v4799_v19 }
 0x30c   : > { %v2608_v24 = vadd.f32 %v5940_v36, %v2607_v21  ;;  %v4800_v25 = vpop.f32.mrb[122].mxu1 }
 0x30d   : > { %v2610_v27 = vpop.f32.mrb[123].mxu1  ;;  %v2619_v29 = vadd.f32 %v5940_v36, %v4800_v25  ;;  %v3172_v31 = vadd.f32 %v4464_v23, %v2616_v22  ;;  %v4481_v22 = vunpack.c.h.bf16 %v4616_v50 }
 0x30e   : > { %v3170_v28 = vadd.f32 %v4460_v20, %v2608_v24  ;;  %v2611_v30 = vadd.f32 %v5940_v36, %v2610_v27 }
 0x30f   : > { %v3173_v33 = vadd.f32 %v4465_v5, %v2619_v29  ;;  %v3300_v35 = vmax.f32 %v3172_v31, 0.0 }
 0x310   : > { %v3298_v32 = vmax.f32 %v3170_v28, 0.0  ;;  %v3171_v12 = vadd.f32 %v4461_v26, %v2611_v30 }
 0x311   : > { %v3301_v38 = vmax.f32 %v3173_v33, 0.0  ;;  %v4618_v33 = vld [vmem:[%s5805_s14 + $0x148] sm:$0xff]  }
 0x312   : > { %v3426_v13 = vadd.f32 %v3425_v46, %v3298_v32  ;;  %v3299_v34 = vmax.f32 %v3171_v12, 0.0  ;;  %v4617_v12 = vld [vmem:[%s5805_s14 + $0x140] sm:$0xff]  }
 0x313   : > { %v4485_v43 = vunpack.c.h.bf16 %v4617_v12 }
 0x314   : > { %v3427_v37 = vadd.f32 %v3426_v13, %v3299_v34 }
 0x316   : > { %v3428_v40 = vadd.f32 %v3427_v37, %v3300_v35  ;;  %v4484_v35 = vunpack.c.l.bf16 %v4617_v12 }
 0x318   : > { %v3429_v42 = vadd.f32 %v3428_v40, %v3301_v38  ;;  %v4488_v40 = vunpack.c.l.bf16 %v4618_v33 }
 0x31a   : > { %v4803_v48 = vpop.f32.mrb[124].mxu1 }
 0x31b   : > { %v2623_v44 = vpop.f32.mrb[125].mxu1  ;;  %v2632_v45 = vadd.f32 %v5940_v36, %v4803_v48  ;;  %v5308_v48 = vmov 0.0  }
 0x31c   : > { %v2624_v52 = vadd.f32 %v5940_v36, %v2623_v44  ;;  %v4804_v53 = vpop.f32.mrb[126].mxu1  ;;  %516 = vst [vmem:[#allocation2] sm:$0x1] %v5308_v48 }
 0x31d   : > { %v2626_v55 = vpop.f32.mrb[127].mxu1  ;;  %v2635_v57 = vadd.f32 %v5940_v36, %v4804_v53  ;;  %v3176_v60 = vadd.f32 %v4472_v49, %v2632_v45  ;;  %v4489_v49 = vunpack.c.h.bf16 %v4618_v33 }
 0x31e   : > { %v3174_v56 = vadd.f32 %v4468_v39, %v2624_v52  ;;  %v2627_v59 = vadd.f32 %v5940_v36, %v2626_v55 }
 0x31f   : > { %v3177_v1 = vadd.f32 %v4473_v58, %v2635_v57  ;;  %v3304_v3 = vmax.f32 %v3176_v60, 0.0 }
 0x320   : > { %v3302_v61 = vmax.f32 %v3174_v56, 0.0  ;;  %v3175_v62 = vadd.f32 %v4469_v54, %v2627_v59 }
 0x321   : > { %v3305_v6 = vmax.f32 %v3177_v1, 0.0 }
 0x322   : > { %v3430_v63 = vadd.f32 %v3429_v42, %v3302_v61  ;;  %v3303_v2 = vmax.f32 %v3175_v62, 0.0 }
 0x324   : > { %v3431_v4 = vadd.f32 %v3430_v63, %v3303_v2  ;;  %v4619_v63 = vld [vmem:[%s5805_s14 + $0x150] sm:$0xff]   ;;  %v4620_v2 = vld [vmem:[%s5805_s14 + $0x158] sm:$0xff]  }
 0x325   : > { %v4492_v15 = vunpack.c.l.bf16 %v4619_v63 }
 0x326   : > { %v3432_v16 = vadd.f32 %v3431_v4, %v3304_v3 }
 0x328   : > { %v3433_v7 = vadd.f32 %v3432_v16, %v3305_v6  ;;  %v4496_v6 = vunpack.c.l.bf16 %v4620_v2 }
 0x32a   : > { %v4807_v51 = vpop.f32.mrb[128].mxu1 }
 0x32b   : > { %v2639_v18 = vpop.f32.mrb[129].mxu1  ;;  %v2648_v9 = vadd.f32 %v5940_v36, %v4807_v51 }
 0x32c   : > { %v2640_v11 = vadd.f32 %v5940_v36, %v2639_v18  ;;  %v4808_v46 = vpop.f32.mrb[130].mxu1  ;;  %v4497_v18 = vunpack.c.h.bf16 %v4620_v2 }
 0x32d   : > { %v2642_v19 = vpop.f32.mrb[131].mxu1  ;;  %v2651_v21 = vadd.f32 %v5940_v36, %v4808_v46  ;;  %v3180_v24 = vadd.f32 %v4480_v10, %v2648_v9 }
 0x32e   : > { %v3178_v20 = vadd.f32 %v4476_v8, %v2640_v11  ;;  %v2643_v23 = vadd.f32 %v5940_v36, %v2642_v19  ;;  %v5182_v19 = vld [vmem:[%s5507_s19 + $0xe4] ss:$16 sps:$4 sm:$0xff]  }
 0x32f   : > { %v3181_v28 = vadd.f32 %v4481_v22, %v2651_v21  ;;  %v3308_v5 = vmax.f32 %v3180_v24, 0.0  ;;  %3728 = vmatprep.subr.bf16.mxu1 %v5182_v19 }
 0x330   : > { %v3306_v25 = vmax.f32 %v3178_v20, 0.0  ;;  %v3179_v26 = vadd.f32 %v4477_v47, %v2643_v23  ;;  %v5180_v47 = vld [vmem:[%s5507_s19 + $0xe0] ss:$16 sps:$4 sm:$0xff]   ;;  %v5185_v23 = vld [vmem:[%s5507_s19 + $0xc] ss:$16 sps:$4 sm:$0xff]  }
 0x331   : > { %v3309_v31 = vmax.f32 %v3181_v28, 0.0  ;;  %3729 = vmatpush1.bf16.msra.mxu1 %v5180_v47  ;;  %v4621_v28 = vld [vmem:[%s5805_s14 + $0x160] sm:$0xff]  }
 0x332   : > { %v3434_v27 = vadd.f32 %v3433_v7, %v3306_v25  ;;  %v3307_v29 = vmax.f32 %v3179_v26, 0.0  ;;  %v4493_v7 = vunpack.c.h.bf16 %v4619_v63  ;;  %3755 = vmatprep.subr.bf16.mxu1 %v5185_v23  ;;  %v4625_v47 = vld [vmem:[%s5805_s14 + $0x180] sm:$0xff]  }
 0x334   : > { %v3435_v30 = vadd.f32 %v3434_v27, %v3307_v29 }
 0x336   : > { %v3436_v32 = vadd.f32 %v3435_v30, %v3308_v5  ;;  %v4622_v5 = vld [vmem:[%s5805_s14 + $0x168] sm:$0xff]  }
 0x338   : > { %v3437_v13 = vadd.f32 %v3436_v32, %v3309_v31  ;;  %v4500_v31 = vunpack.c.l.bf16 %v4621_v28 }
 0x33a   : > { %v4811_v34 = vpop.f32.mrb[132].mxu1 }
 0x33b   : > { %v2655_v37 = vpop.f32.mrb[133].mxu1  ;;  %v2664_v38 = vadd.f32 %v5940_v36, %v4811_v34 }
 0x33c   : > { %v2656_v41 = vadd.f32 %v5940_v36, %v2655_v37  ;;  %v4812_v42 = vpop.f32.mrb[134].mxu1 }
 0x33d   : > { %v2658_v39 = vpop.f32.mrb[135].mxu1  ;;  %v2667_v45 = vadd.f32 %v5940_v36, %v4812_v42  ;;  %v3184_v53 = vadd.f32 %v4488_v40, %v2664_v38 }
 0x33e   : > { %v3182_v44 = vadd.f32 %v4484_v35, %v2656_v41  ;;  %v2659_v52 = vadd.f32 %v5940_v36, %v2658_v39  ;;  %v4501_v35 = vunpack.c.h.bf16 %v4621_v28  ;;  %v4505_v41 = vunpack.c.h.bf16 %v4622_v5 }
 0x33f   : > { %v3185_v57 = vadd.f32 %v4489_v49, %v2667_v45  ;;  %v3312_v59 = vmax.f32 %v3184_v53, 0.0  ;;  %v4517_v28 = vunpack.c.h.bf16 %v4625_v47 }
 0x340   : > { %v3310_v54 = vmax.f32 %v3182_v44, 0.0  ;;  %v3183_v55 = vadd.f32 %v4485_v43, %v2659_v52 }
 0x341   : > { %v3313_v61 = vmax.f32 %v3185_v57, 0.0 }
 0x342   : > { %v3438_v56 = vadd.f32 %v3437_v13, %v3310_v54  ;;  %v3311_v58 = vmax.f32 %v3183_v55, 0.0  ;;  %v4504_v13 = vunpack.c.l.bf16 %v4622_v5 }
 0x344   : > { %v3439_v60 = vadd.f32 %v3438_v56, %v3311_v58  ;;  %v4623_v56 = vld [vmem:[%s5805_s14 + $0x170] sm:$0xff]   ;;  %v4624_v58 = vld [vmem:[%s5805_s14 + $0x178] sm:$0xff]  }
 0x345   : > { %v4512_v63 = vunpack.c.l.bf16 %v4624_v58 }
 0x346   : > { %v3440_v62 = vadd.f32 %v3439_v60, %v3312_v59  ;;  %v4508_v60 = vunpack.c.l.bf16 %v4623_v56 }
 0x348   : > { %v3441_v1 = vadd.f32 %v3440_v62, %v3313_v61 }
 0x34a   : > { %v4815_v14 = vpop.f32.mrb[136].mxu1 }
 0x34b   : > { %v2671_v3 = vpop.f32.mrb[137].mxu1  ;;  %v2680_v4 = vadd.f32 %v5940_v36, %v4815_v14  ;;  %v4509_v14 = vunpack.c.h.bf16 %v4623_v56 }
 0x34c   : > { %v2672_v16 = vadd.f32 %v5940_v36, %v2671_v3  ;;  %v4816_v17 = vpop.f32.mrb[138].mxu1 }
 0x34d   : > { %v2674_v50 = vpop.f32.mrb[139].mxu1  ;;  %v2683_v8 = vadd.f32 %v5940_v36, %v4816_v17  ;;  %v3188_v10 = vadd.f32 %v4496_v6, %v2680_v4  ;;  %v4513_v6 = vunpack.c.h.bf16 %v4624_v58 }
 0x34e   : > { %v3186_v51 = vadd.f32 %v4492_v15, %v2672_v16  ;;  %v2675_v9 = vadd.f32 %v5940_v36, %v2674_v50 }
 0x34f   : > { %v3189_v21 = vadd.f32 %v4497_v18, %v2683_v8  ;;  %v3316_v24 = vmax.f32 %v3188_v10, 0.0 }
 0x350   : > { %v3314_v11 = vmax.f32 %v3186_v51, 0.0  ;;  %v3187_v46 = vadd.f32 %v4493_v7, %v2675_v9 }
 0x351   : > { %v3317_v26 = vmax.f32 %v3189_v21, 0.0 }
 0x352   : > { %v3442_v20 = vadd.f32 %v3441_v1, %v3314_v11  ;;  %v3315_v22 = vmax.f32 %v3187_v46, 0.0 }
 0x354   : > { %v3443_v25 = vadd.f32 %v3442_v20, %v3315_v22  ;;  %v4626_v20 = vld [vmem:[%s5805_s14 + $0x188] sm:$0xff]   ;;  %v4516_v22 = vunpack.c.l.bf16 %v4625_v47 }
 0x356   : > { %v3444_v27 = vadd.f32 %v3443_v25, %v3316_v24  ;;  %v4520_v25 = vunpack.c.l.bf16 %v4626_v20 }
 0x358   : > { %v3445_v29 = vadd.f32 %v3444_v27, %v3317_v26 }
 0x35a   : > { %v4819_v30 = vpop.f32.mrb[140].mxu1 }
 0x35b   : > { %v2687_v32 = vpop.f32.mrb[141].mxu1  ;;  %v2696_v12 = vadd.f32 %v5940_v36, %v4819_v30 }
 0x35c   : > { %v2688_v33 = vadd.f32 %v5940_v36, %v2687_v32  ;;  %v4820_v34 = vpop.f32.mrb[142].mxu1 }
 0x35d   : > { %v2690_v37 = vpop.f32.mrb[143].mxu1  ;;  %v2699_v40 = vadd.f32 %v5940_v36, %v4820_v34  ;;  %v3192_v43 = vadd.f32 %v4504_v13, %v2696_v12  ;;  %v4627_v34 = vld [vmem:[%s5805_s14 + $0x190] sm:$0xff]  }
 0x35e   : > { %v3190_v38 = vadd.f32 %v4500_v31, %v2688_v33  ;;  %v2691_v42 = vadd.f32 %v5940_v36, %v2690_v37  ;;  %v4521_v31 = vunpack.c.h.bf16 %v4626_v20 }
 0x35f   : > { %v3193_v45 = vadd.f32 %v4505_v41, %v2699_v40  ;;  %v3320_v52 = vmax.f32 %v3192_v43, 0.0  ;;  %v4628_v40 = vld [vmem:[%s5805_s14 + $0x198] sm:$0xff]  }
 0x360   : > { %v3318_v48 = vmax.f32 %v3190_v38, 0.0  ;;  %v3191_v39 = vadd.f32 %v4501_v35, %v2691_v42  ;;  %v4524_v42 = vunpack.c.l.bf16 %v4627_v34 }
 0x361   : > { %v3321_v54 = vmax.f32 %v3193_v45, 0.0  ;;  %v4528_v45 = vunpack.c.l.bf16 %v4628_v40 }
 0x362   : > { %v3446_v44 = vadd.f32 %v3445_v29, %v3318_v48  ;;  %v3319_v49 = vmax.f32 %v3191_v39, 0.0 }
 0x364   : > { %v3447_v53 = vadd.f32 %v3446_v44, %v3319_v49 }
 0x366   : > { %v3448_v55 = vadd.f32 %v3447_v53, %v3320_v52  ;;  %v4525_v53 = vunpack.c.h.bf16 %v4627_v34 }
 0x368   : > { %v3449_v57 = vadd.f32 %v3448_v55, %v3321_v54 }
 0x36a   : > { %v4823_v59 = vpop.f32.mrb[144].mxu1 }
 0x36b   : > { %v2703_v61 = vpop.f32.mrb[145].mxu1  ;;  %v2712_v62 = vadd.f32 %v5940_v36, %v4823_v59  ;;  %v4529_v59 = vunpack.c.h.bf16 %v4628_v40 }
 0x36c   : > { %v2704_v1 = vadd.f32 %v5940_v36, %v2703_v61  ;;  %v4824_v2 = vpop.f32.mrb[146].mxu1 }
 0x36d   : > { %v2706_v15 = vpop.f32.mrb[147].mxu1  ;;  %v2715_v4 = vadd.f32 %v5940_v36, %v4824_v2  ;;  %v3196_v17 = vadd.f32 %v4512_v63, %v2712_v62  ;;  %v4629_v62 = vld [vmem:[%s5805_s14 + $0x1a0] sm:$0xff]  }
 0x36e   : > { %v3194_v3 = vadd.f32 %v4508_v60, %v2704_v1  ;;  %v2707_v16 = vadd.f32 %v5940_v36, %v2706_v15 }
 0x36f   : > { %v3197_v8 = vadd.f32 %v4513_v6, %v2715_v4  ;;  %v3324_v9 = vmax.f32 %v3196_v17, 0.0 }
 0x370   : > { %v3322_v7 = vmax.f32 %v3194_v3, 0.0  ;;  %v3195_v50 = vadd.f32 %v4509_v14, %v2707_v16  ;;  %v4630_v14 = vld [vmem:[%s5805_s14 + $0x1a8] sm:$0xff]   ;;  %v4532_v16 = vunpack.c.l.bf16 %v4629_v62 }
 0x371   : > { %v3325_v11 = vmax.f32 %v3197_v8, 0.0  ;;  %v4536_v17 = vunpack.c.l.bf16 %v4630_v14 }
 0x372   : > { %v3450_v51 = vadd.f32 %v3449_v57, %v3322_v7  ;;  %v3323_v18 = vmax.f32 %v3195_v50, 0.0  ;;  %v4533_v50 = vunpack.c.h.bf16 %v4629_v62 }
 0x374   : > { %v3451_v10 = vadd.f32 %v3450_v51, %v3323_v18 }
 0x376   : > { %v3452_v46 = vadd.f32 %v3451_v10, %v3324_v9 }
 0x378   : > { %v3453_v19 = vadd.f32 %v3452_v46, %v3325_v11  ;;  %v4537_v46 = vunpack.c.h.bf16 %v4630_v14 }
 0x37a   : > { %v4827_v21 = vpop.f32.mrb[148].mxu1 }
 0x37b   : > { %v2719_v23 = vpop.f32.mrb[149].mxu1  ;;  %v2728_v24 = vadd.f32 %v5940_v36, %v4827_v21 }
 0x37c   : > { %v2720_v26 = vadd.f32 %v5940_v36, %v2719_v23  ;;  %v4828_v27 = vpop.f32.mrb[150].mxu1  ;;  %v4631_v23 = vld [vmem:[%s5805_s14 + $0x1b0] sm:$0xff]  }
 0x37d   : > { %v2722_v29 = vpop.f32.mrb[151].mxu1  ;;  %v2731_v30 = vadd.f32 %v5940_v36, %v4828_v27  ;;  %v3200_v12 = vadd.f32 %v4520_v25, %v2728_v24 }
 0x37e   : > { %v3198_v5 = vadd.f32 %v4516_v22, %v2720_v26  ;;  %v2723_v32 = vadd.f32 %v5940_v36, %v2722_v29 }
 0x37f   : > { %v3201_v37 = vadd.f32 %v4521_v31, %v2731_v30  ;;  %v3328_v43 = vmax.f32 %v3200_v12, 0.0 }
 0x380   : > { %v3326_v13 = vmax.f32 %v3198_v5, 0.0  ;;  %v3199_v33 = vadd.f32 %v4517_v28, %v2723_v32  ;;  %v4632_v28 = vld [vmem:[%s5805_s14 + $0x1b8] sm:$0xff]   ;;  %v4540_v32 = vunpack.c.l.bf16 %v4631_v23 }
 0x381   : > { %v3329_v54 = vmax.f32 %v3201_v37, 0.0  ;;  %v4544_v12 = vunpack.c.l.bf16 %v4632_v28 }
 0x382   : > { %v3454_v35 = vadd.f32 %v3453_v19, %v3326_v13  ;;  %v3327_v38 = vmax.f32 %v3199_v33, 0.0  ;;  %v4541_v33 = vunpack.c.h.bf16 %v4631_v23 }
 0x383   : > { %v4831_v41 = vpop.f32.mrb[152].mxu1 }
 0x384   : > { %v3455_v48 = vadd.f32 %v3454_v35, %v3327_v38  ;;  %v2735_v39 = vpop.f32.mrb[153].mxu1  ;;  %v2744_v44 = vadd.f32 %v5940_v36, %v4831_v41 }
 0x385   : > { %v2736_v49 = vadd.f32 %v5940_v36, %v2735_v39  ;;  %v4832_v52 = vpop.f32.mrb[154].mxu1 }
 0x386   : > { %v3456_v55 = vadd.f32 %v3455_v48, %v3328_v43  ;;  %v2738_v56 = vpop.f32.mrb[155].mxu1  ;;  %v2747_v58 = vadd.f32 %v5940_v36, %v4832_v52  ;;  %v3204_v63 = vadd.f32 %v4528_v45, %v2744_v44 }
 0x387   : > { %v3202_v57 = vadd.f32 %v4524_v42, %v2736_v49  ;;  %v2739_v60 = vadd.f32 %v5940_v36, %v2738_v56  ;;  %v4545_v42 = vunpack.c.h.bf16 %v4632_v28  ;;  %v4633_v49 = vld [vmem:[%s5805_s14 + $0x1c0] sm:$0xff]   ;;  %v4634_v56 = vld [vmem:[%s5805_s14 + $0x1c8] sm:$0xff]  }
 0x388   : > { %v3457_v61 = vadd.f32 %v3456_v55, %v3329_v54  ;;  %v3205_v3 = vadd.f32 %v4529_v59, %v2747_v58  ;;  %v3332_v51 = vmax.f32 %v3204_v63, 0.0  ;;  %v4552_v62 = vunpack.c.l.bf16 %v4634_v56 }
 0x389   : > { %v3330_v1 = vmax.f32 %v3202_v57, 0.0  ;;  %v3203_v2 = vadd.f32 %v4525_v53, %v2739_v60 }
 0x38a   : > { %v3333_v19 = vmax.f32 %v3205_v3, 0.0 }
 0x38b   : > { %v3458_v15 = vadd.f32 %v3457_v61, %v3330_v1  ;;  %v3331_v4 = vmax.f32 %v3203_v2, 0.0  ;;  %v4835_v6 = vpop.f32.mrb[156].mxu1  ;;  %v4548_v61 = vunpack.c.l.bf16 %v4633_v49  ;;  %v4549_v1 = vunpack.c.h.bf16 %v4633_v49 }
 0x38c   : > { %v2751_v7 = vpop.f32.mrb[157].mxu1  ;;  %v2760_v18 = vadd.f32 %v5940_v36, %v4835_v6 }
 0x38d   : > { %v3459_v8 = vadd.f32 %v3458_v15, %v3331_v4  ;;  %v2752_v9 = vadd.f32 %v5940_v36, %v2751_v7  ;;  %v4836_v10 = vpop.f32.mrb[158].mxu1 }
 0x38e   : > { %v2763_v11 = vadd.f32 %v5940_v36, %v4836_v10  ;;  %v2754_v47 = vpop.f32.mrb[159].mxu1  ;;  %v3208_v24 = vadd.f32 %v4536_v17, %v2760_v18  ;;  %v4635_v18 = vld [vmem:[%s5805_s14 + $0x1d0] sm:$0xff]  }
 0x38f   : > { %v3460_v20 = vadd.f32 %v3459_v8, %v3332_v51  ;;  %v3206_v21 = vadd.f32 %v4532_v16, %v2752_v9  ;;  %v2755_v22 = vadd.f32 %v5940_v36, %v2754_v47  ;;  %v4553_v16 = vunpack.c.h.bf16 %v4634_v56  ;;  %v4636_v47 = vld [vmem:[%s5805_s14 + $0x1d8] sm:$0xff]  }
 0x390   : > { %v3209_v29 = vadd.f32 %v4537_v46, %v2763_v11  ;;  %v3336_v34 = vmax.f32 %v3208_v24, 0.0  ;;  %v4556_v23 = vunpack.c.l.bf16 %v4635_v18  ;;  %v4560_v24 = vunpack.c.l.bf16 %v4636_v47 }
 0x391   : > { %v3334_v25 = vmax.f32 %v3206_v21, 0.0  ;;  %v3461_v26 = vadd.f32 %v3460_v20, %v3333_v19  ;;  %v3207_v27 = vadd.f32 %v4533_v50, %v2755_v22 }
 0x392   : > { %v3337_v41 = vmax.f32 %v3209_v29, 0.0 }
 0x393   : > { %v3462_v5 = vadd.f32 %v3461_v26, %v3334_v25  ;;  %v3335_v30 = vmax.f32 %v3207_v27, 0.0  ;;  %v4839_v31 = vpop.f32.mrb[160].mxu1  ;;  %v4557_v26 = vunpack.c.h.bf16 %v4635_v18 }
 0x394   : > { %v2767_v13 = vpop.f32.mrb[161].mxu1  ;;  %v2776_v37 = vadd.f32 %v5940_v36, %v4839_v31 }
 0x395   : > { %v3463_v35 = vadd.f32 %v3462_v5, %v3335_v30  ;;  %v2768_v38 = vadd.f32 %v5940_v36, %v2767_v13  ;;  %v4840_v40 = vpop.f32.mrb[162].mxu1 }
 0x396   : > { %v2770_v43 = vpop.f32.mrb[163].mxu1  ;;  %v2779_v44 = vadd.f32 %v5940_v36, %v4840_v40  ;;  %v3212_v52 = vadd.f32 %v4544_v12, %v2776_v37 }
 0x397   : > { %v3464_v48 = vadd.f32 %v3463_v35, %v3336_v34  ;;  %v3210_v39 = vadd.f32 %v4540_v32, %v2768_v38  ;;  %v2771_v45 = vadd.f32 %v5940_v36, %v2770_v43  ;;  %v4561_v32 = vunpack.c.h.bf16 %v4636_v47  ;;  %v5210_v34 = vld [vmem:[%s5811_s2] ss:$0 sm:$0xff]  ;;  %s4068_s2 = sshll.u32 %s5431_s24, 2 }
 0x398   : > { %v3213_v58 = vadd.f32 %v4545_v42, %v2779_v44  ;;  %v3340_v2 = vmax.f32 %v3212_v52, 0.0  ;;  %v4637_v38 = vld [vmem:[%s5805_s14 + $0x1e0] sm:$0xff]   ;;  %s510_s26 = scalar_lea.vmem %s6189_s7, %s4068_s2  ;;  %s3867_s2 = scalar_lea.sflag [#allocation4], %s454_s0 }
 0x399   : > { %v3338_v53 = vmax.f32 %v3210_v39, 0.0  ;;  %v3465_v54 = vadd.f32 %v3464_v48, %v3337_v41  ;;  %v3211_v55 = vadd.f32 %v4541_v33, %v2771_v45  ;;  %v4638_v48 = vld [vmem:[%s5805_s14 + $0x1e8] sm:$0xff]  }
 0x39a   : > { %v3341_v7 = vmax.f32 %v3213_v58, 0.0  ;;  %v4568_v52 = vunpack.c.l.bf16 %v4638_v48 }
 0x39b   : > { %v3466_v57 = vadd.f32 %v3465_v54, %v3338_v53  ;;  %v3339_v59 = vmax.f32 %v3211_v55, 0.0  ;;  %v4843_v60 = vpop.f32.mrb[164].mxu1  ;;  %v4565_v54 = vunpack.c.h.bf16 %v4637_v38 }
 0x39c   : > { %v2783_v63 = vpop.f32.mrb[165].mxu1  ;;  %v2792_v15 = vadd.f32 %v5940_v36, %v4843_v60 }
 0x39d   : > { %v3467_v14 = vadd.f32 %v3466_v57, %v3339_v59  ;;  %v2784_v3 = vadd.f32 %v5940_v36, %v2783_v63  ;;  %v4844_v4 = vpop.f32.mrb[166].mxu1 }
 0x39e   : > { %v2795_v6 = vadd.f32 %v5940_v36, %v4844_v4  ;;  %v2786_v17 = vpop.f32.mrb[167].mxu1  ;;  %v3216_v9 = vadd.f32 %v4552_v62, %v2792_v15  ;;  %v4639_v15 = vld [vmem:[%s5805_s14 + $0x1f0] sm:$0xff]  }
 0x39f   : > { %v3468_v50 = vadd.f32 %v3467_v14, %v3340_v2  ;;  %v3214_v51 = vadd.f32 %v4548_v61, %v2784_v3  ;;  %v2787_v8 = vadd.f32 %v5940_v36, %v2786_v17  ;;  %v4569_v61 = vunpack.c.h.bf16 %v4638_v48  ;;  %v4640_v17 = vld [vmem:[%s5805_s14 + $0x1f8] sm:$0xff]  }
 0x3a0   : > { %v3217_v19 = vadd.f32 %v4553_v16, %v2795_v6  ;;  %v3344_v27 = vmax.f32 %v3216_v9, 0.0  ;;  %v4572_v18 = vunpack.c.l.bf16 %v4639_v15  ;;  %v4576_v9 = vunpack.c.l.bf16 %v4640_v17 }
 0x3a1   : > { %v3342_v10 = vmax.f32 %v3214_v51, 0.0  ;;  %v3469_v11 = vadd.f32 %v3468_v50, %v3341_v7  ;;  %v3215_v46 = vadd.f32 %v4549_v1, %v2787_v8 }
 0x3a2   : > { %v3345_v31 = vmax.f32 %v3217_v19, 0.0 }
 0x3a3   : > { %v3470_v20 = vadd.f32 %v3469_v11, %v3342_v10  ;;  %v3343_v21 = vmax.f32 %v3215_v46, 0.0  ;;  %v4847_v22 = vpop.f32.mrb[168].mxu1  ;;  %v4573_v11 = vunpack.c.h.bf16 %v4639_v15  ;;  %v3694_v15 = vlaneseq }
 0x3a4   : > { %v2799_v25 = vpop.f32.mrb[169].mxu1  ;;  %v2808_v29 = vadd.f32 %v5940_v36, %v4847_v22 }
 0x3a5   : > { %v3471_v28 = vadd.f32 %v3470_v20, %v3343_v21  ;;  %v2800_v5 = vadd.f32 %v5940_v36, %v2799_v25  ;;  %v4848_v30 = vpop.f32.mrb[170].mxu1  ;;  %v4564_v36 = vunpack.c.l.bf16 %v4637_v38 }
 0x3a6   : > { %v2802_v12 = vpop.f32.mrb[171].mxu1  ;;  %v2811_v35 = vadd.f32 %v5210_v34, %v4848_v30  ;;  %v3220_v40 = vadd.f32 %v4560_v24, %v2808_v29 }
 0x3a7   : > { %v3472_v13 = vadd.f32 %v3471_v28, %v3344_v27  ;;  %v3218_v33 = vadd.f32 %v4556_v23, %v2800_v5  ;;  %v2803_v37 = vadd.f32 %v5210_v34, %v2802_v12  ;;  %v4577_v23 = vunpack.c.h.bf16 %v4640_v17 }
 0x3a8   : > { %v3221_v44 = vadd.f32 %v4561_v32, %v2811_v35  ;;  %v3348_v55 = vmax.f32 %v3220_v40, 0.0 }
 0x3a9   : > { %v3346_v41 = vmax.f32 %v3218_v33, 0.0  ;;  %v3473_v42 = vadd.f32 %v3472_v13, %v3345_v31  ;;  %v3219_v43 = vadd.f32 %v4557_v26, %v2803_v37 }
 0x3aa   : > { %v3349_v63 = vmax.f32 %v3221_v44, 0.0 }
 0x3ab   : > { %v3474_v39 = vadd.f32 %v3473_v42, %v3346_v41  ;;  %v3347_v45 = vmax.f32 %v3219_v43, 0.0  ;;  %v4851_v49 = vpop.f32.mrb[172].mxu1 }
 0x3ac   : > { %v2815_v53 = vpop.f32.mrb[173].mxu1  ;;  %v2824_v57 = vadd.f32 %v5210_v34, %v4851_v49 }
 0x3ad   : > { %v3475_v56 = vadd.f32 %v3474_v39, %v3347_v45  ;;  %v2816_v58 = vadd.f32 %v5210_v34, %v2815_v53  ;;  %v4852_v59 = vpop.f32.mrb[174].mxu1  ;;  %v3358_v39 = vld [vmem:[#allocation2] sm:$0x1] }
 0x3ae   : > { %v2827_v60 = vadd.f32 %v5210_v34, %v4852_v59  ;;  %v2818_v62 = vpop.f32.mrb[175].mxu1  ;;  %v3224_v3 = vadd.f32 %v4568_v52, %v2824_v57  ;;  %v5183_v52 = vld [vmem:[%s5507_s19 + $0x8] ss:$16 sps:$4 sm:$0xff]  }
 0x3af   : > { %v3476_v1 = vadd.f32 %v3475_v56, %v3348_v55  ;;  %v3222_v2 = vadd.f32 %v4564_v36, %v2816_v58  ;;  %v2819_v14 = vadd.f32 %v5210_v34, %v2818_v62  ;;  %v5186_v55 = vld [vmem:[%s5507_s19 + $0x28] ss:$16 sps:$4 sm:$0xff]   ;;  %v5191_v56 = vld [vmem:[%s5507_s19 + $0x4c] ss:$16 sps:$4 sm:$0xff]  }
 0x3b0   : > { %v3225_v7 = vadd.f32 %v4569_v61, %v2827_v60  ;;  %v3352_v46 = vmax.f32 %v3224_v3, 0.0  ;;  %v5189_v57 = vld [vmem:[%s5507_s19 + $0x48] ss:$16 sps:$4 sm:$0xff]   ;;  %v5194_v58 = vld [vmem:[%s5507_s19 + $0x6c] ss:$16 sps:$4 sm:$0xff]  }
 0x3b1   : > { %v3350_v4 = vmax.f32 %v3222_v2, 0.0  ;;  %v3477_v6 = vadd.f32 %v3476_v1, %v3349_v63  ;;  %v3223_v16 = vadd.f32 %v4565_v54, %v2819_v14  ;;  %v5188_v54 = vld [vmem:[%s5507_s19 + $0x2c] ss:$16 sps:$4 sm:$0xff]   ;;  %v5192_v59 = vld [vmem:[%s5507_s19 + $0x68] ss:$16 sps:$4 sm:$0xff]  }
 0x3b2   : > { %v3353_v22 = vmax.f32 %v3225_v7, 0.0  ;;  %v5197_v60 = vld [vmem:[%s5507_s19 + $0x8c] ss:$16 sps:$4 sm:$0xff]   ;;  %v5195_v61 = vld [vmem:[%s5507_s19 + $0x88] ss:$16 sps:$4 sm:$0xff]  }
 0x3b3   : > { %v3478_v50 = vadd.f32 %v3477_v6, %v3350_v4  ;;  %v3351_v51 = vmax.f32 %v3223_v16, 0.0  ;;  %v4855_v8 = vpop.f32.mrb[176].mxu1  ;;  %v5198_v62 = vld [vmem:[%s5507_s19 + $0xa8] ss:$16 sps:$4 sm:$0xff]   ;;  %v5203_v63 = vld [vmem:[%s5507_s19 + $0xcc] ss:$16 sps:$4 sm:$0xff]  }
 0x3b4   : > { %v2831_v10 = vpop.f32.mrb[177].mxu1  ;;  %v2840_v19 = vadd.f32 %v5210_v34, %v4855_v8  ;;  %v5201_v1 = vld [vmem:[%s5507_s19 + $0xc8] ss:$16 sps:$4 sm:$0xff]   ;;  %v5206_v2 = vld [vmem:[%s5507_s19 + $0xec] ss:$16 sps:$4 sm:$0xff]   ;;  %v3695_v6 = vshrl.u32 %v3694_v15, 7 }
 0x3b5   : > { %v3479_v47 = vadd.f32 %v3478_v50, %v3351_v51  ;;  %v2832_v20 = vadd.f32 %v5210_v34, %v2831_v10  ;;  %v4856_v21 = vpop.f32.mrb[178].mxu1  ;;  %v5204_v14 = vld [vmem:[%s5507_s19 + $0xe8] ss:$16 sps:$4 sm:$0xff]   ;;  %v5309_v3 = vmov 1983009808  }
 0x3b6   : > { %v2834_v24 = vpop.f32.mrb[179].mxu1  ;;  %v2843_v27 = vadd.f32 %v5210_v34, %v4856_v21  ;;  %v3228_v29 = vadd.f32 %v4576_v9, %v2840_v19  ;;  %v3820_v4 = vunpack.c.l.s4 %v5309_v3  ;;  %v3696_v17 = vsub.s32 0, %v3695_v6  ;;  %v3532_v7 = vld [vmem:[%s510_s26] sm:$0xf] }
 0x3b7   : > { %v3480_v25 = vadd.f32 %v3479_v47, %v3352_v46  ;;  %v3226_v26 = vadd.f32 %v4572_v18, %v2832_v20  ;;  %v2835_v28 = vadd.f32 %v5210_v34, %v2834_v24  ;;  %v3700_v50 = vsub.s32 1, %v3695_v6 }
 0x3b8   : > { %v3229_v12 = vadd.f32 %v4577_v23, %v2843_v27  ;;  %v3356_v33 = vmax.f32 %v3228_v29, 0.0  ;;  %v3821_v16 = vunpack.c.0.s8 %v3820_v4  ;;  %v3697_v18 = vrot.slane %v3532_v7, %v3696_v17 }
 0x3b9   : > { %v3354_v5 = vmax.f32 %v3226_v26, 0.0  ;;  %v3481_v30 = vadd.f32 %v3480_v25, %v3353_v22  ;;  %v3227_v31 = vadd.f32 %v4573_v11, %v2835_v28  ;;  %v3701_v9 = vrot.slane %v3532_v7, %v3700_v50 }
 0x3ba   : > { %v3357_v37 = vmax.f32 %v3229_v12, 0.0  ;;  %v3824_v51 = vsub.s32 %v3821_v16, %v3695_v6  ;;  %v3798_v11 = vstv %s5289_s30  ;;  %s4321_s30 = sshll.u32 %s5293_s9, 7  ;;  %s5310_s9 = smov [#allocation3]  }
 0x3bb   : > { %v3482_v32 = vadd.f32 %v3481_v30, %v3354_v5  ;;  %v3355_v13 = vmax.f32 %v3227_v31, 0.0  ;;  %vm6109_vm1 = vcmp.eq.s32.totalorder %v3695_v6, %v3798_v11  ;;  %v3704_v5 = vsub.s32 2, %v3695_v6  ;;  %s6126_s20 = scalar_lea.hbm %s6190_s8, %s4321_s30  ;;  %s5215_s22 = sshll.u32 %s5310_s9, 4  ;;  %s5216_s22 = int_to_ptr.vmem [resolvable:$false] %s5215_s22 }
 0x3bc   : > { %v3708_v30 = vsub.s32 3, %v3695_v6  ;;  %s5217_s25 = scalar_lea.vmem %s5216_s22, 256 }
 0x3bd   : > { %v3483_v35 = vadd.f32 %v3482_v32, %v3355_v13  ;;  %v3705_v32 = vrot.slane %v3532_v7, %v3704_v5 }
 0x3be   : > { %v3709_v12 = vrot.slane %v3532_v7, %v3708_v30 }
 0x3bf   : > { %v3484_v38 = vadd.f32 %v3483_v35, %v3356_v33 }
 0x3c1   : > { %v3485_v40 = vadd.f32 %v3484_v38, %v3357_v37 }
 0x3c3   : > { %v3486_v41 = vrot.slane %v3485_v40, 4 }
 0x3c5   : > { %v3487_v42 = vadd.f32 %v3486_v41, %v3485_v40 }
 0x3c7   : > { %v3488_v43 = vrot.slane %v3487_v42, 2 }
 0x3c9   : > { %v3489_v48 = vadd.f32 %v3488_v43, %v3487_v42 }
 0x3cb   : > { %v3490_v34 = vrot.slane %v3489_v48, 1 }
 0x3cd   : > { %v3491_v44 = vadd.f32 %v3490_v34, %v3489_v48 }
 0x3cf   : > { %v3492_v45 = vadd.f32 %v3491_v44, %v3358_v39 }
 0x3d1   : > { %3493 = vst [vmem:[#allocation2] sm:$0x1] %v3492_v45 }
 0x3d8   : > { %v3497_v49 = vld [vmem:[#allocation2] sm:$0x1] }
 0x3d9   : > { %v3498_v36 = vmul.f32 0.0009765625, %v3497_v49 }
 0x3db   : > { %v3499_v53 = vpack.c.bf16 %v3498_v36, %v3498_v36 }
 0x3dd   : > { %3747 = vmatmul.mubr.bf16.vlgmr.msra.gmra.mrb[180].mxu1 %v3499_v53 }
 0x3de   : > { %3756 = vmatpush1.bf16.msra.mxu1 %v5183_v52  ;;  %3787 = vmatprep.mubr.bf16.mxu1 %v5307_v0  ;;  %v5200_v0 = vld [vmem:[%s5507_s19 + $0xac] ss:$16 sps:$4 sm:$0xff]   ;;  %s6105_s19 = scalar_lea.vmem [#allocation3], %s4056_s23 }
 0x3df   : > { %3757 = vmatprep.subr.bf16.mxu1 %v5188_v54  ;;  %v3816_v8 = vld [vmem:[%s6105_s19] sm:$0xff]  ;;  %s3881_s24 = sshll.u32 %s6105_s19, 4  ;;  %s6128_s24 = int_to_ptr.vmem [resolvable:$true] %s3881_s24 }
 0x3e0   : > { %v3825_v10 = vrot.slane %v3816_v8, %v3824_v51  ;;  %v3818_v31 = vcombine.high %v3816_v8, %v3816_v8  ;;  %s5211_s23 = scalar_lea.vmem %s6128_s24, 128  ;;  %p5218_p4 = scmp.lt.s32.totalorder %s6128_s24, %s5216_s22 }
 0x3e1   : > { %p5212_p0 = scmp.ne.s32.totalorder %s6128_s24, %s5211_s23  ;;  %p5219_p5 = scmp.lt.s32.totalorder %s5217_s25, %s5211_s23 }
 0x3e2   : > { %3758 = vmatpush1.bf16.msra.mxu1 %v5186_v55  ;;  %v3833_v23 = vcombine.high %v3825_v10, %v3825_v10  ;;  %v3832_v13 = vrot.slane %v3818_v31, %v3824_v51 }
 0x3e3   : > { %3759 = vmatprep.subr.bf16.mxu1 %v5191_v56  ;;  %p5213_p1 = pnand %p5212_p0, %p5405_p3  ;;  %p5220_p6 = por %p5219_p5, %p5218_p4 }
 0x3e4   : > { %v3834_v41 = vcombine.high %v3832_v13, %v3832_v13 }
 0x3e5   : > { %p5214_p2 = pneg %p5213_p1 }
 0x3e6   : > { %3760 = vmatpush1.bf16.msra.mxu1 %v5189_v57 }
 0x3e7   : > { %3761 = vmatprep.subr.bf16.mxu1 %v5194_v58  ;;  %p5221_p7 = pnand %p5220_p6, %p5214_p2 }
 0x3ea   : > { %3762 = vmatpush1.bf16.msra.mxu1 %v5192_v59 }
 0x3eb   : > { %3763 = vmatprep.subr.bf16.mxu1 %v5197_v60 }
 0x3ee   : > { %3764 = vmatpush1.bf16.msra.mxu1 %v5195_v61 }
 0x3ef   : > { %3765 = vmatprep.subr.bf16.mxu1 %v5200_v0 }
 0x3f2   : > { %3766 = vmatpush1.bf16.msra.mxu1 %v5198_v62 }
 0x3f3   : > { %3767 = vmatprep.subr.bf16.mxu1 %v5203_v63 }
 0x3f6   : > { %3768 = vmatpush1.bf16.msra.mxu1 %v5201_v1 }
 0x3f7   : > { %3769 = vmatprep.subr.bf16.mxu1 %v5206_v2 }
 0x3fa   : > { %3770 = vmatpush1.bf16.msra.mxu1 %v5204_v14 }
 0x3fd   : > { %3788 = vmatmul.mubr.bf16.vlgmr.msra.gmra.mrb[184].mxu1 %v3499_v53 }
 0x4b0   : > { %v3748_v46 = vpop.f32.mrb[180].mxu1 }
 0x4b1   : > { %v3749_v47 = vadd.f32 %v3748_v46, %v3697_v18  ;;  %v3750_v19 = vpop.f32.mrb[181].mxu1 }
 0x4b2   : > { %v3751_v20 = vadd.f32 %v3750_v19, %v3701_v9  ;;  %v3752_v21 = vpop.f32.mrb[182].mxu1 }
 0x4b3   : > { %v3803_v24 = vrot.slane %v3749_v47, %v3696_v17  ;;  %v3753_v25 = vpop.f32.mrb[183].mxu1 }
 0x4b4   : > { %v3807_v26 = vrot.slane %v3751_v20, %v3696_v17 }
 0x4b5   : > { %v3839_v27 = vsel %vm6109_vm1, %v3803_v24, %v3825_v10 }
 0x4b6   : > { %v3840_v28 = vsel %vm6109_vm1, %v3807_v26, %v3833_v23 }
 0x4b7   : > { %v3847_v29 = vcombine.low %v3839_v27, %v3840_v28 }
 0x4b9   : > { %v3855_v45 = vrot.slane %v3847_v29, %v3824_v51 }
 0x4d0   : > { %v3789_v33 = vpop.f32.mrb[184].mxu1 }
 0x4d1   : > { %v3790_v35 = vadd.f32 %v3789_v33, %v3705_v32  ;;  %v3791_v37 = vpop.f32.mrb[185].mxu1 }
 0x4d2   : > { %v3792_v38 = vadd.f32 %v3791_v37, %v3709_v12  ;;  %v3793_v40 = vpop.f32.mrb[186].mxu1 }
 0x4d3   : > { %v3811_v42 = vrot.slane %v3790_v35, %v3696_v17  ;;  %v3794_v43 = vpop.f32.mrb[187].mxu1 }
 0x4d4   : > { %v3815_v48 = vrot.slane %v3792_v38, %v3696_v17 }
 0x4d5   : > { %v3841_v34 = vsel %vm6109_vm1, %v3811_v42, %v3832_v13 }
 0x4d6   : > { %v3842_v39 = vsel %vm6109_vm1, %v3815_v48, %v3834_v41 }
 0x4d7   : > { %v3848_v44 = vcombine.low %v3841_v34, %v3842_v39 }
 0x4d9   : > { %v3862_v49 = vrot.slane %v3848_v44, %v3824_v51 }
 0x4db   : > { %v3863_v36 = vcombine.low %v3855_v45, %v3862_v49 }
 0x4dd   : > { %3865 = vst [vmem:[%s6105_s19] sm:$0xff] %v3863_v36 }
 0x4de   : > { %5224 = shalt.err (!%p5221_p7)
}
 0x4df   : > { %s5225_s0 = scalar_lea.hbm %s6126_s20, 128  ;;  %s5229_s30 = scalar_lea.hbm %s6190_s8, 512 }
 0x4e0   : > { %p5226_p8 = scmp.ne.s32.totalorder %s6126_s20, %s5225_s0  ;;  %p5230_p12 = scmp.lt.u32.totalorder %s6126_s20, %s6190_s8 }
 0x4e1   : > { %p5231_p13 = scmp.lt.u32.totalorder %s5229_s30, %s5225_s0  ;;  %p5233_p1 = scmp.lt.u32.totalorder %s5225_s0, %s6126_s20 }
 0x4e2   : > { %p5227_p10 = pnand %p5226_p8, %p5405_p3 }
 0x4e3   : > { %p5232_p0 = por %p5231_p13, %p5230_p12 }
 0x4e4   : > { %p5228_p11 = pneg %p5227_p10 }
 0x4e5   : > { %p5234_p2 = por %p5233_p1, %p5232_p0 }
 0x4e7   : > { %p5235_p4 = pnand %p5234_p2, %p5228_p11 }
 0x4e9   : > { %5238 = shalt.err (!%p5235_p4)
}
 0x4ea   : > { %4876 = dma.vmem_to_hbm [thread:$0]  (%p5405_p3), %s6128_s24, 128, %s6126_s20, %s3867_s2  }
 0x4eb PF: > { %p4882_p5 = scmp.ge.s32.totalorder %s5305_s12, 2  ;;  %s3893_s23 = sand.u32 1, %s5277_s27  }
 0x4ec   : > { %s3894_s9 = scalar_lea.sflag [#allocation4], %s3893_s23 }
 0x4ed   : > { %p4879_p6 = pnand %p4882_p5, %p5415_p9 }
 0x4ef   : > { %5272 = dma.done.wait (!%p4879_p6), %s3894_s9, 128  }
 0x4f0   : > { %5274 = vsyncadd (!%p4879_p6), %s3894_s9, 4294967168  ;;  %s21_s12 = sadd.s32 1, %s5305_s12   ;;  %s6199_s27 = smov %s5281_s28 }
 0x4f1   : > { %p18_p7 = scmp.ge.s32.totalorder %s21_s12, 10   ;;  %s6200_s28 = smov %s5285_s29 }
 0x4f2   : > { %s6201_s29 = smov %s5423_s21  ;;  %s6202_s30 = smov %s5297_s10 }
 0x4f3   : > { %s6203_s9 = smov %s5301_s11  ;;  %s6204_s10 = smov %s6207_s15 }
 0x4f4   : > { %s6205_s11 = smov %s6211_s16  ;;  %20 = sbr.rel (!%p18_p7) target bundleno = 8 (0x8), region = 116 }
 0x4fb   :  { %3899 = vsyncpa [#allocation4], 1 }
 0x4fc   :  { %3901 = vsyncpa [#allocation4 + $0x1], 1 }

</bundles_post_ra>
